<compile_context>
chip_gen: v5e
topology: v5e:2x2
jax: 0.10.0
libtpu: 0.0.40
codegen_flags: <defaults>
</compile_context>

<pallas_src>
import numpy as np
import jax
import jax.numpy as jnp
from jax.experimental import pallas as pl
from jax.experimental.pallas import tpu as pltpu


# ---------------- geometry: per-image bands / packed widths ------------------
# conv1: 5x5,  1->10 : 28 -> 24 -> pool -> 12
# conv2: 5x5, 10->20 : 12 ->  8 -> pool ->  4
# conv3: 3x3, 20->50 :  4 ->  2 ; torch flatten (NCHW) -> 200

_BLOCK_B = 8          # images per grid step (raise to 16/32 for more amortization)
_BAND = 32            # per-image row band (28 rows + 4 zero pad), multiple of 8
_W_PAD = 32           # input width 28 -> 32 (zero pad)
_C1_N = 256           # conv1 packed out width: cols 10*x+c, x<24, c<10 -> 240 -> 256
_C2_N = 256           # conv2 packed out width: cols 20*x+c, x<8,  c<20 -> 160 -> 256
_C3_N = 128           # conv3 packed out width: cols 50*x+c, x<2,  c<50 -> 100 -> 128
_N_OUT = 200          # real flatten width (2*2*50)
_N_OUT_PAD = 256      # lane-dense padded output width

_PK_ORDER = ("m1", "b1", "m2", "b2", "m3", "b3", "q", "s")


# ------------------------------ Pallas kernel --------------------------------

def _conv_relu(lhs_bf16, m_ref, b_ref, row_stride):
    """Valid conv, stride 1, on the row-stacked packed layout.

    H[y] = sum_i A[y + i*row_stride] @ M_i  is computed as
    sum_i roll_up(A @ M_i, i*row_stride): one shared bf16 LHS (cast hoisted),
    kh MXU matmuls, kh-1 cheap sublane rolls of the f32 outputs, then
    f32 bias + ReLU.  Rows whose window crosses an image band are garbage and
    are never read downstream."""
    kh = m_ref.shape[0]
    rows = lhs_bf16.shape[0]
    acc = jnp.dot(lhs_bf16, m_ref[0], preferred_element_type=jnp.float32)
    for i in range(1, kh):
        u = jnp.dot(lhs_bf16, m_ref[i], preferred_element_type=jnp.float32)
        acc = acc + pltpu.roll(u, rows - i * row_stride, axis=0)   # u[y+i*s]
    return jnp.maximum(acc + b_ref[...], 0.0)


def _pool2x2(h, row_shift, col_shift):
    """2x2 max-pool without compaction: elementwise max with a row-rolled and a
    lane-rolled copy (VPU + XLU only).  Valid results live at every
    2*row_shift-th row and every 2*col_shift-th packed column; the next layer's
    Toeplitz matrix reads exactly those positions."""
    rows, cols = h.shape
    r = jnp.maximum(h, pltpu.roll(h, rows - row_shift, axis=0))     # h[y+rs]
    return jnp.maximum(r, pltpu.roll(r, cols - col_shift, axis=1))  # r[:, c+cs]


def _mnist_fused_kernel(x_ref, m1_ref, b1_ref, m2_ref, b2_ref,
                        m3_ref, b3_ref, q_ref, s_ref, o_ref):
    a0 = x_ref[...]                                            # (B*32, 32) bf16
    h1 = _conv_relu(a0, m1_ref, b1_ref, row_stride=1)          # (B*32, 256) f32
    p1 = _pool2x2(h1, row_shift=1, col_shift=10)               # valid @ rows%2==0
    h2 = _conv_relu(p1.astype(jnp.bfloat16), m2_ref, b2_ref, row_stride=2)
    p2 = _pool2x2(h2, row_shift=2, col_shift=20)               # valid @ rows%4==0
    h3 = _conv_relu(p2.astype(jnp.bfloat16), m3_ref, b3_ref, row_stride=4)
    # Torch NCHW flatten: pick row b*32 (oy=0) and b*32+4 (oy=1) of every band,
    # permute the packed (ox, co) columns into co*4 + oy*2 + ox.  Exact (0/1
    # matrices, f32 matmuls) and lane-dense (256-wide padded output).
    r0 = jnp.dot(s_ref[0], h3, preferred_element_type=jnp.float32)   # (B, 128)
    r1 = jnp.dot(s_ref[1], h3, preferred_element_type=jnp.float32)
    o_ref[...] = (jnp.dot(r0, q_ref[0], preferred_element_type=jnp.float32) +
                  jnp.dot(r1, q_ref[1], preferred_element_type=jnp.float32))


# ----------------------- one-time parameter packing --------------------------

def _conv_toeplitz(w, w_in, in_cstride, k_rows, n_cols):
    """Banded matrices M_i so that conv == sum_i A[y+i*stride] @ M_i on the
    packed layout.  Input columns are read at `in_cstride*x + cin` (the sparse
    layout left behind by the previous pool); output columns are written at
    `cout*x + cout_idx` (dense)."""
    cout, cin, kh, kw = w.shape
    w_out = w_in - kw + 1
    m = np.zeros((kh, k_rows, n_cols), np.float32)
    wt = np.transpose(w, (2, 3, 1, 0))                  # (kh, kw, cin, cout)
    for i in range(kh):
        for j in range(kw):
            for xo in range(w_out):
                xi = xo + j
                m[i, in_cstride * xi:in_cstride * xi + cin,
                  cout * xo:cout * xo + cout] = wt[i, j]
    return m


def _pack_bias(b, w_out, n_cols):
    v = np.zeros((1, n_cols), np.float32)
    v[0, :w_out * b.shape[0]] = np.tile(b, w_out)
    return v


def _flatten_perm():
    """Q[oy]: conv3 packed column 50*ox+co -> torch flatten index co*4+oy*2+ox."""
    q = np.zeros((2, _C3_N, _N_OUT_PAD), np.float32)
    for oy in range(2):
        for ox in range(2):
            for co in range(50):
                q[oy, 50 * ox + co, co * 4 + oy * 2 + ox] = 1.0
    return q


def _row_select():
    """S[oy]: pick stacked row b*_BAND + 4*oy of each image band."""
    s = np.zeros((2, _BLOCK_B, _BLOCK_B * _BAND), np.float32)
    idx = np.arange(_BLOCK_B)
    s[0, idx, idx * _BAND] = 1.0
    s[1, idx, idx * _BAND + 4] = 1.0
    return s


def pack_params(params):
    """Repack torch-layout conv params into the kernel's matrices ONCE.
    Conv matrices in bf16 (MXU inputs); biases / selectors stay f32."""
    w1 = np.asarray(params["w1"], np.float32)
    b1 = np.asarray(params["b1"], np.float32)
    w2 = np.asarray(params["w2"], np.float32)
    b2 = np.asarray(params["b2"], np.float32)
    w3 = np.asarray(params["w3"], np.float32)
    b3 = np.asarray(params["b3"], np.float32)
    bf16 = jnp.bfloat16
    return {
        # conv1 reads the raw 32-wide input columns (stride 1, cin 1).
        "m1": jnp.asarray(_conv_toeplitz(w1, w_in=28, in_cstride=1,
                                         k_rows=_W_PAD, n_cols=_C1_N), bf16),
        "b1": jnp.asarray(_pack_bias(b1, 24, _C1_N)),
        # conv2 reads pool1's sparse columns 20*x + cin (cin < 10).
        "m2": jnp.asarray(_conv_toeplitz(w2, w_in=12, in_cstride=20,
                                         k_rows=_C1_N, n_cols=_C2_N), bf16),
        "b2": jnp.asarray(_pack_bias(b2, 8, _C2_N)),
        # conv3 reads pool2's sparse columns 40*x + cin (cin < 20).
        "m3": jnp.asarray(_conv_toeplitz(w3, w_in=4, in_cstride=40,
                                         k_rows=_C2_N, n_cols=_C3_N), bf16),
        "b3": jnp.asarray(_pack_bias(b3, 2, _C3_N)),
        "q": jnp.asarray(_flatten_perm(), jnp.float32),
        "s": jnp.asarray(_row_select(), jnp.float32),
    }


# --------------------------------- forward -----------------------------------

def mnist_net_forward(x_nchw, pk):
    """Fused forward: single pallas_call, _BLOCK_B images per grid step."""
    n, c, h, w = x_nchw.shape
    assert (c, h, w) == (1, 28, 28), x_nchw.shape
    n_pad = -(-n // _BLOCK_B) * _BLOCK_B

    # Host-side prep: bf16 cast (hoisted out of the kernel), pad each image to
    # a 32x32 band, pad the batch to a multiple of B, stack rows.
    x = x_nchw.reshape(n, 28, 28).astype(jnp.bfloat16)
    x = jnp.pad(x, ((0, n_pad - n), (0, _BAND - 28), (0, _W_PAD - 28)))
    xs = x.reshape(n_pad * _BAND, _W_PAD)              # (n_pad*32, 32) bf16

    def _const_spec(a):
        zeros = (0,) * a.ndim
        return pl.BlockSpec(a.shape, lambda i, _z=zeros: _z)

    packed = [pk[k] for k in _PK_ORDER]
    out = pl.pallas_call(
        _mnist_fused_kernel,
        out_shape=jax.ShapeDtypeStruct((n_pad, _N_OUT_PAD), jnp.float32),
        grid=(n_pad // _BLOCK_B,),
        in_specs=[pl.BlockSpec((_BLOCK_B * _BAND, _W_PAD), lambda i: (i, 0))]
                 + [_const_spec(a) for a in packed],
        out_specs=pl.BlockSpec((_BLOCK_B, _N_OUT_PAD), lambda i: (i, 0)),
        compiler_params=pltpu.CompilerParams(
            dimension_semantics=("parallel",)),   # shard batch over TCs (v7x)
    )(xs, *packed)
    return out[:n, :_N_OUT]                       # drop batch/lane padding


# --------------------------- params / reference ------------------------------

def init_params(key):
    """Deterministic torch-like (uniform +/- 1/sqrt(fan_in)) init."""
    ks = jax.random.split(key, 6)

    def conv_init(kw_key, kb_key, cout, cin, k):
        bound = 1.0 / (cin * k * k) ** 0.5
        w = jax.random.uniform(kw_key, (cout, cin, k, k), jnp.float32,
                               -bound, bound)
        b = jax.random.uniform(kb_key, (cout,), jnp.float32, -bound, bound)
        return w, b

    w1, b1 = conv_init(ks[0], ks[1], 10, 1, 5)
    w2, b2 = conv_init(ks[2], ks[3], 20, 10, 5)
    w3, b3 = conv_init(ks[4], ks[5], 50, 20, 3)
    return {"w1": w1, "b1": b1, "w2": w2, "b2": b2, "w3": w3, "b3": b3}


def reference_forward(x_nchw, params, dtype=jnp.float32):
    """lax.conv reference.  dtype=bfloat16 reproduces the kernel's quantization
    points (bf16 matmul inputs, f32 accumulate/epilogue) for a tight check."""
    def q(a):
        return a.astype(dtype).astype(jnp.float32)

    def conv(x, w, b):
        y = jax.lax.conv_general_dilated(
            x.astype(dtype), w.astype(dtype), (1, 1), "VALID",
            dimension_numbers=("NCHW", "OIHW", "NCHW"),
            preferred_element_type=jnp.float32)
        return q(jax.nn.relu(y + b[None, :, None, None]))

    def pool(x):
        return jax.lax.reduce_window(x, -jnp.inf, jax.lax.max,
                                     (1, 1, 2, 2), (1, 1, 2, 2), "VALID")

    x = x_nchw.astype(jnp.float32)
    x = pool(conv(x, params["w1"], params["b1"]))
    x = pool(conv(x, params["w2"], params["b2"]))
    x = conv(x, params["w3"], params["b3"])
    return x.reshape(-1, 2 * 2 * 50)


# ----------------------------------- main -------------------------------------

if __name__ == "__main__":
    key = jax.random.PRNGKey(0)
    k_x, k_p = jax.random.split(key)

    # MNIST-shaped input; batch 16 -> grid = 2 blocks of 8 images.
    x = jax.random.normal(k_x, (16, 1, 28, 28), dtype=jnp.float32)
    params = init_params(k_p)
    packed = pack_params(params)             # one-time repack, outside the jit

    fwd = jax.jit(mnist_net_forward)
    out = jax.block_until_ready(fwd(x, packed))
    assert out.shape == (16, 2 * 2 * 50), out.shape

    # Tight check vs a reference quantized at the same points as the kernel.
    ref_q = jax.block_until_ready(reference_forward(x, params, jnp.bfloat16))
    err_q = float(jnp.max(jnp.abs(out - ref_q)))
    assert jnp.allclose(out, ref_q, atol=2e-2, rtol=2e-2), err_q

    # Loose sanity check vs the pure-f32 reference (bf16 MXU inputs only).
    ref_f = jax.block_until_ready(reference_forward(x, params, jnp.float32))
    err_f = float(jnp.max(jnp.abs(out - ref_f)))
    assert jnp.allclose(out, ref_f, atol=6e-2, rtol=6e-2), err_f

    print("KERNEL_OK")
</pallas_src>

<mosaic_0001>
module attributes {stable_mosaic.version = 11 : i64} {
  func.func @_mnist_fused_kernel(%arg0: i32, %arg1: memref<256x32xbf16, #tpu.memory_space<vmem>>, %arg2: memref<5x32x256xbf16, #tpu.memory_space<vmem>>, %arg3: memref<1x256xf32, #tpu.memory_space<vmem>>, %arg4: memref<5x256x256xbf16, #tpu.memory_space<vmem>>, %arg5: memref<1x256xf32, #tpu.memory_space<vmem>>, %arg6: memref<3x256x128xbf16, #tpu.memory_space<vmem>>, %arg7: memref<1x128xf32, #tpu.memory_space<vmem>>, %arg8: memref<2x128x256xf32, #tpu.memory_space<vmem>>, %arg9: memref<2x8x256xf32, #tpu.memory_space<vmem>>, %arg10: memref<8x256xf32, #tpu.memory_space<vmem>>) attributes {dimension_semantics = [#tpu.dimension_semantics<parallel>], iteration_bounds = array<i64: 2>, scalar_prefetch = 0 : i64, scratch_operands = 0 : i64, tpu.core_type = #tpu.core_type<tc>, window_params = [{transform_indices = @transform_0, window_bounds = array<i64: 256, 32>}, {pipeline_mode = #tpu.pipeline_mode<synchronous>, transform_indices = @transform_1, window_bounds = array<i64: 5, 32, 256>}, {pipeline_mode = #tpu.pipeline_mode<synchronous>, transform_indices = @transform_2, window_bounds = array<i64: 1, 256>}, {pipeline_mode = #tpu.pipeline_mode<synchronous>, transform_indices = @transform_3, window_bounds = array<i64: 5, 256, 256>}, {pipeline_mode = #tpu.pipeline_mode<synchronous>, transform_indices = @transform_4, window_bounds = array<i64: 1, 256>}, {pipeline_mode = #tpu.pipeline_mode<synchronous>, transform_indices = @transform_5, window_bounds = array<i64: 3, 256, 128>}, {pipeline_mode = #tpu.pipeline_mode<synchronous>, transform_indices = @transform_6, window_bounds = array<i64: 1, 128>}, {pipeline_mode = #tpu.pipeline_mode<synchronous>, transform_indices = @transform_7, window_bounds = array<i64: 2, 128, 256>}, {pipeline_mode = #tpu.pipeline_mode<synchronous>, transform_indices = @transform_8, window_bounds = array<i64: 2, 8, 256>}, {transform_indices = @transform_9, window_bounds = array<i64: 8, 256>}]} {
    %c0 = arith.constant 0 : index
    %c0_0 = arith.constant 0 : index
    %0 = vector.load %arg1[%c0, %c0_0] : memref<256x32xbf16, #tpu.memory_space<vmem>>, vector<256x32xbf16>
    %c0_1 = arith.constant 0 : index
    %c0_2 = arith.constant 0 : index
    %c0_3 = arith.constant 0 : index
    %1 = vector.load %arg2[%c0_1, %c0_2, %c0_3] : memref<5x32x256xbf16, #tpu.memory_space<vmem>>, vector<1x32x256xbf16>
    %2 = vector.shape_cast %1 : vector<1x32x256xbf16> to vector<32x256xbf16>
    %cst = arith.constant dense<0.000000e+00> : vector<256x256xf32>
    %3 = tpu.matmul %0, %2, %cst {dimension_numbers = #tpu.dot_dimension_numbers<[1], [0], [0], [1], [0, 0, 1, 1], [], []>} : vector<256x32xbf16>, vector<32x256xbf16>, vector<256x256xf32> -> vector<256x256xf32>
    %c1 = arith.constant 1 : index
    %c0_4 = arith.constant 0 : index
    %c0_5 = arith.constant 0 : index
    %4 = vector.load %arg2[%c1, %c0_4, %c0_5] : memref<5x32x256xbf16, #tpu.memory_space<vmem>>, vector<1x32x256xbf16>
    %5 = vector.shape_cast %4 : vector<1x32x256xbf16> to vector<32x256xbf16>
    %cst_6 = arith.constant dense<0.000000e+00> : vector<256x256xf32>
    %6 = tpu.matmul %0, %5, %cst_6 {dimension_numbers = #tpu.dot_dimension_numbers<[1], [0], [0], [1], [0, 0, 1, 1], [], []>} : vector<256x32xbf16>, vector<32x256xbf16>, vector<256x256xf32> -> vector<256x256xf32>
    %c255_i32 = arith.constant 255 : i32
    %7 = tpu.dynamic_rotate %6 by %c255_i32 dim 0 : vector<256x256xf32>, i32 -> vector<256x256xf32>
    %8 = arith.addf %3, %7 : vector<256x256xf32>
    %c2 = arith.constant 2 : index
    %c0_7 = arith.constant 0 : index
    %c0_8 = arith.constant 0 : index
    %9 = vector.load %arg2[%c2, %c0_7, %c0_8] : memref<5x32x256xbf16, #tpu.memory_space<vmem>>, vector<1x32x256xbf16>
    %10 = vector.shape_cast %9 : vector<1x32x256xbf16> to vector<32x256xbf16>
    %cst_9 = arith.constant dense<0.000000e+00> : vector<256x256xf32>
    %11 = tpu.matmul %0, %10, %cst_9 {dimension_numbers = #tpu.dot_dimension_numbers<[1], [0], [0], [1], [0, 0, 1, 1], [], []>} : vector<256x32xbf16>, vector<32x256xbf16>, vector<256x256xf32> -> vector<256x256xf32>
    %c254_i32 = arith.constant 254 : i32
    %12 = tpu.dynamic_rotate %11 by %c254_i32 dim 0 : vector<256x256xf32>, i32 -> vector<256x256xf32>
    %13 = arith.addf %8, %12 : vector<256x256xf32>
    %c3 = arith.constant 3 : index
    %c0_10 = arith.constant 0 : index
    %c0_11 = arith.constant 0 : index
    %14 = vector.load %arg2[%c3, %c0_10, %c0_11] : memref<5x32x256xbf16, #tpu.memory_space<vmem>>, vector<1x32x256xbf16>
    %15 = vector.shape_cast %14 : vector<1x32x256xbf16> to vector<32x256xbf16>
    %cst_12 = arith.constant dense<0.000000e+00> : vector<256x256xf32>
    %16 = tpu.matmul %0, %15, %cst_12 {dimension_numbers = #tpu.dot_dimension_numbers<[1], [0], [0], [1], [0, 0, 1, 1], [], []>} : vector<256x32xbf16>, vector<32x256xbf16>, vector<256x256xf32> -> vector<256x256xf32>
    %c253_i32 = arith.constant 253 : i32
    %17 = tpu.dynamic_rotate %16 by %c253_i32 dim 0 : vector<256x256xf32>, i32 -> vector<256x256xf32>
    %18 = arith.addf %13, %17 : vector<256x256xf32>
    %c4 = arith.constant 4 : index
    %c0_13 = arith.constant 0 : index
    %c0_14 = arith.constant 0 : index
    %19 = vector.load %arg2[%c4, %c0_13, %c0_14] : memref<5x32x256xbf16, #tpu.memory_space<vmem>>, vector<1x32x256xbf16>
    %20 = vector.shape_cast %19 : vector<1x32x256xbf16> to vector<32x256xbf16>
    %cst_15 = arith.constant dense<0.000000e+00> : vector<256x256xf32>
    %21 = tpu.matmul %0, %20, %cst_15 {dimension_numbers = #tpu.dot_dimension_numbers<[1], [0], [0], [1], [0, 0, 1, 1], [], []>} : vector<256x32xbf16>, vector<32x256xbf16>, vector<256x256xf32> -> vector<256x256xf32>
    %c252_i32 = arith.constant 252 : i32
    %22 = tpu.dynamic_rotate %21 by %c252_i32 dim 0 : vector<256x256xf32>, i32 -> vector<256x256xf32>
    %23 = arith.addf %18, %22 : vector<256x256xf32>
    %c0_16 = arith.constant 0 : index
    %c0_17 = arith.constant 0 : index
    %24 = vector.load %arg3[%c0_16, %c0_17] : memref<1x256xf32, #tpu.memory_space<vmem>>, vector<1x256xf32>
    %25 = vector.broadcast %24 : vector<1x256xf32> to vector<256x256xf32>
    %26 = arith.addf %23, %25 : vector<256x256xf32>
    %cst_18 = arith.constant 0.000000e+00 : f32
    %27 = vector.broadcast %cst_18 : f32 to vector<256x256xf32>
    %28 = arith.maximumf %26, %27 : vector<256x256xf32>
    %c255_i32_19 = arith.constant 255 : i32
    %29 = tpu.dynamic_rotate %28 by %c255_i32_19 dim 0 : vector<256x256xf32>, i32 -> vector<256x256xf32>
    %30 = arith.maximumf %28, %29 : vector<256x256xf32>
    %c246_i32 = arith.constant 246 : i32
    %31 = tpu.dynamic_rotate %30 by %c246_i32 dim 1 : vector<256x256xf32>, i32 -> vector<256x256xf32>
    %32 = arith.maximumf %30, %31 : vector<256x256xf32>
    %33 = arith.truncf %32 : vector<256x256xf32> to vector<256x256xbf16>
    %c0_20 = arith.constant 0 : index
    %c0_21 = arith.constant 0 : index
    %c0_22 = arith.constant 0 : index
    %34 = vector.load %arg4[%c0_20, %c0_21, %c0_22] : memref<5x256x256xbf16, #tpu.memory_space<vmem>>, vector<1x256x256xbf16>
    %35 = vector.shape_cast %34 : vector<1x256x256xbf16> to vector<256x256xbf16>
    %cst_23 = arith.constant dense<0.000000e+00> : vector<256x256xf32>
    %36 = tpu.matmul %33, %35, %cst_23 {dimension_numbers = #tpu.dot_dimension_numbers<[1], [0], [0], [1], [0, 0, 1, 1], [], []>} : vector<256x256xbf16>, vector<256x256xbf16>, vector<256x256xf32> -> vector<256x256xf32>
    %c1_24 = arith.constant 1 : index
    %c0_25 = arith.constant 0 : index
    %c0_26 = arith.constant 0 : index
    %37 = vector.load %arg4[%c1_24, %c0_25, %c0_26] : memref<5x256x256xbf16, #tpu.memory_space<vmem>>, vector<1x256x256xbf16>
    %38 = vector.shape_cast %37 : vector<1x256x256xbf16> to vector<256x256xbf16>
    %cst_27 = arith.constant dense<0.000000e+00> : vector<256x256xf32>
    %39 = tpu.matmul %33, %38, %cst_27 {dimension_numbers = #tpu.dot_dimension_numbers<[1], [0], [0], [1], [0, 0, 1, 1], [], []>} : vector<256x256xbf16>, vector<256x256xbf16>, vector<256x256xf32> -> vector<256x256xf32>
    %c254_i32_28 = arith.constant 254 : i32
    %40 = tpu.dynamic_rotate %39 by %c254_i32_28 dim 0 : vector<256x256xf32>, i32 -> vector<256x256xf32>
    %41 = arith.addf %36, %40 : vector<256x256xf32>
    %c2_29 = arith.constant 2 : index
    %c0_30 = arith.constant 0 : index
    %c0_31 = arith.constant 0 : index
    %42 = vector.load %arg4[%c2_29, %c0_30, %c0_31] : memref<5x256x256xbf16, #tpu.memory_space<vmem>>, vector<1x256x256xbf16>
    %43 = vector.shape_cast %42 : vector<1x256x256xbf16> to vector<256x256xbf16>
    %cst_32 = arith.constant dense<0.000000e+00> : vector<256x256xf32>
    %44 = tpu.matmul %33, %43, %cst_32 {dimension_numbers = #tpu.dot_dimension_numbers<[1], [0], [0], [1], [0, 0, 1, 1], [], []>} : vector<256x256xbf16>, vector<256x256xbf16>, vector<256x256xf32> -> vector<256x256xf32>
    %c252_i32_33 = arith.constant 252 : i32
    %45 = tpu.dynamic_rotate %44 by %c252_i32_33 dim 0 : vector<256x256xf32>, i32 -> vector<256x256xf32>
    %46 = arith.addf %41, %45 : vector<256x256xf32>
    %c3_34 = arith.constant 3 : index
    %c0_35 = arith.constant 0 : index
    %c0_36 = arith.constant 0 : index
    %47 = vector.load %arg4[%c3_34, %c0_35, %c0_36] : memref<5x256x256xbf16, #tpu.memory_space<vmem>>, vector<1x256x256xbf16>
    %48 = vector.shape_cast %47 : vector<1x256x256xbf16> to vector<256x256xbf16>
    %cst_37 = arith.constant dense<0.000000e+00> : vector<256x256xf32>
    %49 = tpu.matmul %33, %48, %cst_37 {dimension_numbers = #tpu.dot_dimension_numbers<[1], [0], [0], [1], [0, 0, 1, 1], [], []>} : vector<256x256xbf16>, vector<256x256xbf16>, vector<256x256xf32> -> vector<256x256xf32>
    %c250_i32 = arith.constant 250 : i32
    %50 = tpu.dynamic_rotate %49 by %c250_i32 dim 0 : vector<256x256xf32>, i32 -> vector<256x256xf32>
    %51 = arith.addf %46, %50 : vector<256x256xf32>
    %c4_38 = arith.constant 4 : index
    %c0_39 = arith.constant 0 : index
    %c0_40 = arith.constant 0 : index
    %52 = vector.load %arg4[%c4_38, %c0_39, %c0_40] : memref<5x256x256xbf16, #tpu.memory_space<vmem>>, vector<1x256x256xbf16>
    %53 = vector.shape_cast %52 : vector<1x256x256xbf16> to vector<256x256xbf16>
    %cst_41 = arith.constant dense<0.000000e+00> : vector<256x256xf32>
    %54 = tpu.matmul %33, %53, %cst_41 {dimension_numbers = #tpu.dot_dimension_numbers<[1], [0], [0], [1], [0, 0, 1, 1], [], []>} : vector<256x256xbf16>, vector<256x256xbf16>, vector<256x256xf32> -> vector<256x256xf32>
    %c248_i32 = arith.constant 248 : i32
    %55 = tpu.dynamic_rotate %54 by %c248_i32 dim 0 : vector<256x256xf32>, i32 -> vector<256x256xf32>
    %56 = arith.addf %51, %55 : vector<256x256xf32>
    %c0_42 = arith.constant 0 : index
    %c0_43 = arith.constant 0 : index
    %57 = vector.load %arg5[%c0_42, %c0_43] : memref<1x256xf32, #tpu.memory_space<vmem>>, vector<1x256xf32>
    %58 = vector.broadcast %57 : vector<1x256xf32> to vector<256x256xf32>
    %59 = arith.addf %56, %58 : vector<256x256xf32>
    %cst_44 = arith.constant 0.000000e+00 : f32
    %60 = vector.broadcast %cst_44 : f32 to vector<256x256xf32>
    %61 = arith.maximumf %59, %60 : vector<256x256xf32>
    %c254_i32_45 = arith.constant 254 : i32
    %62 = tpu.dynamic_rotate %61 by %c254_i32_45 dim 0 : vector<256x256xf32>, i32 -> vector<256x256xf32>
    %63 = arith.maximumf %61, %62 : vector<256x256xf32>
    %c236_i32 = arith.constant 236 : i32
    %64 = tpu.dynamic_rotate %63 by %c236_i32 dim 1 : vector<256x256xf32>, i32 -> vector<256x256xf32>
    %65 = arith.maximumf %63, %64 : vector<256x256xf32>
    %66 = arith.truncf %65 : vector<256x256xf32> to vector<256x256xbf16>
    %c0_46 = arith.constant 0 : index
    %c0_47 = arith.constant 0 : index
    %c0_48 = arith.constant 0 : index
    %67 = vector.load %arg6[%c0_46, %c0_47, %c0_48] : memref<3x256x128xbf16, #tpu.memory_space<vmem>>, vector<1x256x128xbf16>
    %68 = vector.shape_cast %67 : vector<1x256x128xbf16> to vector<256x128xbf16>
    %cst_49 = arith.constant dense<0.000000e+00> : vector<256x128xf32>
    %69 = tpu.matmul %66, %68, %cst_49 {dimension_numbers = #tpu.dot_dimension_numbers<[1], [0], [0], [1], [0, 0, 1, 1], [], []>} : vector<256x256xbf16>, vector<256x128xbf16>, vector<256x128xf32> -> vector<256x128xf32>
    %c1_50 = arith.constant 1 : index
    %c0_51 = arith.constant 0 : index
    %c0_52 = arith.constant 0 : index
    %70 = vector.load %arg6[%c1_50, %c0_51, %c0_52] : memref<3x256x128xbf16, #tpu.memory_space<vmem>>, vector<1x256x128xbf16>
    %71 = vector.shape_cast %70 : vector<1x256x128xbf16> to vector<256x128xbf16>
    %cst_53 = arith.constant dense<0.000000e+00> : vector<256x128xf32>
    %72 = tpu.matmul %66, %71, %cst_53 {dimension_numbers = #tpu.dot_dimension_numbers<[1], [0], [0], [1], [0, 0, 1, 1], [], []>} : vector<256x256xbf16>, vector<256x128xbf16>, vector<256x128xf32> -> vector<256x128xf32>
    %c252_i32_54 = arith.constant 252 : i32
    %73 = tpu.dynamic_rotate %72 by %c252_i32_54 dim 0 : vector<256x128xf32>, i32 -> vector<256x128xf32>
    %74 = arith.addf %69, %73 : vector<256x128xf32>
    %c2_55 = arith.constant 2 : index
    %c0_56 = arith.constant 0 : index
    %c0_57 = arith.constant 0 : index
    %75 = vector.load %arg6[%c2_55, %c0_56, %c0_57] : memref<3x256x128xbf16, #tpu.memory_space<vmem>>, vector<1x256x128xbf16>
    %76 = vector.shape_cast %75 : vector<1x256x128xbf16> to vector<256x128xbf16>
    %cst_58 = arith.constant dense<0.000000e+00> : vector<256x128xf32>
    %77 = tpu.matmul %66, %76, %cst_58 {dimension_numbers = #tpu.dot_dimension_numbers<[1], [0], [0], [1], [0, 0, 1, 1], [], []>} : vector<256x256xbf16>, vector<256x128xbf16>, vector<256x128xf32> -> vector<256x128xf32>
    %c248_i32_59 = arith.constant 248 : i32
    %78 = tpu.dynamic_rotate %77 by %c248_i32_59 dim 0 : vector<256x128xf32>, i32 -> vector<256x128xf32>
    %79 = arith.addf %74, %78 : vector<256x128xf32>
    %c0_60 = arith.constant 0 : index
    %c0_61 = arith.constant 0 : index
    %80 = vector.load %arg7[%c0_60, %c0_61] : memref<1x128xf32, #tpu.memory_space<vmem>>, vector<1x128xf32>
    %81 = vector.broadcast %80 : vector<1x128xf32> to vector<256x128xf32>
    %82 = arith.addf %79, %81 : vector<256x128xf32>
    %cst_62 = arith.constant 0.000000e+00 : f32
    %83 = vector.broadcast %cst_62 : f32 to vector<256x128xf32>
    %84 = arith.maximumf %82, %83 : vector<256x128xf32>
    %c0_63 = arith.constant 0 : index
    %c0_64 = arith.constant 0 : index
    %c0_65 = arith.constant 0 : index
    %85 = vector.load %arg9[%c0_63, %c0_64, %c0_65] : memref<2x8x256xf32, #tpu.memory_space<vmem>>, vector<1x8x256xf32>
    %86 = vector.shape_cast %85 : vector<1x8x256xf32> to vector<8x256xf32>
    %cst_66 = arith.constant dense<0.000000e+00> : vector<8x128xf32>
    %87 = tpu.matmul %86, %84, %cst_66 {dimension_numbers = #tpu.dot_dimension_numbers<[1], [0], [0], [1], [0, 0, 1, 1], [], []>} : vector<8x256xf32>, vector<256x128xf32>, vector<8x128xf32> -> vector<8x128xf32>
    %c1_67 = arith.constant 1 : index
    %c0_68 = arith.constant 0 : index
    %c0_69 = arith.constant 0 : index
    %88 = vector.load %arg9[%c1_67, %c0_68, %c0_69] : memref<2x8x256xf32, #tpu.memory_space<vmem>>, vector<1x8x256xf32>
    %89 = vector.shape_cast %88 : vector<1x8x256xf32> to vector<8x256xf32>
    %cst_70 = arith.constant dense<0.000000e+00> : vector<8x128xf32>
    %90 = tpu.matmul %89, %84, %cst_70 {dimension_numbers = #tpu.dot_dimension_numbers<[1], [0], [0], [1], [0, 0, 1, 1], [], []>} : vector<8x256xf32>, vector<256x128xf32>, vector<8x128xf32> -> vector<8x128xf32>
    %c0_71 = arith.constant 0 : index
    %c0_72 = arith.constant 0 : index
    %c0_73 = arith.constant 0 : index
    %91 = vector.load %arg8[%c0_71, %c0_72, %c0_73] : memref<2x128x256xf32, #tpu.memory_space<vmem>>, vector<1x128x256xf32>
    %92 = vector.shape_cast %91 : vector<1x128x256xf32> to vector<128x256xf32>
    %cst_74 = arith.constant dense<0.000000e+00> : vector<8x256xf32>
    %93 = tpu.matmul %87, %92, %cst_74 {dimension_numbers = #tpu.dot_dimension_numbers<[1], [0], [0], [1], [0, 0, 1, 1], [], []>} : vector<8x128xf32>, vector<128x256xf32>, vector<8x256xf32> -> vector<8x256xf32>
    %c1_75 = arith.constant 1 : index
    %c0_76 = arith.constant 0 : index
    %c0_77 = arith.constant 0 : index
    %94 = vector.load %arg8[%c1_75, %c0_76, %c0_77] : memref<2x128x256xf32, #tpu.memory_space<vmem>>, vector<1x128x256xf32>
    %95 = vector.shape_cast %94 : vector<1x128x256xf32> to vector<128x256xf32>
    %cst_78 = arith.constant dense<0.000000e+00> : vector<8x256xf32>
    %96 = tpu.matmul %90, %95, %cst_78 {dimension_numbers = #tpu.dot_dimension_numbers<[1], [0], [0], [1], [0, 0, 1, 1], [], []>} : vector<8x128xf32>, vector<128x256xf32>, vector<8x256xf32> -> vector<8x256xf32>
    %97 = arith.addf %93, %96 : vector<8x256xf32>
    %c0_79 = arith.constant 0 : index
    %c0_80 = arith.constant 0 : index
    %98 = vector.load %arg10[%c0_79, %c0_80] : memref<8x256xf32, #tpu.memory_space<vmem>>, vector<8x256xf32>
    tpu.vector_store %arg10[%c0_79, %c0_80], %97 {strides = array<i32>} : memref<8x256xf32, #tpu.memory_space<vmem>>, vector<8x256xf32>,
    return
  }
  func.func @transform_0(%arg0: i32) -> (i32, i32) {
    %c0_i32 = arith.constant 0 : i32
    %c0_i32_0 = arith.constant 0 : i32
    return %arg0, %c0_i32 : i32, i32
  }
  func.func @transform_1(%arg0: i32) -> (i32, i32, i32) {
    %c0_i32 = arith.constant 0 : i32
    %c0_i32_0 = arith.constant 0 : i32
    %c0_i32_1 = arith.constant 0 : i32
    %c0_i32_2 = arith.constant 0 : i32
    return %c0_i32, %c0_i32_0, %c0_i32_1 : i32, i32, i32
  }
  func.func @transform_2(%arg0: i32) -> (i32, i32) {
    %c0_i32 = arith.constant 0 : i32
    %c0_i32_0 = arith.constant 0 : i32
    %c0_i32_1 = arith.constant 0 : i32
    return %c0_i32, %c0_i32_0 : i32, i32
  }
  func.func @transform_3(%arg0: i32) -> (i32, i32, i32) {
    %c0_i32 = arith.constant 0 : i32
    %c0_i32_0 = arith.constant 0 : i32
    %c0_i32_1 = arith.constant 0 : i32
    %c0_i32_2 = arith.constant 0 : i32
    return %c0_i32, %c0_i32_0, %c0_i32_1 : i32, i32, i32
  }
  func.func @transform_4(%arg0: i32) -> (i32, i32) {
    %c0_i32 = arith.constant 0 : i32
    %c0_i32_0 = arith.constant 0 : i32
    %c0_i32_1 = arith.constant 0 : i32
    return %c0_i32, %c0_i32_0 : i32, i32
  }
  func.func @transform_5(%arg0: i32) -> (i32, i32, i32) {
    %c0_i32 = arith.constant 0 : i32
    %c0_i32_0 = arith.constant 0 : i32
    %c0_i32_1 = arith.constant 0 : i32
    %c0_i32_2 = arith.constant 0 : i32
    return %c0_i32, %c0_i32_0, %c0_i32_1 : i32, i32, i32
  }
  func.func @transform_6(%arg0: i32) -> (i32, i32) {
    %c0_i32 = arith.constant 0 : i32
    %c0_i32_0 = arith.constant 0 : i32
    %c0_i32_1 = arith.constant 0 : i32
    return %c0_i32, %c0_i32_0 : i32, i32
  }
  func.func @transform_7(%arg0: i32) -> (i32, i32, i32) {
    %c0_i32 = arith.constant 0 : i32
    %c0_i32_0 = arith.constant 0 : i32
    %c0_i32_1 = arith.constant 0 : i32
    %c0_i32_2 = arith.constant 0 : i32
    return %c0_i32, %c0_i32_0, %c0_i32_1 : i32, i32, i32
  }
  func.func @transform_8(%arg0: i32) -> (i32, i32, i32) {
    %c0_i32 = arith.constant 0 : i32
    %c0_i32_0 = arith.constant 0 : i32
    %c0_i32_1 = arith.constant 0 : i32
    %c0_i32_2 = arith.constant 0 : i32
    return %c0_i32, %c0_i32_0, %c0_i32_1 : i32, i32, i32
  }
  func.func @transform_9(%arg0: i32) -> (i32, i32) {
    %c0_i32 = arith.constant 0 : i32
    %c0_i32_0 = arith.constant 0 : i32
    return %arg0, %c0_i32 : i32, i32
  }
}

</mosaic_0001>

<bundles_post_ra>
// kernel: mnist_net_forward.1
= control target key start
LH: loop header
LB: loop body
LE: loop exit
PB: predicated region body
PF: predicated region fallthrough
CT: control target
= control target key end

     0   :  { %s16977_s0 = inlined_call_operand.vmem [shape: bf16[512,32], index: 0, kind: input, shape index: {}]   ;;  %s16978_s1 = inlined_call_operand.hbm [shape: bf16[5,32,256], index: 1, kind: input, shape index: {}]   ;;  %s16979_s2 = inlined_call_operand.vmem [shape: f32[1,256], index: 2, kind: input, shape index: {}]   ;;  %s16980_s3 = inlined_call_operand.vmem [shape: bf16[5,256,256], index: 3, kind: input, shape index: {}]   ;;  %s16981_s4 = inlined_call_operand.vmem [shape: f32[1,256], index: 4, kind: input, shape index: {}]   ;;  %s16982_s5 = inlined_call_operand.vmem [shape: bf16[3,256,128], index: 5, kind: input, shape index: {}]   ;;  %s16983_s6 = inlined_call_operand.vmem [shape: f32[1,128], index: 6, kind: input, shape index: {}]   ;;  %s16984_s7 = inlined_call_operand.hbm [shape: f32[2,128,256], index: 7, kind: input, shape index: {}]   ;;  %s16985_s8 = inlined_call_operand.hbm [shape: f32[2,8,256], index: 8, kind: input, shape index: {}]   ;;  %s16986_s9 = inlined_call_operand.hbm [shape: f32[16,256], index: 9, kind: output, shape index: {}]  }
   0x1   :  { %17199 = sst [smem:[#allocation91_spill]] %s16978_s1 }
   0x2   :  { %17200 = sst [smem:[#allocation92_spill]] %s16984_s7 }
   0x3   :  { %14 = vsyncpa [#allocation3], 0 }
   0x4   :  { %15 = vsyncpa [#allocation6], 0 }
   0x5   :  { %16 = vsyncpa [#allocation4], 0 }
   0x6   :  { %18 = vsyncpa [#allocation4 + $0x1], 0  ;;  %s10470_s30 = smov 0   ;;  %s10472_s10 = smov 0  }
   0x7   :  { %s10474_s11 = smov 0   ;;  %s10476_s12 = smov 0  }
   0x8 LB: > { %17201 = sst [smem:[#allocation12_spill]] %s10405_s11  ;;  %s10491_s13 = sadd.s32 4294967295, %s10409_s12   ;;  %s10409_s12 = sphi %s10476_s12, %s17889_s12   ;;  %s10405_s11 = sphi %s10474_s11, %s17886_s11   ;;  %s10401_s10 = sphi %s10472_s10, %s17888_s10   ;;  %s10397_s30 = sphi %s10470_s30, %s17887_s30  }
   0x9   : > { %s8245_s14 = sadd.s32 4294967294, %s10409_s12   ;;  %s10495_s15 = sadd.s32 1, %s10409_s12  }
   0xa   : > { %s225_s16 = sadd.s32 1, %s10405_s11  ;;  %s222_s17 = ssub.s32 %s10409_s12, %s10495_s15 }
   0xb   : > { %p235_p0 = scmp.ne.s32.totalorder %s10405_s11, %s10401_s10  ;;  %p223_p1 = scmp.eq.s32.totalorder %s222_s17, 0 }
   0xc   : > { %p236_p2 = scmp.eq.s32.totalorder %s10491_s13, 1  ;;  %p241_p3 = scmp.ne.s32.totalorder %s10401_s10, %s10397_s30 }
   0xd   : > { %p242_p4 = scmp.eq.s32.totalorder %s8245_s14, 1  ;;  %p8246_p7 = scmp.ge.s32.totalorder %s10409_s12, 1 }
   0xe   : > { %s10506_s18 = scalar_select %p223_p1, %s10405_s11, %s225_s16  }
   0xf   : > { %p10508_p5 = por %p236_p2, %p235_p0  ;;  %p10512_p6 = por %p242_p4, %p241_p3 }
  0x10   : > { %17202 = sst [smem:[#allocation13_spill]] %s10506_s18  ;;  %p249_p8 = scmp.lt.s32.totalorder %s10409_s12, 3 }
  0x11   : > { %p9864_p9 = scmp.eq.s32.totalorder %s10491_s13, 0  ;;  %s17206_s7 = sld [smem:[#allocation92_spill]] }
  0x12   : > { %p10519_p10 = pnand %p8246_p7, %p249_p8  ;;  %s10411_s25 = smov [#allocation5]  }
  0x13   : > { %s291_s26 = sshll.u32 %s10411_s25, 4  ;;  %s17208_s1 = sld [smem:[#allocation91_spill]]  ;;  %s292_s26 = int_to_ptr.vmem [resolvable:$true] %s291_s26 }
  0x14   : > { %p9850_p11 = pneg %p10519_p10  ;;  %s10412_s16 = smov 256  }
  0x15   : > { %s10413_s17 = smov 16   ;;  %s10414_s22 = smov [#allocation2]  }
  0x16   : > { %p10530_p12 = pnand %p9864_p9, %p9850_p11  ;;  %s262_s23 = sshll.u32 %s10414_s22, 4  ;;  %s263_s23 = int_to_ptr.vmem [resolvable:$true] %s262_s23 }
  0x17   : > { %s289_s24 = sshll.u32 %s17206_s7, 4  ;;  %s10415_s25 = smov 128   ;;  %s290_s24 = int_to_ptr.hbm [resolvable:$true] %s289_s24 }
  0x18   : > { %9856 = dma.hbm_to_vmem [thread:$0]  (!%p10530_p12), %s290_s24, 8192, %s292_s26, [#allocation6], %s10412_s16, %s10412_s16, %s10413_s17  }
  0x19   : > { %s260_s14 = sshll.u32 %s17208_s1, 4  ;;  %s10416_s7 = smov 8   ;;  %s261_s14 = int_to_ptr.hbm [resolvable:$true] %s260_s14 }
  0x1a   : > { %9853 = dma.hbm_to_vmem [thread:$0]  (!%p10530_p12), %s261_s14, 2560, %s263_s23, [#allocation3], %s10415_s25, %s10415_s25, %s10416_s7  }
  0x1b   : > { %s303_s28 = sshll.u32 %s16985_s8, 4  ;;  %s10417_s29 = smov [#allocation7]   ;;  %s304_s28 = int_to_ptr.hbm [resolvable:$true] %s303_s28 }
  0x1c   : > { %s305_s1 = sshll.u32 %s10417_s29, 4  ;;  %330 = sbr.rel (%p10519_p10) target bundleno = 3119 (0xc2f), region = 56  ;;  %s306_s1 = int_to_ptr.vmem [resolvable:$true] %s305_s1 }
  0x1d   : > { %9859 = dma.hbm_to_vmem [thread:$0]  (!%p10530_p12), %s304_s28, 512, %s306_s1, [#allocation6], %s10412_s16, %s10412_s16, %s10413_s17  }
  0x21   : > { %10384 = dma.done.wait (%p9864_p9), [#allocation3], 2560  }
  0x22   : > { %10386 = vsyncadd (%p9864_p9), [#allocation3], 4294964736 }
  0x23   : > { %10388 = dma.done.wait (%p9864_p9), [#allocation6], 8704  }
  0x24   : > { %10390 = vsyncadd (%p9864_p9), [#allocation6], 4294958592  ;;  %s8256_s7 = sshll.u32 %s10491_s13, 5  ;;  %v8332_v0 = vld [vmem:[#allocation2 + $0x30] sm:$0xf]  ;;  %vm525_vm0 = vcmask 261120   ;;  %v16988_v34 = vlaneseq }
  0x25   : > { %p378_p13 = scmp.lt.s32.totalorder %s8256_s7, 63  ;;  %v9614_v1 = vld [vmem:[#allocation2 + $0x34] sm:$0xf0]  ;;  %v9613_v2 = vld [vmem:[#allocation2 + $0x34] sm:$0xf]  ;;  %s10418_s27 = smov 118  }
  0x26   : > { %v8333_v3 = vor.u32 %v9614_v1, %v8332_v0  ;;  %v8334_v4 = vld [vmem:[#allocation2 + $0x38] sm:$0xf0]  ;;  %v8380_v5 = vld [vmem:[#allocation2 + $0x10] sm:$0xf]  ;;  %v9610_v6 = vld [vmem:[#allocation2 + $0x14] sm:$0xf0] }
  0x27   : > { %s17891_s7 = smov (!%p378_p13, %s8256_s7), 63  ;;  %v8337_v7 = vor.u32 %v9613_v2, %v8334_v4  ;;  %v8381_v8 = vor.u32 %v9610_v6, %v8380_v5  ;;  %v9609_v9 = vld [vmem:[#allocation2 + $0x14] sm:$0xf]  ;;  %v8382_v10 = vld [vmem:[#allocation2 + $0x18] sm:$0xf0]  ;;  %v10664_v36 = vshrl.u32 %v16988_v34, 7 }
  0x28   : > { %s8257_s1 = sshll.u32 %s17891_s7, 2  ;;  %v8324_v11 = vld [vmem:[#allocation2 + $0x20] sm:$0xf]  ;;  %580 = vmatpush.bf16.msra.mxu0 %v8333_v3  ;;  %v8385_v12 = vor.u32 %v9609_v9, %v8382_v10  ;;  %v9612_v13 = vld [vmem:[#allocation2 + $0x24] sm:$0xf0]  ;;  %s10419_s11 = smov 108  }
  0x29   : > { %v9611_v14 = vld [vmem:[#allocation2 + $0x24] sm:$0xf]  ;;  %v8326_v15 = vld [vmem:[#allocation2 + $0x28] sm:$0xf0]  ;;  %s10560_s21 = scalar_lea.vmem %s16977_s0, %s8257_s1  ;;  %669 = vmatpush.bf16.msra.mxu1 %v8337_v7  ;;  %909 = vmatpush.bf16.msra.mxu2 %v8381_v8  ;;  %v8325_v16 = vor.u32 %v9612_v13, %v8324_v11  ;;  %v8372_v18 = vld [vmem:[#allocation2] sm:$0xf] }
  0x2a   : > { %v8329_v17 = vor.u32 %v9611_v14, %v8326_v15  ;;  %v9608_v19 = vld [vmem:[#allocation2 + $0x4] sm:$0xf0]  ;;  %v9607_v20 = vld [vmem:[#allocation2 + $0x4] sm:$0xf]  ;;  %998 = vmatpush.bf16.msra.mxu3 %v8385_v12  ;;  %v8374_v22 = vld [vmem:[#allocation2 + $0x8] sm:$0xf0] }
  0x2b   : > { %v8373_v21 = vor.u32 %v9608_v19, %v8372_v18  ;;  %v8377_v23 = vor.u32 %v9607_v20, %v8374_v22  ;;  %v10563_v24 = vld [vmem:[%s10560_s21] sm:$0xff]  ;;  %v10574_v25 = vld [vmem:[%s10560_s21 + $0x8] sm:$0xff]  ;;  %v10585_v26 = vld [vmem:[%s10560_s21 + $0x10] sm:$0xff]  ;;  %17209 = vst [vmem:[#allocation14_spill] sm:$0xff] %v10664_v36  ;;  %vm818_vm1 = vcmp.lt.s32.totalorder %v10664_v36, 7  ;;  %vm1348_vm2 = vcmp.lt.s32.totalorder %v10664_v36, 6 }
  0x2c   : > { %581 = vmatpush.bf16.msra.mxu0 %v8325_v16  ;;  %v10596_v27 = vld [vmem:[%s10560_s21 + $0x18] sm:$0xff]  ;;  %v10607_v28 = vld [vmem:[%s10560_s21 + $0x20] sm:$0xff]  ;;  %v10618_v29 = vld [vmem:[%s10560_s21 + $0x28] sm:$0xff]  ;;  %vm1744_vm3 = vcmp.lt.s32.totalorder %v10664_v36, 5  ;;  %vm2140_vm4 = vcmp.lt.s32.totalorder %v10664_v36, 4  ;;  %s374_s17 = sand.u32 1, %s10401_s10  }
  0x2d   : > { %670 = vmatpush.bf16.msra.mxu1 %v8329_v17  ;;  %910 = vmatpush.bf16.msra.mxu2 %v8373_v21  ;;  %v10629_v30 = vld [vmem:[%s10560_s21 + $0x30] sm:$0xff]  ;;  %v10640_v31 = vld [vmem:[%s10560_s21 + $0x38] sm:$0xff]  ;;  %v10651_v32 = vld [vmem:[%s10560_s21 + $0x40] sm:$0xff]  ;;  %s8255_s22 = sshll.u32 %s374_s17, 4  ;;  %s9835_s23 = sshll.u32 %s10491_s13, 4 }
  0x2e   : > { %999 = vmatpush.bf16.msra.mxu3 %v8377_v23  ;;  %v10684_v50 = vld [vmem:[%s10560_s21 + $0x48] sm:$0xff]  ;;  %v10711_v7 = vld [vmem:[%s10560_s21 + $0x50] sm:$0xff]  ;;  %s8150_s29 = scalar_lea.hbm %s16986_s9, %s9835_s23  ;;  %s8139_s1 = scalar_lea.sflag [#allocation4], %s374_s17 }
  0x2f   : > { %8338 = vmatmul.msk.bf16.vlgmr.msra.gmra.mxu0 %vm525_vm0, %v10563_v24  ;;  %s10359_s14 = scalar_lea.hbm %s16986_s9, 32 }
  0x30   : > { %8354 = vmatmul.msk.bf16.vlgmr.msra.gmra.mxu1 %vm525_vm0, %v10563_v24  ;;  %8386 = vmatmul.msk.bf16.vlgmr.msra.gmra.mxu2 %vm525_vm0, %v10563_v24 }
  0x31   : > { %8402 = vmatmul.msk.bf16.vlgmr.msra.gmra.mxu3 %vm525_vm0, %v10563_v24 }
  0x3f   : > { %8339 = vmatmul.msk.bf16.gmra.mxu0 %vm525_vm0, %v10574_v25 }
  0x40   : > { %8355 = vmatmul.msk.bf16.gmra.mxu1 %vm525_vm0, %v10574_v25  ;;  %8387 = vmatmul.msk.bf16.gmra.mxu2 %vm525_vm0, %v10574_v25 }
  0x41   : > { %8403 = vmatmul.msk.bf16.gmra.mxu3 %vm525_vm0, %v10574_v25 }
  0x4f   : > { %8340 = vmatmul.msk.bf16.gmra.mxu0 %vm525_vm0, %v10585_v26 }
  0x50   : > { %8356 = vmatmul.msk.bf16.gmra.mxu1 %vm525_vm0, %v10585_v26  ;;  %8388 = vmatmul.msk.bf16.gmra.mxu2 %vm525_vm0, %v10585_v26 }
  0x51   : > { %8404 = vmatmul.msk.bf16.gmra.mxu3 %vm525_vm0, %v10585_v26 }
  0x5f   : > { %8341 = vmatmul.msk.bf16.gmra.mxu0 %vm525_vm0, %v10596_v27 }
  0x60   : > { %8357 = vmatmul.msk.bf16.gmra.mxu1 %vm525_vm0, %v10596_v27  ;;  %8389 = vmatmul.msk.bf16.gmra.mxu2 %vm525_vm0, %v10596_v27 }
  0x61   : > { %8405 = vmatmul.msk.bf16.gmra.mxu3 %vm525_vm0, %v10596_v27 }
  0x6f   : > { %8342 = vmatmul.msk.bf16.gmra.mxu0 %vm525_vm0, %v10607_v28 }
  0x70   : > { %8358 = vmatmul.msk.bf16.gmra.mxu1 %vm525_vm0, %v10607_v28  ;;  %8390 = vmatmul.msk.bf16.gmra.mxu2 %vm525_vm0, %v10607_v28 }
  0x71   : > { %8406 = vmatmul.msk.bf16.gmra.mxu3 %vm525_vm0, %v10607_v28 }
  0x7f   : > { %8343 = vmatmul.msk.bf16.gmra.mxu0 %vm525_vm0, %v10618_v29 }
  0x80   : > { %8359 = vmatmul.msk.bf16.gmra.mxu1 %vm525_vm0, %v10618_v29  ;;  %8391 = vmatmul.msk.bf16.gmra.mxu2 %vm525_vm0, %v10618_v29 }
  0x81   : > { %8407 = vmatmul.msk.bf16.gmra.mxu3 %vm525_vm0, %v10618_v29 }
  0x8f   : > { %8344 = vmatmul.msk.bf16.gmra.mxu0 %vm525_vm0, %v10629_v30 }
  0x90   : > { %8360 = vmatmul.msk.bf16.gmra.mxu1 %vm525_vm0, %v10629_v30  ;;  %8392 = vmatmul.msk.bf16.gmra.mxu2 %vm525_vm0, %v10629_v30 }
  0x91   : > { %8408 = vmatmul.msk.bf16.gmra.mxu3 %vm525_vm0, %v10629_v30 }
  0x9f   : > { %8345 = vmatmul.msk.bf16.gmra.mxu0 %vm525_vm0, %v10640_v31 }
  0xa0   : > { %8361 = vmatmul.msk.bf16.gmra.mxu1 %vm525_vm0, %v10640_v31  ;;  %8393 = vmatmul.msk.bf16.gmra.mxu2 %vm525_vm0, %v10640_v31 }
  0xa1   : > { %8409 = vmatmul.msk.bf16.gmra.mxu3 %vm525_vm0, %v10640_v31 }
  0xac   : > { %v10653_v33 = vpop.f32.mrf.mxu0 }
  0xad   : > { %v10655_v35 = vpop.f32.mrf.mxu1  ;;  %v16990_v41 = vrot.slane %v10653_v33, 1 }
  0xae   : > { %v16989_v38 = vrot.slane %v10655_v35, 1 }
  0xaf   : > { %8346 = vmatmul.msk.bf16.gmra.mxu0 %vm525_vm0, %v10651_v32 }
  0xb0   : > { %8362 = vmatmul.msk.bf16.gmra.mxu1 %vm525_vm0, %v10651_v32  ;;  %8394 = vmatmul.msk.bf16.gmra.mxu2 %vm525_vm0, %v10651_v32 }
  0xb1   : > { %8410 = vmatmul.msk.bf16.gmra.mxu3 %vm525_vm0, %v10651_v32 }
  0xb3   : > { %v912_v37 = vpop.f32.mrf.mxu2 }
  0xb4   : > { %v1001_v39 = vpop.f32.mrf.mxu3  ;;  %v585_v40 = vpop.f32.mrf.mxu0 }
  0xb5   : > { %v754_v42 = vrot.slane %v585_v40, 1  ;;  %v674_v43 = vpop.f32.mrf.mxu1 }
  0xb6   : > { %v755_v44 = vrot.slane %v674_v43, 1  ;;  %v10738_v43 = vld [vmem:[%s10560_s21 + $0x58] sm:$0xff] }
  0xb7   : > { %v879_v45 = vsel %vm818_vm1, %v16990_v41, %v754_v42 }
  0xb8   : > { %v10675_v46 = vadd.f32 %v912_v37, %v879_v45  ;;  %v880_v47 = vsel %vm818_vm1, %v16989_v38, %v755_v44 }
  0xb9   : > { %v10681_v48 = vadd.f32 %v1001_v39, %v880_v47 }
  0xbb   : > { %v914_v49 = vpop.f32.mrf.mxu2 }
  0xbc   : > { %v1003_v51 = vpop.f32.mrf.mxu3  ;;  %v588_v52 = vpop.f32.mrf.mxu0 }
  0xbd   : > { %v756_v53 = vrot.slane %v588_v52, 1  ;;  %v677_v54 = vpop.f32.mrf.mxu1 }
  0xbe   : > { %v757_v55 = vrot.slane %v677_v54, 1 }
  0xbf   : > { %v877_v56 = vsel %vm818_vm1, %v754_v42, %v756_v53  ;;  %8347 = vmatmul.msk.bf16.gmra.mxu0 %vm525_vm0, %v10684_v50 }
  0xc0   : > { %v10690_v57 = vadd.f32 %v914_v49, %v877_v56  ;;  %v878_v58 = vsel %vm818_vm1, %v755_v44, %v757_v55  ;;  %8363 = vmatmul.msk.bf16.gmra.mxu1 %vm525_vm0, %v10684_v50  ;;  %8395 = vmatmul.msk.bf16.gmra.mxu2 %vm525_vm0, %v10684_v50 }
  0xc1   : > { %v10698_v59 = vadd.f32 %v1003_v51, %v878_v58  ;;  %8411 = vmatmul.msk.bf16.gmra.mxu3 %vm525_vm0, %v10684_v50 }
  0xc3   : > { %v917_v60 = vpop.f32.mrf.mxu2 }
  0xc4   : > { %v1006_v61 = vpop.f32.mrf.mxu3  ;;  %v590_v62 = vpop.f32.mrf.mxu0 }
  0xc5   : > { %v758_v63 = vrot.slane %v590_v62, 1  ;;  %v679_v0 = vpop.f32.mrf.mxu1  ;;  %v9618_v62 = vld [vmem:[#allocation2 + $0x54] sm:$0xf0] }
  0xc6   : > { %v759_v1 = vrot.slane %v679_v0, 1 }
  0xc7   : > { %v875_v2 = vsel %vm818_vm1, %v756_v53, %v758_v63 }
  0xc8   : > { %v10704_v3 = vadd.f32 %v917_v60, %v875_v2  ;;  %v876_v4 = vsel %vm818_vm1, %v757_v55, %v759_v1 }
  0xc9   : > { %v10708_v5 = vadd.f32 %v1006_v61, %v876_v4  ;;  %v8428_v61 = vld [vmem:[#allocation2 + $0x50] sm:$0xf] }
  0xcb   : > { %v919_v6 = vpop.f32.mrf.mxu2 }
  0xcc   : > { %v1008_v8 = vpop.f32.mrf.mxu3  ;;  %v593_v9 = vpop.f32.mrf.mxu0 }
  0xcd   : > { %v760_v10 = vrot.slane %v593_v9, 1  ;;  %v682_v11 = vpop.f32.mrf.mxu1 }
  0xce   : > { %v761_v12 = vrot.slane %v682_v11, 1  ;;  %v10765_v11 = vld [vmem:[%s10560_s21 + $0x60] sm:$0xff] }
  0xcf   : > { %v873_v13 = vsel %vm818_vm1, %v758_v63, %v760_v10  ;;  %8348 = vmatmul.msk.bf16.gmra.mxu0 %vm525_vm0, %v10711_v7 }
  0xd0   : > { %v10717_v14 = vadd.f32 %v919_v6, %v873_v13  ;;  %v874_v15 = vsel %vm818_vm1, %v759_v1, %v761_v12  ;;  %8364 = vmatmul.msk.bf16.gmra.mxu1 %vm525_vm0, %v10711_v7  ;;  %8396 = vmatmul.msk.bf16.gmra.mxu2 %vm525_vm0, %v10711_v7  ;;  %v8429_v1 = vor.u32 %v9618_v62, %v8428_v61  ;;  %v10792_v62 = vld [vmem:[%s10560_s21 + $0x68] sm:$0xff] }
  0xd1   : > { %v10725_v16 = vadd.f32 %v1008_v8, %v874_v15  ;;  %8412 = vmatmul.msk.bf16.gmra.mxu3 %vm525_vm0, %v10711_v7  ;;  %v9617_v15 = vld [vmem:[#allocation2 + $0x54] sm:$0xf] }
  0xd2   : > { %1112 = vmatpush.bf16.msrb.mxu0 %v8429_v1 }
  0xd3   : > { %v922_v17 = vpop.f32.mrf.mxu2 }
  0xd4   : > { %v1011_v18 = vpop.f32.mrf.mxu3  ;;  %v595_v19 = vpop.f32.mrf.mxu0 }
  0xd5   : > { %v762_v20 = vrot.slane %v595_v19, 1  ;;  %v684_v21 = vpop.f32.mrf.mxu1 }
  0xd6   : > { %v763_v22 = vrot.slane %v684_v21, 1 }
  0xd7   : > { %v871_v23 = vsel %vm818_vm1, %v760_v10, %v762_v20 }
  0xd8   : > { %v10731_v37 = vadd.f32 %v922_v17, %v871_v23  ;;  %v872_v39 = vsel %vm818_vm1, %v761_v12, %v763_v22  ;;  %v8430_v17 = vld [vmem:[#allocation2 + $0x58] sm:$0xf0] }
  0xd9   : > { %v10735_v40 = vadd.f32 %v1011_v18, %v872_v39 }
  0xdb   : > { %v924_v42 = vpop.f32.mrf.mxu2 }
  0xdc   : > { %v1013_v44 = vpop.f32.mrf.mxu3  ;;  %v598_v45 = vpop.f32.mrf.mxu0 }
  0xdd   : > { %v764_v47 = vrot.slane %v598_v45, 1  ;;  %v687_v49 = vpop.f32.mrf.mxu1 }
  0xde   : > { %v765_v51 = vrot.slane %v687_v49, 1 }
  0xdf   : > { %v869_v52 = vsel %vm818_vm1, %v762_v20, %v764_v47  ;;  %8349 = vmatmul.msk.bf16.gmra.mxu0 %vm525_vm0, %v10738_v43  ;;  %v8433_v20 = vor.u32 %v9617_v15, %v8430_v17 }
  0xe0   : > { %v10744_v53 = vadd.f32 %v924_v42, %v869_v52  ;;  %v870_v54 = vsel %vm818_vm1, %v763_v22, %v765_v51  ;;  %8365 = vmatmul.msk.bf16.gmra.mxu1 %vm525_vm0, %v10738_v43  ;;  %8397 = vmatmul.msk.bf16.gmra.mxu2 %vm525_vm0, %v10738_v43 }
  0xe1   : > { %v10752_v55 = vadd.f32 %v1013_v44, %v870_v54  ;;  %8413 = vmatmul.msk.bf16.gmra.mxu3 %vm525_vm0, %v10738_v43  ;;  %1201 = vmatpush.bf16.msrb.mxu1 %v8433_v20 }
  0xe3   : > { %v927_v56 = vpop.f32.mrf.mxu2 }
  0xe4   : > { %v1016_v58 = vpop.f32.mrf.mxu3  ;;  %v600_v60 = vpop.f32.mrf.mxu0 }
  0xe5   : > { %v766_v63 = vrot.slane %v600_v60, 1  ;;  %v689_v0 = vpop.f32.mrf.mxu1 }
  0xe6   : > { %v767_v2 = vrot.slane %v689_v0, 1 }
  0xe7   : > { %v867_v4 = vsel %vm818_vm1, %v764_v47, %v766_v63 }
  0xe8   : > { %v10758_v6 = vadd.f32 %v927_v56, %v867_v4  ;;  %v868_v8 = vsel %vm818_vm1, %v765_v51, %v767_v2 }
  0xe9   : > { %v10762_v9 = vadd.f32 %v1016_v58, %v868_v8 }
  0xeb   : > { %v929_v10 = vpop.f32.mrf.mxu2 }
  0xec   : > { %v1018_v12 = vpop.f32.mrf.mxu3  ;;  %v603_v13 = vpop.f32.mrf.mxu0 }
  0xed   : > { %v768_v18 = vrot.slane %v603_v13, 1  ;;  %v692_v19 = vpop.f32.mrf.mxu1 }
  0xee   : > { %v769_v21 = vrot.slane %v692_v19, 1 }
  0xef   : > { %v865_v22 = vsel %vm818_vm1, %v766_v63, %v768_v18  ;;  %8350 = vmatmul.msk.bf16.gmra.mxu0 %vm525_vm0, %v10765_v11 }
  0xf0   : > { %v10771_v23 = vadd.f32 %v929_v10, %v865_v22  ;;  %v866_v39 = vsel %vm818_vm1, %v767_v2, %v769_v21  ;;  %8366 = vmatmul.msk.bf16.gmra.mxu1 %vm525_vm0, %v10765_v11  ;;  %8398 = vmatmul.msk.bf16.gmra.mxu2 %vm525_vm0, %v10765_v11 }
  0xf1   : > { %v10779_v42 = vadd.f32 %v1018_v12, %v866_v39  ;;  %8414 = vmatmul.msk.bf16.gmra.mxu3 %vm525_vm0, %v10765_v11  ;;  %v8476_v39 = vld [vmem:[#allocation2 + $0x70] sm:$0xf] }
  0xf3   : > { %v932_v44 = vpop.f32.mrf.mxu2 }
  0xf4   : > { %v1021_v45 = vpop.f32.mrf.mxu3  ;;  %v605_v47 = vpop.f32.mrf.mxu0 }
  0xf5   : > { %v770_v49 = vrot.slane %v605_v47, 1  ;;  %v694_v51 = vpop.f32.mrf.mxu1 }
  0xf6   : > { %v771_v52 = vrot.slane %v694_v51, 1 }
  0xf7   : > { %v863_v54 = vsel %vm818_vm1, %v768_v18, %v770_v49 }
  0xf8   : > { %v10785_v56 = vadd.f32 %v932_v44, %v863_v54  ;;  %v864_v58 = vsel %vm818_vm1, %v769_v21, %v771_v52  ;;  %v9622_v44 = vld [vmem:[#allocation2 + $0x74] sm:$0xf0] }
  0xf9   : > { %v10789_v60 = vadd.f32 %v1021_v45, %v864_v58  ;;  %v9621_v45 = vld [vmem:[#allocation2 + $0x74] sm:$0xf]  ;;  %v8477_v51 = vor.u32 %v9622_v44, %v8476_v39 }
  0xfb   : > { %v934_v61 = vpop.f32.mrf.mxu2  ;;  %1508 = vmatpush.bf16.msrb.mxu2 %v8477_v51 }
  0xfc   : > { %v1023_v63 = vpop.f32.mrf.mxu3  ;;  %v608_v0 = vpop.f32.mrf.mxu0 }
  0xfd   : > { %v772_v1 = vrot.slane %v608_v0, 1  ;;  %v697_v2 = vpop.f32.mrf.mxu1  ;;  %v8420_v0 = vld [vmem:[#allocation2 + $0x40] sm:$0xf] }
  0xfe   : > { %v773_v4 = vrot.slane %v697_v2, 1  ;;  %v9615_v2 = vld [vmem:[#allocation2 + $0x44] sm:$0xf] }
  0xff   : > { %v861_v8 = vsel %vm818_vm1, %v770_v49, %v772_v1  ;;  %8351 = vmatmul.msk.bf16.gmra.mxu0 %vm525_vm0, %v10792_v62 }
 0x100   : > { %v10798_v10 = vadd.f32 %v934_v61, %v861_v8  ;;  %v862_v12 = vsel %vm818_vm1, %v771_v52, %v773_v4  ;;  %8367 = vmatmul.msk.bf16.gmra.mxu1 %vm525_vm0, %v10792_v62  ;;  %8399 = vmatmul.msk.bf16.gmra.mxu2 %vm525_vm0, %v10792_v62  ;;  %v8478_v52 = vld [vmem:[#allocation2 + $0x78] sm:$0xf0]  ;;  %v10819_v61 = vld [vmem:[%s10560_s21 + $0x70] sm:$0xff] }
 0x101   : > { %v10806_v13 = vadd.f32 %v1023_v63, %v862_v12  ;;  %8415 = vmatmul.msk.bf16.gmra.mxu3 %vm525_vm0, %v10792_v62  ;;  %v8481_v58 = vor.u32 %v9621_v45, %v8478_v52  ;;  %v8470_v45 = vld [vmem:[#allocation2 + $0x68] sm:$0xf0] }
 0x103   : > { %v937_v15 = vpop.f32.mrf.mxu2  ;;  %1597 = vmatpush.bf16.msrb.mxu3 %v8481_v58 }
 0x104   : > { %v1026_v17 = vpop.f32.mrf.mxu3  ;;  %v610_v18 = vpop.f32.mrf.mxu0 }
 0x105   : > { %v774_v19 = vrot.slane %v610_v18, 1  ;;  %v699_v20 = vpop.f32.mrf.mxu1  ;;  %v8422_v18 = vld [vmem:[#allocation2 + $0x48] sm:$0xf0] }
 0x106   : > { %v775_v21 = vrot.slane %v699_v20, 1  ;;  %v8468_v20 = vld [vmem:[#allocation2 + $0x60] sm:$0xf]  ;;  %v8425_v44 = vor.u32 %v9615_v2, %v8422_v18 }
 0x107   : > { %v859_v22 = vsel %vm818_vm1, %v772_v1, %v774_v19  ;;  %v9616_v1 = vld [vmem:[#allocation2 + $0x44] sm:$0xf0] }
 0x108   : > { %v10812_v47 = vadd.f32 %v937_v15, %v859_v22  ;;  %v860_v49 = vsel %vm818_vm1, %v773_v4, %v775_v21  ;;  %v8421_v15 = vor.u32 %v9616_v1, %v8420_v0  ;;  %v9620_v22 = vld [vmem:[#allocation2 + $0x64] sm:$0xf0]  ;;  %1202 = vmatpush.bf16.msrb.mxu1 %v8425_v44 }
 0x109   : > { %v10816_v54 = vadd.f32 %v1026_v17, %v860_v49  ;;  %v8469_v17 = vor.u32 %v9620_v22, %v8468_v20  ;;  %v9619_v49 = vld [vmem:[#allocation2 + $0x64] sm:$0xf] }
 0x10a   : > { %1113 = vmatpush.bf16.msrb.mxu0 %v8421_v15  ;;  %v8473_v51 = vor.u32 %v9619_v49, %v8470_v45  ;;  %v10846_v49 = vld [vmem:[%s10560_s21 + $0x78] sm:$0xff] }
 0x10b   : > { %v939_v63 = vpop.f32.mrf.mxu2  ;;  %1509 = vmatpush.bf16.msrb.mxu2 %v8469_v17 }
 0x10c   : > { %v1028_v8 = vpop.f32.mrf.mxu3  ;;  %v613_v12 = vpop.f32.mrf.mxu0  ;;  %1598 = vmatpush.bf16.msrb.mxu3 %v8473_v51 }
 0x10d   : > { %v776_v4 = vrot.slane %v613_v12, 1  ;;  %v702_v39 = vpop.f32.mrf.mxu1 }
 0x10e   : > { %v777_v52 = vrot.slane %v702_v39, 1 }
 0x10f   : > { %v857_v58 = vsel %vm818_vm1, %v774_v19, %v776_v4  ;;  %8352 = vmatmul.msk.bf16.gmra.mxu0 %vm525_vm0, %v10819_v61 }
 0x110   : > { %v10825_v0 = vadd.f32 %v939_v63, %v857_v58  ;;  %v858_v1 = vsel %vm818_vm1, %v775_v21, %v777_v52  ;;  %8368 = vmatmul.msk.bf16.gmra.mxu1 %vm525_vm0, %v10819_v61  ;;  %8400 = vmatmul.msk.bf16.gmra.mxu2 %vm525_vm0, %v10819_v61 }
 0x111   : > { %v10833_v2 = vadd.f32 %v1028_v8, %v858_v1  ;;  %8416 = vmatmul.msk.bf16.gmra.mxu3 %vm525_vm0, %v10819_v61 }
 0x113   : > { %v942_v19 = vpop.f32.mrf.mxu2 }
 0x114   : > { %v1031_v63 = vpop.f32.mrf.mxu3  ;;  %v615_v12 = vpop.f32.mrf.mxu0 }
 0x115   : > { %v778_v15 = vrot.slane %v615_v12, 1  ;;  %v704_v18 = vpop.f32.mrf.mxu1 }
 0x116   : > { %v779_v21 = vrot.slane %v704_v18, 1 }
 0x117   : > { %v855_v20 = vsel %vm818_vm1, %v776_v4, %v778_v15 }
 0x118   : > { %v10839_v22 = vadd.f32 %v942_v19, %v855_v20  ;;  %v856_v8 = vsel %vm818_vm1, %v777_v52, %v779_v21 }
 0x119   : > { %v10843_v39 = vadd.f32 %v1031_v63, %v856_v8 }
 0x11b   : > { %v944_v44 = vpop.f32.mrf.mxu2 }
 0x11c   : > { %v1033_v17 = vpop.f32.mrf.mxu3  ;;  %v618_v45 = vpop.f32.mrf.mxu0 }
 0x11d   : > { %v780_v51 = vrot.slane %v618_v45, 1  ;;  %v707_v58 = vpop.f32.mrf.mxu1 }
 0x11e   : > { %v781_v1 = vrot.slane %v707_v58, 1 }
 0x11f   : > { %v853_v12 = vsel %vm818_vm1, %v778_v15, %v780_v51  ;;  %8353 = vmatmul.msk.bf16.gmra.mxu0 %vm525_vm0, %v10846_v49 }
 0x120   : > { %v10852_v4 = vadd.f32 %v944_v44, %v853_v12  ;;  %v854_v52 = vsel %vm818_vm1, %v779_v21, %v781_v1  ;;  %8369 = vmatmul.msk.bf16.gmra.mxu1 %vm525_vm0, %v10846_v49  ;;  %8401 = vmatmul.msk.bf16.gmra.mxu2 %vm525_vm0, %v10846_v49 }
 0x121   : > { %v10860_v19 = vadd.f32 %v1033_v17, %v854_v52  ;;  %8417 = vmatmul.msk.bf16.gmra.mxu3 %vm525_vm0, %v10846_v49 }
 0x123   : > { %17210 = vst [vmem:[#allocation15_spill] sm:$0xff] %v10860_v19  ;;  %v947_v63 = vpop.f32.mrf.mxu2 }
 0x124   : > { %v1036_v15 = vpop.f32.mrf.mxu3  ;;  %v620_v18 = vpop.f32.mrf.mxu0 }
 0x125   : > { %v782_v20 = vrot.slane %v620_v18, 1  ;;  %v709_v8 = vpop.f32.mrf.mxu1 }
 0x126   : > { %v783_v44 = vrot.slane %v709_v8, 1 }
 0x127   : > { %v851_v21 = vsel %vm818_vm1, %v780_v51, %v782_v20 }
 0x128   : > { %v10866_v45 = vadd.f32 %v947_v63, %v851_v21  ;;  %v852_v58 = vsel %vm818_vm1, %v781_v1, %v783_v44 }
 0x129   : > { %v10870_v12 = vadd.f32 %v1036_v15, %v852_v58 }
 0x12b   : > { %17211 = vst [vmem:[#allocation16_spill] sm:$0xff] %v10870_v12  ;;  %v949_v17 = vpop.f32.mrf.mxu2 }
 0x12c   : > { %v1038_v52 = vpop.f32.mrf.mxu3  ;;  %v623_v34 = vpop.f32.mrf.mxu0 }
 0x12d   : > { %v784_v38 = vrot.slane %v623_v34, 1  ;;  %v712_v41 = vpop.f32.mrf.mxu1 }
 0x12e   : > { %v785_v19 = vrot.slane %v712_v41, 1 }
 0x12f   : > { %v849_v18 = vsel %vm818_vm1, %v782_v20, %v784_v38  ;;  %8434 = vmatmul.msk.bf16.vlgmr.msrb.gmra.mxu0 %vm525_vm0, %v10563_v24 }
 0x130   : > { %v10876_v51 = vadd.f32 %v949_v17, %v849_v18  ;;  %v850_v63 = vsel %vm818_vm1, %v783_v44, %v785_v19  ;;  %8450 = vmatmul.msk.bf16.vlgmr.msrb.gmra.mxu1 %vm525_vm0, %v10563_v24  ;;  %8482 = vmatmul.msk.bf16.vlgmr.msrb.gmra.mxu2 %vm525_vm0, %v10563_v24 }
 0x131   : > { %v10884_v34 = vadd.f32 %v1038_v52, %v850_v63  ;;  %8498 = vmatmul.msk.bf16.vlgmr.msrb.gmra.mxu3 %vm525_vm0, %v10563_v24 }
 0x132   : > { %17212 = vst [vmem:[#allocation17_spill] sm:$0xff] %v10876_v51 }
 0x133   : > { %17213 = vst [vmem:[#allocation18_spill] sm:$0xff] %v10884_v34  ;;  %v952_v41 = vpop.f32.mrf.mxu2 }
 0x134   : > { %v1041_v1 = vpop.f32.mrf.mxu3  ;;  %v625_v15 = vpop.f32.mrf.mxu0 }
 0x135   : > { %v786_v20 = vrot.slane %v625_v15, 1  ;;  %v714_v8 = vpop.f32.mrf.mxu1 }
 0x136   : > { %v787_v21 = vrot.slane %v714_v8, 1 }
 0x137   : > { %v847_v44 = vsel %vm818_vm1, %v784_v38, %v786_v20 }
 0x138   : > { %v10890_v58 = vadd.f32 %v952_v41, %v847_v44  ;;  %v848_v17 = vsel %vm818_vm1, %v785_v19, %v787_v21 }
 0x139   : > { %v10894_v18 = vadd.f32 %v1041_v1, %v848_v17 }
 0x13b   : > { %17214 = vst [vmem:[#allocation19_spill] sm:$0xff] %v10894_v18  ;;  %v954_v52 = vpop.f32.mrf.mxu2 }
 0x13c   : > { %v1043_v63 = vpop.f32.mrf.mxu3  ;;  %v628_v34 = vpop.f32.mrf.mxu0 }
 0x13d   : > { %v788_v24 = vrot.slane %v628_v34, 1  ;;  %v717_v51 = vpop.f32.mrf.mxu1 }
 0x13e   : > { %v789_v12 = vrot.slane %v717_v51, 1 }
 0x13f   : > { %v845_v15 = vsel %vm818_vm1, %v786_v20, %v788_v24  ;;  %8435 = vmatmul.msk.bf16.gmra.mxu0 %vm525_vm0, %v10574_v25 }
 0x140   : > { %v10900_v38 = vadd.f32 %v954_v52, %v845_v15  ;;  %v846_v41 = vsel %vm818_vm1, %v787_v21, %v789_v12  ;;  %8451 = vmatmul.msk.bf16.gmra.mxu1 %vm525_vm0, %v10574_v25  ;;  %8483 = vmatmul.msk.bf16.gmra.mxu2 %vm525_vm0, %v10574_v25 }
 0x141   : > { %v10908_v19 = vadd.f32 %v1043_v63, %v846_v41  ;;  %8499 = vmatmul.msk.bf16.gmra.mxu3 %vm525_vm0, %v10574_v25 }
 0x142   : > { %17215 = vst [vmem:[#allocation20_spill] sm:$0xff] %v10900_v38 }
 0x143   : > { %17216 = vst [vmem:[#allocation21_spill] sm:$0xff] %v10908_v19  ;;  %v957_v51 = vpop.f32.mrf.mxu2 }
 0x144   : > { %v1046_v34 = vpop.f32.mrf.mxu3  ;;  %v630_v1 = vpop.f32.mrf.mxu0 }
 0x145   : > { %v790_v20 = vrot.slane %v630_v1, 1  ;;  %v719_v8 = vpop.f32.mrf.mxu1 }
 0x146   : > { %v791_v44 = vrot.slane %v719_v8, 1 }
 0x147   : > { %v843_v21 = vsel %vm818_vm1, %v788_v24, %v790_v20 }
 0x148   : > { %v10914_v17 = vadd.f32 %v957_v51, %v843_v21  ;;  %v844_v52 = vsel %vm818_vm1, %v789_v12, %v791_v44 }
 0x149   : > { %v10918_v15 = vadd.f32 %v1046_v34, %v844_v52 }
 0x14b   : > { %17217 = vst [vmem:[#allocation22_spill] sm:$0xff] %v10918_v15  ;;  %v959_v63 = vpop.f32.mrf.mxu2 }
 0x14c   : > { %v1048_v41 = vpop.f32.mrf.mxu3  ;;  %v633_v19 = vpop.f32.mrf.mxu0 }
 0x14d   : > { %v792_v25 = vrot.slane %v633_v19, 1  ;;  %v722_v38 = vpop.f32.mrf.mxu1 }
 0x14e   : > { %v793_v18 = vrot.slane %v722_v38, 1 }
 0x14f   : > { %v841_v1 = vsel %vm818_vm1, %v790_v20, %v792_v25  ;;  %8436 = vmatmul.msk.bf16.gmra.mxu0 %vm525_vm0, %v10585_v26 }
 0x150   : > { %v10924_v24 = vadd.f32 %v959_v63, %v841_v1  ;;  %v842_v51 = vsel %vm818_vm1, %v791_v44, %v793_v18  ;;  %8452 = vmatmul.msk.bf16.gmra.mxu1 %vm525_vm0, %v10585_v26  ;;  %8484 = vmatmul.msk.bf16.gmra.mxu2 %vm525_vm0, %v10585_v26 }
 0x151   : > { %v10932_v12 = vadd.f32 %v1048_v41, %v842_v51  ;;  %8500 = vmatmul.msk.bf16.gmra.mxu3 %vm525_vm0, %v10585_v26 }
 0x152   : > { %17218 = vst [vmem:[#allocation23_spill] sm:$0xff] %v10924_v24 }
 0x153   : > { %17219 = vst [vmem:[#allocation24_spill] sm:$0xff] %v10932_v12  ;;  %v962_v38 = vpop.f32.mrf.mxu2 }
 0x154   : > { %v1051_v19 = vpop.f32.mrf.mxu3  ;;  %v635_v34 = vpop.f32.mrf.mxu0 }
 0x155   : > { %v794_v20 = vrot.slane %v635_v34, 1  ;;  %v724_v8 = vpop.f32.mrf.mxu1 }
 0x156   : > { %v795_v21 = vrot.slane %v724_v8, 1 }
 0x157   : > { %v839_v44 = vsel %vm818_vm1, %v792_v25, %v794_v20 }
 0x158   : > { %v10938_v52 = vadd.f32 %v962_v38, %v839_v44  ;;  %v840_v63 = vsel %vm818_vm1, %v793_v18, %v795_v21 }
 0x159   : > { %v10942_v1 = vadd.f32 %v1051_v19, %v840_v63 }
 0x15b   : > { %17220 = vst [vmem:[#allocation25_spill] sm:$0xff] %v10942_v1  ;;  %v964_v41 = vpop.f32.mrf.mxu2 }
 0x15c   : > { %v1053_v51 = vpop.f32.mrf.mxu3  ;;  %v638_v12 = vpop.f32.mrf.mxu0 }
 0x15d   : > { %v796_v26 = vrot.slane %v638_v12, 1  ;;  %v727_v24 = vpop.f32.mrf.mxu1 }
 0x15e   : > { %v797_v15 = vrot.slane %v727_v24, 1 }
 0x15f   : > { %v837_v34 = vsel %vm818_vm1, %v794_v20, %v796_v26  ;;  %8437 = vmatmul.msk.bf16.gmra.mxu0 %vm525_vm0, %v10596_v27 }
 0x160   : > { %v10948_v25 = vadd.f32 %v964_v41, %v837_v34  ;;  %v838_v38 = vsel %vm818_vm1, %v795_v21, %v797_v15  ;;  %8453 = vmatmul.msk.bf16.gmra.mxu1 %vm525_vm0, %v10596_v27  ;;  %8485 = vmatmul.msk.bf16.gmra.mxu2 %vm525_vm0, %v10596_v27 }
 0x161   : > { %v10956_v18 = vadd.f32 %v1053_v51, %v838_v38  ;;  %8501 = vmatmul.msk.bf16.gmra.mxu3 %vm525_vm0, %v10596_v27 }
 0x162   : > { %17221 = vst [vmem:[#allocation26_spill] sm:$0xff] %v10948_v25 }
 0x163   : > { %17222 = vst [vmem:[#allocation27_spill] sm:$0xff] %v10956_v18  ;;  %v967_v24 = vpop.f32.mrf.mxu2 }
 0x164   : > { %v1056_v12 = vpop.f32.mrf.mxu3  ;;  %v640_v19 = vpop.f32.mrf.mxu0 }
 0x165   : > { %v798_v20 = vrot.slane %v640_v19, 1  ;;  %v729_v8 = vpop.f32.mrf.mxu1 }
 0x166   : > { %v799_v44 = vrot.slane %v729_v8, 1 }
 0x167   : > { %v835_v21 = vsel %vm818_vm1, %v796_v26, %v798_v20 }
 0x168   : > { %v10962_v63 = vadd.f32 %v967_v24, %v835_v21  ;;  %v836_v41 = vsel %vm818_vm1, %v797_v15, %v799_v44 }
 0x169   : > { %v10966_v34 = vadd.f32 %v1056_v12, %v836_v41 }
 0x16b   : > { %17223 = vst [vmem:[#allocation28_spill] sm:$0xff] %v10966_v34  ;;  %v969_v51 = vpop.f32.mrf.mxu2 }
 0x16c   : > { %v1058_v38 = vpop.f32.mrf.mxu3  ;;  %v643_v18 = vpop.f32.mrf.mxu0 }
 0x16d   : > { %v800_v27 = vrot.slane %v643_v18, 1  ;;  %v732_v25 = vpop.f32.mrf.mxu1 }
 0x16e   : > { %v801_v1 = vrot.slane %v732_v25, 1 }
 0x16f   : > { %v833_v19 = vsel %vm818_vm1, %v798_v20, %v800_v27  ;;  %8438 = vmatmul.msk.bf16.gmra.mxu0 %vm525_vm0, %v10607_v28 }
 0x170   : > { %v10972_v26 = vadd.f32 %v969_v51, %v833_v19  ;;  %v834_v24 = vsel %vm818_vm1, %v799_v44, %v801_v1  ;;  %8454 = vmatmul.msk.bf16.gmra.mxu1 %vm525_vm0, %v10607_v28  ;;  %8486 = vmatmul.msk.bf16.gmra.mxu2 %vm525_vm0, %v10607_v28 }
 0x171   : > { %v10980_v15 = vadd.f32 %v1058_v38, %v834_v24  ;;  %8502 = vmatmul.msk.bf16.gmra.mxu3 %vm525_vm0, %v10607_v28 }
 0x172   : > { %17224 = vst [vmem:[#allocation29_spill] sm:$0xff] %v10972_v26 }
 0x173   : > { %17225 = vst [vmem:[#allocation30_spill] sm:$0xff] %v10980_v15  ;;  %v972_v25 = vpop.f32.mrf.mxu2 }
 0x174   : > { %v1061_v18 = vpop.f32.mrf.mxu3  ;;  %v645_v12 = vpop.f32.mrf.mxu0 }
 0x175   : > { %v802_v20 = vrot.slane %v645_v12, 1  ;;  %v734_v8 = vpop.f32.mrf.mxu1 }
 0x176   : > { %v803_v21 = vrot.slane %v734_v8, 1 }
 0x177   : > { %v831_v44 = vsel %vm818_vm1, %v800_v27, %v802_v20 }
 0x178   : > { %v10986_v41 = vadd.f32 %v972_v25, %v831_v44  ;;  %v832_v51 = vsel %vm818_vm1, %v801_v1, %v803_v21 }
 0x179   : > { %v10990_v19 = vadd.f32 %v1061_v18, %v832_v51 }
 0x17b   : > { %17226 = vst [vmem:[#allocation31_spill] sm:$0xff] %v10990_v19  ;;  %v974_v38 = vpop.f32.mrf.mxu2 }
 0x17c   : > { %v1063_v24 = vpop.f32.mrf.mxu3  ;;  %v648_v15 = vpop.f32.mrf.mxu0 }
 0x17d   : > { %v804_v28 = vrot.slane %v648_v15, 1  ;;  %v737_v26 = vpop.f32.mrf.mxu1 }
 0x17e   : > { %v805_v34 = vrot.slane %v737_v26, 1 }
 0x17f   : > { %v829_v12 = vsel %vm818_vm1, %v802_v20, %v804_v28  ;;  %8439 = vmatmul.msk.bf16.gmra.mxu0 %vm525_vm0, %v10618_v29 }
 0x180   : > { %v10996_v27 = vadd.f32 %v974_v38, %v829_v12  ;;  %v830_v25 = vsel %vm818_vm1, %v803_v21, %v805_v34  ;;  %8455 = vmatmul.msk.bf16.gmra.mxu1 %vm525_vm0, %v10618_v29  ;;  %8487 = vmatmul.msk.bf16.gmra.mxu2 %vm525_vm0, %v10618_v29 }
 0x181   : > { %v11004_v1 = vadd.f32 %v1063_v24, %v830_v25  ;;  %8503 = vmatmul.msk.bf16.gmra.mxu3 %vm525_vm0, %v10618_v29 }
 0x182   : > { %17227 = vst [vmem:[#allocation32_spill] sm:$0xff] %v10996_v27 }
 0x183   : > { %17228 = vst [vmem:[#allocation33_spill] sm:$0xff] %v11004_v1  ;;  %v977_v26 = vpop.f32.mrf.mxu2 }
 0x184   : > { %v1066_v15 = vpop.f32.mrf.mxu3  ;;  %v650_v18 = vpop.f32.mrf.mxu0 }
 0x185   : > { %v806_v20 = vrot.slane %v650_v18, 1  ;;  %v739_v8 = vpop.f32.mrf.mxu1 }
 0x186   : > { %v807_v44 = vrot.slane %v739_v8, 1 }
 0x187   : > { %v827_v21 = vsel %vm818_vm1, %v804_v28, %v806_v20 }
 0x188   : > { %v11010_v51 = vadd.f32 %v977_v26, %v827_v21  ;;  %v828_v38 = vsel %vm818_vm1, %v805_v34, %v807_v44 }
 0x189   : > { %v11014_v12 = vadd.f32 %v1066_v15, %v828_v38 }
 0x18b   : > { %17229 = vst [vmem:[#allocation34_spill] sm:$0xff] %v11014_v12  ;;  %v979_v24 = vpop.f32.mrf.mxu2 }
 0x18c   : > { %v1068_v25 = vpop.f32.mrf.mxu3  ;;  %v653_v1 = vpop.f32.mrf.mxu0 }
 0x18d   : > { %v808_v29 = vrot.slane %v653_v1, 1  ;;  %v742_v27 = vpop.f32.mrf.mxu1 }
 0x18e   : > { %v809_v19 = vrot.slane %v742_v27, 1 }
 0x18f   : > { %v825_v18 = vsel %vm818_vm1, %v806_v20, %v808_v29  ;;  %8440 = vmatmul.msk.bf16.gmra.mxu0 %vm525_vm0, %v10629_v30 }
 0x190   : > { %v11020_v28 = vadd.f32 %v979_v24, %v825_v18  ;;  %v826_v26 = vsel %vm818_vm1, %v807_v44, %v809_v19  ;;  %8456 = vmatmul.msk.bf16.gmra.mxu1 %vm525_vm0, %v10629_v30  ;;  %8488 = vmatmul.msk.bf16.gmra.mxu2 %vm525_vm0, %v10629_v30 }
 0x191   : > { %v11028_v34 = vadd.f32 %v1068_v25, %v826_v26  ;;  %8504 = vmatmul.msk.bf16.gmra.mxu3 %vm525_vm0, %v10629_v30 }
 0x192   : > { %17230 = vst [vmem:[#allocation35_spill] sm:$0xff] %v11020_v28 }
 0x193   : > { %17231 = vst [vmem:[#allocation36_spill] sm:$0xff] %v11028_v34  ;;  %v982_v27 = vpop.f32.mrf.mxu2 }
 0x194   : > { %v1071_v1 = vpop.f32.mrf.mxu3  ;;  %v655_v15 = vpop.f32.mrf.mxu0 }
 0x195   : > { %v810_v20 = vrot.slane %v655_v15, 1  ;;  %v744_v8 = vpop.f32.mrf.mxu1 }
 0x196   : > { %v811_v21 = vrot.slane %v744_v8, 1 }
 0x197   : > { %v823_v44 = vsel %vm818_vm1, %v808_v29, %v810_v20 }
 0x198   : > { %v11034_v38 = vadd.f32 %v982_v27, %v823_v44  ;;  %v824_v24 = vsel %vm818_vm1, %v809_v19, %v811_v21 }
 0x199   : > { %v11038_v18 = vadd.f32 %v1071_v1, %v824_v24 }
 0x19b   : > { %v984_v25 = vpop.f32.mrf.mxu2 }
 0x19c   : > { %v1073_v26 = vpop.f32.mrf.mxu3  ;;  %v658_v34 = vpop.f32.mrf.mxu0 }
 0x19d   : > { %v812_v30 = vrot.slane %v658_v34, 1  ;;  %v747_v28 = vpop.f32.mrf.mxu1 }
 0x19e   : > { %v813_v12 = vrot.slane %v747_v28, 1 }
 0x19f   : > { %v821_v15 = vsel %vm818_vm1, %v810_v20, %v812_v30  ;;  %8441 = vmatmul.msk.bf16.gmra.mxu0 %vm525_vm0, %v10640_v31 }
 0x1a0   : > { %v11044_v29 = vadd.f32 %v984_v25, %v821_v15  ;;  %v822_v27 = vsel %vm818_vm1, %v811_v21, %v813_v12  ;;  %8457 = vmatmul.msk.bf16.gmra.mxu1 %vm525_vm0, %v10640_v31  ;;  %8489 = vmatmul.msk.bf16.gmra.mxu2 %vm525_vm0, %v10640_v31 }
 0x1a1   : > { %v11052_v19 = vadd.f32 %v1073_v26, %v822_v27  ;;  %8505 = vmatmul.msk.bf16.gmra.mxu3 %vm525_vm0, %v10640_v31  ;;  %v17235_v26 = vrot.slane %v10653_v33, 1 }
 0x1a3   : > { %17232 = vst [vmem:[#allocation37_spill] sm:$0xff] %v11052_v19  ;;  %v987_v28 = vpop.f32.mrf.mxu2 }
 0x1a4   : > { %v1076_v34 = vpop.f32.mrf.mxu3  ;;  %v660_v1 = vpop.f32.mrf.mxu0 }
 0x1a5   : > { %v814_v20 = vrot.slane %v660_v1, 1  ;;  %v749_v8 = vpop.f32.mrf.mxu1  ;;  %v17237_v1 = vrot.slane %v10655_v35, 1 }
 0x1a6   : > { %v815_v44 = vrot.slane %v749_v8, 1 }
 0x1a7   : > { %v819_v21 = vsel %vm818_vm1, %v812_v30, %v814_v20  ;;  %v881_v31 = vsel %vm818_vm1, %v814_v20, %v17235_v26 }
 0x1a8   : > { %v11058_v24 = vadd.f32 %v987_v28, %v819_v21  ;;  %v820_v25 = vsel %vm818_vm1, %v813_v12, %v815_v44  ;;  %v882_v30 = vsel %vm818_vm1, %v815_v44, %v17237_v1 }
 0x1a9   : > { %v11062_v15 = vadd.f32 %v1076_v34, %v820_v25 }
 0x1aa   : > { %17233 = vst [vmem:[#allocation38_spill] sm:$0xff] %v11058_v24 }
 0x1ab   : > { %17234 = vst [vmem:[#allocation39_spill] sm:$0xff] %v11062_v15  ;;  %v989_v27 = vpop.f32.mrf.mxu2 }
 0x1ac   : > { %v11068_v19 = vadd.f32 %v989_v27, %v881_v31  ;;  %v1078_v28 = vpop.f32.mrf.mxu3  ;;  %v11074_v8 = vpop.f32.mrf.mxu0 }
 0x1ad   : > { %v11076_v21 = vadd.f32 %v1078_v28, %v882_v30  ;;  %v11078_v12 = vpop.f32.mrf.mxu1  ;;  %v16991_v44 = vrot.slane %v11074_v8, 2 }
 0x1ae   : > { %17236 = vst [vmem:[#allocation40_spill] sm:$0xff] %v11068_v19  ;;  %v16992_v35 = vrot.slane %v11078_v12, 2 }
 0x1af   : > { %17238 = vst [vmem:[#allocation41_spill] sm:$0xff] %v11076_v21  ;;  %8442 = vmatmul.msk.bf16.gmra.mxu0 %vm525_vm0, %v10651_v32 }
 0x1b0   : > { %8458 = vmatmul.msk.bf16.gmra.mxu1 %vm525_vm0, %v10651_v32  ;;  %8490 = vmatmul.msk.bf16.gmra.mxu2 %vm525_vm0, %v10651_v32 }
 0x1b1   : > { %8506 = vmatmul.msk.bf16.gmra.mxu3 %vm525_vm0, %v10651_v32 }
 0x1b3   : > { %v11088_v33 = vpop.f32.mrf.mxu2 }
 0x1b4   : > { %17239 = vst [vmem:[#allocation42_spill] sm:$0xff] %v11088_v33  ;;  %v11091_v34 = vpop.f32.mrf.mxu3  ;;  %v1117_v20 = vpop.f32.mrf.mxu0  ;;  %v16994_v28 = vrot.slane %v11088_v33, 3 }
 0x1b5   : > { %17240 = vst [vmem:[#allocation43_spill] sm:$0xff] %v11091_v34  ;;  %v1286_v25 = vrot.slane %v1117_v20, 2  ;;  %v1206_v26 = vpop.f32.mrf.mxu1  ;;  %v16993_v20 = vrot.slane %v11091_v34, 3 }
 0x1b6   : > { %v1287_v31 = vrot.slane %v1206_v26, 2 }
 0x1b7   : > { %v1409_v27 = vsel %vm1348_vm2, %v16991_v44, %v1286_v25 }
 0x1b8   : > { %v1413_v32 = vadd.f32 %v1409_v27, %v10675_v46  ;;  %v1410_v1 = vsel %vm1348_vm2, %v16992_v35, %v1287_v31 }
 0x1b9   : > { %v1414_v30 = vadd.f32 %v1410_v1, %v10681_v48 }
 0x1bb   : > { %v1513_v21 = vpop.f32.mrf.mxu2 }
 0x1bc   : > { %v1682_v26 = vrot.slane %v1513_v21, 3  ;;  %v1602_v15 = vpop.f32.mrf.mxu3  ;;  %v1120_v19 = vpop.f32.mrf.mxu0 }
 0x1bd   : > { %v1683_v44 = vrot.slane %v1602_v15, 3  ;;  %v1288_v24 = vrot.slane %v1120_v19, 2  ;;  %v1209_v46 = vpop.f32.mrf.mxu1 }
 0x1be   : > { %v1805_v27 = vsel %vm1744_vm3, %v16994_v28, %v1682_v26  ;;  %v1289_v35 = vrot.slane %v1209_v46, 2 }
 0x1bf   : > { %v11112_v48 = vadd.f32 %v1805_v27, %v1413_v32  ;;  %v1806_v1 = vsel %vm1744_vm3, %v16993_v20, %v1683_v44  ;;  %v1407_v21 = vsel %vm1348_vm2, %v1286_v25, %v1288_v24  ;;  %8443 = vmatmul.msk.bf16.gmra.mxu0 %vm525_vm0, %v10684_v50 }
 0x1c0   : > { %v11122_v19 = vadd.f32 %v1806_v1, %v1414_v30  ;;  %v1415_v15 = vadd.f32 %v1407_v21, %v10690_v57  ;;  %v1408_v46 = vsel %vm1348_vm2, %v1287_v31, %v1289_v35  ;;  %8459 = vmatmul.msk.bf16.gmra.mxu1 %vm525_vm0, %v10684_v50  ;;  %8491 = vmatmul.msk.bf16.gmra.mxu2 %vm525_vm0, %v10684_v50 }
 0x1c1   : > { %v1416_v32 = vadd.f32 %v1408_v46, %v10698_v59  ;;  %8507 = vmatmul.msk.bf16.gmra.mxu3 %vm525_vm0, %v10684_v50 }
 0x1c2   : > { %17241 = vst [vmem:[#allocation44_spill] sm:$0xff] %v11122_v19 }
 0x1c3   : > { %v1516_v25 = vpop.f32.mrf.mxu2 }
 0x1c4   : > { %v1684_v27 = vrot.slane %v1516_v25, 3  ;;  %v1605_v30 = vpop.f32.mrf.mxu3  ;;  %v1122_v1 = vpop.f32.mrf.mxu0 }
 0x1c5   : > { %v1685_v20 = vrot.slane %v1605_v30, 3  ;;  %v1290_v57 = vrot.slane %v1122_v1, 2  ;;  %v1211_v21 = vpop.f32.mrf.mxu1 }
 0x1c6   : > { %v1803_v31 = vsel %vm1744_vm3, %v1682_v26, %v1684_v27  ;;  %v1291_v28 = vrot.slane %v1211_v21, 2 }
 0x1c7   : > { %v11136_v34 = vadd.f32 %v1803_v31, %v1415_v15  ;;  %v1804_v33 = vsel %vm1744_vm3, %v1683_v44, %v1685_v20  ;;  %v1405_v59 = vsel %vm1348_vm2, %v1288_v24, %v1290_v57 }
 0x1c8   : > { %v11142_v50 = vadd.f32 %v1804_v33, %v1416_v32  ;;  %v1417_v46 = vadd.f32 %v1405_v59, %v10704_v3  ;;  %v1406_v25 = vsel %vm1348_vm2, %v1289_v35, %v1291_v28 }
 0x1c9   : > { %17242 = vst [vmem:[#allocation45_spill] sm:$0xff] %v11136_v34  ;;  %v1418_v30 = vadd.f32 %v1406_v25, %v10708_v5 }
 0x1cb   : > { %v1518_v1 = vpop.f32.mrf.mxu2 }
 0x1cc   : > { %v1686_v26 = vrot.slane %v1518_v1, 3  ;;  %v1607_v21 = vpop.f32.mrf.mxu3  ;;  %v1125_v15 = vpop.f32.mrf.mxu0 }
 0x1cd   : > { %v1687_v31 = vrot.slane %v1607_v21, 3  ;;  %v1292_v34 = vrot.slane %v1125_v15, 2  ;;  %v1214_v19 = vpop.f32.mrf.mxu1 }
 0x1ce   : > { %v1801_v44 = vsel %vm1744_vm3, %v1684_v27, %v1686_v26  ;;  %v1293_v24 = vrot.slane %v1214_v19, 2 }
 0x1cf   : > { %v11150_v33 = vadd.f32 %v1801_v44, %v1417_v46  ;;  %v1802_v3 = vsel %vm1744_vm3, %v1685_v20, %v1687_v31  ;;  %v1403_v35 = vsel %vm1348_vm2, %v1290_v57, %v1292_v34  ;;  %8444 = vmatmul.msk.bf16.gmra.mxu0 %vm525_vm0, %v10711_v7 }
 0x1d0   : > { %v11158_v5 = vadd.f32 %v1802_v3, %v1418_v30  ;;  %v1419_v32 = vadd.f32 %v1403_v35, %v10717_v14  ;;  %v1404_v59 = vsel %vm1348_vm2, %v1291_v28, %v1293_v24  ;;  %8460 = vmatmul.msk.bf16.gmra.mxu1 %vm525_vm0, %v10711_v7  ;;  %8492 = vmatmul.msk.bf16.gmra.mxu2 %vm525_vm0, %v10711_v7 }
 0x1d1   : > { %v1420_v20 = vadd.f32 %v1404_v59, %v10725_v16  ;;  %8508 = vmatmul.msk.bf16.gmra.mxu3 %vm525_vm0, %v10711_v7 }
 0x1d3   : > { %v1521_v19 = vpop.f32.mrf.mxu2 }
 0x1d4   : > { %v1688_v27 = vrot.slane %v1521_v19, 3  ;;  %v1610_v57 = vpop.f32.mrf.mxu3  ;;  %v1127_v46 = vpop.f32.mrf.mxu0 }
 0x1d5   : > { %v1689_v25 = vrot.slane %v1610_v57, 3  ;;  %v1294_v14 = vrot.slane %v1127_v46, 2  ;;  %v1216_v30 = vpop.f32.mrf.mxu1 }
 0x1d6   : > { %v1799_v28 = vsel %vm1744_vm3, %v1686_v26, %v1688_v27  ;;  %v1295_v1 = vrot.slane %v1216_v30, 2 }
 0x1d7   : > { %v11172_v21 = vadd.f32 %v1799_v28, %v1419_v32  ;;  %v1800_v15 = vsel %vm1744_vm3, %v1687_v31, %v1689_v25  ;;  %v1401_v16 = vsel %vm1348_vm2, %v1292_v34, %v1294_v14 }
 0x1d8   : > { %v11178_v7 = vadd.f32 %v1800_v15, %v1420_v20  ;;  %v1421_v44 = vadd.f32 %v1401_v16, %v10731_v37  ;;  %v1402_v3 = vsel %vm1348_vm2, %v1293_v24, %v1295_v1 }
 0x1d9   : > { %v1422_v35 = vadd.f32 %v1402_v3, %v10735_v40 }
 0x1db   : > { %v1523_v59 = vpop.f32.mrf.mxu2 }
 0x1dc   : > { %v1690_v26 = vrot.slane %v1523_v59, 3  ;;  %v1612_v19 = vpop.f32.mrf.mxu3  ;;  %v1130_v32 = vpop.f32.mrf.mxu0 }
 0x1dd   : > { %v1691_v57 = vrot.slane %v1612_v19, 3  ;;  %v1296_v46 = vrot.slane %v1130_v32, 2  ;;  %v1219_v30 = vpop.f32.mrf.mxu1 }
 0x1de   : > { %v1797_v31 = vsel %vm1744_vm3, %v1688_v27, %v1690_v26  ;;  %v1297_v34 = vrot.slane %v1219_v30, 2 }
 0x1df   : > { %v11186_v20 = vadd.f32 %v1797_v31, %v1421_v44  ;;  %v1798_v37 = vsel %vm1744_vm3, %v1689_v25, %v1691_v57  ;;  %v1399_v24 = vsel %vm1348_vm2, %v1294_v14, %v1296_v46  ;;  %8445 = vmatmul.msk.bf16.gmra.mxu0 %vm525_vm0, %v10738_v43 }
 0x1e0   : > { %v11194_v40 = vadd.f32 %v1798_v37, %v1422_v35  ;;  %v1423_v28 = vadd.f32 %v1399_v24, %v10744_v53  ;;  %v1400_v15 = vsel %vm1348_vm2, %v1295_v1, %v1297_v34  ;;  %8461 = vmatmul.msk.bf16.gmra.mxu1 %vm525_vm0, %v10738_v43  ;;  %8493 = vmatmul.msk.bf16.gmra.mxu2 %vm525_vm0, %v10738_v43  ;;  %v8524_v37 = vld [vmem:[#allocation2 + $0x90] sm:$0xf]  ;;  %v9626_v24 = vld [vmem:[#allocation2 + $0x94] sm:$0xf0] }
 0x1e1   : > { %v1424_v27 = vadd.f32 %v1400_v15, %v10752_v55  ;;  %8509 = vmatmul.msk.bf16.gmra.mxu3 %vm525_vm0, %v10738_v43  ;;  %v8525_v15 = vor.u32 %v9626_v24, %v8524_v37 }
 0x1e3   : > { %v1526_v25 = vpop.f32.mrf.mxu2  ;;  %1904 = vmatpush.bf16.msra.mxu0 %v8525_v15 }
 0x1e4   : > { %v1692_v14 = vrot.slane %v1526_v25, 3  ;;  %v1615_v16 = vpop.f32.mrf.mxu3  ;;  %v1132_v44 = vpop.f32.mrf.mxu0 }
 0x1e5   : > { %v1693_v3 = vrot.slane %v1615_v16, 3  ;;  %v1298_v53 = vrot.slane %v1132_v44, 2  ;;  %v1221_v35 = vpop.f32.mrf.mxu1 }
 0x1e6   : > { %v1795_v1 = vsel %vm1744_vm3, %v1690_v26, %v1692_v14  ;;  %v1299_v59 = vrot.slane %v1221_v35, 2 }
 0x1e7   : > { %v11208_v19 = vadd.f32 %v1795_v1, %v1423_v28  ;;  %v1796_v32 = vsel %vm1744_vm3, %v1691_v57, %v1693_v3  ;;  %v1397_v55 = vsel %vm1348_vm2, %v1296_v46, %v1298_v53 }
 0x1e8   : > { %v11214_v43 = vadd.f32 %v1796_v32, %v1424_v27  ;;  %v1425_v30 = vadd.f32 %v1397_v55, %v10758_v6  ;;  %v1398_v31 = vsel %vm1348_vm2, %v1297_v34, %v1299_v59 }
 0x1e9   : > { %v1426_v26 = vadd.f32 %v1398_v31, %v10762_v9 }
 0x1eb   : > { %v1528_v28 = vpop.f32.mrf.mxu2 }
 0x1ec   : > { %v1694_v25 = vrot.slane %v1528_v28, 3  ;;  %v1617_v16 = vpop.f32.mrf.mxu3  ;;  %v1135_v57 = vpop.f32.mrf.mxu0 }
 0x1ed   : > { %v1695_v44 = vrot.slane %v1617_v16, 3  ;;  %v1300_v35 = vrot.slane %v1135_v57, 2  ;;  %v1224_v46 = vpop.f32.mrf.mxu1 }
 0x1ee   : > { %v1793_v27 = vsel %vm1744_vm3, %v1692_v14, %v1694_v25  ;;  %v1301_v6 = vrot.slane %v1224_v46, 2  ;;  %v9625_v14 = vld [vmem:[#allocation2 + $0x94] sm:$0xf] }
 0x1ef   : > { %v11222_v1 = vadd.f32 %v1793_v27, %v1425_v30  ;;  %v1794_v34 = vsel %vm1744_vm3, %v1693_v3, %v1695_v44  ;;  %v1395_v9 = vsel %vm1348_vm2, %v1298_v53, %v1300_v35  ;;  %8446 = vmatmul.msk.bf16.gmra.mxu0 %vm525_vm0, %v10765_v11  ;;  %v8526_v3 = vld [vmem:[#allocation2 + $0x98] sm:$0xf0] }
 0x1f0   : > { %v11230_v32 = vadd.f32 %v1794_v34, %v1426_v26  ;;  %v1427_v55 = vadd.f32 %v1395_v9, %v10771_v23  ;;  %v1396_v31 = vsel %vm1348_vm2, %v1299_v59, %v1301_v6  ;;  %8462 = vmatmul.msk.bf16.gmra.mxu1 %vm525_vm0, %v10765_v11  ;;  %8494 = vmatmul.msk.bf16.gmra.mxu2 %vm525_vm0, %v10765_v11 }
 0x1f1   : > { %v1428_v53 = vadd.f32 %v1396_v31, %v10779_v42  ;;  %8510 = vmatmul.msk.bf16.gmra.mxu3 %vm525_vm0, %v10765_v11  ;;  %v8529_v30 = vor.u32 %v9625_v14, %v8526_v3 }
 0x1f3   : > { %v11242_v37 = vpop.f32.mrf.mxu2  ;;  %1993 = vmatpush.bf16.msra.mxu1 %v8529_v30 }
 0x1f4   : > { %v16998_v23 = vrot.slane %v11242_v37, 3  ;;  %v11245_v59 = vpop.f32.mrf.mxu3  ;;  %v1137_v24 = vpop.f32.mrf.mxu0 }
 0x1f5   : > { %v16997_v26 = vrot.slane %v11245_v59, 3  ;;  %v1302_v15 = vrot.slane %v1137_v24, 2  ;;  %v1226_v28 = vpop.f32.mrf.mxu1 }
 0x1f6   : > { %v1791_v42 = vsel %vm1744_vm3, %v1694_v25, %v16998_v23  ;;  %v1303_v16 = vrot.slane %v1226_v28, 2 }
 0x1f7   : > { %v11252_v11 = vadd.f32 %v1791_v42, %v1427_v55  ;;  %v1792_v57 = vsel %vm1744_vm3, %v1695_v44, %v16997_v26  ;;  %v1393_v46 = vsel %vm1348_vm2, %v1300_v35, %v1302_v15 }
 0x1f8   : > { %v11260_v27 = vadd.f32 %v1792_v57, %v1428_v53  ;;  %v11263_v34 = vadd.f32 %v1393_v46, %v10785_v56  ;;  %v1394_v9 = vsel %vm1348_vm2, %v1301_v6, %v1303_v16  ;;  %v9623_v57 = vld [vmem:[#allocation2 + $0x84] sm:$0xf] }
 0x1f9   : > { %v11268_v25 = vadd.f32 %v1394_v9, %v10789_v60  ;;  %v8518_v9 = vld [vmem:[#allocation2 + $0x88] sm:$0xf0] }
 0x1fc   : > { %v1140_v55 = vpop.f32.mrf.mxu0 }
 0x1fd   : > { %v1304_v31 = vrot.slane %v1140_v55, 2  ;;  %v1229_v14 = vpop.f32.mrf.mxu1 }
 0x1fe   : > { %v1305_v3 = vrot.slane %v1229_v14, 2 }
 0x1ff   : > { %v1391_v44 = vsel %vm1348_vm2, %v1302_v15, %v1304_v31  ;;  %8447 = vmatmul.msk.bf16.gmra.mxu0 %vm525_vm0, %v10792_v62 }
 0x200   : > { %v11275_v35 = vadd.f32 %v1391_v44, %v10798_v10  ;;  %v1392_v56 = vsel %vm1348_vm2, %v1303_v16, %v1305_v3  ;;  %8463 = vmatmul.msk.bf16.gmra.mxu1 %vm525_vm0, %v10792_v62  ;;  %8495 = vmatmul.msk.bf16.gmra.mxu2 %vm525_vm0, %v10792_v62  ;;  %v9624_v16 = vld [vmem:[#allocation2 + $0x84] sm:$0xf0]  ;;  %v8521_v44 = vor.u32 %v9623_v57, %v8518_v9 }
 0x201   : > { %v11284_v60 = vadd.f32 %v1392_v56, %v10806_v13  ;;  %8511 = vmatmul.msk.bf16.gmra.mxu3 %vm525_vm0, %v10792_v62  ;;  %v8516_v13 = vld [vmem:[#allocation2 + $0x80] sm:$0xf] }
 0x202   : > { %v8517_v46 = vor.u32 %v9624_v16, %v8516_v13  ;;  %1994 = vmatpush.bf16.msra.mxu1 %v8521_v44 }
 0x204   : > { %v1142_v6 = vpop.f32.mrf.mxu0  ;;  %1905 = vmatpush.bf16.msra.mxu0 %v8517_v46 }
 0x205   : > { %v1306_v53 = vrot.slane %v1142_v6, 2  ;;  %v1231_v30 = vpop.f32.mrf.mxu1 }
 0x206   : > { %v1307_v10 = vrot.slane %v1231_v30, 2 }
 0x207   : > { %v1389_v24 = vsel %vm1348_vm2, %v1304_v31, %v1306_v53 }
 0x208   : > { %v11291_v15 = vadd.f32 %v1389_v24, %v10812_v47  ;;  %v1390_v28 = vsel %vm1348_vm2, %v1305_v3, %v1307_v10 }
 0x209   : > { %v11296_v42 = vadd.f32 %v1390_v28, %v10816_v54 }
 0x20c   : > { %v1145_v62 = vpop.f32.mrf.mxu0 }
 0x20d   : > { %v1308_v55 = vrot.slane %v1145_v62, 2  ;;  %v1234_v14 = vpop.f32.mrf.mxu1 }
 0x20e   : > { %v1309_v56 = vrot.slane %v1234_v14, 2 }
 0x20f   : > { %v1387_v47 = vsel %vm1348_vm2, %v1306_v53, %v1308_v55  ;;  %8448 = vmatmul.msk.bf16.gmra.mxu0 %vm525_vm0, %v10819_v61 }
 0x210   : > { %v11303_v54 = vadd.f32 %v1387_v47, %v10825_v0  ;;  %v1388_v31 = vsel %vm1348_vm2, %v1307_v10, %v1309_v56  ;;  %8464 = vmatmul.msk.bf16.gmra.mxu1 %vm525_vm0, %v10819_v61  ;;  %8496 = vmatmul.msk.bf16.gmra.mxu2 %vm525_vm0, %v10819_v61 }
 0x211   : > { %v11312_v3 = vadd.f32 %v1388_v31, %v10833_v2  ;;  %8512 = vmatmul.msk.bf16.gmra.mxu3 %vm525_vm0, %v10819_v61 }
 0x214   : > { %v1147_v6 = vpop.f32.mrf.mxu0 }
 0x215   : > { %v1310_v53 = vrot.slane %v1147_v6, 2  ;;  %v1236_v30 = vpop.f32.mrf.mxu1  ;;  %v17244_v6 = vld [vmem:[#allocation16_spill] sm:$0xff] }
 0x216   : > { %v1311_v0 = vrot.slane %v1236_v30, 2 }
 0x217   : > { %v1385_v24 = vsel %vm1348_vm2, %v1308_v55, %v1310_v53 }
 0x218   : > { %v11319_v10 = vadd.f32 %v1385_v24, %v10839_v22  ;;  %v1386_v28 = vsel %vm1348_vm2, %v1309_v56, %v1311_v0 }
 0x219   : > { %v11324_v13 = vadd.f32 %v1386_v28, %v10843_v39  ;;  %v17243_v39 = vld [vmem:[#allocation15_spill] sm:$0xff] }
 0x21c   : > { %v1150_v2 = vpop.f32.mrf.mxu0 }
 0x21d   : > { %v1312_v16 = vrot.slane %v1150_v2, 2  ;;  %v1239_v57 = vpop.f32.mrf.mxu1  ;;  %v10233_v2 = vld [vmem:[%s10560_s21] sm:$0xff] }
 0x21e   : > { %v1313_v61 = vrot.slane %v1239_v57, 2 }
 0x21f   : > { %v1383_v62 = vsel %vm1348_vm2, %v1310_v53, %v1312_v16  ;;  %8449 = vmatmul.msk.bf16.gmra.mxu0 %vm525_vm0, %v10846_v49 }
 0x220   : > { %v11331_v46 = vadd.f32 %v1383_v62, %v10852_v4  ;;  %v1384_v22 = vsel %vm1348_vm2, %v1311_v0, %v1313_v61  ;;  %8465 = vmatmul.msk.bf16.gmra.mxu1 %vm525_vm0, %v10846_v49  ;;  %8497 = vmatmul.msk.bf16.gmra.mxu2 %vm525_vm0, %v10846_v49 }
 0x221   : > { %v11340_v9 = vadd.f32 %v1384_v22, %v17243_v39  ;;  %8513 = vmatmul.msk.bf16.gmra.mxu3 %vm525_vm0, %v10846_v49 }
 0x224   : > { %v1152_v55 = vpop.f32.mrf.mxu0 }
 0x225   : > { %v1314_v14 = vrot.slane %v1152_v55, 2  ;;  %v1241_v4 = vpop.f32.mrf.mxu1 }
 0x226   : > { %v1315_v44 = vrot.slane %v1241_v4, 2 }
 0x227   : > { %v1381_v56 = vsel %vm1348_vm2, %v1312_v16, %v1314_v14  ;;  %v17245_v16 = vld [vmem:[#allocation17_spill] sm:$0xff] }
 0x228   : > { %v11347_v47 = vadd.f32 %v1381_v56, %v10866_v45  ;;  %v1382_v31 = vsel %vm1348_vm2, %v1313_v61, %v1315_v44  ;;  %v17246_v61 = vld [vmem:[#allocation18_spill] sm:$0xff] }
 0x229   : > { %v11352_v53 = vadd.f32 %v1382_v31, %v17244_v6 }
 0x22c   : > { %v1155_v30 = vpop.f32.mrf.mxu0 }
 0x22d   : > { %v1316_v0 = vrot.slane %v1155_v30, 2  ;;  %v1244_v24 = vpop.f32.mrf.mxu1 }
 0x22e   : > { %v1317_v49 = vrot.slane %v1244_v24, 2 }
 0x22f   : > { %v1379_v28 = vsel %vm1348_vm2, %v1314_v14, %v1316_v0  ;;  %8530 = vmatmul.msk.bf16.vlgmr.msra.gmra.mxu0 %vm525_vm0, %v10233_v2 }
 0x230   : > { %v11359_v57 = vadd.f32 %v1379_v28, %v17245_v16  ;;  %v1380_v45 = vsel %vm1348_vm2, %v1315_v44, %v1317_v49  ;;  %8546 = vmatmul.msk.bf16.vlgmr.msra.gmra.mxu1 %vm525_vm0, %v10233_v2  ;;  %v17247_v44 = vld [vmem:[#allocation19_spill] sm:$0xff] }
 0x231   : > { %v11365_v62 = vadd.f32 %v1380_v45, %v17246_v61  ;;  %v10234_v45 = vld [vmem:[%s10560_s21 + $0x8] sm:$0xff] }
 0x234   : > { %v1157_v22 = vpop.f32.mrf.mxu0 }
 0x235   : > { %v1318_v39 = vrot.slane %v1157_v22, 2  ;;  %v1246_v55 = vpop.f32.mrf.mxu1 }
 0x236   : > { %v1319_v4 = vrot.slane %v1246_v55, 2 }
 0x237   : > { %v1377_v14 = vsel %vm1348_vm2, %v1316_v0, %v1318_v39  ;;  %v17248_v0 = vld [vmem:[#allocation20_spill] sm:$0xff] }
 0x238   : > { %v11370_v56 = vadd.f32 %v1377_v14, %v10890_v58  ;;  %v1378_v31 = vsel %vm1348_vm2, %v1317_v49, %v1319_v4  ;;  %v17249_v49 = vld [vmem:[#allocation21_spill] sm:$0xff] }
 0x239   : > { %v11375_v6 = vadd.f32 %v1378_v31, %v17247_v44 }
 0x23c   : > { %v1160_v30 = vpop.f32.mrf.mxu0 }
 0x23d   : > { %v1320_v24 = vrot.slane %v1160_v30, 2  ;;  %v1249_v28 = vpop.f32.mrf.mxu1 }
 0x23e   : > { %v1321_v2 = vrot.slane %v1249_v28, 2 }
 0x23f   : > { %v1375_v16 = vsel %vm1348_vm2, %v1318_v39, %v1320_v24  ;;  %8531 = vmatmul.msk.bf16.gmra.mxu0 %vm525_vm0, %v10234_v45 }
 0x240   : > { %v11382_v61 = vadd.f32 %v1375_v16, %v17248_v0  ;;  %v1376_v58 = vsel %vm1348_vm2, %v1319_v4, %v1321_v2  ;;  %8547 = vmatmul.msk.bf16.gmra.mxu1 %vm525_vm0, %v10234_v45  ;;  %v17252_v4 = vld [vmem:[#allocation22_spill] sm:$0xff] }
 0x241   : > { %v11388_v22 = vadd.f32 %v1376_v58, %v17249_v49 }
 0x243   : > { %17250 = vst [vmem:[#allocation15_spill] sm:$0xff] %v11388_v22 }
 0x244   : > { %v1162_v55 = vpop.f32.mrf.mxu0 }
 0x245   : > { %v1322_v14 = vrot.slane %v1162_v55, 2  ;;  %v1251_v31 = vpop.f32.mrf.mxu1 }
 0x246   : > { %v1323_v44 = vrot.slane %v1251_v31, 2  ;;  %v10235_v31 = vld [vmem:[%s10560_s21 + $0x10] sm:$0xff] }
 0x247   : > { %v1373_v39 = vsel %vm1348_vm2, %v1320_v24, %v1322_v14  ;;  %v17254_v24 = vld [vmem:[#allocation23_spill] sm:$0xff] }
 0x248   : > { %v11393_v30 = vadd.f32 %v1373_v39, %v10914_v17  ;;  %v1374_v28 = vsel %vm1348_vm2, %v1321_v2, %v1323_v44  ;;  %v17256_v2 = vld [vmem:[#allocation24_spill] sm:$0xff] }
 0x249   : > { %v11398_v16 = vadd.f32 %v1374_v28, %v17252_v4 }
 0x24a   : > { %17251 = vst [vmem:[#allocation16_spill] sm:$0xff] %v11393_v30 }
 0x24b   : > { %17253 = vst [vmem:[#allocation17_spill] sm:$0xff] %v11398_v16 }
 0x24c   : > { %v1165_v45 = vpop.f32.mrf.mxu0 }
 0x24d   : > { %v1324_v0 = vrot.slane %v1165_v45, 2  ;;  %v1254_v58 = vpop.f32.mrf.mxu1 }
 0x24e   : > { %v1325_v49 = vrot.slane %v1254_v58, 2 }
 0x24f   : > { %v1371_v55 = vsel %vm1348_vm2, %v1322_v14, %v1324_v0  ;;  %8532 = vmatmul.msk.bf16.gmra.mxu0 %vm525_vm0, %v10235_v31 }
 0x250   : > { %v11405_v26 = vadd.f32 %v1371_v55, %v17254_v24  ;;  %v1372_v17 = vsel %vm1348_vm2, %v1323_v44, %v1325_v49  ;;  %8548 = vmatmul.msk.bf16.gmra.mxu1 %vm525_vm0, %v10235_v31  ;;  %v17259_v44 = vld [vmem:[#allocation25_spill] sm:$0xff] }
 0x251   : > { %v11411_v39 = vadd.f32 %v1372_v17, %v17256_v2 }
 0x252   : > { %17255 = vst [vmem:[#allocation18_spill] sm:$0xff] %v11405_v26 }
 0x253   : > { %17257 = vst [vmem:[#allocation19_spill] sm:$0xff] %v11411_v39 }
 0x254   : > { %v1167_v28 = vpop.f32.mrf.mxu0 }
 0x255   : > { %v1326_v4 = vrot.slane %v1167_v28, 2  ;;  %v1256_v45 = vpop.f32.mrf.mxu1 }
 0x256   : > { %v1327_v58 = vrot.slane %v1256_v45, 2  ;;  %v10236_v45 = vld [vmem:[%s10560_s21 + $0x18] sm:$0xff] }
 0x257   : > { %v1369_v14 = vsel %vm1348_vm2, %v1324_v0, %v1326_v4  ;;  %v17261_v0 = vld [vmem:[#allocation26_spill] sm:$0xff] }
 0x258   : > { %v11416_v23 = vadd.f32 %v1369_v14, %v10938_v52  ;;  %v1370_v55 = vsel %vm1348_vm2, %v1325_v49, %v1327_v58  ;;  %v17263_v49 = vld [vmem:[#allocation27_spill] sm:$0xff] }
 0x259   : > { %v11421_v24 = vadd.f32 %v1370_v55, %v17259_v44 }
 0x25a   : > { %17258 = vst [vmem:[#allocation20_spill] sm:$0xff] %v11416_v23 }
 0x25b   : > { %17260 = vst [vmem:[#allocation21_spill] sm:$0xff] %v11421_v24 }
 0x25c   : > { %v1170_v31 = vpop.f32.mrf.mxu0 }
 0x25d   : > { %v1328_v26 = vrot.slane %v1170_v31, 2  ;;  %v1259_v17 = vpop.f32.mrf.mxu1 }
 0x25e   : > { %v1329_v2 = vrot.slane %v1259_v17, 2 }
 0x25f   : > { %v1367_v28 = vsel %vm1348_vm2, %v1326_v4, %v1328_v26  ;;  %8533 = vmatmul.msk.bf16.gmra.mxu0 %vm525_vm0, %v10236_v45 }
 0x260   : > { %v11428_v39 = vadd.f32 %v1367_v28, %v17261_v0  ;;  %v1368_v52 = vsel %vm1348_vm2, %v1327_v58, %v1329_v2  ;;  %8549 = vmatmul.msk.bf16.gmra.mxu1 %vm525_vm0, %v10236_v45  ;;  %v17266_v58 = vld [vmem:[#allocation28_spill] sm:$0xff] }
 0x261   : > { %v11434_v14 = vadd.f32 %v1368_v52, %v17263_v49 }
 0x262   : > { %17262 = vst [vmem:[#allocation22_spill] sm:$0xff] %v11428_v39 }
 0x263   : > { %17264 = vst [vmem:[#allocation23_spill] sm:$0xff] %v11434_v14 }
 0x264   : > { %v1172_v55 = vpop.f32.mrf.mxu0 }
 0x265   : > { %v1330_v44 = vrot.slane %v1172_v55, 2  ;;  %v1261_v31 = vpop.f32.mrf.mxu1 }
 0x266   : > { %v1331_v17 = vrot.slane %v1261_v31, 2  ;;  %v10237_v31 = vld [vmem:[%s10560_s21 + $0x20] sm:$0xff] }
 0x267   : > { %v1365_v4 = vsel %vm1348_vm2, %v1328_v26, %v1330_v44  ;;  %v17268_v26 = vld [vmem:[#allocation29_spill] sm:$0xff] }
 0x268   : > { %v11439_v24 = vadd.f32 %v1365_v4, %v10962_v63  ;;  %v1366_v28 = vsel %vm1348_vm2, %v1329_v2, %v1331_v17  ;;  %v17270_v2 = vld [vmem:[#allocation30_spill] sm:$0xff] }
 0x269   : > { %v11444_v0 = vadd.f32 %v1366_v28, %v17266_v58 }
 0x26a   : > { %17265 = vst [vmem:[#allocation24_spill] sm:$0xff] %v11439_v24 }
 0x26b   : > { %17267 = vst [vmem:[#allocation25_spill] sm:$0xff] %v11444_v0 }
 0x26c   : > { %v1175_v45 = vpop.f32.mrf.mxu0 }
 0x26d   : > { %v1332_v39 = vrot.slane %v1175_v45, 2  ;;  %v1264_v52 = vpop.f32.mrf.mxu1 }
 0x26e   : > { %v1333_v49 = vrot.slane %v1264_v52, 2 }
 0x26f   : > { %v1363_v55 = vsel %vm1348_vm2, %v1330_v44, %v1332_v39  ;;  %8534 = vmatmul.msk.bf16.gmra.mxu0 %vm525_vm0, %v10237_v31 }
 0x270   : > { %v11451_v14 = vadd.f32 %v1363_v55, %v17268_v26  ;;  %v1364_v63 = vsel %vm1348_vm2, %v1331_v17, %v1333_v49  ;;  %8550 = vmatmul.msk.bf16.gmra.mxu1 %vm525_vm0, %v10237_v31  ;;  %v17273_v17 = vld [vmem:[#allocation31_spill] sm:$0xff] }
 0x271   : > { %v11457_v4 = vadd.f32 %v1364_v63, %v17270_v2 }
 0x272   : > { %17269 = vst [vmem:[#allocation26_spill] sm:$0xff] %v11451_v14 }
 0x273   : > { %17271 = vst [vmem:[#allocation27_spill] sm:$0xff] %v11457_v4 }
 0x274   : > { %v1177_v28 = vpop.f32.mrf.mxu0 }
 0x275   : > { %v1334_v58 = vrot.slane %v1177_v28, 2  ;;  %v1266_v45 = vpop.f32.mrf.mxu1 }
 0x276   : > { %v1335_v52 = vrot.slane %v1266_v45, 2  ;;  %v10238_v45 = vld [vmem:[%s10560_s21 + $0x28] sm:$0xff] }
 0x277   : > { %v1361_v44 = vsel %vm1348_vm2, %v1332_v39, %v1334_v58  ;;  %v17275_v39 = vld [vmem:[#allocation32_spill] sm:$0xff] }
 0x278   : > { %v11462_v0 = vadd.f32 %v1361_v44, %v10986_v41  ;;  %v1362_v55 = vsel %vm1348_vm2, %v1333_v49, %v1335_v52  ;;  %v17277_v49 = vld [vmem:[#allocation33_spill] sm:$0xff] }
 0x279   : > { %v11467_v26 = vadd.f32 %v1362_v55, %v17273_v17 }
 0x27a   : > { %17272 = vst [vmem:[#allocation28_spill] sm:$0xff] %v11462_v0 }
 0x27b   : > { %17274 = vst [vmem:[#allocation29_spill] sm:$0xff] %v11467_v26 }
 0x27c   : > { %v1180_v31 = vpop.f32.mrf.mxu0 }
 0x27d   : > { %v1336_v14 = vrot.slane %v1180_v31, 2  ;;  %v1269_v63 = vpop.f32.mrf.mxu1 }
 0x27e   : > { %v1337_v2 = vrot.slane %v1269_v63, 2 }
 0x27f   : > { %v1359_v28 = vsel %vm1348_vm2, %v1334_v58, %v1336_v14  ;;  %8535 = vmatmul.msk.bf16.gmra.mxu0 %vm525_vm0, %v10238_v45 }
 0x280   : > { %v11474_v4 = vadd.f32 %v1359_v28, %v17275_v39  ;;  %v1360_v41 = vsel %vm1348_vm2, %v1335_v52, %v1337_v2  ;;  %8551 = vmatmul.msk.bf16.gmra.mxu1 %vm525_vm0, %v10238_v45  ;;  %v17280_v52 = vld [vmem:[#allocation34_spill] sm:$0xff] }
 0x281   : > { %v11480_v44 = vadd.f32 %v1360_v41, %v17277_v49 }
 0x282   : > { %17276 = vst [vmem:[#allocation30_spill] sm:$0xff] %v11474_v4 }
 0x283   : > { %17278 = vst [vmem:[#allocation31_spill] sm:$0xff] %v11480_v44 }
 0x284   : > { %v1182_v55 = vpop.f32.mrf.mxu0 }
 0x285   : > { %v1338_v17 = vrot.slane %v1182_v55, 2  ;;  %v1271_v31 = vpop.f32.mrf.mxu1 }
 0x286   : > { %v1339_v63 = vrot.slane %v1271_v31, 2  ;;  %v10239_v31 = vld [vmem:[%s10560_s21 + $0x30] sm:$0xff] }
 0x287   : > { %v1357_v58 = vsel %vm1348_vm2, %v1336_v14, %v1338_v17  ;;  %v17282_v14 = vld [vmem:[#allocation35_spill] sm:$0xff] }
 0x288   : > { %v11485_v26 = vadd.f32 %v1357_v58, %v11010_v51  ;;  %v1358_v28 = vsel %vm1348_vm2, %v1337_v2, %v1339_v63  ;;  %v17284_v2 = vld [vmem:[#allocation36_spill] sm:$0xff] }
 0x289   : > { %v11490_v39 = vadd.f32 %v1358_v28, %v17280_v52 }
 0x28a   : > { %17279 = vst [vmem:[#allocation32_spill] sm:$0xff] %v11485_v26 }
 0x28b   : > { %17281 = vst [vmem:[#allocation33_spill] sm:$0xff] %v11490_v39 }
 0x28c   : > { %v1185_v45 = vpop.f32.mrf.mxu0 }
 0x28d   : > { %v1340_v4 = vrot.slane %v1185_v45, 2  ;;  %v1274_v41 = vpop.f32.mrf.mxu1 }
 0x28e   : > { %v1341_v49 = vrot.slane %v1274_v41, 2 }
 0x28f   : > { %v1355_v55 = vsel %vm1348_vm2, %v1338_v17, %v1340_v4  ;;  %8536 = vmatmul.msk.bf16.gmra.mxu0 %vm525_vm0, %v10239_v31 }
 0x290   : > { %v11497_v44 = vadd.f32 %v1355_v55, %v17282_v14  ;;  %v1356_v51 = vsel %vm1348_vm2, %v1339_v63, %v1341_v49  ;;  %8552 = vmatmul.msk.bf16.gmra.mxu1 %vm525_vm0, %v10239_v31 }
 0x291   : > { %v11503_v58 = vadd.f32 %v1356_v51, %v17284_v2 }
 0x292   : > { %17283 = vst [vmem:[#allocation34_spill] sm:$0xff] %v11497_v44 }
 0x293   : > { %17285 = vst [vmem:[#allocation35_spill] sm:$0xff] %v11503_v58 }
 0x294   : > { %v1187_v28 = vpop.f32.mrf.mxu0 }
 0x295   : > { %v1342_v52 = vrot.slane %v1187_v28, 2  ;;  %v1276_v45 = vpop.f32.mrf.mxu1 }
 0x296   : > { %v1343_v41 = vrot.slane %v1276_v45, 2  ;;  %v10240_v45 = vld [vmem:[%s10560_s21 + $0x38] sm:$0xff] }
 0x297   : > { %v1353_v17 = vsel %vm1348_vm2, %v1340_v4, %v1342_v52 }
 0x298   : > { %v11508_v39 = vadd.f32 %v1353_v17, %v11034_v38  ;;  %v1354_v55 = vsel %vm1348_vm2, %v1341_v49, %v1343_v41 }
 0x299   : > { %v11513_v63 = vadd.f32 %v1354_v55, %v11038_v18  ;;  %v17289_v18 = vld [vmem:[#allocation37_spill] sm:$0xff] }
 0x29a   : > { %17286 = vst [vmem:[#allocation36_spill] sm:$0xff] %v11508_v39 }
 0x29b   : > { %17287 = vst [vmem:[#allocation46_spill] sm:$0xff] %v11513_v63  ;;  %v17291_v63 = vrot.slane %v11074_v8, 2  ;;  %v17299_v8 = vld [vmem:[#allocation41_spill] sm:$0xff] }
 0x29c   : > { %v1190_v31 = vpop.f32.mrf.mxu0 }
 0x29d   : > { %v1344_v14 = vrot.slane %v1190_v31, 2  ;;  %v1279_v51 = vpop.f32.mrf.mxu1 }
 0x29e   : > { %v1345_v2 = vrot.slane %v1279_v51, 2 }
 0x29f   : > { %v1351_v28 = vsel %vm1348_vm2, %v1342_v52, %v1344_v14  ;;  %8537 = vmatmul.msk.bf16.gmra.mxu0 %vm525_vm0, %v10240_v45 }
 0x2a0   : > { %v11520_v4 = vadd.f32 %v1351_v28, %v11044_v29  ;;  %v1352_v38 = vsel %vm1348_vm2, %v1343_v41, %v1345_v2  ;;  %8553 = vmatmul.msk.bf16.gmra.mxu1 %vm525_vm0, %v10240_v45  ;;  %v17292_v28 = vld [vmem:[#allocation38_spill] sm:$0xff]  ;;  %v17294_v45 = vld [vmem:[#allocation40_spill] sm:$0xff] }
 0x2a1   : > { %v11526_v49 = vadd.f32 %v1352_v38, %v17289_v18  ;;  %v17296_v18 = vrot.slane %v11078_v12, 2 }
 0x2a2   : > { %17288 = vst [vmem:[#allocation47_spill] sm:$0xff] %v11520_v4 }
 0x2a3   : > { %17290 = vst [vmem:[#allocation37_spill] sm:$0xff] %v11526_v49 }
 0x2a4   : > { %v1192_v17 = vpop.f32.mrf.mxu0 }
 0x2a5   : > { %v1346_v55 = vrot.slane %v1192_v17, 2  ;;  %v1281_v31 = vpop.f32.mrf.mxu1 }
 0x2a6   : > { %v1347_v51 = vrot.slane %v1281_v31, 2 }
 0x2a7   : > { %v1349_v52 = vsel %vm1348_vm2, %v1344_v14, %v1346_v55  ;;  %v1411_v29 = vsel %vm1348_vm2, %v1346_v55, %v17291_v63  ;;  %v17297_v14 = vld [vmem:[#allocation39_spill] sm:$0xff] }
 0x2a8   : > { %v11535_v41 = vadd.f32 %v1349_v52, %v17292_v28  ;;  %v11538_v4 = vadd.f32 %v1411_v29, %v17294_v45  ;;  %v1350_v38 = vsel %vm1348_vm2, %v1345_v2, %v1347_v51  ;;  %v1412_v17 = vsel %vm1348_vm2, %v1347_v51, %v17296_v18  ;;  %v10241_v52 = vld [vmem:[%s10560_s21 + $0x40] sm:$0xff] }
 0x2a9   : > { %v11547_v31 = vadd.f32 %v1350_v38, %v17297_v14  ;;  %v11550_v49 = vadd.f32 %v1412_v17, %v17299_v8  ;;  %v2269_v18 = vld [vmem:[%s16979_s2] sm:$0x3]  ;;  %v11569_v17 = vpop.f32.mrf.mxu2 }
 0x2aa   : > { %17293 = vst [vmem:[#allocation38_spill] sm:$0xff] %v11535_v41 }
 0x2ab   : > { %17295 = vst [vmem:[#allocation40_spill] sm:$0xff] %v11538_v4 }
 0x2ac   : > { %17298 = vst [vmem:[#allocation39_spill] sm:$0xff] %v11547_v31  ;;  %v11552_v63 = vpop.f32.mrf.mxu0 }
 0x2ad   : > { %17300 = vst [vmem:[#allocation41_spill] sm:$0xff] %v11550_v49  ;;  %v11554_v55 = vpop.f32.mrf.mxu1  ;;  %v17000_v51 = vrot.slane %v11552_v63, 4 }
 0x2ae   : > { %17301 = vst [vmem:[#allocation48_spill] sm:$0xff] %v11552_v63  ;;  %v17002_v12 = vrot.slane %v11554_v55, 4  ;;  %v11579_v63 = vperm.slane %v2269_v18, 1 }
 0x2af   : > { %17302 = vst [vmem:[#allocation49_spill] sm:$0xff] %v11554_v55  ;;  %8538 = vmatmul.msk.bf16.gmra.mxu0 %vm525_vm0, %v10241_v52 }
 0x2b0   : > { %8554 = vmatmul.msk.bf16.gmra.mxu1 %vm525_vm0, %v10241_v52  ;;  %v11576_v52 = vperm.slane %v2269_v18, 0 }
 0x2b4   : > { %v1909_v2 = vpop.f32.mrf.mxu0 }
 0x2b5   : > { %v2078_v29 = vrot.slane %v1909_v2, 4  ;;  %v1998_v28 = vpop.f32.mrf.mxu1  ;;  %v17303_v2 = vld [vmem:[#allocation44_spill] sm:$0xff] }
 0x2b6   : > { %v2079_v45 = vrot.slane %v1998_v28, 4 }
 0x2b7   : > { %v2201_v38 = vsel %vm2140_vm4, %v17000_v51, %v2078_v29  ;;  %v11581_v51 = vpop.f32.mrf.mxu3 }
 0x2b8   : > { %v2202_v14 = vsel %vm2140_vm4, %v17002_v12, %v2079_v45  ;;  %v2205_v8 = vadd.f32 %v2201_v38, %v11112_v48  ;;  %v10242_v12 = vld [vmem:[%s10560_s21 + $0x48] sm:$0xff]  ;;  %v17304_v38 = vld [vmem:[#allocation45_spill] sm:$0xff] }
 0x2b9   : > { %v2206_v28 = vadd.f32 %v2202_v14, %v17303_v2 }
 0x2ba   : > { %v2275_v39 = vadd.f32 %v11576_v52, %v2205_v8 }
 0x2bb   : > { %v2276_v48 = vadd.f32 %v11579_v63, %v2206_v28 }
 0x2bc   : > { %v1912_v49 = vpop.f32.mrf.mxu0  ;;  %v2339_v2 = vmax.f32 %v2275_v39, 0.0 }
 0x2bd   : > { %v2080_v31 = vrot.slane %v1912_v49, 4  ;;  %v2001_v4 = vpop.f32.mrf.mxu1  ;;  %v2340_v58 = vmax.f32 %v2276_v48, 0.0 }
 0x2be   : > { %v2081_v41 = vrot.slane %v2001_v4, 4  ;;  %v11594_v4 = vpop.f32.mrf.mxu2  ;;  %v11600_v24 = vrot.slane %v2339_v2, 1 }
 0x2bf   : > { %v2199_v55 = vsel %vm2140_vm4, %v2078_v29, %v2080_v31  ;;  %8539 = vmatmul.msk.bf16.gmra.mxu0 %vm525_vm0, %v10242_v12 }
 0x2c0   : > { %v2207_v14 = vadd.f32 %v2199_v55, %v17304_v38  ;;  %v2200_v18 = vsel %vm2140_vm4, %v2079_v45, %v2081_v41  ;;  %8555 = vmatmul.msk.bf16.gmra.mxu1 %vm525_vm0, %v10242_v12  ;;  %v11598_v38 = vpop.f32.mrf.mxu3  ;;  %17305 = vst [vmem:[#allocation44_spill] sm:$0xff] %v11600_v24 }
 0x2c1   : > { %v2208_v49 = vadd.f32 %v2200_v18, %v11142_v50  ;;  %v11604_v18 = vrot.slane %v2340_v58, 1 }
 0x2c2   : > { %v2277_v8 = vadd.f32 %v11576_v52, %v2207_v14 }
 0x2c3   : > { %v2278_v29 = vadd.f32 %v11579_v63, %v2208_v49  ;;  %17306 = vst [vmem:[#allocation45_spill] sm:$0xff] %v11604_v18 }
 0x2c4   : > { %v1914_v44 = vpop.f32.mrf.mxu0  ;;  %v2341_v26 = vmax.f32 %v2277_v8, 0.0 }
 0x2c5   : > { %v2082_v28 = vrot.slane %v1914_v44, 4  ;;  %v2003_v0 = vpop.f32.mrf.mxu1  ;;  %v2342_v55 = vmax.f32 %v2278_v29, 0.0 }
 0x2c6   : > { %v2083_v45 = vrot.slane %v2003_v0, 4  ;;  %v2405_v12 = vrot.slane %v2341_v26, 1 }
 0x2c7   : > { %v2197_v50 = vsel %vm2140_vm4, %v2080_v31, %v2082_v28  ;;  %v2406_v39 = vrot.slane %v2342_v55, 1 }
 0x2c8   : > { %v2209_v14 = vadd.f32 %v2197_v50, %v11150_v33  ;;  %v2198_v48 = vsel %vm2140_vm4, %v2081_v41, %v2083_v45  ;;  %v2527_v44 = vsel %vm818_vm1, %v11600_v24, %v2405_v12  ;;  %v11622_v41 = vpop.f32.mrf.mxu2 }
 0x2c9   : > { %v2210_v0 = vadd.f32 %v2198_v48, %v11158_v5  ;;  %v11613_v49 = vmax.f32 %v2339_v2, %v2527_v44  ;;  %v2528_v31 = vsel %vm818_vm1, %v11604_v18, %v2406_v39  ;;  %v10243_v44 = vld [vmem:[%s10560_s21 + $0x50] sm:$0xff] }
 0x2ca   : > { %v2279_v8 = vadd.f32 %v11576_v52, %v2209_v14  ;;  %v11619_v29 = vmax.f32 %v2340_v58, %v2528_v31  ;;  %v11628_v58 = vpop.f32.mrf.mxu3 }
 0x2cb   : > { %v2280_v33 = vadd.f32 %v11579_v63, %v2210_v0 }
 0x2cc   : > { %17307 = vst [vmem:[#allocation50_spill] sm:$0xff] %v11619_v29  ;;  %v2343_v50 = vmax.f32 %v2279_v8, 0.0  ;;  %v1917_v23 = vpop.f32.mrf.mxu0 }
 0x2cd   : > { %v2344_v24 = vmax.f32 %v2280_v33, 0.0  ;;  %v2084_v16 = vrot.slane %v1917_v23, 4  ;;  %v2006_v30 = vpop.f32.mrf.mxu1 }
 0x2ce   : > { %v2085_v5 = vrot.slane %v2006_v30, 4  ;;  %v2407_v2 = vrot.slane %v2343_v50, 1 }
 0x2cf   : > { %v2195_v48 = vsel %vm2140_vm4, %v2082_v28, %v2084_v16  ;;  %8540 = vmatmul.msk.bf16.gmra.mxu0 %vm525_vm0, %v10243_v44  ;;  %v2408_v14 = vrot.slane %v2344_v24, 1 }
 0x2d0   : > { %v2211_v0 = vadd.f32 %v2195_v48, %v11172_v21  ;;  %v2196_v31 = vsel %vm2140_vm4, %v2083_v45, %v2085_v5  ;;  %8556 = vmatmul.msk.bf16.gmra.mxu1 %vm525_vm0, %v10243_v44  ;;  %v2525_v23 = vsel %vm818_vm1, %v2405_v12, %v2407_v2 }
 0x2d1   : > { %v2212_v30 = vadd.f32 %v2196_v31, %v11178_v7  ;;  %v11637_v8 = vmax.f32 %v2341_v26, %v2525_v23  ;;  %v2526_v28 = vsel %vm818_vm1, %v2406_v39, %v2408_v14  ;;  %v11648_v26 = vpop.f32.mrf.mxu2 }
 0x2d2   : > { %v11641_v33 = vmax.f32 %v2342_v55, %v2526_v28  ;;  %v2281_v18 = vadd.f32 %v11576_v52, %v2211_v0 }
 0x2d3   : > { %17308 = vst [vmem:[#allocation51_spill] sm:$0xff] %v11637_v8  ;;  %v2282_v21 = vadd.f32 %v11579_v63, %v2212_v30  ;;  %v9912_v45 = vpack.i.bf16 %v11637_v8, %v11613_v49 }
 0x2d4   : > { %17309 = vst [vmem:[#allocation52_spill] sm:$0xff] %v11641_v33  ;;  %v1919_v48 = vpop.f32.mrf.mxu0  ;;  %v2345_v44 = vmax.f32 %v2281_v18, 0.0 }
 0x2d5   : > { %v2086_v22 = vrot.slane %v1919_v48, 4  ;;  %v2008_v12 = vpop.f32.mrf.mxu1  ;;  %9913 = vrot.lane.b32.xlu0 %v9912_v45, %s10418_s27  ;;  %v2346_v7 = vmax.f32 %v2282_v21, 0.0  ;;  %v11662_v48 = vpop.f32.mrf.mxu3 }
 0x2d6   : > { %v2087_v39 = vrot.slane %v2008_v12, 4  ;;  %v2409_v55 = vrot.slane %v2345_v44, 1 }
 0x2d7   : > { %v2193_v0 = vsel %vm2140_vm4, %v2084_v16, %v2086_v22  ;;  %v2410_v31 = vrot.slane %v2346_v7, 1 }
 0x2d8   : > { %v2213_v23 = vadd.f32 %v2193_v0, %v11186_v20  ;;  %v2194_v30 = vsel %vm2140_vm4, %v2085_v5, %v2087_v39  ;;  %v2523_v18 = vsel %vm818_vm1, %v2407_v2, %v2409_v55  ;;  %v9917_v5 = vpack.i.bf16 %v11641_v33, %v11619_v29 }
 0x2d9   : > { %v2214_v28 = vadd.f32 %v2194_v30, %v11194_v40  ;;  %v11658_v45 = vmax.f32 %v2343_v50, %v2523_v18  ;;  %v2524_v21 = vsel %vm818_vm1, %v2408_v14, %v2410_v31 }
 0x2da   : > { %v2283_v16 = vadd.f32 %v11576_v52, %v2213_v23  ;;  %v11665_v12 = vmax.f32 %v2344_v24, %v2524_v21  ;;  %v10244_v23 = vld [vmem:[%s10560_s21 + $0x58] sm:$0xff] }
 0x2db   : > { %v2284_v20 = vadd.f32 %v11579_v63, %v2214_v28  ;;  %v11675_v28 = vpop.f32.mrf.mxu2 }
 0x2dc   : > { %v2347_v2 = vmax.f32 %v2283_v16, 0.0  ;;  %v1922_v0 = vpop.f32.mrf.mxu0 }
 0x2dd   : > { %v2348_v40 = vmax.f32 %v2284_v20, 0.0  ;;  %v2088_v50 = vrot.slane %v1922_v0, 4  ;;  %v2011_v30 = vpop.f32.mrf.mxu1  ;;  %9918 = vrot.lane.b32.xlu0 %v9917_v5, %s10418_s27 }
 0x2de   : > { %v2089_v18 = vrot.slane %v2011_v30, 4  ;;  %v2411_v14 = vrot.slane %v2347_v2, 1 }
 0x2df   : > { %v2191_v8 = vsel %vm2140_vm4, %v2086_v22, %v2088_v50  ;;  %8541 = vmatmul.msk.bf16.gmra.mxu0 %vm525_vm0, %v10244_v23  ;;  %v2412_v24 = vrot.slane %v2348_v40, 1 }
 0x2e0   : > { %v2215_v21 = vadd.f32 %v2191_v8, %v11208_v19  ;;  %v2192_v16 = vsel %vm2140_vm4, %v2087_v39, %v2089_v18  ;;  %8557 = vmatmul.msk.bf16.gmra.mxu1 %vm525_vm0, %v10244_v23  ;;  %v2521_v20 = vsel %vm818_vm1, %v2409_v55, %v2411_v14  ;;  %v11694_v39 = vpop.f32.mrf.mxu3 }
 0x2e1   : > { %v2216_v5 = vadd.f32 %v2192_v16, %v11214_v43  ;;  %v11684_v0 = vmax.f32 %v2345_v44, %v2521_v20  ;;  %v2522_v22 = vsel %vm818_vm1, %v2410_v31, %v2412_v24 }
 0x2e2   : > { %v11688_v30 = vmax.f32 %v2346_v7, %v2522_v22  ;;  %v2285_v33 = vadd.f32 %v11576_v52, %v2215_v21 }
 0x2e3   : > { %17310 = vst [vmem:[#allocation53_spill] sm:$0xff] %v11684_v0  ;;  %v2286_v19 = vadd.f32 %v11579_v63, %v2216_v5  ;;  %v9922_v8 = vpack.i.bf16 %v11684_v0, %v11658_v45 }
 0x2e4   : > { %17311 = vst [vmem:[#allocation54_spill] sm:$0xff] %v11688_v30  ;;  %v1924_v23 = vpop.f32.mrf.mxu0  ;;  %v2349_v55 = vmax.f32 %v2285_v33, 0.0 }
 0x2e5   : > { %v2090_v29 = vrot.slane %v1924_v23, 4  ;;  %v2013_v43 = vpop.f32.mrf.mxu1  ;;  %9923 = vrot.lane.b32.xlu1 %v9922_v8, %s10418_s27  ;;  %v2350_v44 = vmax.f32 %v2286_v19, 0.0  ;;  %v11709_v8 = vpop.f32.mrf.mxu2 }
 0x2e6   : > { %v2091_v16 = vrot.slane %v2013_v43, 4  ;;  %v2413_v31 = vrot.slane %v2349_v55, 1 }
 0x2e7   : > { %v2189_v7 = vsel %vm2140_vm4, %v2088_v50, %v2090_v29  ;;  %v2414_v21 = vrot.slane %v2350_v44, 1 }
 0x2e8   : > { %v2217_v20 = vadd.f32 %v2189_v7, %v11222_v1  ;;  %v2190_v5 = vsel %vm2140_vm4, %v2089_v18, %v2091_v16  ;;  %v2519_v22 = vsel %vm818_vm1, %v2411_v14, %v2413_v31  ;;  %v9927_v18 = vpack.i.bf16 %v11688_v30, %v11665_v12 }
 0x2e9   : > { %v2218_v33 = vadd.f32 %v2190_v5, %v11230_v32  ;;  %v11705_v23 = vmax.f32 %v2347_v2, %v2519_v22  ;;  %v2520_v19 = vsel %vm818_vm1, %v2412_v24, %v2414_v21  ;;  %v11718_v24 = vpop.f32.mrf.mxu3 }
 0x2ea   : > { %v2287_v50 = vadd.f32 %v11576_v52, %v2217_v20  ;;  %v11712_v43 = vmax.f32 %v2348_v40, %v2520_v19  ;;  %v1698_v20 = vrot.slane %v11569_v17, 3 }
 0x2eb   : > { %17312 = vst [vmem:[#allocation55_spill] sm:$0xff] %v11705_v23  ;;  %v2288_v1 = vadd.f32 %v11579_v63, %v2218_v33  ;;  %v10245_v33 = vld [vmem:[%s10560_s21 + $0x60] sm:$0xff] }
 0x2ec   : > { %v2351_v14 = vmax.f32 %v2287_v50, 0.0  ;;  %v1927_v7 = vpop.f32.mrf.mxu0  ;;  %v1699_v50 = vrot.slane %v11581_v51, 3 }
 0x2ed   : > { %v2352_v32 = vmax.f32 %v2288_v1, 0.0  ;;  %v2092_v2 = vrot.slane %v1927_v7, 4  ;;  %v2016_v5 = vpop.f32.mrf.mxu1  ;;  %9928 = vrot.lane.b32.xlu1 %v9927_v18, %s10418_s27 }
 0x2ee   : > { %v2093_v22 = vrot.slane %v2016_v5, 4  ;;  %v2415_v0 = vrot.slane %v2351_v14, 1 }
 0x2ef   : > { %v2187_v40 = vsel %vm2140_vm4, %v2090_v29, %v2092_v2  ;;  %8542 = vmatmul.msk.bf16.gmra.mxu0 %vm525_vm0, %v10245_v33  ;;  %v2416_v19 = vrot.slane %v2352_v32, 1 }
 0x2f0   : > { %v2219_v1 = vadd.f32 %v2187_v40, %v11252_v11  ;;  %v2188_v18 = vsel %vm2140_vm4, %v2091_v16, %v2093_v22  ;;  %8558 = vmatmul.msk.bf16.gmra.mxu1 %vm525_vm0, %v10245_v33  ;;  %v2517_v7 = vsel %vm818_vm1, %v2413_v31, %v2415_v0  ;;  %v17314_v11 = vrot.slane %v11242_v37, 3 }
 0x2f1   : > { %v2220_v17 = vadd.f32 %v2188_v18, %v11260_v27  ;;  %v11733_v5 = vmax.f32 %v2349_v55, %v2517_v7  ;;  %v2518_v29 = vsel %vm818_vm1, %v2414_v21, %v2416_v19  ;;  %v17315_v27 = vrot.slane %v11245_v59, 3  ;;  %v11751_v21 = vpop.f32.mrf.mxu2 }
 0x2f2   : > { %v2289_v30 = vadd.f32 %v11576_v52, %v2219_v1  ;;  %v11738_v51 = vmax.f32 %v2350_v44, %v2518_v29  ;;  %v1789_v16 = vsel %vm1744_vm3, %v17314_v11, %v1698_v20  ;;  %v1700_v59 = vrot.slane %v11594_v4, 3 }
 0x2f3   : > { %17313 = vst [vmem:[#allocation56_spill] sm:$0xff] %v11733_v5  ;;  %v2290_v40 = vadd.f32 %v11579_v63, %v2220_v17  ;;  %v9932_v31 = vpack.i.bf16 %v11733_v5, %v11705_v23  ;;  %v1790_v55 = vsel %vm1744_vm3, %v17315_v27, %v1699_v50  ;;  %v1825_v7 = vadd.f32 %v1789_v16, %v11263_v34 }
 0x2f4   : > { %v1929_v33 = vpop.f32.mrf.mxu0  ;;  %v2353_v44 = vmax.f32 %v2289_v30, 0.0  ;;  %v1826_v11 = vadd.f32 %v1790_v55, %v11268_v25  ;;  %v1701_v23 = vrot.slane %v11598_v38, 3  ;;  %v11760_v30 = vpop.f32.mrf.mxu3  ;;  %v1787_v38 = vsel %vm1744_vm3, %v1698_v20, %v1700_v59 }
 0x2f5   : > { %v2094_v1 = vrot.slane %v1929_v33, 4  ;;  %v2018_v18 = vpop.f32.mrf.mxu1  ;;  %9933 = vrot.lane.b32.xlu2 %v9932_v31, %s10418_s27  ;;  %v2354_v37 = vmax.f32 %v2290_v40, 0.0 }
 0x2f6   : > { %v2095_v17 = vrot.slane %v2018_v18, 4  ;;  %v2417_v29 = vrot.slane %v2353_v44, 1 }
 0x2f7   : > { %v2185_v27 = vsel %vm2140_vm4, %v2092_v2, %v2094_v1  ;;  %v2418_v5 = vrot.slane %v2354_v37, 1 }
 0x2f8   : > { %v2221_v33 = vadd.f32 %v2185_v27, %v1825_v7  ;;  %v2186_v40 = vsel %vm2140_vm4, %v2093_v22, %v2095_v17  ;;  %v2515_v34 = vsel %vm818_vm1, %v2415_v0, %v2417_v29  ;;  %v9937_v22 = vpack.i.bf16 %v11738_v51, %v11712_v43 }
 0x2f9   : > { %v2222_v16 = vadd.f32 %v2186_v40, %v1826_v11  ;;  %v2516_v25 = vsel %vm818_vm1, %v2416_v19, %v2418_v5  ;;  %v11768_v4 = vmax.f32 %v2351_v14, %v2515_v34  ;;  %v1788_v0 = vsel %vm1744_vm3, %v1699_v50, %v1701_v23  ;;  %v11782_v27 = vpop.f32.mrf.mxu2 }
 0x2fa   : > { %v2291_v2 = vadd.f32 %v11576_v52, %v2221_v33  ;;  %v11771_v31 = vmax.f32 %v2352_v32, %v2516_v25  ;;  %v1827_v32 = vadd.f32 %v1787_v38, %v11275_v35  ;;  %v1828_v40 = vadd.f32 %v1788_v0, %v11284_v60 }
 0x2fb   : > { %v2292_v55 = vadd.f32 %v11579_v63, %v2222_v16  ;;  %v1702_v34 = vrot.slane %v11622_v41, 3  ;;  %v10246_v16 = vld [vmem:[%s10560_s21 + $0x68] sm:$0xff] }
 0x2fc   : > { %v2355_v18 = vmax.f32 %v2291_v2, 0.0  ;;  %v1932_v19 = vpop.f32.mrf.mxu0  ;;  %v1703_v2 = vrot.slane %v11628_v58, 3 }
 0x2fd   : > { %v2356_v14 = vmax.f32 %v2292_v55, 0.0  ;;  %v2096_v7 = vrot.slane %v1932_v19, 4  ;;  %v2021_v11 = vpop.f32.mrf.mxu1  ;;  %9938 = vrot.lane.b32.xlu2 %v9937_v22, %s10418_s27  ;;  %v11800_v22 = vpop.f32.mrf.mxu3 }
 0x2fe   : > { %v2097_v20 = vrot.slane %v2021_v11, 4  ;;  %v2419_v33 = vrot.slane %v2355_v18, 1 }
 0x2ff   : > { %v2183_v50 = vsel %vm2140_vm4, %v2094_v1, %v2096_v7  ;;  %8543 = vmatmul.msk.bf16.gmra.mxu0 %vm525_vm0, %v10246_v16  ;;  %v2420_v25 = vrot.slane %v2356_v14, 1 }
 0x300   : > { %v2223_v55 = vadd.f32 %v2183_v50, %v1827_v32  ;;  %v2184_v35 = vsel %vm2140_vm4, %v2095_v17, %v2097_v20  ;;  %8559 = vmatmul.msk.bf16.gmra.mxu1 %vm525_vm0, %v10246_v16  ;;  %v2513_v60 = vsel %vm818_vm1, %v2417_v29, %v2419_v33  ;;  %v1785_v17 = vsel %vm1744_vm3, %v1700_v59, %v1702_v34 }
 0x301   : > { %v2224_v38 = vadd.f32 %v2184_v35, %v1828_v40  ;;  %v2514_v41 = vsel %vm818_vm1, %v2418_v5, %v2420_v25  ;;  %v11798_v1 = vmax.f32 %v2353_v44, %v2513_v60  ;;  %v1786_v5 = vsel %vm1744_vm3, %v1701_v23, %v1703_v2 }
 0x302   : > { %v11803_v0 = vadd.f32 %v11576_v52, %v2223_v55  ;;  %v11805_v58 = vmax.f32 %v2354_v37, %v2514_v41  ;;  %v1829_v50 = vadd.f32 %v1785_v17, %v11291_v15  ;;  %v1704_v16 = vrot.slane %v11648_v26, 3 }
 0x303   : > { %v11810_v19 = vadd.f32 %v11579_v63, %v2224_v38  ;;  %v9942_v29 = vpack.i.bf16 %v11798_v1, %v11768_v4  ;;  %v1830_v35 = vadd.f32 %v1786_v5, %v11296_v42  ;;  %v1705_v60 = vrot.slane %v11662_v48, 3 }
 0x304   : > { %v1934_v44 = vpop.f32.mrf.mxu0  ;;  %v9947_v11 = vpack.i.bf16 %v11805_v58, %v11771_v31  ;;  %v2357_v32 = vmax.f32 %v11803_v0, 0.0  ;;  %v11828_v0 = vpop.f32.mrf.mxu2  ;;  %v1783_v48 = vsel %vm1744_vm3, %v1702_v34, %v1704_v16 }
 0x305   : > { %v2098_v37 = vrot.slane %v1934_v44, 4  ;;  %v2023_v40 = vpop.f32.mrf.mxu1  ;;  %9943 = vrot.lane.b32.xlu0 %v9942_v29, %s10418_s27  ;;  %v2358_v59 = vmax.f32 %v11810_v19, 0.0  ;;  %v1831_v34 = vadd.f32 %v1783_v48, %v11303_v54  ;;  %v8716_v54 = vld [vmem:[%s16980_s3 + $0x1f0] sm:$0xf] }
 0x306   : > { %v2099_v55 = vrot.slane %v2023_v40, 4  ;;  %9948 = vrot.lane.b32.xlu1 %v9947_v11, %s10418_s27  ;;  %v2421_v23 = vrot.slane %v2357_v32, 1  ;;  %v11851_v11 = vpop.f32.mrf.mxu3  ;;  %v10247_v48 = vld [vmem:[%s10560_s21 + $0x70] sm:$0xff] }
 0x307   : > { %v2181_v38 = vsel %vm2140_vm4, %v2096_v7, %v2098_v37  ;;  %v2422_v41 = vrot.slane %v2358_v59, 1 }
 0x308   : > { %v2225_v29 = vadd.f32 %v2181_v38, %v1829_v50  ;;  %v2182_v15 = vsel %vm2140_vm4, %v2097_v20, %v2099_v55  ;;  %v2511_v26 = vsel %vm818_vm1, %v2419_v33, %v2421_v23  ;;  %v1784_v20 = vsel %vm1744_vm3, %v1703_v2, %v1705_v60  ;;  %v8652_v2 = vld [vmem:[%s16980_s3 + $0x170] sm:$0xf] }
 0x309   : > { %v2226_v17 = vadd.f32 %v2182_v15, %v1830_v35  ;;  %v2512_v19 = vsel %vm818_vm1, %v2420_v25, %v2422_v41  ;;  %v11836_v42 = vmax.f32 %v2355_v18, %v2511_v26  ;;  %v1706_v33 = vrot.slane %v11675_v28, 3  ;;  %v9674_v28 = vld [vmem:[%s16980_s3 + $0x174] sm:$0xf0] }
 0x30a   : > { %v11841_v7 = vadd.f32 %v11576_v52, %v2225_v29  ;;  %v11843_v5 = vmax.f32 %v2356_v14, %v2512_v19  ;;  %v1832_v35 = vadd.f32 %v1784_v20, %v11312_v3  ;;  %v8653_v15 = vor.u32 %v9674_v28, %v8652_v2  ;;  %v9690_v26 = vld [vmem:[%s16980_s3 + $0x1f4] sm:$0xf0] }
 0x30b   : > { %v11848_v44 = vadd.f32 %v11579_v63, %v2226_v17  ;;  %v1707_v17 = vrot.slane %v11694_v39, 3  ;;  %v8717_v20 = vor.u32 %v9690_v26, %v8716_v54 }
 0x30c   : > { %v17013_v18 = vmax.f32 %v11841_v7, 0.0  ;;  %v1937_v25 = vpop.f32.mrf.mxu0  ;;  %3111 = vmatpush.bf16.msra.mxu2 %v8653_v15  ;;  %v11889_v54 = vpop.f32.mrf.mxu2 }
 0x30d   : > { %v17012_v40 = vmax.f32 %v11848_v44, 0.0  ;;  %v2100_v14 = vrot.slane %v1937_v25, 4  ;;  %v2026_v50 = vpop.f32.mrf.mxu1  ;;  %3200 = vmatpush.bf16.msra.mxu3 %v8717_v20 }
 0x30e   : > { %v2101_v38 = vrot.slane %v2026_v50, 4  ;;  %v2423_v29 = vrot.slane %v17013_v18, 1  ;;  %v11926_v18 = vpop.f32.mrf.mxu3 }
 0x30f   : > { %v2179_v19 = vsel %vm2140_vm4, %v2098_v37, %v2100_v14  ;;  %8544 = vmatmul.msk.bf16.gmra.mxu0 %vm525_vm0, %v10247_v48  ;;  %v2424_v3 = vrot.slane %v17012_v40, 1  ;;  %v1708_v40 = vrot.slane %v11709_v8, 3 }
 0x310   : > { %v2227_v25 = vadd.f32 %v2179_v19, %v1831_v34  ;;  %v2180_v50 = vsel %vm2140_vm4, %v2099_v55, %v2101_v38  ;;  %8560 = vmatmul.msk.bf16.gmra.mxu1 %vm525_vm0, %v10247_v48  ;;  %v2509_v2 = vsel %vm818_vm1, %v2421_v23, %v2423_v29  ;;  %v1709_v34 = vrot.slane %v11718_v24, 3  ;;  %v9673_v24 = vld [vmem:[%s16980_s3 + $0x174] sm:$0xf]  ;;  %v8718_v48 = vld [vmem:[%s16980_s3 + $0x1f8] sm:$0xf0] }
 0x311   : > { %v2228_v39 = vadd.f32 %v2180_v50, %v1832_v35  ;;  %v2510_v37 = vsel %vm818_vm1, %v2422_v41, %v2424_v3  ;;  %v11885_v28 = vmax.f32 %v2357_v32, %v2509_v2  ;;  %v1781_v23 = vsel %vm1744_vm3, %v1704_v16, %v1706_v33  ;;  %v9689_v16 = vld [vmem:[%s16980_s3 + $0x1f4] sm:$0xf] }
 0x312   : > { %v11892_v55 = vadd.f32 %v11576_v52, %v2227_v25  ;;  %v11894_v26 = vmax.f32 %v2358_v59, %v2510_v37  ;;  %v1782_v41 = vsel %vm1744_vm3, %v1705_v60, %v1707_v17  ;;  %v8654_v59 = vld [vmem:[%s16980_s3 + $0x178] sm:$0xf0]  ;;  %v8721_v2 = vor.u32 %v9689_v16, %v8718_v48 }
 0x313   : > { %v11901_v32 = vadd.f32 %v11579_v63, %v2228_v39  ;;  %v9952_v8 = vpack.i.bf16 %v11885_v28, %v11836_v42  ;;  %v8657_v19 = vor.u32 %v9673_v24, %v8654_v59  ;;  %v1833_v39 = vadd.f32 %v1781_v23, %v11319_v10 }
 0x314   : > { %v1939_v35 = vpop.f32.mrf.mxu0  ;;  %v9957_v60 = vpack.i.bf16 %v11894_v26, %v11843_v5  ;;  %v2361_v15 = vmax.f32 %v11892_v55, 0.0  ;;  %v1834_v37 = vadd.f32 %v1782_v41, %v11324_v13  ;;  %v1780_v16 = vsel %vm1744_vm3, %v1707_v17, %v1709_v34  ;;  %3378 = vmatpush.bf16.msrb.mxu1 %v8721_v2 }
 0x315   : > { %v2102_v20 = vrot.slane %v1939_v35, 4  ;;  %v11920_v25 = vpop.f32.mrf.mxu1  ;;  %9953 = vrot.lane.b32.xlu2 %v9952_v8, %s10418_s27  ;;  %v17016_v50 = vmax.f32 %v11901_v32, 0.0  ;;  %3289 = vmatpush.bf16.msrb.mxu0 %v8657_v19  ;;  %v1779_v8 = vsel %vm1744_vm3, %v1706_v33, %v1708_v40  ;;  %v17014_v23 = vrot.slane %v11751_v21, 3 }
 0x316   : > { %v2103_v24 = vrot.slane %v11920_v25, 4  ;;  %9958 = vrot.lane.b32.xlu0 %v9957_v60, %s10418_s27  ;;  %v2425_v59 = vrot.slane %v2361_v15, 1  ;;  %v17015_v33 = vrot.slane %v11760_v30, 3  ;;  %v17317_v2 = vmax.f32 %v11848_v44, 0.0 }
 0x317   : > { %v2177_v10 = vsel %vm2140_vm4, %v2100_v14, %v2102_v20  ;;  %v2426_v13 = vrot.slane %v17016_v50, 1  ;;  %v17316_v14 = vmax.f32 %v11841_v7, 0.0  ;;  %v9672_v7 = vld [vmem:[%s16980_s3 + $0x164] sm:$0xf0]  ;;  %v1836_v44 = vadd.f32 %v1780_v16, %v11340_v9  ;;  %v9671_v9 = vld [vmem:[%s16980_s3 + $0x164] sm:$0xf] }
 0x318   : > { %v2229_v41 = vadd.f32 %v2177_v10, %v1833_v39  ;;  %v2178_v35 = vsel %vm2140_vm4, %v2101_v38, %v2103_v24  ;;  %v2507_v60 = vsel %vm818_vm1, %v2423_v29, %v2425_v59  ;;  %v1835_v38 = vadd.f32 %v1779_v8, %v11331_v46  ;;  %v11977_v8 = vpop.f32.mrf.mxu2 }
 0x319   : > { %v2230_v19 = vadd.f32 %v2178_v35, %v1834_v37  ;;  %v2508_v17 = vsel %vm818_vm1, %v2424_v3, %v2426_v13  ;;  %v11950_v48 = vmax.f32 %v17316_v14, %v2507_v60  ;;  %v8644_v3 = vld [vmem:[%s16980_s3 + $0x160] sm:$0xf]  ;;  %v1777_v46 = vsel %vm1744_vm3, %v1708_v40, %v17014_v23  ;;  %v9688_v60 = vld [vmem:[%s16980_s3 + $0x1e4] sm:$0xf0] }
 0x31a   : > { %v11953_v25 = vadd.f32 %v11576_v52, %v2229_v41  ;;  %v11957_v39 = vmax.f32 %v17317_v2, %v2508_v17  ;;  %v8708_v37 = vld [vmem:[%s16980_s3 + $0x1e0] sm:$0xf]  ;;  %v8645_v35 = vor.u32 %v9672_v7, %v8644_v3  ;;  %v1778_v40 = vsel %vm1744_vm3, %v1709_v34, %v17015_v33  ;;  %v8646_v2 = vld [vmem:[%s16980_s3 + $0x168] sm:$0xf0]  ;;  %v9687_v3 = vld [vmem:[%s16980_s3 + $0x1e4] sm:$0xf] }
 0x31b   : > { %v11961_v29 = vadd.f32 %v11579_v63, %v2230_v19  ;;  %v8709_v14 = vor.u32 %v9688_v60, %v8708_v37  ;;  %v8649_v33 = vor.u32 %v9671_v9, %v8646_v2  ;;  %v8710_v37 = vld [vmem:[%s16980_s3 + $0x1e8] sm:$0xf0]  ;;  %v10248_v7 = vld [vmem:[%s10560_s21 + $0x78] sm:$0xff]  ;;  %v8636_v9 = vld [vmem:[%s16980_s3 + $0x150] sm:$0xf]  ;;  %v12028_v60 = vpop.f32.mrf.mxu3  ;;  %v17318_v55 = vmax.f32 %v11901_v32, 0.0 }
 0x31c   : > { %v17017_v10 = vmax.f32 %v11953_v25, 0.0  ;;  %v11980_v41 = vpop.f32.mrf.mxu0  ;;  %3112 = vmatpush.bf16.msra.mxu2 %v8645_v35  ;;  %v8713_v35 = vor.u32 %v9687_v3, %v8710_v37  ;;  %v9670_v2 = vld [vmem:[%s16980_s3 + $0x154] sm:$0xf0]  ;;  %v8700_v3 = vld [vmem:[%s16980_s3 + $0x1d0] sm:$0xf]  ;;  %s376_s21 = scalar_lea.vmem [#allocation8], %s8255_s22 }
 0x31d   : > { %v17019_v16 = vmax.f32 %v11961_v29, 0.0  ;;  %v17018_v19 = vrot.slane %v11980_v41, 4  ;;  %v11994_v17 = vpop.f32.mrf.mxu1  ;;  %3201 = vmatpush.bf16.msra.mxu3 %v8709_v14  ;;  %3290 = vmatpush.bf16.msrb.mxu0 %v8649_v33  ;;  %v8637_v33 = vor.u32 %v9670_v2, %v8636_v9  ;;  %v8638_v37 = vld [vmem:[%s16980_s3 + $0x158] sm:$0xf0]  ;;  %v1837_v9 = vadd.f32 %v1777_v46, %v11347_v47  ;;  %v9668_v32 = vld [vmem:[%s16980_s3 + $0x144] sm:$0xf0] }
 0x31e   : > { %v17020_v23 = vrot.slane %v11994_v17, 4  ;;  %v12006_v34 = vrot.slane %v17017_v10, 1  ;;  %3379 = vmatpush.bf16.msrb.mxu1 %v8713_v35  ;;  %v8692_v47 = vld [vmem:[%s16980_s3 + $0x1c0] sm:$0xf]  ;;  %v1838_v46 = vadd.f32 %v1778_v40, %v11352_v53  ;;  %v17319_v53 = vrot.slane %v11782_v27, 3  ;;  %s8152_s7 = sshll.u32 %s376_s21, 4  ;;  %s8153_s7 = int_to_ptr.vmem [resolvable:$true] %s8152_s7 }
 0x31f   : > { %v2175_v50 = vsel %vm2140_vm4, %v2102_v20, %v17018_v19  ;;  %8545 = vmatmul.msk.bf16.gmra.mxu0 %vm525_vm0, %v10248_v7  ;;  %v12020_v10 = vrot.slane %v17019_v16, 1  ;;  %v9685_v16 = vld [vmem:[%s16980_s3 + $0x1d4] sm:$0xf]  ;;  %v17320_v40 = vrot.slane %v11751_v21, 3  ;;  %v9683_v21 = vld [vmem:[%s16980_s3 + $0x1c4] sm:$0xf] }
 0x320   : > { %v2231_v20 = vadd.f32 %v2175_v50, %v1835_v38  ;;  %v2176_v19 = vsel %vm2140_vm4, %v2103_v24, %v17020_v23  ;;  %8561 = vmatmul.msk.bf16.gmra.mxu1 %vm525_vm0, %v10248_v7  ;;  %v2505_v14 = vsel %vm818_vm1, %v2425_v59, %v12006_v34  ;;  %v9686_v50 = vld [vmem:[%s16980_s3 + $0x1d4] sm:$0xf0]  ;;  %v9669_v38 = vld [vmem:[%s16980_s3 + $0x154] sm:$0xf]  ;;  %3113 = vmatpush.bf16.msra.mxu2 %v8637_v33 }
 0x321   : > { %v2232_v24 = vadd.f32 %v2176_v19, %v1836_v44  ;;  %v2506_v7 = vsel %vm818_vm1, %v2426_v13, %v12020_v10  ;;  %v12052_v59 = vmax.f32 %v2361_v15, %v2505_v14  ;;  %v8702_v44 = vld [vmem:[%s16980_s3 + $0x1d8] sm:$0xf0]  ;;  %v8701_v19 = vor.u32 %v9686_v50, %v8700_v3 }
 0x322   : > { %v12064_v13 = vadd.f32 %v11576_v52, %v2231_v20  ;;  %v12068_v15 = vmax.f32 %v17318_v55, %v2506_v7  ;;  %v8641_v35 = vor.u32 %v9669_v38, %v8638_v37  ;;  %v8705_v23 = vor.u32 %v9685_v16, %v8702_v44  ;;  %v8628_v20 = vld [vmem:[%s16980_s3 + $0x140] sm:$0xf]  ;;  %v9667_v7 = vld [vmem:[%s16980_s3 + $0x144] sm:$0xf] }
 0x323   : > { %v12072_v2 = vadd.f32 %v11579_v63, %v2232_v24  ;;  %v9962_v14 = vpack.i.bf16 %v12052_v59, %v11950_v48  ;;  %3202 = vmatpush.bf16.msra.mxu3 %v8701_v19  ;;  %v8629_v38 = vor.u32 %v9668_v32, %v8628_v20  ;;  %v9684_v24 = vld [vmem:[%s16980_s3 + $0x1c4] sm:$0xf0]  ;;  %v1775_v33 = vsel %vm1744_vm3, %v17320_v40, %v17319_v53  ;;  %v8694_v40 = vld [vmem:[%s16980_s3 + $0x1c8] sm:$0xf0] }
 0x324   : > { %v12086_v3 = vpop.f32.mrf.mxu0  ;;  %v9967_v50 = vpack.i.bf16 %v12068_v15, %v11957_v39  ;;  %v17021_v16 = vmax.f32 %v12064_v13, 0.0  ;;  %3291 = vmatpush.bf16.msrb.mxu0 %v8641_v35  ;;  %3380 = vmatpush.bf16.msrb.mxu1 %v8705_v23  ;;  %v8693_v19 = vor.u32 %v9684_v24, %v8692_v47  ;;  %v8630_v35 = vld [vmem:[%s16980_s3 + $0x148] sm:$0xf0]  ;;  %v17321_v20 = vrot.slane %v11800_v22, 3 }
 0x325   : > { %v2106_v37 = vrot.slane %v12086_v3, 4  ;;  %v12104_v44 = vpop.f32.mrf.mxu1  ;;  %9963 = vrot.lane.b32.xlu1 %v9962_v14, %s10418_s27  ;;  %v17022_v55 = vmax.f32 %v12072_v2, 0.0  ;;  %v17322_v32 = vrot.slane %v11760_v30, 3  ;;  %v12120_v14 = vpop.f32.mrf.mxu2  ;;  %v8633_v24 = vor.u32 %v9667_v7, %v8630_v35  ;;  %3114 = vmatpush.bf16.msra.mxu2 %v8629_v38  ;;  %v8620_v7 = vld [vmem:[%s16980_s3 + $0x130] sm:$0xf] }
 0x326   : > { %v17023_v23 = vrot.slane %v12104_v44, 4  ;;  %9968 = vrot.lane.b32.xlu2 %v9967_v50, %s10418_s27  ;;  %v12126_v47 = vrot.slane %v17021_v16, 1  ;;  %v8697_v16 = vor.u32 %v9683_v21, %v8694_v40  ;;  %v9666_v35 = vld [vmem:[%s16980_s3 + $0x134] sm:$0xf0]  ;;  %v8684_v21 = vld [vmem:[%s16980_s3 + $0x1b0] sm:$0xf] }
 0x327   : > { %v1776_v53 = vsel %vm1744_vm3, %v17322_v32, %v17321_v20  ;;  %v17323_v20 = vrot.slane %v11980_v41, 4  ;;  %v12140_v50 = vrot.slane %v17022_v55, 1  ;;  %v17324_v41 = vrot.slane %v11994_v17, 4  ;;  %3203 = vmatpush.bf16.msra.mxu3 %v8693_v19  ;;  %v9665_v17 = vld [vmem:[%s16980_s3 + $0x134] sm:$0xf] }
 0x328   : > { %v2503_v38 = vsel %vm818_vm1, %v12006_v34, %v12126_v47  ;;  %3292 = vmatpush.bf16.msrb.mxu0 %v8633_v24  ;;  %v17325_v19 = vmax.f32 %v11953_v25, 0.0  ;;  %3381 = vmatpush.bf16.msrb.mxu1 %v8697_v16  ;;  %v9681_v55 = vld [vmem:[%s16980_s3 + $0x1b4] sm:$0xf] }
 0x329   : > { %v2173_v32 = vsel %vm2140_vm4, %v17323_v20, %v2106_v37  ;;  %v2174_v20 = vsel %vm2140_vm4, %v17324_v41, %v17023_v23  ;;  %v2504_v34 = vsel %vm818_vm1, %v12020_v10, %v12140_v50  ;;  %v8622_v41 = vld [vmem:[%s16980_s3 + $0x138] sm:$0xf0]  ;;  %v17327_v10 = vmax.f32 %v11961_v29, 0.0  ;;  %v8612_v23 = vld [vmem:[%s16980_s3 + $0x120] sm:$0xf] }
 0x32a   : > { %v2233_v30 = vadd.f32 %v2173_v32, %v1837_v9  ;;  %v9682_v9 = vld [vmem:[%s16980_s3 + $0x1b4] sm:$0xf0]  ;;  %v2234_v40 = vadd.f32 %v2174_v20, %v1838_v46  ;;  %v12173_v24 = vmax.f32 %v17325_v19, %v2503_v38  ;;  %v8621_v32 = vor.u32 %v9666_v35, %v8620_v7  ;;  %v8686_v46 = vld [vmem:[%s16980_s3 + $0x1b8] sm:$0xf0]  ;;  %v12184_v20 = vpop.f32.mrf.mxu3  ;;  %v8676_v29 = vld [vmem:[%s16980_s3 + $0x1a0] sm:$0xf] }
 0x32b   : > { %v12191_v16 = vmax.f32 %v17327_v10, %v2504_v34  ;;  %v8685_v7 = vor.u32 %v9682_v9, %v8684_v21  ;;  %v8625_v35 = vor.u32 %v9665_v17, %v8622_v41  ;;  %v8689_v19 = vor.u32 %v9681_v55, %v8686_v46  ;;  %v9663_v34 = vld [vmem:[%s16980_s3 + $0x124] sm:$0xf] }
 0x32c   : > { %17326 = vst [vmem:[#allocation57_spill] sm:$0xff] %v12173_v24  ;;  %v12187_v25 = vadd.f32 %v11576_v52, %v2233_v30  ;;  %v12194_v38 = vadd.f32 %v11579_v63, %v2234_v40  ;;  %3115 = vmatpush.bf16.msra.mxu2 %v8621_v32  ;;  %v9664_v30 = vld [vmem:[%s16980_s3 + $0x124] sm:$0xf0]  ;;  %v1839_v21 = vadd.f32 %v1775_v33, %v11359_v57  ;;  %v12207_v17 = vpop.f32.mrf.mxu0  ;;  %v9679_v10 = vld [vmem:[%s16980_s3 + $0x1a4] sm:$0xf] }
 0x32d   : > { %17328 = vst [vmem:[#allocation58_spill] sm:$0xff] %v12191_v16  ;;  %3204 = vmatpush.bf16.msra.mxu3 %v8685_v7  ;;  %3293 = vmatpush.bf16.msrb.mxu0 %v8625_v35  ;;  %v8613_v55 = vor.u32 %v9664_v30, %v8612_v23  ;;  %v9680_v40 = vld [vmem:[%s16980_s3 + $0x1a4] sm:$0xf0]  ;;  %v1840_v32 = vadd.f32 %v1776_v53, %v11365_v62  ;;  %v17027_v57 = vrot.slane %v12207_v17, 4  ;;  %v12218_v33 = vpop.f32.mrf.mxu1  ;;  %v8614_v23 = vld [vmem:[%s16980_s3 + $0x128] sm:$0xf0] }
 0x32e   : > { %v17024_v9 = vmax.f32 %v12187_v25, 0.0  ;;  %v17025_v41 = vmax.f32 %v12194_v38, 0.0  ;;  %3382 = vmatpush.bf16.msrb.mxu1 %v8689_v19  ;;  %v8677_v46 = vor.u32 %v9680_v40, %v8676_v29  ;;  %v17028_v7 = vrot.slane %v11851_v11, 3  ;;  %v8678_v19 = vld [vmem:[%s16980_s3 + $0x1a8] sm:$0xf0] }
 0x32f   : > { %v17026_v62 = vrot.slane %v12218_v33, 4  ;;  %v8617_v35 = vor.u32 %v9663_v34, %v8614_v23  ;;  %v17329_v30 = vrot.slane %v11828_v0, 3  ;;  %v17330_v29 = vrot.slane %v11782_v27, 3  ;;  %v8604_v27 = vld [vmem:[%s16980_s3 + $0x110] sm:$0xf] }
 0x330   : > { %v12230_v53 = vrot.slane %v17024_v9, 1  ;;  %v2171_v9 = vsel %vm2140_vm4, %v2106_v37, %v17027_v57  ;;  %v12249_v34 = vrot.slane %v17025_v41, 1  ;;  %3116 = vmatpush.bf16.msra.mxu2 %v8613_v55  ;;  %v8681_v23 = vor.u32 %v9679_v10, %v8678_v19  ;;  %v8668_v10 = vld [vmem:[%s16980_s3 + $0x190] sm:$0xf] }
 0x331   : > { %v1773_v40 = vsel %vm1744_vm3, %v17330_v29, %v17329_v30  ;;  %v9662_v30 = vld [vmem:[%s16980_s3 + $0x114] sm:$0xf0]  ;;  %v12257_v29 = vpop.f32.mrf.mxu2  ;;  %v2235_v3 = vadd.f32 %v2171_v9, %v1839_v21  ;;  %v17331_v37 = vrot.slane %v12104_v44, 4  ;;  %3205 = vmatpush.bf16.msra.mxu3 %v8677_v46  ;;  %3294 = vmatpush.bf16.msrb.mxu0 %v8617_v35  ;;  %v9661_v44 = vld [vmem:[%s16980_s3 + $0x114] sm:$0xf]  ;;  %v17332_v46 = vmax.f32 %v12064_v13, 0.0 }
 0x332   : > { %v2501_v55 = vsel %vm818_vm1, %v12126_v47, %v12230_v53  ;;  %v9678_v21 = vld [vmem:[%s16980_s3 + $0x194] sm:$0xf0]  ;;  %v2502_v47 = vsel %vm818_vm1, %v12140_v50, %v12249_v34  ;;  %3383 = vmatpush.bf16.msrb.mxu1 %v8681_v23  ;;  %v8605_v19 = vor.u32 %v9662_v30, %v8604_v27  ;;  %v17334_v13 = vmax.f32 %v12072_v2, 0.0  ;;  %v8596_v2 = vld [vmem:[%s16980_s3 + $0x100] sm:$0xf] }
 0x333   : > { %v2172_v41 = vsel %vm2140_vm4, %v17331_v37, %v17026_v62  ;;  %v12284_v35 = vmax.f32 %v17332_v46, %v2501_v55  ;;  %v8606_v37 = vld [vmem:[%s16980_s3 + $0x118] sm:$0xf0]  ;;  %v9677_v62 = vld [vmem:[%s16980_s3 + $0x194] sm:$0xf]  ;;  %v12296_v50 = vadd.f32 %v11576_v52, %v2235_v3  ;;  %v8669_v23 = vor.u32 %v9678_v21, %v8668_v10  ;;  %v9660_v10 = vld [vmem:[%s16980_s3 + $0x104] sm:$0xf0] }
 0x334   : > { %v2236_v9 = vadd.f32 %v2172_v41, %v1840_v32  ;;  %v8670_v32 = vld [vmem:[%s16980_s3 + $0x198] sm:$0xf0]  ;;  %v12300_v41 = vmax.f32 %v17334_v13, %v2502_v47  ;;  %v8609_v27 = vor.u32 %v9661_v44, %v8606_v37  ;;  %v17336_v30 = vrot.slane %v11800_v22, 3  ;;  %3117 = vmatpush.bf16.msra.mxu2 %v8605_v19  ;;  %v12319_v22 = vpop.f32.mrf.mxu3  ;;  %v1949_v21 = vpop.f32.mrf.mxu0  ;;  %v9676_v19 = vld [vmem:[%s16980_s3 + $0x184] sm:$0xf0] }
 0x335   : > { %17333 = vst [vmem:[#allocation59_spill] sm:$0xff] %v12284_v35  ;;  %v9972_v3 = vpack.i.bf16 %v12284_v35, %v12173_v24  ;;  %v8673_v57 = vor.u32 %v9677_v62, %v8670_v32  ;;  %3206 = vmatpush.bf16.msra.mxu3 %v8669_v23  ;;  %v8597_v47 = vor.u32 %v9660_v10, %v8596_v2  ;;  %v8660_v62 = vld [vmem:[%s16980_s3 + $0x180] sm:$0xf]  ;;  %v2110_v32 = vrot.slane %v1949_v21, 4  ;;  %v2038_v13 = vpop.f32.mrf.mxu1  ;;  %v8598_v2 = vld [vmem:[%s16980_s3 + $0x108] sm:$0xf0] }
 0x336   : > { %17335 = vst [vmem:[#allocation60_spill] sm:$0xff] %v12300_v41  ;;  %v1774_v55 = vsel %vm1744_vm3, %v17336_v30, %v17028_v7  ;;  %v12309_v46 = vadd.f32 %v11579_v63, %v2236_v9  ;;  %v9977_v44 = vpack.i.bf16 %v12300_v41, %v12191_v16  ;;  %v2369_v9 = vmax.f32 %v12296_v50, 0.0  ;;  %3295 = vmatpush.bf16.msrb.mxu0 %v8609_v27  ;;  %v9659_v27 = vld [vmem:[%s16980_s3 + $0x104] sm:$0xf] }
 0x337   : > { %v1841_v37 = vadd.f32 %v1773_v40, %v11370_v56  ;;  %9973 = vrot.lane.b32.xlu0 %v9972_v3, %s10418_s27  ;;  %3384 = vmatpush.bf16.msrb.mxu1 %v8673_v57  ;;  %v8661_v23 = vor.u32 %v9676_v19, %v8660_v62  ;;  %v1842_v10 = vadd.f32 %v1774_v55, %v11375_v6  ;;  %v2111_v7 = vrot.slane %v2038_v13, 4  ;;  %v9675_v57 = vld [vmem:[%s16980_s3 + $0x184] sm:$0xf] }
 0x338   : > { %v2370_v30 = vmax.f32 %v12309_v46, 0.0  ;;  %9978 = vrot.lane.b32.xlu1 %v9977_v44, %s10418_s27  ;;  %v2433_v56 = vrot.slane %v2369_v9, 1  ;;  %v8601_v40 = vor.u32 %v9659_v27, %v8598_v2  ;;  %v8662_v46 = vld [vmem:[%s16980_s3 + $0x188] sm:$0xf0]  ;;  %v1716_v3 = vrot.slane %v11889_v54, 3  ;;  %3118 = vmatpush.bf16.msra.mxu2 %v8597_v47 }
 0x339   : > { %v17337_v21 = vrot.slane %v12207_v17, 4  ;;  %v8665_v44 = vor.u32 %v9675_v57, %v8662_v46  ;;  %v1717_v62 = vrot.slane %v11926_v18, 3  ;;  %v17338_v13 = vrot.slane %v12218_v33, 4  ;;  %3207 = vmatpush.bf16.msra.mxu3 %v8661_v23  ;;  %v12369_v33 = vpop.f32.mrf.mxu2 }
 0x33a   : > { %v2434_v55 = vrot.slane %v2370_v30, 1  ;;  %v2499_v54 = vsel %vm818_vm1, %v12230_v53, %v2433_v56  ;;  %3296 = vmatpush.bf16.msrb.mxu0 %v8601_v40  ;;  %v17339_v2 = vmax.f32 %v12187_v25, 0.0  ;;  %v17341_v57 = vmax.f32 %v12194_v38, 0.0 }
 0x33b   : > { %v2169_v6 = vsel %vm2140_vm4, %v17337_v21, %v2110_v32  ;;  %v2170_v27 = vsel %vm2140_vm4, %v17338_v13, %v2111_v7  ;;  %3385 = vmatpush.bf16.msrb.mxu1 %v8665_v44  ;;  %v17343_v23 = vrot.slane %v11828_v0, 3  ;;  %v17344_v25 = vrot.slane %v11851_v11, 3 }
 0x33c   : > { %v2237_v19 = vadd.f32 %v2169_v6, %v1841_v37  ;;  %v2238_v17 = vadd.f32 %v2170_v27, %v1842_v10  ;;  %v2500_v47 = vsel %vm818_vm1, %v12249_v34, %v2434_v55  ;;  %v12367_v18 = vmax.f32 %v17339_v2, %v2499_v54  ;;  %v1952_v21 = vpop.f32.mrf.mxu0  ;;  %v12394_v27 = vpop.f32.mrf.mxu3 }
 0x33d   : > { %v12376_v53 = vmax.f32 %v17341_v57, %v2500_v47  ;;  %v1771_v10 = vsel %vm1744_vm3, %v17343_v23, %v1716_v3  ;;  %v1772_v40 = vsel %vm1744_vm3, %v17344_v25, %v1717_v62  ;;  %v1718_v38 = vrot.slane %v11977_v8, 3  ;;  %v2041_v0 = vpop.f32.mrf.mxu1 }
 0x33e   : > { %17340 = vst [vmem:[#allocation61_spill] sm:$0xff] %v12367_v18  ;;  %v12372_v37 = vadd.f32 %v11576_v52, %v2237_v19  ;;  %v12383_v34 = vadd.f32 %v11579_v63, %v2238_v17  ;;  %v2112_v44 = vrot.slane %v1952_v21, 4  ;;  %v1843_v19 = vadd.f32 %v1771_v10, %v11382_v61  ;;  %v17345_v17 = vld [vmem:[#allocation15_spill] sm:$0xff] }
 0x33f   : > { %17342 = vst [vmem:[#allocation62_spill] sm:$0xff] %v12376_v53  ;;  %v1719_v13 = vrot.slane %v12028_v60, 3  ;;  %v2113_v54 = vrot.slane %v2041_v0, 4  ;;  %v1844_v47 = vadd.f32 %v1772_v40, %v17345_v17  ;;  %v1769_v61 = vsel %vm1744_vm3, %v1716_v3, %v1718_v38  ;;  %v17348_v0 = vld [vmem:[#allocation16_spill] sm:$0xff] }
 0x340   : > { %v2371_v46 = vmax.f32 %v12372_v37, 0.0  ;;  %v2372_v6 = vmax.f32 %v12383_v34, 0.0  ;;  %v2167_v2 = vsel %vm2140_vm4, %v2110_v32, %v2112_v44  ;;  %v1720_v25 = vrot.slane %v12120_v14, 3 }
 0x341   : > { %v2239_v57 = vadd.f32 %v2167_v2, %v1843_v19  ;;  %v2168_v8 = vsel %vm2140_vm4, %v2111_v7, %v2113_v54  ;;  %v1770_v32 = vsel %vm1744_vm3, %v1717_v62, %v1719_v13  ;;  %v1721_v3 = vrot.slane %v12184_v20, 3  ;;  %v12427_v62 = vpop.f32.mrf.mxu2 }
 0x342   : > { %v2435_v11 = vrot.slane %v2371_v46, 1  ;;  %v2436_v37 = vrot.slane %v2372_v6, 1  ;;  %v2240_v60 = vadd.f32 %v2168_v8, %v1844_v47  ;;  %v1722_v40 = vrot.slane %v12257_v29, 3  ;;  %v17349_v47 = vld [vmem:[#allocation17_spill] sm:$0xff] }
 0x343   : > { %v12415_v7 = vadd.f32 %v11576_v52, %v2239_v57  ;;  %v1845_v20 = vadd.f32 %v1769_v61, %v17348_v0  ;;  %v1846_v2 = vadd.f32 %v1770_v32, %v17349_v47  ;;  %v17350_v47 = vlaneseq }
 0x344   : > { %v2497_v23 = vsel %vm818_vm1, %v2433_v56, %v2435_v11  ;;  %v2498_v10 = vsel %vm818_vm1, %v2434_v55, %v2436_v37  ;;  %v12422_v55 = vadd.f32 %v11579_v63, %v2240_v60  ;;  %v1954_v14 = vpop.f32.mrf.mxu0  ;;  %v1765_v61 = vsel %vm1744_vm3, %v1720_v25, %v1722_v40 }
 0x345   : > { %v12409_v34 = vmax.f32 %v2369_v9, %v2497_v23  ;;  %v12417_v56 = vmax.f32 %v2370_v30, %v2498_v10  ;;  %v1723_v9 = vrot.slane %v12319_v22, 3  ;;  %v17029_v30 = vmax.f32 %v12415_v7, 0.0  ;;  %v2043_v29 = vpop.f32.mrf.mxu1 }
 0x346   : > { %v2114_v19 = vrot.slane %v1954_v14, 4  ;;  %v17030_v17 = vmax.f32 %v12422_v55, 0.0  ;;  %v1767_v22 = vsel %vm1744_vm3, %v1718_v38, %v1720_v25  ;;  %v2115_v57 = vrot.slane %v2043_v29, 4  ;;  %v12452_v14 = vpop.f32.mrf.mxu3  ;;  %v17355_v25 = vld [vmem:[#allocation20_spill] sm:$0xff] }
 0x347   : > { %17346 = vst [vmem:[#allocation15_spill] sm:$0xff] %v12409_v34  ;;  %v9982_v50 = vpack.i.bf16 %v12409_v34, %v12367_v18  ;;  %v9987_v21 = vpack.i.bf16 %v12417_v56, %v12376_v53  ;;  %v2437_v8 = vrot.slane %v17029_v30, 1  ;;  %v1768_v23 = vsel %vm1744_vm3, %v1719_v13, %v1721_v3  ;;  %v9914_v10 = vpop.permute.xlu0 %9913 }
 0x348   : > { %17347 = vst [vmem:[#allocation63_spill] sm:$0xff] %v12417_v56  ;;  %v2165_v60 = vsel %vm2140_vm4, %v2112_v44, %v2114_v19  ;;  %v2438_v32 = vrot.slane %v17030_v17, 1  ;;  %v1766_v38 = vsel %vm1744_vm3, %v1721_v3, %v1723_v9  ;;  %v2166_v13 = vsel %vm2140_vm4, %v2113_v54, %v2115_v57  ;;  %v17356_v56 = vld [vmem:[#allocation21_spill] sm:$0xff] }
 0x349   : > { %9983 = vrot.lane.b32.xlu2 %v9982_v50, %s10418_s27  ;;  %9988 = vrot.lane.b32.xlu0 %v9987_v21, %s10418_s27  ;;  %v2241_v21 = vadd.f32 %v2165_v60, %v1845_v20  ;;  %v2242_v0 = vadd.f32 %v2166_v13, %v1846_v2  ;;  %v2495_v29 = vsel %vm818_vm1, %v2435_v11, %v2437_v8  ;;  %v12462_v30 = vand.u32 127, %v17350_v47  ;;  %v17353_v2 = vld [vmem:[#allocation18_spill] sm:$0xff]  ;;  %v17354_v13 = vld [vmem:[#allocation19_spill] sm:$0xff] }
 0x34a   : > { %v2496_v44 = vsel %vm818_vm1, %v2436_v37, %v2438_v32  ;;  %v12469_v20 = vmax.f32 %v2371_v46, %v2495_v29  ;;  %v1847_v60 = vadd.f32 %v1767_v22, %v17353_v2  ;;  %v1848_v37 = vadd.f32 %v1768_v23, %v17354_v13 }
 0x34b   : > { %17351 = vst [vmem:[#allocation16_spill] sm:$0xff] %v12462_v30  ;;  %v12465_v3 = vadd.f32 %v11576_v52, %v2241_v21  ;;  %v12467_v17 = vmax.f32 %v2372_v6, %v2496_v44  ;;  %v12472_v54 = vadd.f32 %v11579_v63, %v2242_v0  ;;  %v1849_v50 = vadd.f32 %v1765_v61, %v17355_v25  ;;  %v12492_v61 = vpop.f32.mrf.mxu2 }
 0x34c   : > { %v1957_v47 = vpop.f32.mrf.mxu0  ;;  %v1850_v53 = vadd.f32 %v1766_v38, %v17356_v56  ;;  %v17357_v21 = vrot.slane %v12369_v33, 3  ;;  %v17358_v22 = vrot.slane %v12394_v27, 3  ;;  %v9916_v25 = vunpack.i.h.bf16 %v9914_v10 }
 0x34d   : > { %17352 = vst [vmem:[#allocation17_spill] sm:$0xff] %v12467_v17  ;;  %v17036_v11 = vmax.f32 %v12465_v3, 0.0  ;;  %v17035_v6 = vmax.f32 %v12472_v54, 0.0  ;;  %v2116_v0 = vrot.slane %v1957_v47, 4  ;;  %v2046_v44 = vpop.f32.mrf.mxu1  ;;  %vm2725_vm5 = vcmp.lt.s32.totalorder %v12462_v30, 118 }
 0x34e   : > { %v12483_v46 = vsel %vm1744_vm3, %v1722_v40, %v17357_v21  ;;  %v12490_v23 = vsel %vm1744_vm3, %v1723_v9, %v17358_v22  ;;  %v2117_v56 = vrot.slane %v2046_v44, 4  ;;  %v9915_v38 = vunpack.i.l.bf16 %v9914_v10  ;;  %v12507_v18 = vpop.f32.mrf.mxu3  ;;  %v17361_v44 = vld [vmem:[#allocation52_spill] sm:$0xff] }
 0x34f   : > { %v2163_v40 = vsel %vm2140_vm4, %v2114_v19, %v2116_v0  ;;  %v9919_v29 = vpop.permute.xlu0 %9918  ;;  %v2440_v2 = vrot.slane %v17035_v6, 1  ;;  %v2439_v13 = vrot.slane %v17036_v11, 1  ;;  %v17360_v11 = vld [vmem:[#allocation51_spill] sm:$0xff]  ;;  %v17362_v24 = vmax.f32 %v12422_v55, 0.0 }
 0x350   : > { %v2243_v47 = vadd.f32 %v2163_v40, %v1847_v60  ;;  %v2164_v9 = vsel %vm2140_vm4, %v2115_v57, %v2117_v56  ;;  %v9921_v21 = vunpack.i.h.bf16 %v9919_v29  ;;  %v9920_v22 = vunpack.i.l.bf16 %v9919_v29 }
 0x351   : > { %v2244_v34 = vadd.f32 %v2164_v9, %v1848_v37  ;;  %v2494_v19 = vsel %vm818_vm1, %v2438_v32, %v2440_v2  ;;  %v17359_v9 = vld [vmem:[#allocation50_spill] sm:$0xff] }
 0x352   : > { %v12510_v6 = vadd.f32 %v11576_v52, %v2243_v47  ;;  %v2726_v60 = vsel %vm2725_vm5, %v9915_v38, %v9920_v22  ;;  %v2727_v57 = vsel %vm2725_vm5, %v9916_v25, %v9921_v21  ;;  %v2758_v40 = vsel %vm2725_vm5, %v9920_v22, %v9915_v38 }
 0x353   : > { %v12519_v29 = vadd.f32 %v11579_v63, %v2244_v34  ;;  %v2759_v32 = vsel %vm2725_vm5, %v9921_v21, %v9916_v25  ;;  %v2790_v37 = vmax.f32 %v11613_v49, %v2726_v60  ;;  %v2791_v47 = vmax.f32 %v17359_v9, %v2758_v40 }
 0x354   : > { %v2792_v10 = vmax.f32 %v17360_v11, %v2727_v57  ;;  %v2793_v16 = vmax.f32 %v17361_v44, %v2759_v32  ;;  %v1959_v41 = vpop.f32.mrf.mxu0  ;;  %v12529_v35 = vmax.f32 %v17362_v24, %v2494_v19  ;;  %v2493_v34 = vsel %vm818_vm1, %v2437_v8, %v2439_v13  ;;  %v12559_v32 = vpop.f32.mrf.mxu2 }
 0x355   : > { %v2118_v38 = vrot.slane %v1959_v41, 4  ;;  %v2048_v22 = vpop.f32.mrf.mxu1  ;;  %v17364_v25 = vmax.f32 %v12415_v7, 0.0  ;;  %v17042_v49 = vmax.f32 %v12519_v29, 0.0  ;;  %v17041_v11 = vmax.f32 %v12510_v6, 0.0 }
 0x356   : > { %17363 = vst [vmem:[#allocation18_spill] sm:$0xff] %v12529_v35  ;;  %v12539_v60 = vpack.c.bf16 %v2792_v10, %v2790_v37  ;;  %v12541_v44 = vpack.c.bf16 %v2793_v16, %v2791_v47  ;;  %v2119_v55 = vrot.slane %v2048_v22, 4  ;;  %v9997_v24 = vpack.i.bf16 %v12529_v35, %v12467_v17 }
 0x357   : > { %v12535_v21 = vmax.f32 %v17364_v25, %v2493_v34  ;;  %v2161_v41 = vsel %vm2140_vm4, %v2116_v0, %v2118_v38  ;;  %v9924_v8 = vpop.permute.xlu1 %9923  ;;  %v2442_v19 = vrot.slane %v17042_v49, 1  ;;  %v2441_v10 = vrot.slane %v17041_v11, 1 }
 0x358   : > { %17365 = vst [vmem:[#allocation19_spill] sm:$0xff] %v12539_v60  ;;  %v17367_v16 = vrot.slane %v12427_v62, 3  ;;  %v17368_v57 = vrot.slane %v12369_v33, 3  ;;  %v2245_v0 = vadd.f32 %v2161_v41, %v1849_v50  ;;  %v2162_v37 = vsel %vm2140_vm4, %v2117_v56, %v2119_v55  ;;  %9998 = vrot.lane.b32.xlu2 %v9997_v24, %s10418_s27  ;;  %3119 = vmatmul.bf16.vlgmr.msra.gmra.mxu2 %v12539_v60  ;;  %v17373_v24 = vld [vmem:[#allocation22_spill] sm:$0xff]  ;;  %v17374_v41 = vld [vmem:[#allocation23_spill] sm:$0xff] }
 0x359   : > { %17366 = vst [vmem:[#allocation20_spill] sm:$0xff] %v12541_v44  ;;  %v9992_v7 = vpack.i.bf16 %v12535_v21, %v12469_v20  ;;  %v17369_v9 = vrot.slane %v12452_v14, 3  ;;  %v17370_v47 = vrot.slane %v12394_v27, 3  ;;  %v2246_v34 = vadd.f32 %v2162_v37, %v1850_v53  ;;  %3208 = vmatmul.bf16.vlgmr.msra.gmra.mxu3 %v12541_v44  ;;  %3386 = vmatmul.bf16.vlgmr.msrb.gmra.mxu1 %v12541_v44 }
 0x35a   : > { %v1761_v40 = vsel %vm1744_vm3, %v17368_v57, %v17367_v16  ;;  %v2492_v50 = vsel %vm818_vm1, %v2440_v2, %v2442_v19  ;;  %v12576_v56 = vadd.f32 %v11576_v52, %v2245_v0  ;;  %3297 = vmatmul.bf16.vlgmr.msrb.gmra.mxu0 %v12539_v60  ;;  %v17371_v27 = vmax.f32 %v12472_v54, 0.0  ;;  %v12593_v16 = vpop.f32.mrf.mxu3  ;;  %v17375_v54 = vld [vmem:[#allocation24_spill] sm:$0xff] }
 0x35b   : > { %v1762_v33 = vsel %vm1744_vm3, %v17370_v47, %v17369_v9  ;;  %9993 = vrot.lane.b32.xlu1 %v9992_v7, %s10418_s27  ;;  %v2491_v53 = vsel %vm818_vm1, %v2439_v13, %v2441_v10  ;;  %v12587_v25 = vadd.f32 %v11579_v63, %v2246_v34  ;;  %v1851_v2 = vadd.f32 %v12483_v46, %v17373_v24  ;;  %v17376_v9 = vld [vmem:[#allocation25_spill] sm:$0xff] }
 0x35c   : > { %v12582_v22 = vmax.f32 %v17371_v27, %v2492_v50  ;;  %v1852_v7 = vadd.f32 %v12490_v23, %v17374_v41  ;;  %v17045_v57 = vmax.f32 %v12576_v56, 0.0  ;;  %v1962_v0 = vpop.f32.mrf.mxu0  ;;  %v1853_v37 = vadd.f32 %v1761_v40, %v17375_v54  ;;  %v12598_v50 = vpop.permute.xlu2 %9933 }
 0x35d   : > { %v1854_v47 = vadd.f32 %v1762_v33, %v17376_v9  ;;  %v17046_v13 = vmax.f32 %v12587_v25, 0.0  ;;  %v2120_v34 = vrot.slane %v1962_v0, 4  ;;  %v2051_v27 = vpop.f32.mrf.mxu1  ;;  %v17377_v41 = vmax.f32 %v12465_v3, 0.0 }
 0x35e   : > { %17372 = vst [vmem:[#allocation21_spill] sm:$0xff] %v12582_v22  ;;  %v2121_v24 = vrot.slane %v2051_v27, 4  ;;  %v2443_v23 = vrot.slane %v17045_v57, 1  ;;  %v9926_v49 = vunpack.i.h.bf16 %v9924_v8  ;;  %v9925_v40 = vunpack.i.l.bf16 %v9924_v8 }
 0x35f   : > { %v12606_v11 = vmax.f32 %v17377_v41, %v2491_v53  ;;  %v2159_v33 = vsel %vm2140_vm4, %v2118_v38, %v2120_v34  ;;  %v9929_v54 = vpop.permute.xlu1 %9928  ;;  %v2444_v0 = vrot.slane %v17046_v13, 1  ;;  %v12619_v38 = vpop.f32.mrf.mxu2  ;;  %v17379_v13 = vld [vmem:[#allocation54_spill] sm:$0xff]  ;;  %v17380_v17 = vmax.f32 %v12519_v29, 0.0 }
 0x360   : > { %v2247_v9 = vadd.f32 %v2159_v33, %v1851_v2  ;;  %v2160_v27 = vsel %vm2140_vm4, %v2119_v55, %v2121_v24  ;;  %v9931_v46 = vunpack.i.h.bf16 %v9929_v54  ;;  %v9930_v44 = vunpack.i.l.bf16 %v9929_v54 }
 0x361   : > { %v2248_v3 = vadd.f32 %v2160_v27, %v1852_v7  ;;  %v2490_v53 = vsel %vm818_vm1, %v2442_v19, %v2444_v0  ;;  %v2489_v8 = vsel %vm818_vm1, %v2441_v10, %v2443_v23 }
 0x362   : > { %v12622_v41 = vadd.f32 %v11576_v52, %v2247_v9  ;;  %v2728_v2 = vsel %vm2725_vm5, %v9925_v40, %v9930_v44  ;;  %v2729_v55 = vsel %vm2725_vm5, %v9926_v49, %v9931_v46  ;;  %v2760_v7 = vsel %vm2725_vm5, %v9930_v44, %v9925_v40  ;;  %v17378_v9 = vld [vmem:[#allocation53_spill] sm:$0xff]  ;;  %v12655_v29 = vpop.f32.mrf.mxu3 }
 0x363   : > { %v12631_v33 = vadd.f32 %v11579_v63, %v2248_v3  ;;  %v2761_v19 = vsel %vm2725_vm5, %v9931_v46, %v9926_v49  ;;  %v2794_v10 = vmax.f32 %v11658_v45, %v2728_v2  ;;  %v2795_v54 = vmax.f32 %v11665_v12, %v2760_v7 }
 0x364   : > { %v2796_v27 = vmax.f32 %v17378_v9, %v2729_v55  ;;  %v2797_v57 = vmax.f32 %v17379_v13, %v2761_v19  ;;  %v1964_v60 = vpop.f32.mrf.mxu0  ;;  %v12641_v35 = vmax.f32 %v17380_v17, %v2490_v53  ;;  %v17381_v44 = vmax.f32 %v12510_v6, 0.0 }
 0x365   : > { %v17382_v3 = vrot.slane %v12492_v61, 3  ;;  %v17383_v49 = vrot.slane %v12427_v62, 3  ;;  %v2122_v12 = vrot.slane %v1964_v60, 4  ;;  %v2053_v46 = vpop.f32.mrf.mxu1  ;;  %v2382_v13 = vmax.f32 %v12631_v33, 0.0  ;;  %v9939_v62 = vpop.permute.xlu2 %9938 }
 0x366   : > { %v12645_v40 = vmax.f32 %v17381_v44, %v2489_v8  ;;  %v2381_v2 = vmax.f32 %v12622_v41, 0.0  ;;  %v12657_v17 = vpack.c.bf16 %v2796_v27, %v2794_v10  ;;  %v12659_v6 = vpack.c.bf16 %v2797_v57, %v2795_v54 }
 0x367   : > { %v1759_v45 = vsel %vm1744_vm3, %v17383_v49, %v17382_v3  ;;  %v2123_v53 = vrot.slane %v2053_v46, 4  ;;  %v10007_v8 = vpack.i.bf16 %v12641_v35, %v12582_v22  ;;  %v2157_v55 = vsel %vm2140_vm4, %v2120_v34, %v2122_v12 }
 0x368   : > { %17384 = vst [vmem:[#allocation50_spill] sm:$0xff] %v12657_v17  ;;  %v10002_v60 = vpack.i.bf16 %v12645_v40, %v12606_v11  ;;  %v2446_v7 = vrot.slane %v2382_v13, 1  ;;  %v2445_v33 = vrot.slane %v2381_v2, 1  ;;  %v17386_v41 = vrot.slane %v12507_v18, 3  ;;  %3124 = vmatmul.bf16.gmra.mxu2 %v12657_v17 }
 0x369   : > { %17385 = vst [vmem:[#allocation51_spill] sm:$0xff] %v12659_v6  ;;  %v17387_v19 = vrot.slane %v12452_v14, 3  ;;  %v2249_v10 = vadd.f32 %v2157_v55, %v1853_v37  ;;  %v2158_v54 = vsel %vm2140_vm4, %v2121_v24, %v2123_v53  ;;  %10008 = vrot.lane.b32.xlu1 %v10007_v8, %s10418_s27  ;;  %v17052_v34 = vrot.slane %v12559_v32, 3  ;;  %3213 = vmatmul.bf16.gmra.mxu3 %v12659_v6  ;;  %v17390_v8 = vld [vmem:[#allocation26_spill] sm:$0xff] }
 0x36a   : > { %v2250_v9 = vadd.f32 %v2158_v54, %v1854_v47  ;;  %10003 = vrot.lane.b32.xlu0 %v10002_v60, %s10418_s27  ;;  %v2488_v14 = vsel %vm818_vm1, %v2444_v0, %v2446_v7  ;;  %v2487_v37 = vsel %vm818_vm1, %v2443_v23, %v2445_v33  ;;  %v9940_v27 = vunpack.i.l.bf16 %v9939_v62  ;;  %3302 = vmatmul.bf16.gmra.mxu0 %v12657_v17  ;;  %v12702_v60 = vpop.f32.mrf.mxu2  ;;  %v17395_v17 = vld [vmem:[#allocation56_spill] sm:$0xff] }
 0x36b   : > { %v1760_v57 = vsel %vm1744_vm3, %v17387_v19, %v17386_v41  ;;  %v12685_v24 = vadd.f32 %v11576_v52, %v2249_v10  ;;  %3391 = vmatmul.bf16.gmra.mxu1 %v12659_v6  ;;  %v17388_v47 = vmax.f32 %v12587_v25, 0.0  ;;  %v17389_v3 = vmax.f32 %v12576_v56, 0.0  ;;  %v17391_v10 = vld [vmem:[#allocation27_spill] sm:$0xff] }
 0x36c   : > { %v1731_v0 = vrot.slane %v12593_v16, 3  ;;  %v9941_v46 = vunpack.i.h.bf16 %v9939_v62  ;;  %v12699_v23 = vadd.f32 %v11579_v63, %v2250_v9  ;;  %v1855_v55 = vadd.f32 %v1759_v45, %v17390_v8  ;;  %v1967_v19 = vpop.f32.mrf.mxu0 }
 0x36d   : > { %v12691_v44 = vmax.f32 %v17388_v47, %v2488_v14  ;;  %v12695_v49 = vmax.f32 %v17389_v3, %v2487_v37  ;;  %v9935_v41 = vunpack.i.l.bf16 %v12598_v50  ;;  %v17051_v25 = vmax.f32 %v12685_v24, 0.0  ;;  %v2056_v62 = vpop.f32.mrf.mxu1 }
 0x36e   : > { %v1856_v54 = vadd.f32 %v1760_v57, %v17391_v10  ;;  %v9936_v56 = vunpack.i.h.bf16 %v12598_v50  ;;  %v17055_v14 = vmax.f32 %v12699_v23, 0.0  ;;  %v2124_v16 = vrot.slane %v1967_v19, 4  ;;  %v12729_v10 = vpop.f32.mrf.mxu3 }
 0x36f   : > { %v17392_v9 = vrot.slane %v12492_v61, 3  ;;  %v2730_v37 = vsel %vm2725_vm5, %v9935_v41, %v9940_v27  ;;  %v2125_v47 = vrot.slane %v2056_v62, 4  ;;  %v2447_v57 = vrot.slane %v17051_v25, 1  ;;  %v17394_v25 = vld [vmem:[#allocation55_spill] sm:$0xff] }
 0x370   : > { %v17393_v50 = vrot.slane %v12507_v18, 3  ;;  %v2731_v8 = vsel %vm2725_vm5, %v9936_v56, %v9941_v46  ;;  %v2155_v61 = vsel %vm2140_vm4, %v2122_v12, %v2124_v16  ;;  %v2448_v19 = vrot.slane %v17055_v14, 1 }
 0x371   : > { %v1757_v45 = vsel %vm1744_vm3, %v17392_v9, %v17052_v34  ;;  %v2762_v62 = vsel %vm2725_vm5, %v9940_v27, %v9935_v41  ;;  %v2763_v18 = vsel %vm2725_vm5, %v9941_v46, %v9936_v56  ;;  %v2251_v9 = vadd.f32 %v2155_v61, %v1855_v55 }
 0x372   : > { %v1758_v3 = vsel %vm1744_vm3, %v17393_v50, %v1731_v0  ;;  %v2156_v50 = vsel %vm2140_vm4, %v2123_v53, %v2125_v47  ;;  %v2798_v34 = vmax.f32 %v17394_v25, %v2730_v37  ;;  %v2486_v12 = vsel %vm818_vm1, %v2446_v7, %v2448_v19  ;;  %v12764_v37 = vpop.f32.mrf.mxu2 }
 0x373   : > { %v2252_v6 = vadd.f32 %v2156_v50, %v1856_v54  ;;  %v2485_v14 = vsel %vm818_vm1, %v2445_v33, %v2447_v57  ;;  %v2800_v22 = vmax.f32 %v17395_v17, %v2731_v8  ;;  %v12744_v27 = vadd.f32 %v11576_v52, %v2251_v9 }
 0x374   : > { %v12746_v41 = vmax.f32 %v2382_v13, %v2486_v12  ;;  %v12748_v46 = vmax.f32 %v2381_v2, %v2485_v14  ;;  %v1732_v53 = vrot.slane %v12619_v38, 3  ;;  %v2799_v55 = vmax.f32 %v11712_v43, %v2762_v62  ;;  %v1969_v54 = vpop.f32.mrf.mxu0  ;;  %v17396_v14 = vld [vmem:[#allocation28_spill] sm:$0xff]  ;;  %v17398_v62 = vld [vmem:[#allocation29_spill] sm:$0xff] }
 0x375   : > { %v2801_v25 = vmax.f32 %v11738_v51, %v2763_v18  ;;  %v12754_v7 = vadd.f32 %v11579_v63, %v2252_v6  ;;  %v17060_v33 = vrot.slane %v12655_v29, 3  ;;  %v17059_v2 = vmax.f32 %v12744_v27, 0.0  ;;  %v2058_v38 = vpop.f32.mrf.mxu1 }
 0x376   : > { %v10017_v17 = vpack.i.bf16 %v12746_v41, %v12691_v44  ;;  %v10012_v13 = vpack.i.bf16 %v12748_v46, %v12695_v49  ;;  %v2126_v56 = vrot.slane %v1969_v54, 4  ;;  %v1857_v51 = vadd.f32 %v1757_v45, %v17396_v14 }
 0x377   : > { %v2386_v43 = vmax.f32 %v12754_v7, 0.0  ;;  %v12766_v6 = vpack.c.bf16 %v2800_v22, %v2798_v34  ;;  %v2127_v8 = vrot.slane %v2058_v38, 4  ;;  %v2449_v61 = vrot.slane %v17059_v2, 1  ;;  %v9944_v45 = vpop.permute.xlu0 %9943 }
 0x378   : > { %10018 = vrot.lane.b32.xlu0 %v10017_v17, %s10418_s27  ;;  %10013 = vrot.lane.b32.xlu2 %v10012_v13, %s10418_s27  ;;  %v1858_v18 = vadd.f32 %v1758_v3, %v17398_v62  ;;  %v12773_v9 = vpack.c.bf16 %v2801_v25, %v2799_v55  ;;  %v2153_v50 = vsel %vm2140_vm4, %v2124_v16, %v2126_v56  ;;  %v17400_v22 = vrot.slane %v12559_v32, 3  ;;  %v9949_v55 = vpop.permute.xlu1 %9948  ;;  %v12792_v13 = vpop.f32.mrf.mxu3 }
 0x379   : > { %17397 = vst [vmem:[#allocation52_spill] sm:$0xff] %v12766_v6  ;;  %v2450_v12 = vrot.slane %v2386_v43, 1  ;;  %v1756_v7 = vsel %vm1744_vm3, %v1731_v0, %v17060_v33  ;;  %v2253_v54 = vadd.f32 %v2153_v50, %v1857_v51  ;;  %v2154_v3 = vsel %vm2140_vm4, %v2125_v47, %v2127_v8  ;;  %3129 = vmatmul.bf16.gmra.mxu2 %v12766_v6  ;;  %v17402_v50 = vld [vmem:[#allocation30_spill] sm:$0xff] }
 0x37a   : > { %17399 = vst [vmem:[#allocation22_spill] sm:$0xff] %v12773_v9  ;;  %v1755_v34 = vsel %vm1744_vm3, %v17400_v22, %v1732_v53  ;;  %v17063_v16 = vrot.slane %v12702_v60, 3  ;;  %v2254_v25 = vadd.f32 %v2154_v3, %v1858_v18  ;;  %3218 = vmatmul.bf16.gmra.mxu3 %v12773_v9  ;;  %v9946_v32 = vunpack.i.h.bf16 %v9944_v45  ;;  %3307 = vmatmul.bf16.gmra.mxu0 %v12766_v6 }
 0x37b   : > { %v2484_v17 = vsel %vm818_vm1, %v2448_v19, %v2450_v12  ;;  %v12795_v0 = vadd.f32 %v11576_v52, %v2253_v54  ;;  %v9951_v38 = vunpack.i.h.bf16 %v9949_v55  ;;  %3396 = vmatmul.bf16.gmra.mxu1 %v12773_v9  ;;  %v17401_v47 = vmax.f32 %v12699_v23, 0.0  ;;  %v17403_v54 = vld [vmem:[#allocation31_spill] sm:$0xff] }
 0x37c   : > { %v2483_v51 = vsel %vm818_vm1, %v2447_v57, %v2449_v61  ;;  %v12806_v62 = vadd.f32 %v11579_v63, %v2254_v25  ;;  %v9950_v19 = vunpack.i.l.bf16 %v9949_v55  ;;  %v9945_v18 = vunpack.i.l.bf16 %v9944_v45  ;;  %v1972_v33 = vpop.f32.mrf.mxu0 }
 0x37d   : > { %v12801_v14 = vmax.f32 %v17401_v47, %v2484_v17  ;;  %v1859_v22 = vadd.f32 %v1755_v34, %v17402_v50  ;;  %v1860_v3 = vadd.f32 %v1756_v7, %v17403_v54  ;;  %v17061_v2 = vmax.f32 %v12795_v0, 0.0  ;;  %v2061_v47 = vpop.f32.mrf.mxu1 }
 0x37e   : > { %v1753_v23 = vsel %vm1744_vm3, %v1732_v53, %v17063_v16  ;;  %v1735_v17 = vrot.slane %v12729_v10, 3  ;;  %v17062_v57 = vmax.f32 %v12806_v62, 0.0  ;;  %v2128_v25 = vrot.slane %v1972_v33, 4 }
 0x37f   : > { %v2733_v45 = vsel %vm2725_vm5, %v9946_v32, %v9951_v38  ;;  %v2129_v34 = vrot.slane %v2061_v47, 4  ;;  %v2451_v7 = vrot.slane %v17061_v2, 1  ;;  %v17404_v55 = vmax.f32 %v12685_v24, 0.0  ;;  %v12833_v47 = vpop.f32.mrf.mxu2 }
 0x380   : > { %v2765_v53 = vsel %vm2725_vm5, %v9951_v38, %v9946_v32  ;;  %v2732_v10 = vsel %vm2725_vm5, %v9945_v18, %v9950_v19  ;;  %v2151_v33 = vsel %vm2140_vm4, %v2126_v56, %v2128_v25  ;;  %v2452_v54 = vrot.slane %v17062_v57, 1 }
 0x381   : > { %v12823_v50 = vmax.f32 %v17404_v55, %v2483_v51  ;;  %v2764_v2 = vsel %vm2725_vm5, %v9950_v19, %v9945_v18  ;;  %v2255_v24 = vadd.f32 %v2151_v33, %v1859_v22  ;;  %v2152_v51 = vsel %vm2140_vm4, %v2127_v8, %v2129_v34 }
 0x382   : > { %v2481_v32 = vsel %vm818_vm1, %v2449_v61, %v2451_v7  ;;  %v17405_v38 = vrot.slane %v12655_v29, 3  ;;  %v2804_v55 = vmax.f32 %v11798_v1, %v2733_v45  ;;  %v2256_v57 = vadd.f32 %v2152_v51, %v1860_v3 }
 0x383   : > { %v2482_v16 = vsel %vm818_vm1, %v2450_v12, %v2452_v54  ;;  %v2802_v19 = vmax.f32 %v11768_v4, %v2732_v10  ;;  %v12850_v18 = vadd.f32 %v11576_v52, %v2255_v24  ;;  %v17406_v61 = vmax.f32 %v12744_v27, 0.0  ;;  %v12865_v12 = vpop.f32.mrf.mxu3 }
 0x384   : > { %v1754_v56 = vsel %vm1744_vm3, %v17405_v38, %v1735_v17  ;;  %v12852_v8 = vmax.f32 %v2386_v43, %v2482_v16  ;;  %v1736_v29 = vrot.slane %v12764_v37, 3  ;;  %v2805_v33 = vmax.f32 %v11805_v58, %v2765_v53  ;;  %v1974_v45 = vpop.f32.mrf.mxu0  ;;  %v17407_v16 = vld [vmem:[#allocation32_spill] sm:$0xff] }
 0x385   : > { %v12856_v22 = vmax.f32 %v17406_v61, %v2481_v32  ;;  %v2803_v1 = vmax.f32 %v11771_v31, %v2764_v2  ;;  %v12862_v3 = vadd.f32 %v11579_v63, %v2256_v57  ;;  %v1737_v4 = vrot.slane %v12792_v13, 3  ;;  %v2063_v31 = vpop.f32.mrf.mxu1  ;;  %v17408_v57 = vld [vmem:[#allocation33_spill] sm:$0xff] }
 0x386   : > { %v10027_v43 = vpack.i.bf16 %v12852_v8, %v12801_v14  ;;  %v17064_v37 = vmax.f32 %v12850_v18, 0.0  ;;  %v1861_v58 = vadd.f32 %v1753_v23, %v17407_v16  ;;  %v2130_v53 = vrot.slane %v1974_v45, 4 }
 0x387   : > { %v10022_v27 = vpack.i.bf16 %v12856_v22, %v12823_v50  ;;  %v2390_v2 = vmax.f32 %v12862_v3, 0.0  ;;  %v1862_v10 = vadd.f32 %v1754_v56, %v17408_v57  ;;  %v12875_v13 = vpack.c.bf16 %v2804_v55, %v2802_v19 }
 0x388   : > { %v2131_v24 = vrot.slane %v2063_v31, 4  ;;  %10028 = vrot.lane.b32.xlu2 %v10027_v43, %s10418_s27  ;;  %v2453_v51 = vrot.slane %v17064_v37, 1  ;;  %v17410_v32 = vrot.slane %v12702_v60, 3  ;;  %v12885_v38 = vpack.c.bf16 %v2805_v33, %v2803_v1  ;;  %v9959_v45 = vpop.permute.xlu0 %9958  ;;  %v9954_v43 = vpop.permute.xlu2 %9953 }
 0x389   : > { %17409 = vst [vmem:[#allocation23_spill] sm:$0xff] %v12875_v13  ;;  %10023 = vrot.lane.b32.xlu1 %v10022_v27, %s10418_s27  ;;  %v2149_v56 = vsel %vm2140_vm4, %v2128_v25, %v2130_v53  ;;  %v2454_v55 = vrot.slane %v2390_v2, 1  ;;  %v1752_v19 = vsel %vm1744_vm3, %v1735_v17, %v1737_v4  ;;  %3134 = vmatmul.bf16.gmra.mxu2 %v12875_v13  ;;  %v1738_v33 = vrot.slane %v12833_v47, 3  ;;  %v12901_v27 = vpop.f32.mrf.mxu2 }
 0x38a   : > { %v1751_v23 = vsel %vm1744_vm3, %v17410_v32, %v1736_v29  ;;  %17411 = vst [vmem:[#allocation24_spill] sm:$0xff] %v12885_v38  ;;  %v2257_v61 = vadd.f32 %v2149_v56, %v1861_v58  ;;  %v2150_v3 = vsel %vm2140_vm4, %v2129_v34, %v2131_v24  ;;  %v2479_v60 = vsel %vm818_vm1, %v2451_v7, %v2453_v51  ;;  %v17415_v56 = vld [vmem:[#allocation35_spill] sm:$0xff] }
 0x38b   : > { %v2258_v25 = vadd.f32 %v2150_v3, %v1862_v10  ;;  %3223 = vmatmul.bf16.gmra.mxu3 %v12885_v38  ;;  %v2480_v17 = vsel %vm818_vm1, %v2452_v54, %v2454_v55  ;;  %v9960_v16 = vunpack.i.l.bf16 %v9959_v45  ;;  %3312 = vmatmul.bf16.gmra.mxu0 %v12875_v13  ;;  %v17412_v7 = vmax.f32 %v12806_v62, 0.0  ;;  %v17414_v10 = vld [vmem:[#allocation34_spill] sm:$0xff] }
 0x38c   : > { %v12904_v34 = vadd.f32 %v11576_v52, %v2257_v61  ;;  %3401 = vmatmul.bf16.gmra.mxu1 %v12885_v38  ;;  %v17413_v58 = vmax.f32 %v12795_v0, 0.0  ;;  %v9961_v57 = vunpack.i.h.bf16 %v9959_v45  ;;  %v1863_v32 = vadd.f32 %v1751_v23, %v17414_v10  ;;  %v1977_v1 = vpop.f32.mrf.mxu0  ;;  %v12929_v23 = vpop.f32.mrf.mxu3 }
 0x38d   : > { %v12910_v47 = vmax.f32 %v17412_v7, %v2480_v17  ;;  %v12917_v54 = vadd.f32 %v11579_v63, %v2258_v25  ;;  %v1864_v61 = vadd.f32 %v1752_v19, %v17415_v56  ;;  %v9955_v3 = vunpack.i.l.bf16 %v9954_v43  ;;  %v2066_v7 = vpop.f32.mrf.mxu1 }
 0x38e   : > { %v12914_v31 = vmax.f32 %v17413_v58, %v2479_v60  ;;  %v17065_v37 = vmax.f32 %v12904_v34, 0.0  ;;  %v1749_v62 = vsel %vm1744_vm3, %v1736_v29, %v1738_v33  ;;  %v9956_v17 = vunpack.i.h.bf16 %v9954_v43 }
 0x38f   : > { %v17070_v0 = vmax.f32 %v12917_v54, 0.0  ;;  %v2132_v60 = vrot.slane %v1977_v1, 4  ;;  %v17416_v25 = vrot.slane %v12865_v12, 3  ;;  %v2734_v19 = vsel %vm2725_vm5, %v9955_v3, %v9960_v16 }
 0x390   : > { %v2133_v58 = vrot.slane %v2066_v7, 4  ;;  %v2455_v10 = vrot.slane %v17065_v37, 1  ;;  %v2735_v29 = vsel %vm2725_vm5, %v9956_v17, %v9961_v57  ;;  %v2766_v1 = vsel %vm2725_vm5, %v9960_v16, %v9955_v3 }
 0x391   : > { %v1750_v45 = vsel %vm1744_vm3, %v1737_v4, %v17416_v25  ;;  %v2147_v43 = vsel %vm2140_vm4, %v2130_v53, %v2132_v60  ;;  %v2456_v4 = vrot.slane %v17070_v0, 1  ;;  %v2767_v56 = vsel %vm2725_vm5, %v9961_v57, %v9956_v17  ;;  %v17418_v17 = vld [vmem:[#allocation36_spill] sm:$0xff] }
 0x392   : > { %v2259_v25 = vadd.f32 %v2147_v43, %v1863_v32  ;;  %v2148_v7 = vsel %vm2140_vm4, %v2131_v24, %v2133_v58  ;;  %v2477_v37 = vsel %vm818_vm1, %v2453_v51, %v2455_v10  ;;  %v1740_v38 = vrot.slane %v12901_v27, 3 }
 0x393   : > { %v2260_v13 = vadd.f32 %v2148_v7, %v1864_v61  ;;  %v2478_v16 = vsel %vm818_vm1, %v2454_v55, %v2456_v4  ;;  %v17417_v53 = vmax.f32 %v12850_v18, 0.0  ;;  %v2806_v0 = vmax.f32 %v11836_v42, %v2734_v19  ;;  %v1588_v42 = vpop.f32.mrf.mxu2  ;;  %v9969_v7 = vpop.permute.xlu2 %9968 }
 0x394   : > { %v2808_v57 = vmax.f32 %v11885_v28, %v2735_v29  ;;  %v12959_v32 = vadd.f32 %v11576_v52, %v2259_v25  ;;  %v12961_v24 = vmax.f32 %v2390_v2, %v2478_v16  ;;  %v2807_v51 = vmax.f32 %v11843_v5, %v2766_v1  ;;  %v1979_v55 = vpop.f32.mrf.mxu0  ;;  %v17419_v5 = vld [vmem:[#allocation46_spill] sm:$0xff] }
 0x395   : > { %v12954_v3 = vmax.f32 %v17417_v53, %v2477_v37  ;;  %v2809_v27 = vmax.f32 %v11894_v26, %v2767_v56  ;;  %v12966_v61 = vadd.f32 %v11579_v63, %v2260_v13  ;;  %v1741_v37 = vrot.slane %v12929_v23, 3  ;;  %v2068_v1 = vpop.f32.mrf.mxu1 }
 0x396   : > { %v10037_v28 = vpack.i.bf16 %v12961_v24, %v12910_v47  ;;  %v17071_v2 = vmax.f32 %v12959_v32, 0.0  ;;  %v1865_v19 = vadd.f32 %v1749_v62, %v17418_v17  ;;  %v1866_v29 = vadd.f32 %v1750_v45, %v17419_v5  ;;  %v17424_v5 = vld [vmem:[#allocation37_spill] sm:$0xff] }
 0x397   : > { %v10032_v18 = vpack.i.bf16 %v12954_v3, %v12914_v31  ;;  %v2134_v26 = vrot.slane %v1979_v55, 4  ;;  %v2394_v13 = vmax.f32 %v12966_v61, 0.0  ;;  %v1747_v23 = vsel %vm1744_vm3, %v1738_v33, %v1740_v38  ;;  %v9964_v53 = vpop.permute.xlu1 %9963 }
 0x398   : > { %v12980_v43 = vpack.c.bf16 %v2808_v57, %v2806_v0  ;;  %v2135_v56 = vrot.slane %v2068_v1, 4  ;;  %10038 = vrot.lane.b32.xlu1 %v10037_v28, %s10418_s27  ;;  %v2457_v25 = vrot.slane %v17071_v2, 1  ;;  %v1742_v62 = vrot.slane %v1588_v42, 3  ;;  %v1677_v0 = vpop.f32.mrf.mxu3 }
 0x399   : > { %10033 = vrot.lane.b32.xlu0 %v10032_v18, %s10418_s27  ;;  %v12985_v45 = vpack.c.bf16 %v2809_v27, %v2807_v51  ;;  %v2145_v16 = vsel %vm2140_vm4, %v2132_v60, %v2134_v26  ;;  %v2458_v61 = vrot.slane %v2394_v13, 1  ;;  %v17422_v18 = vrot.slane %v12865_v12, 3  ;;  %v17423_v27 = vld [vmem:[#allocation47_spill] sm:$0xff] }
 0x39a   : > { %17420 = vst [vmem:[#allocation25_spill] sm:$0xff] %v12980_v43  ;;  %v2261_v57 = vadd.f32 %v2145_v16, %v1865_v19  ;;  %v2146_v55 = vsel %vm2140_vm4, %v2133_v58, %v2135_v56  ;;  %3139 = vmatmul.bf16.gmra.mxu2 %v12980_v43  ;;  %v9966_v42 = vunpack.i.h.bf16 %v9964_v53  ;;  %v2475_v12 = vsel %vm818_vm1, %v2455_v10, %v2457_v25 }
 0x39b   : > { %17421 = vst [vmem:[#allocation53_spill] sm:$0xff] %v12985_v45  ;;  %v1748_v33 = vsel %vm1744_vm3, %v17422_v18, %v1741_v37  ;;  %v2262_v51 = vadd.f32 %v2146_v55, %v1866_v29  ;;  %3228 = vmatmul.bf16.gmra.mxu3 %v12985_v45  ;;  %v2476_v60 = vsel %vm818_vm1, %v2456_v4, %v2458_v61  ;;  %v9971_v17 = vunpack.i.h.bf16 %v9969_v7 }
 0x39c   : > { %v1867_v28 = vadd.f32 %v1747_v23, %v17423_v27  ;;  %v13003_v19 = vadd.f32 %v11576_v52, %v2261_v57  ;;  %3406 = vmatmul.bf16.gmra.mxu1 %v12985_v45  ;;  %v9965_v58 = vunpack.i.l.bf16 %v9964_v53  ;;  %v1868_v1 = vadd.f32 %v1748_v33, %v17424_v5  ;;  %3317 = vmatmul.bf16.gmra.mxu0 %v12980_v43  ;;  %v1982_v57 = vpop.f32.mrf.mxu0  ;;  %v17427_v5 = vld [vmem:[#allocation42_spill] sm:$0xff] }
 0x39d   : > { %v1745_v29 = vsel %vm1744_vm3, %v1740_v38, %v1742_v62  ;;  %v1743_v16 = vrot.slane %v1677_v0, 3  ;;  %v13010_v4 = vadd.f32 %v11579_v63, %v2262_v51  ;;  %v9970_v10 = vunpack.i.l.bf16 %v9969_v7  ;;  %v2071_v51 = vpop.f32.mrf.mxu1 }
 0x39e   : > { %v2737_v18 = vsel %vm2725_vm5, %v9966_v42, %v9971_v17  ;;  %v17425_v53 = vmax.f32 %v12917_v54, 0.0  ;;  %v2769_v38 = vsel %vm2725_vm5, %v9971_v17, %v9966_v42  ;;  %v2136_v0 = vrot.slane %v1982_v57, 4 }
 0x39f   : > { %v17426_v27 = vmax.f32 %v12904_v34, 0.0  ;;  %v17428_v2 = vrot.slane %v17427_v5, 3  ;;  %v2736_v54 = vsel %vm2725_vm5, %v9965_v58, %v9970_v10  ;;  %v1746_v42 = vsel %vm1744_vm3, %v1741_v37, %v1743_v16 }
 0x3a0   : > { %v13018_v55 = vmax.f32 %v17425_v53, %v2476_v60  ;;  %v2137_v60 = vrot.slane %v2071_v51, 4  ;;  %v17429_v53 = vmax.f32 %v13003_v19, 0.0  ;;  %v2768_v34 = vsel %vm2725_vm5, %v9970_v10, %v9965_v58 }
 0x3a1   : > { %v13025_v7 = vmax.f32 %v17426_v27, %v2475_v12  ;;  %v1807_v23 = vsel %vm1744_vm3, %v1742_v62, %v17428_v2  ;;  %v2143_v12 = vsel %vm2140_vm4, %v2134_v26, %v2136_v0  ;;  %v17430_v17 = vmax.f32 %v13010_v4, 0.0 }
 0x3a2   : > { %v2459_v33 = vrot.slane %v17429_v53, 1  ;;  %v2812_v2 = vmax.f32 %v12052_v59, %v2737_v18  ;;  %v2813_v62 = vmax.f32 %v12068_v15, %v2769_v38  ;;  %v2263_v51 = vadd.f32 %v2143_v12, %v1867_v28  ;;  %v17436_v12 = vld [vmem:[#allocation39_spill] sm:$0xff] }
 0x3a3   : > { %v2460_v57 = vrot.slane %v17430_v17, 1  ;;  %v2144_v27 = vsel %vm2140_vm4, %v2135_v56, %v2137_v60  ;;  %v2810_v5 = vmax.f32 %v11950_v48, %v2736_v54  ;;  %v2811_v10 = vmax.f32 %v11957_v39, %v2768_v34  ;;  %v17432_v56 = vld [vmem:[#allocation43_spill] sm:$0xff] }
 0x3a4   : > { %v2264_v37 = vadd.f32 %v2144_v27, %v1868_v1  ;;  %v2473_v26 = vsel %vm818_vm1, %v2457_v25, %v2459_v33  ;;  %v2333_v53 = vadd.f32 %v11576_v52, %v2263_v51  ;;  %v17431_v15 = vmax.f32 %v12959_v32, 0.0  ;;  %v17434_v1 = vld [vmem:[#allocation38_spill] sm:$0xff]  ;;  %v1984_v25 = vpop.f32.mrf.mxu0  ;;  %v17435_v32 = vld [vmem:[#allocation40_spill] sm:$0xff] }
 0x3a5   : > { %v2474_v58 = vsel %vm818_vm1, %v2458_v61, %v2460_v57  ;;  %v17433_v18 = vrot.slane %v17432_v56, 3  ;;  %v1869_v38 = vadd.f32 %v1745_v29, %v17434_v1  ;;  %v1871_v34 = vadd.f32 %v1807_v23, %v17435_v32  ;;  %v2073_v27 = vpop.f32.mrf.mxu1  ;;  %v17440_v23 = vld [vmem:[#allocation48_spill] sm:$0xff] }
 0x3a6   : > { %v13054_v59 = vmax.f32 %v2394_v13, %v2474_v58  ;;  %v13058_v28 = vmax.f32 %v17431_v15, %v2473_v26  ;;  %v2334_v61 = vadd.f32 %v11579_v63, %v2264_v37  ;;  %v2397_v54 = vmax.f32 %v2333_v53, 0.0 }
 0x3a7   : > { %v1808_v48 = vsel %vm1744_vm3, %v1743_v16, %v17433_v18  ;;  %v1870_v17 = vadd.f32 %v1746_v42, %v17436_v12  ;;  %v2138_v51 = vrot.slane %v1984_v25, 4  ;;  %v17437_v16 = vld [vmem:[#allocation41_spill] sm:$0xff]  ;;  %v13073_v37 = vpack.c.bf16 %v2812_v2, %v2810_v5 }
 0x3a8   : > { %v10047_v39 = vpack.i.bf16 %v13054_v59, %v13018_v55  ;;  %v10042_v13 = vpack.i.bf16 %v13058_v28, %v13025_v7  ;;  %v2398_v58 = vmax.f32 %v2334_v61, 0.0  ;;  %v1872_v26 = vadd.f32 %v1808_v48, %v17437_v16 }
 0x3a9   : > { %17438 = vst [vmem:[#allocation54_spill] sm:$0xff] %v13073_v37  ;;  %v13075_v29 = vpack.c.bf16 %v2813_v62, %v2811_v10  ;;  %v2139_v15 = vrot.slane %v2073_v27, 4  ;;  %v2141_v53 = vsel %vm2140_vm4, %v2136_v0, %v2138_v51  ;;  %v17441_v56 = vrot.slane %v17440_v23, 4  ;;  %v9974_v18 = vpop.permute.xlu0 %9973  ;;  %v17442_v10 = vld [vmem:[#allocation49_spill] sm:$0xff] }
 0x3aa   : > { %10048 = vrot.lane.b32.xlu0 %v10047_v39, %s10418_s27  ;;  %10043 = vrot.lane.b32.xlu2 %v10042_v13, %s10418_s27  ;;  %v2462_v61 = vrot.slane %v2398_v58, 1  ;;  %v2461_v48 = vrot.slane %v2397_v54, 1  ;;  %v2265_v2 = vadd.f32 %v2141_v53, %v1869_v38  ;;  %v17443_v1 = vrot.slane %v17442_v10, 4  ;;  %v9979_v39 = vpop.permute.xlu1 %9978 }
 0x3ab   : > { %17439 = vst [vmem:[#allocation26_spill] sm:$0xff] %v13075_v29  ;;  %v2203_v42 = vsel %vm2140_vm4, %v2138_v51, %v17441_v56  ;;  %v2142_v62 = vsel %vm2140_vm4, %v2137_v60, %v2139_v15  ;;  %3144 = vmatmul.bf16.gmra.mxu2 %v13073_v37  ;;  %v9981_v32 = vunpack.i.h.bf16 %v9979_v39  ;;  %v9980_v12 = vunpack.i.l.bf16 %v9979_v39  ;;  %3233 = vmatmul.bf16.gmra.mxu3 %v13075_v29 }
 0x3ac   : > { %v2267_v5 = vadd.f32 %v2203_v42, %v1871_v34  ;;  %v2204_v25 = vsel %vm2140_vm4, %v2139_v15, %v17443_v1  ;;  %v2266_v0 = vadd.f32 %v2142_v62, %v1870_v17  ;;  %v2335_v38 = vadd.f32 %v11576_v52, %v2265_v2  ;;  %3411 = vmatmul.bf16.gmra.mxu1 %v13075_v29 }
 0x3ad   : > { %v2268_v13 = vadd.f32 %v2204_v25, %v1872_v26  ;;  %v9976_v34 = vunpack.i.h.bf16 %v9974_v18  ;;  %v9975_v60 = vunpack.i.l.bf16 %v9974_v18  ;;  %v2472_v51 = vsel %vm818_vm1, %v2460_v57, %v2462_v61  ;;  %3322 = vmatmul.bf16.gmra.mxu0 %v13073_v37 }
 0x3ae   : > { %v2336_v27 = vadd.f32 %v11579_v63, %v2266_v0  ;;  %v17444_v17 = vmax.f32 %v13010_v4, 0.0  ;;  %v2471_v26 = vsel %vm818_vm1, %v2459_v33, %v2461_v48  ;;  %v2337_v15 = vadd.f32 %v11576_v52, %v2267_v5  ;;  %v17446_v0 = vld [vmem:[#allocation59_spill] sm:$0xff] }
 0x3af   : > { %v2399_v53 = vmax.f32 %v2335_v38, 0.0  ;;  %v2739_v56 = vsel %vm2725_vm5, %v9976_v34, %v9981_v32  ;;  %v17445_v57 = vmax.f32 %v13003_v19, 0.0  ;;  %v2738_v4 = vsel %vm2725_vm5, %v9975_v60, %v9980_v12 }
 0x3b0   : > { %v13101_v16 = vmax.f32 %v17444_v17, %v2472_v51  ;;  %v2400_v23 = vmax.f32 %v2336_v27, 0.0  ;;  %v2401_v62 = vmax.f32 %v2337_v15, 0.0  ;;  %v2338_v10 = vadd.f32 %v11579_v63, %v2268_v13  ;;  %v17447_v51 = vld [vmem:[#allocation57_spill] sm:$0xff]  ;;  %v17449_v27 = vld [vmem:[#allocation58_spill] sm:$0xff] }
 0x3b1   : > { %v2463_v42 = vrot.slane %v2399_v53, 1  ;;  %v13110_v18 = vmax.f32 %v17445_v57, %v2471_v26  ;;  %v2771_v52 = vsel %vm2725_vm5, %v9981_v32, %v9976_v34  ;;  %v2770_v33 = vsel %vm2725_vm5, %v9980_v12, %v9975_v60  ;;  %v17448_v32 = vld [vmem:[#allocation60_spill] sm:$0xff]  ;;  %v17452_v57 = vld [vmem:[#allocation45_spill] sm:$0xff] }
 0x3b2   : > { %v2464_v2 = vrot.slane %v2400_v23, 1  ;;  %v2465_v25 = vrot.slane %v2401_v62, 1  ;;  %v2402_v39 = vmax.f32 %v2338_v10, 0.0  ;;  %v2816_v38 = vmax.f32 %v17446_v0, %v2739_v56  ;;  %v17450_v60 = vld [vmem:[#allocation44_spill] sm:$0xff] }
 0x3b3   : > { %v2469_v5 = vsel %vm818_vm1, %v2461_v48, %v2463_v42  ;;  %v2814_v63 = vmax.f32 %v17447_v51, %v2738_v4  ;;  %v2817_v34 = vmax.f32 %v17448_v32, %v2771_v52  ;;  %v2815_v12 = vmax.f32 %v17449_v27, %v2770_v33  ;;  %v17454_v32 = vld [vmem:[#allocation61_spill] sm:$0xff]  ;;  %v17455_v27 = vld [vmem:[#allocation15_spill] sm:$0xff] }
 0x3b4   : > { %v2470_v19 = vsel %vm818_vm1, %v2462_v61, %v2464_v2  ;;  %v13123_v1 = vmax.f32 %v2397_v54, %v2469_v5  ;;  %v2467_v61 = vsel %vm818_vm1, %v2463_v42, %v2465_v25  ;;  %v2529_v17 = vsel %vm818_vm1, %v2465_v25, %v17450_v60 }
 0x3b5   : > { %v13127_v13 = vmax.f32 %v2398_v58, %v2470_v19  ;;  %v13140_v26 = vmax.f32 %v2399_v53, %v2467_v61  ;;  %v2466_v58 = vrot.slane %v2402_v39, 1  ;;  %v13143_v15 = vmax.f32 %v2401_v62, %v2529_v17 }
 0x3b6   : > { %v10052_v48 = vpack.i.bf16 %v13123_v1, %v13110_v18  ;;  %v13145_v56 = vpack.c.bf16 %v2816_v38, %v2814_v63  ;;  %v13153_v10 = vpack.c.bf16 %v2817_v34, %v2815_v12 }
 0x3b7   : > { %v10057_v54 = vpack.i.bf16 %v13127_v13, %v13101_v16  ;;  %v2468_v42 = vsel %vm818_vm1, %v2464_v2, %v2466_v58  ;;  %v2530_v4 = vsel %vm818_vm1, %v2466_v58, %v17452_v57  ;;  %v10062_v53 = vpack.i.bf16 %v13143_v15, %v13140_v26  ;;  %v9984_v2 = vpop.permute.xlu2 %9983 }
 0x3b8   : > { %10053 = vrot.lane.b32.xlu1 %v10052_v48, %s10418_s27  ;;  %17451 = vst [vmem:[#allocation27_spill] sm:$0xff] %v13145_v56  ;;  %v13157_v52 = vmax.f32 %v2400_v23, %v2468_v42  ;;  %v13159_v62 = vmax.f32 %v2402_v39, %v2530_v4  ;;  %v9986_v25 = vunpack.i.h.bf16 %v9984_v2  ;;  %v9985_v39 = vunpack.i.l.bf16 %v9984_v2  ;;  %v17456_v48 = vld [vmem:[#allocation62_spill] sm:$0xff] }
 0x3b9   : > { %10058 = vrot.lane.b32.xlu2 %v10057_v54, %s10418_s27  ;;  %17453 = vst [vmem:[#allocation55_spill] sm:$0xff] %v13153_v10  ;;  %10063 = vrot.lane.b32.xlu0 %v10062_v53, %s10418_s27  ;;  %v17457_v54 = vld [vmem:[#allocation63_spill] sm:$0xff] }
 0x3ba   : > { %v10067_v23 = vpack.i.bf16 %v13159_v62, %v13157_v52 }
 0x3bb   : > { %v9989_v33 = vpop.permute.xlu0 %9988  ;;  %3149 = vmatmul.bf16.gmra.mxu2 %v13145_v56  ;;  %3238 = vmatmul.bf16.gmra.mxu3 %v13153_v10 }
 0x3bc   : > { %3416 = vmatmul.bf16.gmra.mxu1 %v13153_v10  ;;  %v9991_v5 = vunpack.i.h.bf16 %v9989_v33  ;;  %v9990_v19 = vunpack.i.l.bf16 %v9989_v33 }
 0x3bd   : > { %3327 = vmatmul.bf16.gmra.mxu0 %v13145_v56 }
 0x3be   : > { %v2740_v0 = vsel %vm2725_vm5, %v9985_v39, %v9990_v19  ;;  %v2741_v38 = vsel %vm2725_vm5, %v9986_v25, %v9991_v5  ;;  %v2772_v51 = vsel %vm2725_vm5, %v9990_v19, %v9985_v39  ;;  %v2773_v63 = vsel %vm2725_vm5, %v9991_v5, %v9986_v25 }
 0x3bf   : > { %v2818_v34 = vmax.f32 %v17454_v32, %v2740_v0  ;;  %v2820_v12 = vmax.f32 %v17455_v27, %v2741_v38  ;;  %v2819_v61 = vmax.f32 %v17456_v48, %v2772_v51  ;;  %v2821_v60 = vmax.f32 %v17457_v54, %v2773_v63  ;;  %v9999_v42 = vpop.permute.xlu2 %9998  ;;  %v17460_v38 = vld [vmem:[#allocation18_spill] sm:$0xff]  ;;  %v17461_v63 = vld [vmem:[#allocation17_spill] sm:$0xff] }
 0x3c0   : > { %10068 = vrot.lane.b32.xlu1 %v10067_v23, %s10418_s27  ;;  %v10001_v33 = vunpack.i.h.bf16 %v9999_v42  ;;  %v10000_v2 = vunpack.i.l.bf16 %v9999_v42  ;;  %s8154_s27 = sshll.u32 %s8150_s29, 4  ;;  %s8155_s27 = int_to_ptr.hbm [resolvable:$true] %s8154_s27 }
 0x3c1   : > { %v13181_v17 = vpack.c.bf16 %v2820_v12, %v2818_v34  ;;  %v13183_v58 = vpack.c.bf16 %v2821_v60, %v2819_v61  ;;  %s10353_s13 = sshra.s32 %s8155_s27, 4  ;;  %s10354_s13 = int_to_ptr.hbm [resolvable:$true] %s10353_s13 }
 0x3c2   : > { %s10355_s18 = scalar_lea.hbm %s10354_s13, 16  ;;  %p10360_p3 = scmp.lt.s32.totalorder %s10354_s13, %s16986_s9 }
 0x3c3   : > { %17458 = vst [vmem:[#allocation56_spill] sm:$0xff] %v13181_v17  ;;  %p10356_p0 = scmp.ne.s32.totalorder %s10354_s13, %s10355_s18  ;;  %p10361_p4 = scmp.lt.s32.totalorder %s10359_s14, %s10355_s18 }
 0x3c4   : > { %17459 = vst [vmem:[#allocation28_spill] sm:$0xff] %v13183_v58 }
 0x3c5   : > { %p10357_p1 = pnand %p10356_p0, %p10508_p5  ;;  %p10362_p7 = por %p10361_p4, %p10360_p3 }
 0x3c7   : > { %p10358_p2 = pneg %p10357_p1 }
 0x3c9   : > { %p10363_p8 = pnand %p10362_p7, %p10358_p2 }
 0x3cb   : > { %3154 = vmatmul.bf16.gmra.mxu2 %v13181_v17  ;;  %3243 = vmatmul.bf16.gmra.mxu3 %v13183_v58 }
 0x3cc   : > { %3421 = vmatmul.bf16.gmra.mxu1 %v13183_v58 }
 0x3cd   : > { %v9994_v57 = vpop.permute.xlu1 %9993  ;;  %3332 = vmatmul.bf16.gmra.mxu0 %v13181_v17 }
 0x3ce   : > { %v9996_v4 = vunpack.i.h.bf16 %v9994_v57  ;;  %v9995_v53 = vunpack.i.l.bf16 %v9994_v57 }
 0x3d0   : > { %v2743_v5 = vsel %vm2725_vm5, %v9996_v4, %v10001_v33  ;;  %v2742_v19 = vsel %vm2725_vm5, %v9995_v53, %v10000_v2  ;;  %v2775_v23 = vsel %vm2725_vm5, %v10001_v33, %v9996_v4  ;;  %v2774_v25 = vsel %vm2725_vm5, %v10000_v2, %v9995_v53 }
 0x3d1   : > { %v2824_v39 = vmax.f32 %v12535_v21, %v2743_v5  ;;  %v2822_v0 = vmax.f32 %v12469_v20, %v2742_v19  ;;  %v2825_v51 = vmax.f32 %v17460_v38, %v2775_v23  ;;  %v2823_v32 = vmax.f32 %v17461_v63, %v2774_v25 }
 0x3d3   : > { %v13201_v34 = vpack.c.bf16 %v2824_v39, %v2822_v0  ;;  %v13203_v27 = vpack.c.bf16 %v2825_v51, %v2823_v32  ;;  %v17465_v32 = vld [vmem:[#allocation21_spill] sm:$0xff] }
 0x3d5   : > { %17462 = vst [vmem:[#allocation29_spill] sm:$0xff] %v13201_v34 }
 0x3d6   : > { %17463 = vst [vmem:[#allocation30_spill] sm:$0xff] %v13203_v27  ;;  %v3387_v48 = vpop.f32.mrf.mxu1 }
 0x3d7   : > { %v3298_v12 = vpop.f32.mrf.mxu0 }
 0x3d8   : > { %v13205_v61 = vadd.f32 %v3387_v48, %v3298_v12 }
 0x3db   : > { %3159 = vmatmul.bf16.gmra.mxu2 %v13201_v34  ;;  %3248 = vmatmul.bf16.gmra.mxu3 %v13203_v27  ;;  %v10009_v54 = vpop.permute.xlu1 %10008  ;;  %v3120_v42 = vpop.f32.mrf.mxu2 }
 0x3dc   : > { %3426 = vmatmul.bf16.gmra.mxu1 %v13203_v27  ;;  %v10011_v20 = vunpack.i.h.bf16 %v10009_v54  ;;  %v10010_v21 = vunpack.i.l.bf16 %v10009_v54  ;;  %v10004_v60 = vpop.permute.xlu0 %10003  ;;  %v3209_v53 = vpop.f32.mrf.mxu3 }
 0x3dd   : > { %3337 = vmatmul.bf16.gmra.mxu0 %v13201_v34  ;;  %v10006_v57 = vunpack.i.h.bf16 %v10004_v60  ;;  %v10005_v4 = vunpack.i.l.bf16 %v10004_v60  ;;  %v13211_v33 = vadd.f32 %v3209_v53, %v3120_v42 }
 0x3de   : > { %v3389_v23 = vpop.f32.mrf.mxu1 }
 0x3df   : > { %17464 = vst [vmem:[#allocation31_spill] sm:$0xff] %v13211_v33  ;;  %v2745_v2 = vsel %vm2725_vm5, %v10006_v57, %v10011_v20  ;;  %v2744_v5 = vsel %vm2725_vm5, %v10005_v4, %v10010_v21  ;;  %v3300_v19 = vpop.f32.mrf.mxu0  ;;  %v2777_v25 = vsel %vm2725_vm5, %v10011_v20, %v10006_v57  ;;  %v2776_v39 = vsel %vm2725_vm5, %v10010_v21, %v10005_v4 }
 0x3e0   : > { %v13221_v0 = vadd.f32 %v3389_v23, %v3300_v19  ;;  %v2828_v38 = vmax.f32 %v12645_v40, %v2745_v2  ;;  %v2826_v51 = vmax.f32 %v12606_v11, %v2744_v5  ;;  %v2829_v63 = vmax.f32 %v12641_v35, %v2777_v25  ;;  %v10014_v11 = vpop.permute.xlu2 %10013 }
 0x3e1   : > { %v2827_v12 = vmax.f32 %v17465_v32, %v2776_v39  ;;  %v10016_v25 = vunpack.i.h.bf16 %v10014_v11  ;;  %v10015_v39 = vunpack.i.l.bf16 %v10014_v11 }
 0x3e2   : > { %v13229_v42 = vpack.c.bf16 %v2828_v38, %v2826_v51  ;;  %v17072_v40 = vrot.slane %v13221_v0, 2 }
 0x3e3   : > { %v3122_v48 = vpop.f32.mrf.mxu2  ;;  %v13231_v20 = vpack.c.bf16 %v2829_v63, %v2827_v12 }
 0x3e4   : > { %v3211_v54 = vpop.f32.mrf.mxu3  ;;  %17466 = vst [vmem:[#allocation32_spill] sm:$0xff] %v13229_v42 }
 0x3e5   : > { %v13227_v60 = vadd.f32 %v3211_v54, %v3122_v48  ;;  %17467 = vst [vmem:[#allocation33_spill] sm:$0xff] %v13231_v20 }
 0x3e7   : > { %v3303_v57 = vpop.f32.mrf.mxu0  ;;  %v17075_v63 = vrot.slane %v13227_v60, 2 }
 0x3e8   : > { %v3392_v21 = vpop.f32.mrf.mxu1 }
 0x3e9   : > { %v3393_v4 = vadd.f32 %v3392_v21, %v3303_v57 }
 0x3ea   : > { %v10019_v53 = vpop.permute.xlu0 %10018 }
 0x3eb   : > { %3164 = vmatmul.bf16.gmra.mxu2 %v13229_v42  ;;  %3253 = vmatmul.bf16.gmra.mxu3 %v13231_v20  ;;  %v3472_v35 = vrot.slane %v3393_v4, 2  ;;  %v10021_v2 = vunpack.i.h.bf16 %v10019_v53  ;;  %v10020_v5 = vunpack.i.l.bf16 %v10019_v53  ;;  %v3125_v19 = vpop.f32.mrf.mxu2 }
 0x3ec   : > { %3431 = vmatmul.bf16.gmra.mxu1 %v13231_v20  ;;  %v3214_v23 = vpop.f32.mrf.mxu3 }
 0x3ed   : > { %3342 = vmatmul.bf16.gmra.mxu0 %v13229_v42  ;;  %v3215_v38 = vadd.f32 %v3214_v23, %v3125_v19  ;;  %v13242_v51 = vsel %vm1348_vm2, %v17072_v40, %v3472_v35  ;;  %v2746_v32 = vsel %vm2725_vm5, %v10015_v39, %v10020_v5  ;;  %v2747_v12 = vsel %vm2725_vm5, %v10016_v25, %v10021_v2 }
 0x3ee   : > { %v2778_v21 = vsel %vm2725_vm5, %v10020_v5, %v10015_v39  ;;  %v2779_v4 = vsel %vm2725_vm5, %v10021_v2, %v10016_v25  ;;  %v2830_v19 = vmax.f32 %v12695_v49, %v2746_v32  ;;  %v2832_v23 = vmax.f32 %v12748_v46, %v2747_v12 }
 0x3ef   : > { %v3471_v48 = vrot.slane %v3215_v38, 2  ;;  %v3305_v54 = vpop.f32.mrf.mxu0  ;;  %v2831_v40 = vmax.f32 %v12691_v44, %v2778_v21  ;;  %v2833_v20 = vmax.f32 %v12746_v41, %v2779_v4 }
 0x3f0   : > { %v3394_v57 = vpop.f32.mrf.mxu1 }
 0x3f1   : > { %v3395_v53 = vadd.f32 %v3394_v57, %v3305_v54  ;;  %v13257_v11 = vsel %vm1348_vm2, %v17075_v63, %v3471_v48  ;;  %v13267_v54 = vpack.c.bf16 %v2832_v23, %v2830_v19  ;;  %v13269_v57 = vpack.c.bf16 %v2833_v20, %v2831_v40 }
 0x3f3   : > { %v3474_v38 = vrot.slane %v3395_v53, 2  ;;  %v3127_v5 = vpop.f32.mrf.mxu2  ;;  %17468 = vst [vmem:[#allocation34_spill] sm:$0xff] %v13267_v54 }
 0x3f4   : > { %v3216_v39 = vpop.f32.mrf.mxu3  ;;  %17469 = vst [vmem:[#allocation35_spill] sm:$0xff] %v13269_v57 }
 0x3f5   : > { %v13265_v2 = vsel %vm1348_vm2, %v3472_v35, %v3474_v38  ;;  %v3217_v25 = vadd.f32 %v3216_v39, %v3127_v5  ;;  %v10029_v35 = vpop.permute.xlu2 %10028 }
 0x3f6   : > { %v10031_v53 = vunpack.i.h.bf16 %v10029_v35  ;;  %v10030_v19 = vunpack.i.l.bf16 %v10029_v35 }
 0x3f7   : > { %v3473_v63 = vrot.slane %v3217_v25, 2  ;;  %v3308_v49 = vpop.f32.mrf.mxu0 }
 0x3f8   : > { %v3397_v32 = vpop.f32.mrf.mxu1 }
 0x3f9   : > { %v3398_v46 = vadd.f32 %v3397_v32, %v3308_v49  ;;  %v13275_v41 = vsel %vm1348_vm2, %v3471_v48, %v3473_v63 }
 0x3fa   : > { %17470 = vst [vmem:[#allocation36_spill] sm:$0xff] %v13275_v41 }
 0x3fb   : > { %3169 = vmatmul.bf16.gmra.mxu2 %v13267_v54  ;;  %v10024_v44 = vpop.permute.xlu1 %10023  ;;  %3258 = vmatmul.bf16.gmra.mxu3 %v13269_v57  ;;  %v3476_v12 = vrot.slane %v3398_v46, 2 }
 0x3fc   : > { %3436 = vmatmul.bf16.gmra.mxu1 %v13269_v57  ;;  %v10026_v21 = vunpack.i.h.bf16 %v10024_v44  ;;  %v10025_v20 = vunpack.i.l.bf16 %v10024_v44  ;;  %v3130_v40 = vpop.f32.mrf.mxu2 }
 0x3fd   : > { %3347 = vmatmul.bf16.gmra.mxu0 %v13267_v54  ;;  %v3219_v4 = vpop.f32.mrf.mxu3  ;;  %v13281_v5 = vsel %vm1348_vm2, %v3474_v38, %v3476_v12 }
 0x3fe   : > { %v3220_v23 = vadd.f32 %v3219_v4, %v3130_v40  ;;  %17471 = vst [vmem:[#allocation46_spill] sm:$0xff] %v13281_v5  ;;  %v2749_v48 = vsel %vm2725_vm5, %v10026_v21, %v10031_v53  ;;  %v2748_v39 = vsel %vm2725_vm5, %v10025_v20, %v10030_v19  ;;  %v2781_v46 = vsel %vm2725_vm5, %v10031_v53, %v10026_v21 }
 0x3ff   : > { %v3310_v49 = vpop.f32.mrf.mxu0  ;;  %v2780_v44 = vsel %vm2725_vm5, %v10030_v19, %v10025_v20  ;;  %v2836_v40 = vmax.f32 %v12856_v22, %v2749_v48  ;;  %v2834_v4 = vmax.f32 %v12823_v50, %v2748_v39 }
 0x400   : > { %v3475_v25 = vrot.slane %v3220_v23, 2  ;;  %v3399_v32 = vpop.f32.mrf.mxu1  ;;  %v2837_v23 = vmax.f32 %v12852_v8, %v2781_v46  ;;  %v2835_v54 = vmax.f32 %v12801_v14, %v2780_v44 }
 0x401   : > { %v3400_v35 = vadd.f32 %v3399_v32, %v3310_v49  ;;  %v13303_v53 = vpack.c.bf16 %v2836_v40, %v2834_v4 }
 0x402   : > { %v13293_v38 = vsel %vm1348_vm2, %v3473_v63, %v3475_v25  ;;  %v13305_v63 = vpack.c.bf16 %v2837_v23, %v2835_v54 }
 0x403   : > { %v3478_v57 = vrot.slane %v3400_v35, 2  ;;  %17472 = vst [vmem:[#allocation47_spill] sm:$0xff] %v13303_v53 }
 0x404   : > { %v3132_v5 = vpop.f32.mrf.mxu2  ;;  %17473 = vst [vmem:[#allocation37_spill] sm:$0xff] %v13305_v63 }
 0x405   : > { %v3221_v41 = vpop.f32.mrf.mxu3  ;;  %v13301_v21 = vsel %vm1348_vm2, %v3476_v12, %v3478_v57 }
 0x406   : > { %v3222_v20 = vadd.f32 %v3221_v41, %v3132_v5 }
 0x408   : > { %v3477_v19 = vrot.slane %v3222_v20, 2  ;;  %v3313_v22 = vpop.f32.mrf.mxu0 }
 0x409   : > { %v3402_v48 = vpop.f32.mrf.mxu1 }
 0x40a   : > { %v3403_v50 = vadd.f32 %v3402_v48, %v3313_v22  ;;  %v10039_v39 = vpop.permute.xlu1 %10038  ;;  %v13312_v41 = vsel %vm1348_vm2, %v3475_v25, %v3477_v19  ;;  %v8780_v22 = vld [vmem:[%s16980_s3 + $0x70] sm:$0xf]  ;;  %v9642_v48 = vld [vmem:[%s16980_s3 + $0x74] sm:$0xf0] }
 0x40b   : > { %3174 = vmatmul.bf16.gmra.mxu2 %v13303_v53  ;;  %v10034_v8 = vpop.permute.xlu0 %10033  ;;  %3263 = vmatmul.bf16.gmra.mxu3 %v13305_v63  ;;  %v10041_v12 = vunpack.i.h.bf16 %v10039_v39  ;;  %v10040_v54 = vunpack.i.l.bf16 %v10039_v39 }
 0x40c   : > { %v3480_v14 = vrot.slane %v3403_v50, 2  ;;  %3441 = vmatmul.bf16.gmra.mxu1 %v13305_v63  ;;  %v10036_v5 = vunpack.i.h.bf16 %v10034_v8  ;;  %v10035_v49 = vunpack.i.l.bf16 %v10034_v8  ;;  %v3135_v32 = vpop.f32.mrf.mxu2  ;;  %v8781_v8 = vor.u32 %v9642_v48, %v8780_v22 }
 0x40d   : > { %3352 = vmatmul.bf16.gmra.mxu0 %v13303_v53 }
 0x40e   : > { %v3224_v46 = vpop.f32.mrf.mxu3  ;;  %v13317_v35 = vsel %vm1348_vm2, %v3478_v57, %v3480_v14  ;;  %v2751_v40 = vsel %vm2725_vm5, %v10036_v5, %v10041_v12  ;;  %v2750_v25 = vsel %vm2725_vm5, %v10035_v49, %v10040_v54  ;;  %v2783_v57 = vsel %vm2725_vm5, %v10041_v12, %v10036_v5  ;;  %3755 = vmatpush.bf16.msrb.mxu2 %v8781_v8 }
 0x40f   : > { %v3225_v44 = vadd.f32 %v3224_v46, %v3135_v32  ;;  %v2782_v50 = vsel %vm2725_vm5, %v10040_v54, %v10035_v49  ;;  %v8844_v32 = vld [vmem:[%s16980_s3 + $0xf0] sm:$0xf]  ;;  %v9658_v46 = vld [vmem:[%s16980_s3 + $0xf4] sm:$0xf0]  ;;  %v2840_v12 = vmax.f32 %v12954_v3, %v2751_v40  ;;  %v2838_v5 = vmax.f32 %v12914_v31, %v2750_v25  ;;  %v9641_v31 = vld [vmem:[%s16980_s3 + $0x74] sm:$0xf] }
 0x410   : > { %v3315_v23 = vpop.f32.mrf.mxu0  ;;  %v2841_v49 = vmax.f32 %v12961_v24, %v2783_v57  ;;  %v8782_v3 = vld [vmem:[%s16980_s3 + $0x78] sm:$0xf0] }
 0x411   : > { %v3479_v4 = vrot.slane %v3225_v44, 2  ;;  %v3404_v20 = vpop.f32.mrf.mxu1  ;;  %v8845_v44 = vor.u32 %v9658_v46, %v8844_v32  ;;  %v8785_v25 = vor.u32 %v9641_v31, %v8782_v3  ;;  %v8846_v57 = vld [vmem:[%s16980_s3 + $0xf8] sm:$0xf0] }
 0x412   : > { %v3405_v39 = vadd.f32 %v3404_v20, %v3315_v23  ;;  %v2839_v23 = vmax.f32 %v12910_v47, %v2782_v50  ;;  %v9657_v47 = vld [vmem:[%s16980_s3 + $0xf4] sm:$0xf] }
 0x413   : > { %v13341_v63 = vsel %vm1348_vm2, %v3477_v19, %v3479_v4  ;;  %3844 = vmatpush.bf16.msrb.mxu3 %v8845_v44  ;;  %v13351_v19 = vpack.c.bf16 %v2840_v12, %v2838_v5  ;;  %v8849_v8 = vor.u32 %v9657_v47, %v8846_v57  ;;  %3933 = vmatpush.bf16.msra.mxu0 %v8785_v25  ;;  %v10044_v12 = vpop.permute.xlu2 %10043  ;;  %v9639_v25 = vld [vmem:[%s16980_s3 + $0x64] sm:$0xf] }
 0x414   : > { %v3482_v54 = vrot.slane %v3405_v39, 2  ;;  %v3137_v20 = vpop.f32.mrf.mxu2  ;;  %v13362_v24 = vpack.c.bf16 %v2841_v49, %v2839_v23  ;;  %v10045_v31 = vunpack.i.l.bf16 %v10044_v12 }
 0x415   : > { %17475 = vst [vmem:[#allocation43_spill] sm:$0xff] %v13351_v19  ;;  %4022 = vmatpush.bf16.msra.mxu1 %v8849_v8 }
 0x416   : > { %v3226_v22 = vpop.f32.mrf.mxu3  ;;  %v13349_v48 = vsel %vm1348_vm2, %v3480_v14, %v3482_v54  ;;  %17476 = vst [vmem:[#allocation38_spill] sm:$0xff] %v13362_v24 }
 0x417   : > { %17474 = vst [vmem:[#allocation42_spill] sm:$0xff] %v13349_v48  ;;  %v3227_v32 = vadd.f32 %v3226_v22, %v3137_v20 }
 0x419   : > { %v3481_v40 = vrot.slane %v3227_v32, 2  ;;  %v3407_v14 = vpop.f32.mrf.mxu1  ;;  %v3318_v50 = vpop.f32.mrf.mxu0  ;;  %v10046_v32 = vunpack.i.h.bf16 %v10044_v12 }
 0x41a   : > { %v3408_v46 = vadd.f32 %v3407_v14, %v3318_v50  ;;  %v8772_v50 = vld [vmem:[%s16980_s3 + $0x60] sm:$0xf] }
 0x41b   : > { %3179 = vmatmul.bf16.gmra.mxu2 %v13351_v19  ;;  %3268 = vmatmul.bf16.gmra.mxu3 %v13362_v24  ;;  %v13371_v44 = vsel %vm1348_vm2, %v3479_v4, %v3481_v40 }
 0x41c   : > { %v10049_v39 = vpop.permute.xlu0 %10048  ;;  %17477 = vst [vmem:[#allocation40_spill] sm:$0xff] %v13371_v44  ;;  %3446 = vmatmul.bf16.gmra.mxu1 %v13362_v24  ;;  %v3484_v5 = vrot.slane %v3408_v46, 2 }
 0x41d   : > { %v10051_v49 = vunpack.i.h.bf16 %v10049_v39  ;;  %v10050_v23 = vunpack.i.l.bf16 %v10049_v39  ;;  %3357 = vmatmul.bf16.gmra.mxu0 %v13351_v19  ;;  %v3140_v20 = vpop.f32.mrf.mxu2  ;;  %v9640_v39 = vld [vmem:[%s16980_s3 + $0x64] sm:$0xf0] }
 0x41e   : > { %v3229_v22 = vpop.f32.mrf.mxu3  ;;  %v13379_v47 = vsel %vm1348_vm2, %v3482_v54, %v3484_v5  ;;  %v8773_v12 = vor.u32 %v9640_v39, %v8772_v50 }
 0x41f   : > { %v13375_v3 = vadd.f32 %v3229_v22, %v3140_v20  ;;  %17478 = vst [vmem:[#allocation39_spill] sm:$0xff] %v13379_v47  ;;  %v2752_v4 = vsel %vm2725_vm5, %v10045_v31, %v10050_v23  ;;  %v2753_v14 = vsel %vm2725_vm5, %v10046_v32, %v10051_v49  ;;  %v2784_v54 = vsel %vm2725_vm5, %v10050_v23, %v10045_v31  ;;  %v8836_v20 = vld [vmem:[%s16980_s3 + $0xe0] sm:$0xf]  ;;  %v9656_v22 = vld [vmem:[%s16980_s3 + $0xe4] sm:$0xf0] }
 0x420   : > { %v2785_v8 = vsel %vm2725_vm5, %v10051_v49, %v10046_v32  ;;  %v8837_v23 = vor.u32 %v9656_v22, %v8836_v20  ;;  %v8774_v49 = vld [vmem:[%s16980_s3 + $0x68] sm:$0xf0]  ;;  %v9655_v32 = vld [vmem:[%s16980_s3 + $0xe4] sm:$0xf]  ;;  %3756 = vmatpush.bf16.msrb.mxu2 %v8773_v12  ;;  %v2843_v19 = vmax.f32 %v13018_v55, %v2784_v54  ;;  %v8828_v55 = vld [vmem:[%s16980_s3 + $0xd0] sm:$0xf] }
 0x421   : > { %v3409_v57 = vpop.f32.mrf.mxu1  ;;  %v3320_v46 = vpop.f32.mrf.mxu0  ;;  %v8838_v31 = vld [vmem:[%s16980_s3 + $0xe8] sm:$0xf0]  ;;  %v17479_v50 = vrot.slane %v13375_v3, 2  ;;  %v8777_v20 = vor.u32 %v9639_v25, %v8774_v49  ;;  %v2845_v47 = vmax.f32 %v13054_v59, %v2785_v8  ;;  %v9654_v59 = vld [vmem:[%s16980_s3 + $0xd4] sm:$0xf0] }
 0x422   : > { %v13405_v24 = vadd.f32 %v3409_v57, %v3320_v46  ;;  %v2842_v57 = vmax.f32 %v13025_v7, %v2752_v4  ;;  %v2844_v46 = vmax.f32 %v13058_v28, %v2753_v14  ;;  %v8841_v22 = vor.u32 %v9655_v32, %v8838_v31  ;;  %3845 = vmatpush.bf16.msrb.mxu3 %v8837_v23  ;;  %v9638_v7 = vld [vmem:[%s16980_s3 + $0x54] sm:$0xf0]  ;;  %v9637_v14 = vld [vmem:[%s16980_s3 + $0x54] sm:$0xf]  ;;  %v8766_v8 = vld [vmem:[%s16980_s3 + $0x58] sm:$0xf0] }
 0x423   : > { %v13420_v39 = vsel %vm1348_vm2, %v3481_v40, %v17479_v50  ;;  %v8764_v40 = vld [vmem:[%s16980_s3 + $0x50] sm:$0xf]  ;;  %3934 = vmatpush.bf16.msra.mxu0 %v8777_v20  ;;  %v8829_v54 = vor.u32 %v9654_v59, %v8828_v55  ;;  %v9653_v12 = vld [vmem:[%s16980_s3 + $0xd4] sm:$0xf]  ;;  %v8830_v23 = vld [vmem:[%s16980_s3 + $0xd8] sm:$0xf0]  ;;  %v8769_v32 = vor.u32 %v9637_v14, %v8766_v8  ;;  %v13461_v50 = vpack.c.bf16 %v2845_v47, %v2843_v19 }
 0x424   : > { %v17087_v44 = vrot.slane %v13405_v24, 2  ;;  %4023 = vmatpush.bf16.msra.mxu1 %v8841_v22  ;;  %v8765_v4 = vor.u32 %v9638_v7, %v8764_v40  ;;  %v8833_v31 = vor.u32 %v9653_v12, %v8830_v23  ;;  %v8756_v7 = vld [vmem:[%s16980_s3 + $0x40] sm:$0xf]  ;;  %v9652_v47 = vld [vmem:[%s16980_s3 + $0xc4] sm:$0xf0] }
 0x425   : > { %v3142_v48 = vpop.f32.mrf.mxu2  ;;  %17481 = vst [vmem:[#allocation48_spill] sm:$0xff] %v13461_v50  ;;  %v8820_v19 = vld [vmem:[%s16980_s3 + $0xc0] sm:$0xf]  ;;  %v9635_v59 = vld [vmem:[%s16980_s3 + $0x44] sm:$0xf] }
 0x426   : > { %v3231_v28 = vpop.f32.mrf.mxu3  ;;  %v13457_v49 = vsel %vm1348_vm2, %v3484_v5, %v17087_v44  ;;  %3757 = vmatpush.bf16.msrb.mxu2 %v8765_v4  ;;  %3846 = vmatpush.bf16.msrb.mxu3 %v8829_v54  ;;  %v9636_v5 = vld [vmem:[%s16980_s3 + $0x44] sm:$0xf0]  ;;  %v8821_v55 = vor.u32 %v9652_v47, %v8820_v19  ;;  %v8758_v14 = vld [vmem:[%s16980_s3 + $0x48] sm:$0xf0]  ;;  %v17482_v54 = vrot.slane %v13375_v3, 2 }
 0x427   : > { %v13442_v25 = vadd.f32 %v3231_v28, %v3142_v48  ;;  %v13459_v48 = vpack.c.bf16 %v2844_v46, %v2842_v57  ;;  %3935 = vmatpush.bf16.msra.mxu0 %v8769_v32  ;;  %v8757_v46 = vor.u32 %v9636_v5, %v8756_v7  ;;  %v10059_v28 = vpop.permute.xlu2 %10058  ;;  %v9651_v23 = vld [vmem:[%s16980_s3 + $0xc4] sm:$0xf]  ;;  %v8822_v32 = vld [vmem:[%s16980_s3 + $0xc8] sm:$0xf0]  ;;  %v8748_v7 = vld [vmem:[%s16980_s3 + $0x30] sm:$0xf]  ;;  %v8761_v47 = vor.u32 %v9635_v59, %v8758_v14 }
 0x428   : > { %4024 = vmatpush.bf16.msra.mxu1 %v8833_v31  ;;  %v9634_v5 = vld [vmem:[%s16980_s3 + $0x34] sm:$0xf0]  ;;  %v8825_v31 = vor.u32 %v9651_v23, %v8822_v32  ;;  %v9649_v59 = vld [vmem:[%s16980_s3 + $0xb4] sm:$0xf]  ;;  %v8814_v14 = vld [vmem:[%s16980_s3 + $0xb8] sm:$0xf0] }
 0x429   : > { %17480 = vst [vmem:[#allocation41_spill] sm:$0xff] %v13459_v48  ;;  %v17086_v20 = vrot.slane %v13442_v25, 2  ;;  %v3412_v22 = vpop.f32.mrf.mxu1 }
 0x42a   : > { %v10054_v40 = vpop.permute.xlu1 %10053  ;;  %v3323_v57 = vpop.f32.mrf.mxu0  ;;  %3758 = vmatpush.bf16.msrb.mxu2 %v8757_v46  ;;  %3847 = vmatpush.bf16.msrb.mxu3 %v8821_v55  ;;  %v9633_v46 = vld [vmem:[%s16980_s3 + $0x34] sm:$0xf]  ;;  %v8750_v55 = vld [vmem:[%s16980_s3 + $0x38] sm:$0xf0] }
 0x42b   : > { %3184 = vmatmul.bf16.gmra.mxu2 %v13459_v48  ;;  %v13477_v4 = vadd.f32 %v3412_v22, %v3323_v57  ;;  %3273 = vmatmul.bf16.gmra.mxu3 %v13461_v50  ;;  %v13492_v8 = vsel %vm1348_vm2, %v17482_v54, %v17086_v20  ;;  %v10056_v12 = vunpack.i.h.bf16 %v10054_v40  ;;  %v10055_v3 = vunpack.i.l.bf16 %v10054_v40  ;;  %v8812_v54 = vld [vmem:[%s16980_s3 + $0xb0] sm:$0xf]  ;;  %v9650_v40 = vld [vmem:[%s16980_s3 + $0xb4] sm:$0xf0] }
 0x42c   : > { %17483 = vst [vmem:[#allocation49_spill] sm:$0xff] %v13492_v8  ;;  %3451 = vmatmul.bf16.gmra.mxu1 %v13461_v50  ;;  %v10061_v57 = vunpack.i.h.bf16 %v10059_v28  ;;  %v10060_v20 = vunpack.i.l.bf16 %v10059_v28  ;;  %v8749_v50 = vor.u32 %v9634_v5, %v8748_v7  ;;  %3936 = vmatpush.bf16.msra.mxu0 %v8761_v47  ;;  %v8813_v28 = vor.u32 %v9650_v40, %v8812_v54  ;;  %v9632_v8 = vld [vmem:[%s16980_s3 + $0x24] sm:$0xf0] }
 0x42d   : > { %3362 = vmatmul.bf16.gmra.mxu0 %v13459_v48  ;;  %4025 = vmatpush.bf16.msra.mxu1 %v8825_v31  ;;  %v8817_v5 = vor.u32 %v9649_v59, %v8814_v14  ;;  %v17484_v47 = vrot.slane %v13477_v4, 2  ;;  %v17485_v54 = vrot.slane %v13405_v24, 2  ;;  %v8804_v59 = vld [vmem:[%s16980_s3 + $0xa0] sm:$0xf]  ;;  %v9648_v24 = vld [vmem:[%s16980_s3 + $0xa4] sm:$0xf0] }
 0x42e   : > { %v3145_v22 = vpop.f32.mrf.mxu2  ;;  %v3234_v19 = vpop.f32.mrf.mxu3  ;;  %v2755_v48 = vsel %vm2725_vm5, %v10056_v12, %v10061_v57  ;;  %v2754_v23 = vsel %vm2725_vm5, %v10055_v3, %v10060_v20  ;;  %3759 = vmatpush.bf16.msrb.mxu2 %v8749_v50  ;;  %v2787_v50 = vsel %vm2725_vm5, %v10061_v57, %v10056_v12  ;;  %v2786_v31 = vsel %vm2725_vm5, %v10060_v20, %v10055_v3  ;;  %v9631_v14 = vld [vmem:[%s16980_s3 + $0x24] sm:$0xf]  ;;  %v8742_v20 = vld [vmem:[%s16980_s3 + $0x28] sm:$0xf0] }
 0x42f   : > { %v13518_v44 = vadd.f32 %v3234_v19, %v3145_v22  ;;  %v8753_v22 = vor.u32 %v9633_v46, %v8750_v55  ;;  %v8740_v19 = vld [vmem:[%s16980_s3 + $0x20] sm:$0xf]  ;;  %v13546_v40 = vsel %vm1348_vm2, %v17485_v54, %v17484_v47  ;;  %3848 = vmatpush.bf16.msrb.mxu3 %v8813_v28  ;;  %v8805_v12 = vor.u32 %v9648_v24, %v8804_v59  ;;  %v8806_v3 = vld [vmem:[%s16980_s3 + $0xa8] sm:$0xf0] }
 0x430   : > { %v8741_v55 = vor.u32 %v9632_v8, %v8740_v19  ;;  %v9647_v8 = vld [vmem:[%s16980_s3 + $0xa4] sm:$0xf]  ;;  %v17486_v57 = vrot.slane %v13442_v25, 2  ;;  %v2846_v19 = vmax.f32 %v13110_v18, %v2754_v23  ;;  %v2849_v54 = vmax.f32 %v13127_v13, %v2787_v50  ;;  %v8732_v25 = vld [vmem:[%s16980_s3 + $0x10] sm:$0xf] }
 0x431   : > { %v3487_v32 = vrot.slane %v13518_v44, 2  ;;  %v3414_v7 = vpop.f32.mrf.mxu1  ;;  %3937 = vmatpush.bf16.msra.mxu0 %v8753_v22  ;;  %4026 = vmatpush.bf16.msra.mxu1 %v8817_v5  ;;  %v8745_v18 = vor.u32 %v9631_v14, %v8742_v20  ;;  %v8809_v22 = vor.u32 %v9647_v8, %v8806_v3  ;;  %v9646_v23 = vld [vmem:[%s16980_s3 + $0x94] sm:$0xf0]  ;;  %v9629_v5 = vld [vmem:[%s16980_s3 + $0x14] sm:$0xf]  ;;  %v17487_v20 = vrot.slane %v13477_v4, 2 }
 0x432   : > { %v3325_v46 = vpop.f32.mrf.mxu0  ;;  %3760 = vmatpush.bf16.msrb.mxu2 %v8741_v55  ;;  %v8734_v55 = vld [vmem:[%s16980_s3 + $0x18] sm:$0xf0]  ;;  %v9645_v14 = vld [vmem:[%s16980_s3 + $0x94] sm:$0xf]  ;;  %v9628_v4 = vld [vmem:[%s16980_s3 + $0x4] sm:$0xf0] }
 0x433   : > { %v13561_v47 = vadd.f32 %v3414_v7, %v3325_v46  ;;  %v13578_v28 = vsel %vm1348_vm2, %v17486_v57, %v3487_v32  ;;  %v2848_v7 = vmax.f32 %v13123_v1, %v2755_v48  ;;  %v2847_v46 = vmax.f32 %v13101_v16, %v2786_v31  ;;  %v9630_v1 = vld [vmem:[%s16980_s3 + $0x14] sm:$0xf0]  ;;  %3849 = vmatpush.bf16.msrb.mxu3 %v8805_v12  ;;  %v8796_v16 = vld [vmem:[%s16980_s3 + $0x90] sm:$0xf]  ;;  %v8798_v12 = vld [vmem:[%s16980_s3 + $0x98] sm:$0xf0] }
 0x434   : > { %v8733_v13 = vor.u32 %v9630_v1, %v8732_v25  ;;  %v8797_v31 = vor.u32 %v9646_v23, %v8796_v16  ;;  %v8737_v57 = vor.u32 %v9629_v5, %v8734_v55  ;;  %v8724_v16 = vld [vmem:[%s16980_s3] sm:$0xf]  ;;  %v10069_v23 = vpop.permute.xlu1 %10068  ;;  %v8726_v5 = vld [vmem:[%s16980_s3 + $0x8] sm:$0xf0] }
 0x435   : > { %v3490_v59 = vrot.slane %v13561_v47, 2  ;;  %v13617_v3 = vpack.c.bf16 %v2848_v7, %v2846_v19  ;;  %3938 = vmatpush.bf16.msra.mxu0 %v8745_v18  ;;  %4027 = vmatpush.bf16.msra.mxu1 %v8809_v22  ;;  %v8725_v19 = vor.u32 %v9628_v4, %v8724_v16  ;;  %v9627_v18 = vld [vmem:[%s16980_s3 + $0x4] sm:$0xf] }
 0x436   : > { %v3147_v24 = vpop.f32.mrf.mxu2  ;;  %v3236_v48 = vpop.f32.mrf.mxu3  ;;  %3761 = vmatpush.bf16.msrb.mxu2 %v8733_v13 }
 0x437   : > { %v3237_v50 = vadd.f32 %v3236_v48, %v3147_v24  ;;  %v13615_v8 = vsel %vm1348_vm2, %v17487_v20, %v3490_v59  ;;  %v13619_v24 = vpack.c.bf16 %v2849_v54, %v2847_v46  ;;  %v8801_v48 = vor.u32 %v9645_v14, %v8798_v12  ;;  %3850 = vmatpush.bf16.msrb.mxu3 %v8797_v31  ;;  %v8788_v54 = vld [vmem:[%s16980_s3 + $0x80] sm:$0xf]  ;;  %v9644_v46 = vld [vmem:[%s16980_s3 + $0x84] sm:$0xf0]  ;;  %v8790_v31 = vld [vmem:[%s16980_s3 + $0x88] sm:$0xf0]  ;;  %v10064_v14 = vpop.permute.xlu0 %10063 }
 0x438   : > { %v8789_v13 = vor.u32 %v9644_v46, %v8788_v54  ;;  %v8729_v12 = vor.u32 %v9627_v18, %v8726_v5  ;;  %v10071_v20 = vunpack.i.h.bf16 %v10069_v23  ;;  %v10066_v44 = vunpack.i.h.bf16 %v10064_v14 }
 0x439   : > { %17488 = vst [vmem:[#allocation59_spill] sm:$0xff] %v13619_v24  ;;  %v3489_v25 = vrot.slane %v3237_v50, 2  ;;  %v3417_v1 = vpop.f32.mrf.mxu1  ;;  %v9643_v50 = vld [vmem:[%s16980_s3 + $0x84] sm:$0xf]  ;;  %3939 = vmatpush.bf16.msra.mxu0 %v8737_v57  ;;  %4028 = vmatpush.bf16.msra.mxu1 %v8801_v48  ;;  %v10065_v46 = vunpack.i.l.bf16 %v10064_v14 }
 0x43a   : > { %v3328_v7 = vpop.f32.mrf.mxu0  ;;  %3762 = vmatpush.bf16.msrb.mxu2 %v8725_v19  ;;  %v2757_v48 = vsel %vm2725_vm5, %v10066_v44, %v10071_v20  ;;  %v2789_v47 = vsel %vm2725_vm5, %v10071_v20, %v10066_v44 }
 0x43b   : > { %3189 = vmatmul.bf16.gmra.mxu2 %v13617_v3  ;;  %v3418_v22 = vadd.f32 %v3417_v1, %v3328_v7  ;;  %3278 = vmatmul.bf16.gmra.mxu3 %v13619_v24  ;;  %v13651_v55 = vsel %vm1348_vm2, %v3487_v32, %v3489_v25  ;;  %v10070_v1 = vunpack.i.l.bf16 %v10069_v23  ;;  %v8793_v7 = vor.u32 %v9643_v50, %v8790_v31 }
 0x43c   : > { %3456 = vmatmul.bf16.gmra.mxu1 %v13619_v24  ;;  %3851 = vmatpush.bf16.msrb.mxu3 %v8789_v13  ;;  %v2852_v31 = vmax.f32 %v13143_v15, %v2757_v48 }
 0x43d   : > { %v3492_v16 = vrot.slane %v3418_v22, 2  ;;  %3367 = vmatmul.bf16.gmra.mxu0 %v13617_v3  ;;  %v2756_v23 = vsel %vm2725_vm5, %v10065_v46, %v10070_v1  ;;  %4029 = vmatpush.bf16.msra.mxu1 %v8793_v7  ;;  %v2788_v19 = vsel %vm2725_vm5, %v10070_v1, %v10065_v46 }
 0x43e   : > { %v3150_v4 = vpop.f32.mrf.mxu2  ;;  %v3239_v54 = vpop.f32.mrf.mxu3  ;;  %3940 = vmatpush.bf16.msra.mxu0 %v8729_v12  ;;  %v2850_v50 = vmax.f32 %v13140_v26, %v2756_v23  ;;  %v2851_v14 = vmax.f32 %v13157_v52, %v2788_v19  ;;  %v2853_v12 = vmax.f32 %v13159_v62, %v2789_v47 }
 0x43f   : > { %v3240_v32 = vadd.f32 %v3239_v54, %v3150_v4  ;;  %v13659_v57 = vsel %vm1348_vm2, %v3490_v59, %v3492_v16 }
 0x440   : > { %v13681_v44 = vpack.c.bf16 %v2852_v31, %v2850_v50 }
 0x441   : > { %v3491_v18 = vrot.slane %v3240_v32, 2  ;;  %v3419_v22 = vpop.f32.mrf.mxu1 }
 0x442   : > { %v3330_v13 = vpop.f32.mrf.mxu0 }
 0x443   : > { %v3420_v5 = vadd.f32 %v3419_v22, %v3330_v13  ;;  %v13671_v59 = vsel %vm1348_vm2, %v3489_v25, %v3491_v18  ;;  %v13683_v25 = vpack.c.bf16 %v2853_v12, %v2851_v14 }
 0x445   : > { %v3494_v4 = vrot.slane %v3420_v5, 2 }
 0x446   : > { %v3152_v7 = vpop.f32.mrf.mxu2  ;;  %v3241_v1 = vpop.f32.mrf.mxu3 }
 0x447   : > { %v3242_v54 = vadd.f32 %v3241_v1, %v3152_v7  ;;  %v13679_v20 = vsel %vm1348_vm2, %v3492_v16, %v3494_v4 }
 0x449   : > { %v3493_v46 = vrot.slane %v3242_v54, 2  ;;  %v3422_v26 = vpop.f32.mrf.mxu1 }
 0x44a   : > { %v3333_v32 = vpop.f32.mrf.mxu0 }
 0x44b   : > { %3194 = vmatmul.bf16.gmra.mxu2 %v13681_v44  ;;  %v3423_v15 = vadd.f32 %v3422_v26, %v3333_v32  ;;  %3283 = vmatmul.bf16.gmra.mxu3 %v13683_v25  ;;  %v13689_v52 = vsel %vm1348_vm2, %v3491_v18, %v3493_v46  ;;  %v17489_v26 = vld [vmem:[#allocation19_spill] sm:$0xff] }
 0x44c   : > { %3461 = vmatmul.bf16.gmra.mxu1 %v13683_v25 }
 0x44d   : > { %v3496_v62 = vrot.slane %v3423_v15, 2  ;;  %3372 = vmatmul.bf16.gmra.mxu0 %v13681_v44  ;;  %v17490_v15 = vld [vmem:[#allocation20_spill] sm:$0xff] }
 0x44e   : > { %v3155_v16 = vpop.f32.mrf.mxu2  ;;  %v3244_v23 = vpop.f32.mrf.mxu3 }
 0x44f   : > { %v3245_v48 = vadd.f32 %v3244_v23, %v3155_v16  ;;  %v13695_v22 = vsel %vm1348_vm2, %v3494_v4, %v3496_v62 }
 0x451   : > { %v3495_v19 = vrot.slane %v3245_v48, 2  ;;  %v3424_v47 = vpop.f32.mrf.mxu1 }
 0x452   : > { %v3335_v13 = vpop.f32.mrf.mxu0 }
 0x453   : > { %v3425_v5 = vadd.f32 %v3424_v47, %v3335_v13  ;;  %v13699_v18 = vsel %vm1348_vm2, %v3493_v46, %v3495_v19 }
 0x455   : > { %v3498_v50 = vrot.slane %v3425_v5, 2 }
 0x456   : > { %v3157_v31 = vpop.f32.mrf.mxu2  ;;  %v3246_v14 = vpop.f32.mrf.mxu3 }
 0x457   : > { %v3247_v12 = vadd.f32 %v3246_v14, %v3157_v31  ;;  %v13703_v7 = vsel %vm1348_vm2, %v3496_v62, %v3498_v50 }
 0x459   : > { %v3497_v1 = vrot.slane %v3247_v12, 2  ;;  %v3427_v54 = vpop.f32.mrf.mxu1 }
 0x45a   : > { %v3338_v4 = vpop.f32.mrf.mxu0 }
 0x45b   : > { %3763 = vmatmul.bf16.vlgmr.msrb.gmra.mxu2 %v17489_v26  ;;  %v3428_v32 = vadd.f32 %v3427_v54, %v3338_v4  ;;  %3852 = vmatmul.bf16.vlgmr.msrb.gmra.mxu3 %v17490_v15  ;;  %v13709_v46 = vsel %vm1348_vm2, %v3495_v19, %v3497_v1 }
 0x45c   : > { %4030 = vmatmul.bf16.vlgmr.msra.gmra.mxu1 %v17490_v15  ;;  %v17492_v15 = vld [vmem:[#allocation50_spill] sm:$0xff] }
 0x45d   : > { %v3500_v16 = vrot.slane %v3428_v32, 2  ;;  %3941 = vmatmul.bf16.vlgmr.msra.gmra.mxu0 %v17489_v26  ;;  %v17493_v26 = vld [vmem:[#allocation51_spill] sm:$0xff] }
 0x45e   : > { %v3160_v23 = vpop.f32.mrf.mxu2  ;;  %v3249_v62 = vpop.f32.mrf.mxu3 }
 0x45f   : > { %v3250_v48 = vadd.f32 %v3249_v62, %v3160_v23  ;;  %v13715_v47 = vsel %vm1348_vm2, %v3498_v50, %v3500_v16 }
 0x461   : > { %v3499_v13 = vrot.slane %v3250_v48, 2  ;;  %v3429_v5 = vpop.f32.mrf.mxu1 }
 0x462   : > { %v3340_v31 = vpop.f32.mrf.mxu0 }
 0x463   : > { %v3430_v14 = vadd.f32 %v3429_v5, %v3340_v31  ;;  %v13719_v19 = vsel %vm1348_vm2, %v3497_v1, %v3499_v13 }
 0x465   : > { %v3502_v12 = vrot.slane %v3430_v14, 2 }
 0x466   : > { %v3162_v54 = vpop.f32.mrf.mxu2  ;;  %v3251_v4 = vpop.f32.mrf.mxu3 }
 0x467   : > { %v3252_v32 = vadd.f32 %v3251_v4, %v3162_v54  ;;  %v13723_v30 = vsel %vm1348_vm2, %v3500_v16, %v3502_v12 }
 0x468   : > { %17491 = vst [vmem:[#allocation57_spill] sm:$0xff] %v13723_v30 }
 0x469   : > { %v3501_v23 = vrot.slane %v3252_v32, 2  ;;  %v3432_v62 = vpop.f32.mrf.mxu1 }
 0x46a   : > { %v3343_v50 = vpop.f32.mrf.mxu0 }
 0x46b   : > { %3768 = vmatmul.bf16.gmra.mxu2 %v17492_v15  ;;  %v3433_v48 = vadd.f32 %v3432_v62, %v3343_v50  ;;  %3857 = vmatmul.bf16.gmra.mxu3 %v17493_v26  ;;  %v13729_v1 = vsel %vm1348_vm2, %v3499_v13, %v3501_v23 }
 0x46c   : > { %17494 = vst [vmem:[#allocation60_spill] sm:$0xff] %v13729_v1  ;;  %4035 = vmatmul.bf16.gmra.mxu1 %v17493_v26 }
 0x46d   : > { %v3504_v5 = vrot.slane %v3433_v48, 2  ;;  %3946 = vmatmul.bf16.gmra.mxu0 %v17492_v15 }
 0x46e   : > { %v3165_v31 = vpop.f32.mrf.mxu2  ;;  %v3254_v16 = vpop.f32.mrf.mxu3 }
 0x46f   : > { %v3255_v14 = vadd.f32 %v3254_v16, %v3165_v31  ;;  %v13735_v54 = vsel %vm1348_vm2, %v3502_v12, %v3504_v5 }
 0x471   : > { %v3503_v4 = vrot.slane %v3255_v14, 2  ;;  %v3434_v32 = vpop.f32.mrf.mxu1 }
 0x472   : > { %v3345_v62 = vpop.f32.mrf.mxu0 }
 0x473   : > { %v3435_v50 = vadd.f32 %v3434_v32, %v3345_v62  ;;  %v13739_v13 = vsel %vm1348_vm2, %v3501_v23, %v3503_v4 }
 0x474   : > { %17495 = vst [vmem:[#allocation58_spill] sm:$0xff] %v13739_v13  ;;  %v17501_v13 = vld [vmem:[#allocation24_spill] sm:$0xff] }
 0x475   : > { %v3506_v1 = vrot.slane %v3435_v50, 2 }
 0x476   : > { %v3167_v26 = vpop.f32.mrf.mxu2  ;;  %v3256_v48 = vpop.f32.mrf.mxu3 }
 0x477   : > { %v3257_v30 = vadd.f32 %v3256_v48, %v3167_v26  ;;  %v13743_v15 = vsel %vm1348_vm2, %v3504_v5, %v3506_v1 }
 0x478   : > { %17496 = vst [vmem:[#allocation44_spill] sm:$0xff] %v13743_v15 }
 0x479   : > { %v3505_v31 = vrot.slane %v3257_v30, 2  ;;  %v3437_v16 = vpop.f32.mrf.mxu1 }
 0x47a   : > { %v3348_v12 = vpop.f32.mrf.mxu0 }
 0x47b   : > { %3773 = vmatmul.bf16.gmra.mxu2 %v12766_v6  ;;  %v3438_v14 = vadd.f32 %v3437_v16, %v3348_v12  ;;  %3862 = vmatmul.bf16.gmra.mxu3 %v12773_v9  ;;  %v13749_v23 = vsel %vm1348_vm2, %v3503_v4, %v3505_v31 }
 0x47c   : > { %17497 = vst [vmem:[#allocation45_spill] sm:$0xff] %v13749_v23  ;;  %4040 = vmatmul.bf16.gmra.mxu1 %v12773_v9 }
 0x47d   : > { %v3508_v32 = vrot.slane %v3438_v14, 2  ;;  %3951 = vmatmul.bf16.gmra.mxu0 %v12766_v6 }
 0x47e   : > { %v3170_v26 = vpop.f32.mrf.mxu2  ;;  %v3259_v5 = vpop.f32.mrf.mxu3 }
 0x47f   : > { %v3260_v62 = vadd.f32 %v3259_v5, %v3170_v26  ;;  %v13755_v30 = vsel %vm1348_vm2, %v3506_v1, %v3508_v32 }
 0x480   : > { %17498 = vst [vmem:[#allocation61_spill] sm:$0xff] %v13755_v30  ;;  %v17500_v30 = vld [vmem:[#allocation23_spill] sm:$0xff] }
 0x481   : > { %v3507_v50 = vrot.slane %v3260_v62, 2  ;;  %v3439_v48 = vpop.f32.mrf.mxu1 }
 0x482   : > { %v3350_v16 = vpop.f32.mrf.mxu0 }
 0x483   : > { %v3440_v12 = vadd.f32 %v3439_v48, %v3350_v16  ;;  %v13759_v4 = vsel %vm1348_vm2, %v3505_v31, %v3507_v50 }
 0x485   : > { %v3510_v23 = vrot.slane %v3440_v12, 2 }
 0x486   : > { %v3172_v9 = vpop.f32.mrf.mxu2  ;;  %v3261_v14 = vpop.f32.mrf.mxu3 }
 0x487   : > { %v3262_v15 = vadd.f32 %v3261_v14, %v3172_v9  ;;  %v13763_v6 = vsel %vm1348_vm2, %v3508_v32, %v3510_v23 }
 0x488   : > { %17499 = vst [vmem:[#allocation15_spill] sm:$0xff] %v13763_v6 }
 0x489   : > { %v3509_v26 = vrot.slane %v3262_v15, 2  ;;  %v3442_v5 = vpop.f32.mrf.mxu1 }
 0x48a   : > { %v3353_v1 = vpop.f32.mrf.mxu0 }
 0x48b   : > { %3778 = vmatmul.bf16.gmra.mxu2 %v17500_v30  ;;  %v3443_v62 = vadd.f32 %v3442_v5, %v3353_v1  ;;  %3867 = vmatmul.bf16.gmra.mxu3 %v17501_v13  ;;  %v13769_v31 = vsel %vm1348_vm2, %v3507_v50, %v3509_v26 }
 0x48c   : > { %17502 = vst [vmem:[#allocation62_spill] sm:$0xff] %v13769_v31  ;;  %4045 = vmatmul.bf16.gmra.mxu1 %v17501_v13 }
 0x48d   : > { %v3512_v48 = vrot.slane %v3443_v62, 2  ;;  %3956 = vmatmul.bf16.gmra.mxu0 %v17500_v30 }
 0x48e   : > { %v3175_v9 = vpop.f32.mrf.mxu2  ;;  %v3264_v32 = vpop.f32.mrf.mxu3 }
 0x48f   : > { %v3265_v16 = vadd.f32 %v3264_v32, %v3175_v9  ;;  %v13775_v15 = vsel %vm1348_vm2, %v3510_v23, %v3512_v48 }
 0x491   : > { %v3511_v12 = vrot.slane %v3265_v16, 2  ;;  %v3444_v14 = vpop.f32.mrf.mxu1 }
 0x492   : > { %v3355_v5 = vpop.f32.mrf.mxu0 }
 0x493   : > { %v3445_v1 = vadd.f32 %v3444_v14, %v3355_v5  ;;  %v13779_v50 = vsel %vm1348_vm2, %v3509_v26, %v3511_v12 }
 0x495   : > { %v3514_v31 = vrot.slane %v3445_v1, 2 }
 0x496   : > { %v3177_v13 = vpop.f32.mrf.mxu2  ;;  %v3266_v62 = vpop.f32.mrf.mxu3 }
 0x497   : > { %v3267_v6 = vadd.f32 %v3266_v62, %v3177_v13  ;;  %v13783_v30 = vsel %vm1348_vm2, %v3512_v48, %v3514_v31 }
 0x498   : > { %17503 = vst [vmem:[#allocation63_spill] sm:$0xff] %v13783_v30 }
 0x499   : > { %v3513_v9 = vrot.slane %v3267_v6, 2  ;;  %v3447_v32 = vpop.f32.mrf.mxu1 }
 0x49a   : > { %v3358_v23 = vpop.f32.mrf.mxu0 }
 0x49b   : > { %3783 = vmatmul.bf16.gmra.mxu2 %v12980_v43  ;;  %v3448_v16 = vadd.f32 %v3447_v32, %v3358_v23  ;;  %3872 = vmatmul.bf16.gmra.mxu3 %v12985_v45  ;;  %v13789_v26 = vsel %vm1348_vm2, %v3511_v12, %v3513_v9 }
 0x49c   : > { %17504 = vst [vmem:[#allocation18_spill] sm:$0xff] %v13789_v26  ;;  %4050 = vmatmul.bf16.gmra.mxu1 %v12985_v45 }
 0x49d   : > { %v3516_v14 = vrot.slane %v3448_v16, 2  ;;  %3961 = vmatmul.bf16.gmra.mxu0 %v12980_v43 }
 0x49e   : > { %v3180_v13 = vpop.f32.mrf.mxu2  ;;  %v3269_v48 = vpop.f32.mrf.mxu3 }
 0x49f   : > { %v3270_v5 = vadd.f32 %v3269_v48, %v3180_v13  ;;  %v13795_v6 = vsel %vm1348_vm2, %v3514_v31, %v3516_v14 }
 0x4a1   : > { %v3515_v1 = vrot.slane %v3270_v5, 2  ;;  %v3449_v62 = vpop.f32.mrf.mxu1 }
 0x4a2   : > { %v3360_v32 = vpop.f32.mrf.mxu0 }
 0x4a3   : > { %v3450_v23 = vadd.f32 %v3449_v62, %v3360_v32  ;;  %v13799_v12 = vsel %vm1348_vm2, %v3513_v9, %v3515_v1 }
 0x4a5   : > { %v3518_v26 = vrot.slane %v3450_v23, 2 }
 0x4a6   : > { %v3182_v45 = vpop.f32.mrf.mxu2  ;;  %v3271_v16 = vpop.f32.mrf.mxu3 }
 0x4a7   : > { %v3272_v30 = vadd.f32 %v3271_v16, %v3182_v45  ;;  %v13803_v43 = vsel %vm1348_vm2, %v3516_v14, %v3518_v26 }
 0x4a8   : > { %17505 = vst [vmem:[#allocation17_spill] sm:$0xff] %v13803_v43 }
 0x4a9   : > { %v3517_v13 = vrot.slane %v3272_v30, 2  ;;  %v3452_v48 = vpop.f32.mrf.mxu1 }
 0x4aa   : > { %v3363_v31 = vpop.f32.mrf.mxu0 }
 0x4ab   : > { %3788 = vmatmul.bf16.gmra.mxu2 %v13073_v37  ;;  %v3453_v5 = vadd.f32 %v3452_v48, %v3363_v31  ;;  %3877 = vmatmul.bf16.gmra.mxu3 %v13075_v29  ;;  %v13809_v9 = vsel %vm1348_vm2, %v3515_v1, %v3517_v13 }
 0x4ac   : > { %17506 = vst [vmem:[#allocation21_spill] sm:$0xff] %v13809_v9  ;;  %4055 = vmatmul.bf16.gmra.mxu1 %v13075_v29 }
 0x4ad   : > { %v3520_v62 = vrot.slane %v3453_v5, 2  ;;  %3966 = vmatmul.bf16.gmra.mxu0 %v13073_v37 }
 0x4ae   : > { %v3185_v45 = vpop.f32.mrf.mxu2  ;;  %v3274_v14 = vpop.f32.mrf.mxu3 }
 0x4af   : > { %v3275_v32 = vadd.f32 %v3274_v14, %v3185_v45  ;;  %v13815_v30 = vsel %vm1348_vm2, %v3518_v26, %v3520_v62 }
 0x4b1   : > { %v3519_v23 = vrot.slane %v3275_v32, 2  ;;  %v3454_v16 = vpop.f32.mrf.mxu1 }
 0x4b2   : > { %v3365_v48 = vpop.f32.mrf.mxu0 }
 0x4b3   : > { %v3455_v31 = vadd.f32 %v3454_v16, %v3365_v48  ;;  %v13819_v1 = vsel %vm1348_vm2, %v3517_v13, %v3519_v23 }
 0x4b5   : > { %v3522_v9 = vrot.slane %v3455_v31, 2 }
 0x4b6   : > { %v3187_v29 = vpop.f32.mrf.mxu2  ;;  %v3276_v5 = vpop.f32.mrf.mxu3 }
 0x4b7   : > { %v3277_v43 = vadd.f32 %v3276_v5, %v3187_v29  ;;  %v13823_v37 = vsel %vm1348_vm2, %v3520_v62, %v3522_v9 }
 0x4b8   : > { %17507 = vst [vmem:[#allocation64_spill] sm:$0xff] %v13823_v37 }
 0x4b9   : > { %v3521_v45 = vrot.slane %v3277_v43, 2  ;;  %v3457_v14 = vpop.f32.mrf.mxu1 }
 0x4ba   : > { %v3368_v26 = vpop.f32.mrf.mxu0 }
 0x4bb   : > { %3793 = vmatmul.bf16.gmra.mxu2 %v13145_v56  ;;  %v3458_v32 = vadd.f32 %v3457_v14, %v3368_v26  ;;  %3882 = vmatmul.bf16.gmra.mxu3 %v13153_v10  ;;  %v13829_v13 = vsel %vm1348_vm2, %v3519_v23, %v3521_v45 }
 0x4bc   : > { %17508 = vst [vmem:[#allocation65_spill] sm:$0xff] %v13829_v13  ;;  %4060 = vmatmul.bf16.gmra.mxu1 %v13153_v10 }
 0x4bd   : > { %v3524_v16 = vrot.slane %v3458_v32, 2  ;;  %3971 = vmatmul.bf16.gmra.mxu0 %v13145_v56 }
 0x4be   : > { %v3190_v29 = vpop.f32.mrf.mxu2  ;;  %v3279_v62 = vpop.f32.mrf.mxu3 }
 0x4bf   : > { %v3280_v48 = vadd.f32 %v3279_v62, %v3190_v29  ;;  %v13835_v43 = vsel %vm1348_vm2, %v3522_v9, %v3524_v16 }
 0x4c1   : > { %v3523_v31 = vrot.slane %v3280_v48, 2  ;;  %v3459_v5 = vpop.f32.mrf.mxu1 }
 0x4c2   : > { %v3370_v14 = vpop.f32.mrf.mxu0 }
 0x4c3   : > { %v3460_v26 = vadd.f32 %v3459_v5, %v3370_v14  ;;  %v13839_v23 = vsel %vm1348_vm2, %v3521_v45, %v3523_v31 }
 0x4c5   : > { %v3526_v13 = vrot.slane %v3460_v26, 2 }
 0x4c6   : > { %v3192_v10 = vpop.f32.mrf.mxu2  ;;  %v3281_v32 = vpop.f32.mrf.mxu3 }
 0x4c7   : > { %v3282_v37 = vadd.f32 %v3281_v32, %v3192_v10  ;;  %v13843_v56 = vsel %vm1348_vm2, %v3524_v16, %v3526_v13 }
 0x4c9   : > { %v3525_v29 = vrot.slane %v3282_v37, 2  ;;  %v3462_v62 = vpop.f32.mrf.mxu1 }
 0x4ca   : > { %v3373_v9 = vpop.f32.mrf.mxu0 }
 0x4cb   : > { %3798 = vmatmul.bf16.gmra.mxu2 %v13181_v17  ;;  %v3463_v48 = vadd.f32 %v3462_v62, %v3373_v9  ;;  %3887 = vmatmul.bf16.gmra.mxu3 %v13183_v58  ;;  %v13849_v45 = vsel %vm1348_vm2, %v3523_v31, %v3525_v29 }
 0x4cc   : > { %17509 = vst [vmem:[#allocation66_spill] sm:$0xff] %v13849_v45  ;;  %4065 = vmatmul.bf16.gmra.mxu1 %v13183_v58 }
 0x4cd   : > { %v3528_v5 = vrot.slane %v3463_v48, 2  ;;  %3976 = vmatmul.bf16.gmra.mxu0 %v13181_v17 }
 0x4ce   : > { %v3195_v10 = vpop.f32.mrf.mxu2  ;;  %v3284_v16 = vpop.f32.mrf.mxu3 }
 0x4cf   : > { %v3285_v14 = vadd.f32 %v3284_v16, %v3195_v10  ;;  %v13855_v37 = vsel %vm1348_vm2, %v3526_v13, %v3528_v5  ;;  %v17121_v10 = vrot.slane %v13205_v61, 2 }
 0x4d1   : > { %v3527_v26 = vrot.slane %v3285_v14, 2  ;;  %v3464_v32 = vpop.f32.mrf.mxu1 }
 0x4d2   : > { %v3375_v62 = vpop.f32.mrf.mxu0 }
 0x4d3   : > { %v13857_v9 = vadd.f32 %v3464_v32, %v3375_v62  ;;  %v13861_v31 = vsel %vm1348_vm2, %v3525_v29, %v3527_v26  ;;  %v17511_v29 = vrot.slane %v13221_v0, 2 }
 0x4d5   : > { %v17120_v48 = vrot.slane %v13857_v9, 2  ;;  %v3592_v32 = vsel %vm1348_vm2, %v17121_v10, %v17511_v29  ;;  %v17513_v29 = vrot.slane %v13227_v60, 2 }
 0x4d6   : > { %v3197_v58 = vpop.f32.mrf.mxu2  ;;  %v3286_v17 = vpop.f32.mrf.mxu3 }
 0x4d7   : > { %v13864_v45 = vadd.f32 %v3286_v17, %v3197_v58  ;;  %v13870_v13 = vsel %vm1348_vm2, %v3528_v5, %v17120_v48  ;;  %v17131_v58 = vrot.slane %v13211_v33, 2 }
 0x4d9   : > { %17510 = vst [vmem:[#allocation67_spill] sm:$0xff] %v13864_v45  ;;  %v17123_v16 = vrot.slane %v13864_v45, 2  ;;  %v4031_v14 = vpop.f32.mrf.mxu1 }
 0x4da   : > { %v3942_v17 = vpop.f32.mrf.mxu0 }
 0x4db   : > { %3803 = vmatmul.bf16.gmra.mxu2 %v13201_v34  ;;  %v3943_v62 = vadd.f32 %v3942_v17, %v3592_v32  ;;  %3892 = vmatmul.bf16.gmra.mxu3 %v13203_v27  ;;  %v13887_v5 = vsel %vm1348_vm2, %v3527_v26, %v17123_v16  ;;  %v3591_v32 = vsel %vm1348_vm2, %v17131_v58, %v17513_v29 }
 0x4dc   : > { %4070 = vmatmul.bf16.gmra.mxu1 %v13203_v27 }
 0x4dd   : > { %v13890_v0 = vadd.f32 %v4031_v14, %v3943_v62  ;;  %3981 = vmatmul.bf16.gmra.mxu0 %v13201_v34 }
 0x4de   : > { %v3764_v17 = vpop.f32.mrf.mxu2  ;;  %v3853_v10 = vpop.f32.mrf.mxu3 }
 0x4df   : > { %17512 = vst [vmem:[#allocation68_spill] sm:$0xff] %v13890_v0  ;;  %v3765_v48 = vadd.f32 %v3764_v17, %v3591_v32 }
 0x4e1   : > { %v13899_v45 = vadd.f32 %v3853_v10, %v3765_v48  ;;  %v4033_v26 = vpop.f32.mrf.mxu1  ;;  %v17515_v48 = vld [vmem:[#allocation33_spill] sm:$0xff] }
 0x4e2   : > { %v3944_v16 = vpop.f32.mrf.mxu0 }
 0x4e3   : > { %v3945_v27 = vadd.f32 %v3944_v16, %v13242_v51  ;;  %v17517_v51 = vld [vmem:[#allocation36_spill] sm:$0xff] }
 0x4e5   : > { %v13902_v14 = vadd.f32 %v4033_v26, %v3945_v27  ;;  %v17518_v26 = vld [vmem:[#allocation46_spill] sm:$0xff] }
 0x4e6   : > { %v3766_v62 = vpop.f32.mrf.mxu2  ;;  %v3855_v60 = vpop.f32.mrf.mxu3 }
 0x4e7   : > { %v3767_v0 = vadd.f32 %v3766_v62, %v13257_v11 }
 0x4e9   : > { %v13905_v34 = vadd.f32 %v3855_v60, %v3767_v0  ;;  %v4036_v33 = vpop.f32.mrf.mxu1 }
 0x4ea   : > { %v3947_v36 = vpop.f32.mrf.mxu0 }
 0x4eb   : > { %17514 = vst [vmem:[#allocation69_spill] sm:$0xff] %v13905_v34  ;;  %3808 = vmatmul.bf16.gmra.mxu2 %v13229_v42  ;;  %v3948_v29 = vadd.f32 %v3947_v36, %v13265_v2  ;;  %3897 = vmatmul.bf16.gmra.mxu3 %v17515_v48  ;;  %v17519_v34 = vld [vmem:[#allocation34_spill] sm:$0xff] }
 0x4ec   : > { %4075 = vmatmul.bf16.gmra.mxu1 %v17515_v48 }
 0x4ed   : > { %v13911_v10 = vadd.f32 %v4036_v33, %v3948_v29  ;;  %3986 = vmatmul.bf16.gmra.mxu0 %v13229_v42 }
 0x4ee   : > { %v3769_v27 = vpop.f32.mrf.mxu2  ;;  %v3858_v16 = vpop.f32.mrf.mxu3 }
 0x4ef   : > { %17516 = vst [vmem:[#allocation70_spill] sm:$0xff] %v13911_v10  ;;  %v3770_v11 = vadd.f32 %v3769_v27, %v17517_v51  ;;  %v17520_v51 = vld [vmem:[#allocation35_spill] sm:$0xff] }
 0x4f1   : > { %v13915_v0 = vadd.f32 %v3858_v16, %v3770_v11  ;;  %v4038_v32 = vpop.f32.mrf.mxu1 }
 0x4f2   : > { %v3949_v17 = vpop.f32.mrf.mxu0 }
 0x4f3   : > { %v3950_v62 = vadd.f32 %v3949_v17, %v17518_v26 }
 0x4f5   : > { %v13918_v60 = vadd.f32 %v4038_v32, %v3950_v62 }
 0x4f6   : > { %v3771_v36 = vpop.f32.mrf.mxu2  ;;  %v3860_v58 = vpop.f32.mrf.mxu3 }
 0x4f7   : > { %v3772_v2 = vadd.f32 %v3771_v36, %v13293_v38 }
 0x4f9   : > { %v13921_v33 = vadd.f32 %v3860_v58, %v3772_v2  ;;  %v4041_v29 = vpop.f32.mrf.mxu1 }
 0x4fa   : > { %v3952_v10 = vpop.f32.mrf.mxu0 }
 0x4fb   : > { %3813 = vmatmul.bf16.gmra.mxu2 %v17519_v34  ;;  %v3953_v27 = vadd.f32 %v3952_v10, %v13301_v21  ;;  %3902 = vmatmul.bf16.gmra.mxu3 %v17520_v51 }
 0x4fc   : > { %4080 = vmatmul.bf16.gmra.mxu1 %v17520_v51 }
 0x4fd   : > { %v13927_v11 = vadd.f32 %v4041_v29, %v3953_v27  ;;  %3991 = vmatmul.bf16.gmra.mxu0 %v17519_v34 }
 0x4fe   : > { %v3774_v16 = vpop.f32.mrf.mxu2  ;;  %v3863_v32 = vpop.f32.mrf.mxu3 }
 0x4ff   : > { %17521 = vst [vmem:[#allocation36_spill] sm:$0xff] %v13927_v11  ;;  %v3775_v38 = vadd.f32 %v3774_v16, %v13312_v41  ;;  %v17524_v41 = vld [vmem:[#allocation42_spill] sm:$0xff] }
 0x501   : > { %v13931_v58 = vadd.f32 %v3863_v32, %v3775_v38  ;;  %v4043_v17 = vpop.f32.mrf.mxu1  ;;  %v17525_v38 = vld [vmem:[#allocation37_spill] sm:$0xff] }
 0x502   : > { %v3954_v26 = vpop.f32.mrf.mxu0 }
 0x503   : > { %v3955_v62 = vadd.f32 %v3954_v26, %v13317_v35 }
 0x505   : > { %v13934_v36 = vadd.f32 %v4043_v17, %v3955_v62  ;;  %v17527_v17 = vld [vmem:[#allocation40_spill] sm:$0xff] }
 0x506   : > { %v3776_v21 = vpop.f32.mrf.mxu2  ;;  %v3865_v2 = vpop.f32.mrf.mxu3 }
 0x507   : > { %17522 = vst [vmem:[#allocation46_spill] sm:$0xff] %v13934_v36  ;;  %v3777_v10 = vadd.f32 %v3776_v21, %v13341_v63  ;;  %v8940_v21 = vld [vmem:[%s16980_s3 + $0x270] sm:$0xf]  ;;  %v17533_v36 = vld [vmem:[#allocation38_spill] sm:$0xff] }
 0x509   : > { %v13937_v29 = vadd.f32 %v3865_v2, %v3777_v10  ;;  %v4046_v27 = vpop.f32.mrf.mxu1  ;;  %v9004_v10 = vld [vmem:[%s16980_s3 + $0x2f0] sm:$0xf] }
 0x50a   : > { %v3957_v11 = vpop.f32.mrf.mxu0 }
 0x50b   : > { %17523 = vst [vmem:[#allocation34_spill] sm:$0xff] %v13937_v29  ;;  %3818 = vmatmul.bf16.gmra.mxu2 %v13303_v53  ;;  %v3958_v16 = vadd.f32 %v3957_v11, %v17524_v41  ;;  %3907 = vmatmul.bf16.gmra.mxu3 %v17525_v38  ;;  %v9706_v11 = vld [vmem:[%s16980_s3 + $0x274] sm:$0xf0] }
 0x50c   : > { %4085 = vmatmul.bf16.gmra.mxu1 %v17525_v38  ;;  %v9722_v41 = vld [vmem:[%s16980_s3 + $0x2f4] sm:$0xf0] }
 0x50d   : > { %v13943_v32 = vadd.f32 %v4046_v27, %v3958_v16  ;;  %3996 = vmatmul.bf16.gmra.mxu0 %v13303_v53  ;;  %v8941_v27 = vor.u32 %v9706_v11, %v8940_v21  ;;  %v8942_v21 = vld [vmem:[%s16980_s3 + $0x278] sm:$0xf0]  ;;  %v9721_v11 = vld [vmem:[%s16980_s3 + $0x2f4] sm:$0xf] }
 0x50e   : > { %v3779_v35 = vpop.f32.mrf.mxu2  ;;  %v3868_v26 = vpop.f32.mrf.mxu3 }
 0x50f   : > { %17526 = vst [vmem:[#allocation42_spill] sm:$0xff] %v13943_v32  ;;  %v3780_v63 = vadd.f32 %v3779_v35, %v17527_v17  ;;  %v9005_v35 = vor.u32 %v9722_v41, %v9004_v10  ;;  %v17529_v17 = vld [vmem:[#allocation39_spill] sm:$0xff]  ;;  %4304 = vmatpush.bf16.msra.mxu2 %v8941_v27  ;;  %v9705_v32 = vld [vmem:[%s16980_s3 + $0x274] sm:$0xf] }
 0x510   : > { %v8945_v27 = vor.u32 %v9705_v32, %v8942_v21 }
 0x511   : > { %v13947_v62 = vadd.f32 %v3868_v26, %v3780_v63  ;;  %v4048_v2 = vpop.f32.mrf.mxu1  ;;  %4393 = vmatpush.bf16.msra.mxu3 %v9005_v35 }
 0x512   : > { %v3959_v16 = vpop.f32.mrf.mxu0  ;;  %4482 = vmatpush.bf16.msrb.mxu0 %v8945_v27  ;;  %v8932_v27 = vld [vmem:[%s16980_s3 + $0x260] sm:$0xf] }
 0x513   : > { %17528 = vst [vmem:[#allocation40_spill] sm:$0xff] %v13947_v62  ;;  %v3960_v63 = vadd.f32 %v3959_v16, %v17529_v17 }
 0x515   : > { %v13962_v26 = vadd.f32 %v4048_v2, %v3960_v63  ;;  %v9006_v2 = vld [vmem:[%s16980_s3 + $0x2f8] sm:$0xf0] }
 0x516   : > { %v3781_v62 = vpop.f32.mrf.mxu2  ;;  %v3870_v41 = vpop.f32.mrf.mxu3  ;;  %v9009_v16 = vor.u32 %v9721_v11, %v9006_v2 }
 0x517   : > { %17530 = vst [vmem:[#allocation39_spill] sm:$0xff] %v13962_v26  ;;  %v3782_v10 = vadd.f32 %v3781_v62, %v13420_v39  ;;  %v17532_v26 = vld [vmem:[#allocation43_spill] sm:$0xff]  ;;  %v17535_v62 = vld [vmem:[#allocation49_spill] sm:$0xff] }
 0x518   : > { %4571 = vmatpush.bf16.msrb.mxu1 %v9009_v16 }
 0x519   : > { %v13977_v35 = vadd.f32 %v3870_v41, %v3782_v10  ;;  %v4051_v17 = vpop.f32.mrf.mxu1 }
 0x51a   : > { %v3962_v63 = vpop.f32.mrf.mxu0 }
 0x51b   : > { %17531 = vst [vmem:[#allocation71_spill] sm:$0xff] %v13977_v35  ;;  %3823 = vmatmul.bf16.gmra.mxu2 %v17532_v26  ;;  %v3963_v29 = vadd.f32 %v3962_v63, %v13457_v49  ;;  %3912 = vmatmul.bf16.gmra.mxu3 %v17533_v36  ;;  %v9704_v49 = vld [vmem:[%s16980_s3 + $0x264] sm:$0xf0]  ;;  %v9703_v63 = vld [vmem:[%s16980_s3 + $0x264] sm:$0xf] }
 0x51c   : > { %4090 = vmatmul.bf16.gmra.mxu1 %v17533_v36  ;;  %v8933_v16 = vor.u32 %v9704_v49, %v8932_v27  ;;  %v9719_v27 = vld [vmem:[%s16980_s3 + $0x2e4] sm:$0xf]  ;;  %v8998_v49 = vld [vmem:[%s16980_s3 + $0x2e8] sm:$0xf0] }
 0x51d   : > { %v13983_v39 = vadd.f32 %v4051_v17, %v3963_v29  ;;  %4001 = vmatmul.bf16.gmra.mxu0 %v17532_v26  ;;  %v8996_v29 = vld [vmem:[%s16980_s3 + $0x2e0] sm:$0xf]  ;;  %v9720_v17 = vld [vmem:[%s16980_s3 + $0x2e4] sm:$0xf0] }
 0x51e   : > { %v3784_v32 = vpop.f32.mrf.mxu2  ;;  %v3873_v11 = vpop.f32.mrf.mxu3  ;;  %4305 = vmatpush.bf16.msra.mxu2 %v8933_v16 }
 0x51f   : > { %17534 = vst [vmem:[#allocation72_spill] sm:$0xff] %v13983_v39  ;;  %v3785_v21 = vadd.f32 %v3784_v32, %v17535_v62  ;;  %v8934_v32 = vld [vmem:[%s16980_s3 + $0x268] sm:$0xf0] }
 0x521   : > { %v13987_v10 = vadd.f32 %v3873_v11, %v3785_v21  ;;  %v4053_v41 = vpop.f32.mrf.mxu1  ;;  %v8997_v21 = vor.u32 %v9720_v17, %v8996_v29  ;;  %v8937_v11 = vor.u32 %v9703_v63, %v8934_v32  ;;  %v9702_v29 = vld [vmem:[%s16980_s3 + $0x254] sm:$0xf0]  ;;  %v9701_v32 = vld [vmem:[%s16980_s3 + $0x254] sm:$0xf] }
 0x522   : > { %v3964_v2 = vpop.f32.mrf.mxu0  ;;  %v9718_v63 = vld [vmem:[%s16980_s3 + $0x2d4] sm:$0xf0] }
 0x523   : > { %17536 = vst [vmem:[#allocation49_spill] sm:$0xff] %v13987_v10  ;;  %v3965_v62 = vadd.f32 %v3964_v2, %v13546_v40  ;;  %v9001_v10 = vor.u32 %v9719_v27, %v8998_v49  ;;  %4394 = vmatpush.bf16.msra.mxu3 %v8997_v21  ;;  %4483 = vmatpush.bf16.msrb.mxu0 %v8937_v11  ;;  %v8924_v40 = vld [vmem:[%s16980_s3 + $0x250] sm:$0xf] }
 0x524   : > { %v8988_v2 = vld [vmem:[%s16980_s3 + $0x2d0] sm:$0xf] }
 0x525   : > { %v14014_v39 = vadd.f32 %v4053_v41, %v3965_v62  ;;  %4572 = vmatpush.bf16.msrb.mxu1 %v9001_v10  ;;  %v8925_v41 = vor.u32 %v9702_v29, %v8924_v40  ;;  %v8926_v62 = vld [vmem:[%s16980_s3 + $0x258] sm:$0xf0]  ;;  %v8989_v21 = vor.u32 %v9718_v63, %v8988_v2  ;;  %v8916_v40 = vld [vmem:[%s16980_s3 + $0x240] sm:$0xf]  ;;  %v9700_v29 = vld [vmem:[%s16980_s3 + $0x244] sm:$0xf0] }
 0x526   : > { %v3786_v35 = vpop.f32.mrf.mxu2  ;;  %v3875_v17 = vpop.f32.mrf.mxu3  ;;  %v8929_v11 = vor.u32 %v9701_v32, %v8926_v62  ;;  %v8980_v2 = vld [vmem:[%s16980_s3 + $0x2c0] sm:$0xf]  ;;  %v9699_v32 = vld [vmem:[%s16980_s3 + $0x244] sm:$0xf]  ;;  %v8918_v62 = vld [vmem:[%s16980_s3 + $0x248] sm:$0xf0] }
 0x527   : > { %v3787_v16 = vadd.f32 %v3786_v35, %v13578_v28  ;;  %v9717_v28 = vld [vmem:[%s16980_s3 + $0x2d4] sm:$0xf]  ;;  %v8990_v35 = vld [vmem:[%s16980_s3 + $0x2d8] sm:$0xf0]  ;;  %4306 = vmatpush.bf16.msra.mxu2 %v8925_v41  ;;  %4395 = vmatpush.bf16.msra.mxu3 %v8989_v21  ;;  %v9716_v41 = vld [vmem:[%s16980_s3 + $0x2c4] sm:$0xf0] }
 0x528   : > { %v8993_v27 = vor.u32 %v9717_v28, %v8990_v35  ;;  %4484 = vmatpush.bf16.msrb.mxu0 %v8929_v11  ;;  %v17539_v11 = vld [vmem:[#allocation48_spill] sm:$0xff]  ;;  %v8981_v28 = vor.u32 %v9716_v41, %v8980_v2  ;;  %v8921_v35 = vor.u32 %v9699_v32, %v8918_v62  ;;  %v9714_v62 = vld [vmem:[%s16980_s3 + $0x2b4] sm:$0xf0] }
 0x529   : > { %v14041_v10 = vadd.f32 %v3875_v17, %v3787_v16  ;;  %v4056_v49 = vpop.f32.mrf.mxu1  ;;  %v17538_v16 = vld [vmem:[#allocation41_spill] sm:$0xff]  ;;  %v8917_v17 = vor.u32 %v9700_v29, %v8916_v40  ;;  %v8982_v40 = vld [vmem:[%s16980_s3 + $0x2c8] sm:$0xf0]  ;;  %v8908_v2 = vld [vmem:[%s16980_s3 + $0x230] sm:$0xf] }
 0x52a   : > { %v3967_v63 = vpop.f32.mrf.mxu0  ;;  %4573 = vmatpush.bf16.msrb.mxu1 %v8993_v27  ;;  %v9715_v27 = vld [vmem:[%s16980_s3 + $0x2c4] sm:$0xf]  ;;  %v8972_v41 = vld [vmem:[%s16980_s3 + $0x2b0] sm:$0xf] }
 0x52b   : > { %17537 = vst [vmem:[#allocation73_spill] sm:$0xff] %v14041_v10  ;;  %3828 = vmatmul.bf16.gmra.mxu2 %v17538_v16  ;;  %v3968_v21 = vadd.f32 %v3967_v63, %v13615_v8  ;;  %3917 = vmatmul.bf16.gmra.mxu3 %v17539_v11  ;;  %v8985_v29 = vor.u32 %v9715_v27, %v8982_v40  ;;  %v9698_v63 = vld [vmem:[%s16980_s3 + $0x234] sm:$0xf0] }
 0x52c   : > { %4095 = vmatmul.bf16.gmra.mxu1 %v17539_v11  ;;  %4307 = vmatpush.bf16.msra.mxu2 %v8917_v17  ;;  %v8909_v32 = vor.u32 %v9698_v63, %v8908_v2  ;;  %v8973_v27 = vor.u32 %v9714_v62, %v8972_v41  ;;  %v8900_v63 = vld [vmem:[%s16980_s3 + $0x220] sm:$0xf]  ;;  %v9696_v41 = vld [vmem:[%s16980_s3 + $0x224] sm:$0xf0] }
 0x52d   : > { %v14071_v10 = vadd.f32 %v4056_v49, %v3968_v21  ;;  %4006 = vmatmul.bf16.gmra.mxu0 %v17538_v16  ;;  %4396 = vmatpush.bf16.msra.mxu3 %v8981_v28  ;;  %v9697_v21 = vld [vmem:[%s16980_s3 + $0x234] sm:$0xf]  ;;  %v8910_v28 = vld [vmem:[%s16980_s3 + $0x238] sm:$0xf0]  ;;  %v8964_v62 = vld [vmem:[%s16980_s3 + $0x2a0] sm:$0xf] }
 0x52e   : > { %v3789_v8 = vpop.f32.mrf.mxu2  ;;  %v3878_v49 = vpop.f32.mrf.mxu3  ;;  %4485 = vmatpush.bf16.msrb.mxu0 %v8921_v35  ;;  %4574 = vmatpush.bf16.msrb.mxu1 %v8985_v29  ;;  %v8913_v40 = vor.u32 %v9697_v21, %v8910_v28  ;;  %v8974_v35 = vld [vmem:[%s16980_s3 + $0x2b8] sm:$0xf0]  ;;  %v8902_v28 = vld [vmem:[%s16980_s3 + $0x228] sm:$0xf0] }
 0x52f   : > { %v3790_v17 = vadd.f32 %v3789_v8, %v13651_v55  ;;  %v9713_v55 = vld [vmem:[%s16980_s3 + $0x2b4] sm:$0xf] }
 0x530   : > { %4308 = vmatpush.bf16.msra.mxu2 %v8909_v32  ;;  %v8977_v8 = vor.u32 %v9713_v55, %v8974_v35  ;;  %v9695_v32 = vld [vmem:[%s16980_s3 + $0x224] sm:$0xf] }
 0x531   : > { %v14099_v29 = vadd.f32 %v3878_v49, %v3790_v17  ;;  %v4058_v2 = vpop.f32.mrf.mxu1  ;;  %4397 = vmatpush.bf16.msra.mxu3 %v8973_v27  ;;  %v8901_v17 = vor.u32 %v9696_v41, %v8900_v63  ;;  %v9712_v49 = vld [vmem:[%s16980_s3 + $0x2a4] sm:$0xf0]  ;;  %v8905_v35 = vor.u32 %v9695_v32, %v8902_v28  ;;  %v9710_v32 = vld [vmem:[%s16980_s3 + $0x294] sm:$0xf0]  ;;  %v9693_v28 = vld [vmem:[%s16980_s3 + $0x214] sm:$0xf] }
 0x532   : > { %v3969_v21 = vpop.f32.mrf.mxu0  ;;  %4486 = vmatpush.bf16.msrb.mxu0 %v8913_v40  ;;  %4575 = vmatpush.bf16.msrb.mxu1 %v8977_v8  ;;  %v8965_v55 = vor.u32 %v9712_v49, %v8964_v62  ;;  %v9711_v40 = vld [vmem:[%s16980_s3 + $0x2a4] sm:$0xf]  ;;  %v8966_v8 = vld [vmem:[%s16980_s3 + $0x2a8] sm:$0xf0]  ;;  %v9694_v62 = vld [vmem:[%s16980_s3 + $0x214] sm:$0xf0] }
 0x533   : > { %17540 = vst [vmem:[#allocation74_spill] sm:$0xff] %v14099_v29  ;;  %v3970_v27 = vadd.f32 %v3969_v21, %v13659_v57  ;;  %v8969_v63 = vor.u32 %v9711_v40, %v8966_v8  ;;  %v8892_v57 = vld [vmem:[%s16980_s3 + $0x210] sm:$0xf] }
 0x534   : > { %4309 = vmatpush.bf16.msra.mxu2 %v8901_v17  ;;  %v8956_v21 = vld [vmem:[%s16980_s3 + $0x290] sm:$0xf] }
 0x535   : > { %v14126_v41 = vadd.f32 %v4058_v2, %v3970_v27  ;;  %4398 = vmatpush.bf16.msra.mxu3 %v8965_v55  ;;  %v8893_v2 = vor.u32 %v9694_v62, %v8892_v57  ;;  %v8894_v27 = vld [vmem:[%s16980_s3 + $0x218] sm:$0xf0]  ;;  %v8957_v55 = vor.u32 %v9710_v32, %v8956_v21  ;;  %v8884_v57 = vld [vmem:[%s16980_s3 + $0x200] sm:$0xf]  ;;  %v9692_v62 = vld [vmem:[%s16980_s3 + $0x204] sm:$0xf0] }
 0x536   : > { %v3791_v29 = vpop.f32.mrf.mxu2  ;;  %v3880_v17 = vpop.f32.mrf.mxu3  ;;  %4487 = vmatpush.bf16.msrb.mxu0 %v8905_v35  ;;  %4576 = vmatpush.bf16.msrb.mxu1 %v8969_v63  ;;  %v8897_v40 = vor.u32 %v9693_v28, %v8894_v27  ;;  %v8948_v21 = vld [vmem:[%s16980_s3 + $0x280] sm:$0xf]  ;;  %v8886_v28 = vld [vmem:[%s16980_s3 + $0x208] sm:$0xf0] }
 0x537   : > { %v3792_v49 = vadd.f32 %v3791_v29, %v13671_v59  ;;  %v9709_v59 = vld [vmem:[%s16980_s3 + $0x294] sm:$0xf]  ;;  %v8958_v29 = vld [vmem:[%s16980_s3 + $0x298] sm:$0xf0] }
 0x538   : > { %4310 = vmatpush.bf16.msra.mxu2 %v8893_v2  ;;  %v8961_v8 = vor.u32 %v9709_v59, %v8958_v29  ;;  %v9691_v2 = vld [vmem:[%s16980_s3 + $0x204] sm:$0xf]  ;;  %v8950_v29 = vld [vmem:[%s16980_s3 + $0x288] sm:$0xf0] }
 0x539   : > { %v14153_v35 = vadd.f32 %v3880_v17, %v3792_v49  ;;  %v4061_v63 = vpop.f32.mrf.mxu1  ;;  %4399 = vmatpush.bf16.msra.mxu3 %v8957_v55  ;;  %v8885_v49 = vor.u32 %v9692_v62, %v8884_v57  ;;  %v9708_v17 = vld [vmem:[%s16980_s3 + $0x284] sm:$0xf0]  ;;  %v9707_v59 = vld [vmem:[%s16980_s3 + $0x284] sm:$0xf] }
 0x53a   : > { %v3972_v32 = vpop.f32.mrf.mxu0  ;;  %4488 = vmatpush.bf16.msrb.mxu0 %v8897_v40  ;;  %4577 = vmatpush.bf16.msrb.mxu1 %v8961_v8  ;;  %v8949_v55 = vor.u32 %v9708_v17, %v8948_v21  ;;  %v8889_v40 = vor.u32 %v9691_v2, %v8886_v28  ;;  %v8953_v57 = vor.u32 %v9707_v59, %v8950_v29 }
 0x53b   : > { %17541 = vst [vmem:[#allocation75_spill] sm:$0xff] %v14153_v35  ;;  %3833 = vmatmul.bf16.gmra.mxu2 %v13617_v3  ;;  %v3973_v27 = vadd.f32 %v3972_v32, %v13679_v20  ;;  %3922 = vmatmul.bf16.gmra.mxu3 %v13619_v24 }
 0x53c   : > { %4100 = vmatmul.bf16.gmra.mxu1 %v13619_v24  ;;  %4311 = vmatpush.bf16.msra.mxu2 %v8885_v49 }
 0x53d   : > { %v14183_v62 = vadd.f32 %v4061_v63, %v3973_v27  ;;  %4011 = vmatmul.bf16.gmra.mxu0 %v13617_v3  ;;  %4400 = vmatpush.bf16.msra.mxu3 %v8949_v55 }
 0x53e   : > { %v3794_v20 = vpop.f32.mrf.mxu2  ;;  %v3883_v21 = vpop.f32.mrf.mxu3  ;;  %4489 = vmatpush.bf16.msrb.mxu0 %v8889_v40  ;;  %4578 = vmatpush.bf16.msrb.mxu1 %v8953_v57 }
 0x53f   : > { %v3795_v8 = vadd.f32 %v3794_v20, %v13689_v52 }
 0x541   : > { %v14187_v32 = vadd.f32 %v3883_v21, %v3795_v8  ;;  %v4063_v17 = vpop.f32.mrf.mxu1 }
 0x542   : > { %v3974_v2 = vpop.f32.mrf.mxu0 }
 0x543   : > { %v3975_v28 = vadd.f32 %v3974_v2, %v13695_v22 }
 0x545   : > { %v14190_v35 = vadd.f32 %v4063_v17, %v3975_v28 }
 0x546   : > { %v3796_v49 = vpop.f32.mrf.mxu2  ;;  %v3885_v27 = vpop.f32.mrf.mxu3 }
 0x547   : > { %v3797_v63 = vadd.f32 %v3796_v49, %v13699_v18 }
 0x549   : > { %v14193_v59 = vadd.f32 %v3885_v27, %v3797_v63  ;;  %v4066_v55 = vpop.f32.mrf.mxu1 }
 0x54a   : > { %v3977_v29 = vpop.f32.mrf.mxu0 }
 0x54b   : > { %3838 = vmatmul.bf16.gmra.mxu2 %v13681_v44  ;;  %v3978_v52 = vadd.f32 %v3977_v29, %v13703_v7  ;;  %3927 = vmatmul.bf16.gmra.mxu3 %v13683_v25  ;;  %v17545_v29 = vld [vmem:[#allocation19_spill] sm:$0xff] }
 0x54c   : > { %4105 = vmatmul.bf16.gmra.mxu1 %v13683_v25 }
 0x54d   : > { %v14199_v40 = vadd.f32 %v4066_v55, %v3978_v52  ;;  %4016 = vmatmul.bf16.gmra.mxu0 %v13681_v44 }
 0x54e   : > { %v3799_v22 = vpop.f32.mrf.mxu2  ;;  %v3888_v57 = vpop.f32.mrf.mxu3 }
 0x54f   : > { %v3800_v18 = vadd.f32 %v3799_v22, %v13709_v46  ;;  %v17546_v46 = vld [vmem:[#allocation57_spill] sm:$0xff]  ;;  %v17547_v22 = vld [vmem:[#allocation20_spill] sm:$0xff] }
 0x551   : > { %v14203_v20 = vadd.f32 %v3888_v57, %v3800_v18  ;;  %v4068_v8 = vpop.f32.mrf.mxu1  ;;  %v17549_v57 = vld [vmem:[#allocation60_spill] sm:$0xff] }
 0x552   : > { %v3979_v21 = vpop.f32.mrf.mxu0 }
 0x553   : > { %17542 = vst [vmem:[#allocation76_spill] sm:$0xff] %v14203_v20  ;;  %v3980_v17 = vadd.f32 %v3979_v21, %v13715_v47  ;;  %v17554_v20 = vld [vmem:[#allocation50_spill] sm:$0xff] }
 0x555   : > { %v14206_v2 = vadd.f32 %v4068_v8, %v3980_v17 }
 0x556   : > { %v3801_v7 = vpop.f32.mrf.mxu2  ;;  %v3890_v49 = vpop.f32.mrf.mxu3 }
 0x557   : > { %17543 = vst [vmem:[#allocation77_spill] sm:$0xff] %v14206_v2  ;;  %v3802_v28 = vadd.f32 %v3801_v7, %v13719_v19 }
 0x559   : > { %v14209_v63 = vadd.f32 %v3890_v49, %v3802_v28  ;;  %v4071_v27 = vpop.f32.mrf.mxu1 }
 0x55a   : > { %v3982_v55 = vpop.f32.mrf.mxu0 }
 0x55b   : > { %17544 = vst [vmem:[#allocation78_spill] sm:$0xff] %v14209_v63  ;;  %4312 = vmatmul.bf16.vlgmr.msra.gmra.mxu2 %v17545_v29  ;;  %v3983_v52 = vadd.f32 %v3982_v55, %v17546_v46  ;;  %4401 = vmatmul.bf16.vlgmr.msra.gmra.mxu3 %v17547_v22  ;;  %v17552_v46 = vld [vmem:[#allocation58_spill] sm:$0xff] }
 0x55c   : > { %4579 = vmatmul.bf16.vlgmr.msrb.gmra.mxu1 %v17547_v22 }
 0x55d   : > { %v14215_v18 = vadd.f32 %v4071_v27, %v3983_v52  ;;  %4490 = vmatmul.bf16.vlgmr.msrb.gmra.mxu0 %v17545_v29 }
 0x55e   : > { %v3804_v47 = vpop.f32.mrf.mxu2  ;;  %v3893_v8 = vpop.f32.mrf.mxu3 }
 0x55f   : > { %17548 = vst [vmem:[#allocation19_spill] sm:$0xff] %v14215_v18  ;;  %v3805_v19 = vadd.f32 %v3804_v47, %v17549_v57  ;;  %v17555_v47 = vld [vmem:[#allocation44_spill] sm:$0xff] }
 0x561   : > { %v14219_v21 = vadd.f32 %v3893_v8, %v3805_v19  ;;  %v4073_v17 = vpop.f32.mrf.mxu1  ;;  %v17556_v19 = vld [vmem:[#allocation51_spill] sm:$0xff] }
 0x562   : > { %v3984_v7 = vpop.f32.mrf.mxu0 }
 0x563   : > { %17550 = vst [vmem:[#allocation57_spill] sm:$0xff] %v14219_v21  ;;  %v3985_v28 = vadd.f32 %v3984_v7, %v13735_v54 }
 0x565   : > { %v14222_v49 = vadd.f32 %v4073_v17, %v3985_v28  ;;  %v17558_v17 = vld [vmem:[#allocation45_spill] sm:$0xff] }
 0x566   : > { %v3806_v55 = vpop.f32.mrf.mxu2  ;;  %v3895_v2 = vpop.f32.mrf.mxu3 }
 0x567   : > { %17551 = vst [vmem:[#allocation60_spill] sm:$0xff] %v14222_v49  ;;  %v3807_v63 = vadd.f32 %v3806_v55, %v17552_v46  ;;  %v17560_v46 = vld [vmem:[#allocation61_spill] sm:$0xff] }
 0x569   : > { %v14225_v27 = vadd.f32 %v3895_v2, %v3807_v63  ;;  %v4076_v52 = vpop.f32.mrf.mxu1 }
 0x56a   : > { %v3987_v18 = vpop.f32.mrf.mxu0 }
 0x56b   : > { %17553 = vst [vmem:[#allocation58_spill] sm:$0xff] %v14225_v27  ;;  %4317 = vmatmul.bf16.gmra.mxu2 %v17554_v20  ;;  %v3988_v57 = vadd.f32 %v3987_v18, %v17555_v47  ;;  %4406 = vmatmul.bf16.gmra.mxu3 %v17556_v19 }
 0x56c   : > { %4584 = vmatmul.bf16.gmra.mxu1 %v17556_v19  ;;  %v17563_v19 = vld [vmem:[#allocation52_spill] sm:$0xff] }
 0x56d   : > { %v14231_v8 = vadd.f32 %v4076_v52, %v3988_v57  ;;  %4495 = vmatmul.bf16.gmra.mxu0 %v17554_v20 }
 0x56e   : > { %v3809_v54 = vpop.f32.mrf.mxu2  ;;  %v3898_v28 = vpop.f32.mrf.mxu3 }
 0x56f   : > { %17557 = vst [vmem:[#allocation44_spill] sm:$0xff] %v14231_v8  ;;  %v3810_v7 = vadd.f32 %v3809_v54, %v17558_v17  ;;  %v17564_v54 = vld [vmem:[#allocation15_spill] sm:$0xff] }
 0x571   : > { %v14235_v2 = vadd.f32 %v3898_v28, %v3810_v7  ;;  %v4078_v63 = vpop.f32.mrf.mxu1  ;;  %v17565_v7 = vld [vmem:[#allocation22_spill] sm:$0xff] }
 0x572   : > { %v3989_v55 = vpop.f32.mrf.mxu0 }
 0x573   : > { %17559 = vst [vmem:[#allocation45_spill] sm:$0xff] %v14235_v2  ;;  %v3990_v27 = vadd.f32 %v3989_v55, %v17560_v46  ;;  %v17571_v2 = vld [vmem:[#allocation23_spill] sm:$0xff] }
 0x575   : > { %v14238_v49 = vadd.f32 %v4078_v63, %v3990_v27  ;;  %v17567_v63 = vld [vmem:[#allocation62_spill] sm:$0xff] }
 0x576   : > { %v3811_v18 = vpop.f32.mrf.mxu2  ;;  %v3900_v21 = vpop.f32.mrf.mxu3 }
 0x577   : > { %17561 = vst [vmem:[#allocation61_spill] sm:$0xff] %v14238_v49  ;;  %v3812_v47 = vadd.f32 %v3811_v18, %v13759_v4 }
 0x579   : > { %v14241_v52 = vadd.f32 %v3900_v21, %v3812_v47  ;;  %v4081_v57 = vpop.f32.mrf.mxu1 }
 0x57a   : > { %v3992_v8 = vpop.f32.mrf.mxu0 }
 0x57b   : > { %17562 = vst [vmem:[#allocation79_spill] sm:$0xff] %v14241_v52  ;;  %4322 = vmatmul.bf16.gmra.mxu2 %v17563_v19  ;;  %v3993_v17 = vadd.f32 %v3992_v8, %v17564_v54  ;;  %4411 = vmatmul.bf16.gmra.mxu3 %v17565_v7 }
 0x57c   : > { %4589 = vmatmul.bf16.gmra.mxu1 %v17565_v7 }
 0x57d   : > { %v14247_v28 = vadd.f32 %v4081_v57, %v3993_v17  ;;  %4500 = vmatmul.bf16.gmra.mxu0 %v17563_v19 }
 0x57e   : > { %v3814_v27 = vpop.f32.mrf.mxu2  ;;  %v3903_v55 = vpop.f32.mrf.mxu3 }
 0x57f   : > { %17566 = vst [vmem:[#allocation15_spill] sm:$0xff] %v14247_v28  ;;  %v3815_v4 = vadd.f32 %v3814_v27, %v17567_v63  ;;  %v17572_v27 = vld [vmem:[#allocation63_spill] sm:$0xff] }
 0x581   : > { %v14251_v21 = vadd.f32 %v3903_v55, %v3815_v4  ;;  %v4083_v46 = vpop.f32.mrf.mxu1  ;;  %v17573_v4 = vld [vmem:[#allocation24_spill] sm:$0xff] }
 0x582   : > { %v3994_v18 = vpop.f32.mrf.mxu0 }
 0x583   : > { %17568 = vst [vmem:[#allocation62_spill] sm:$0xff] %v14251_v21  ;;  %v3995_v47 = vadd.f32 %v3994_v18, %v13775_v15  ;;  %v17579_v21 = vld [vmem:[#allocation25_spill] sm:$0xff] }
 0x585   : > { %v14254_v52 = vadd.f32 %v4083_v46, %v3995_v47  ;;  %v17575_v46 = vld [vmem:[#allocation18_spill] sm:$0xff] }
 0x586   : > { %v3816_v8 = vpop.f32.mrf.mxu2  ;;  %v3905_v49 = vpop.f32.mrf.mxu3 }
 0x587   : > { %17569 = vst [vmem:[#allocation80_spill] sm:$0xff] %v14254_v52  ;;  %v3817_v54 = vadd.f32 %v3816_v8, %v13779_v50 }
 0x589   : > { %v14257_v57 = vadd.f32 %v3905_v49, %v3817_v54  ;;  %v4086_v17 = vpop.f32.mrf.mxu1 }
 0x58a   : > { %v3997_v28 = vpop.f32.mrf.mxu0 }
 0x58b   : > { %17570 = vst [vmem:[#allocation81_spill] sm:$0xff] %v14257_v57  ;;  %4327 = vmatmul.bf16.gmra.mxu2 %v17571_v2  ;;  %v3998_v63 = vadd.f32 %v3997_v28, %v17572_v27  ;;  %4416 = vmatmul.bf16.gmra.mxu3 %v17573_v4 }
 0x58c   : > { %4594 = vmatmul.bf16.gmra.mxu1 %v17573_v4 }
 0x58d   : > { %v14263_v55 = vadd.f32 %v4086_v17, %v3998_v63  ;;  %4505 = vmatmul.bf16.gmra.mxu0 %v17571_v2 }
 0x58e   : > { %v3819_v15 = vpop.f32.mrf.mxu2  ;;  %v3908_v18 = vpop.f32.mrf.mxu3 }
 0x58f   : > { %17574 = vst [vmem:[#allocation63_spill] sm:$0xff] %v14263_v55  ;;  %v3820_v50 = vadd.f32 %v3819_v15, %v17575_v46  ;;  %v17580_v15 = vld [vmem:[#allocation17_spill] sm:$0xff] }
 0x591   : > { %v14267_v49 = vadd.f32 %v3908_v18, %v3820_v50  ;;  %v4088_v47 = vpop.f32.mrf.mxu1  ;;  %v17581_v50 = vld [vmem:[#allocation53_spill] sm:$0xff] }
 0x592   : > { %v3999_v8 = vpop.f32.mrf.mxu0 }
 0x593   : > { %17576 = vst [vmem:[#allocation18_spill] sm:$0xff] %v14267_v49  ;;  %v4000_v54 = vadd.f32 %v3999_v8, %v13795_v6  ;;  %v17587_v49 = vld [vmem:[#allocation54_spill] sm:$0xff] }
 0x595   : > { %v14270_v57 = vadd.f32 %v4088_v47, %v4000_v54  ;;  %v17583_v47 = vld [vmem:[#allocation21_spill] sm:$0xff] }
 0x596   : > { %v3821_v28 = vpop.f32.mrf.mxu2  ;;  %v3910_v52 = vpop.f32.mrf.mxu3 }
 0x597   : > { %17577 = vst [vmem:[#allocation82_spill] sm:$0xff] %v14270_v57  ;;  %v3822_v27 = vadd.f32 %v3821_v28, %v13799_v12 }
 0x599   : > { %v14273_v17 = vadd.f32 %v3910_v52, %v3822_v27  ;;  %v4091_v63 = vpop.f32.mrf.mxu1 }
 0x59a   : > { %v4002_v55 = vpop.f32.mrf.mxu0 }
 0x59b   : > { %17578 = vst [vmem:[#allocation83_spill] sm:$0xff] %v14273_v17  ;;  %4332 = vmatmul.bf16.gmra.mxu2 %v17579_v21  ;;  %v4003_v46 = vadd.f32 %v4002_v55, %v17580_v15  ;;  %4421 = vmatmul.bf16.gmra.mxu3 %v17581_v50 }
 0x59c   : > { %4599 = vmatmul.bf16.gmra.mxu1 %v17581_v50 }
 0x59d   : > { %v14279_v18 = vadd.f32 %v4091_v63, %v4003_v46  ;;  %4510 = vmatmul.bf16.gmra.mxu0 %v17579_v21 }
 0x59e   : > { %v3824_v6 = vpop.f32.mrf.mxu2  ;;  %v3913_v8 = vpop.f32.mrf.mxu3 }
 0x59f   : > { %17582 = vst [vmem:[#allocation17_spill] sm:$0xff] %v14279_v18  ;;  %v3825_v12 = vadd.f32 %v3824_v6, %v17583_v47  ;;  %v17588_v6 = vld [vmem:[#allocation64_spill] sm:$0xff] }
 0x5a1   : > { %v14283_v52 = vadd.f32 %v3913_v8, %v3825_v12  ;;  %v4093_v54 = vpop.f32.mrf.mxu1  ;;  %v17589_v12 = vld [vmem:[#allocation26_spill] sm:$0xff] }
 0x5a2   : > { %v4004_v28 = vpop.f32.mrf.mxu0 }
 0x5a3   : > { %17584 = vst [vmem:[#allocation21_spill] sm:$0xff] %v14283_v52  ;;  %v4005_v27 = vadd.f32 %v4004_v28, %v13815_v30  ;;  %v17594_v52 = vld [vmem:[#allocation27_spill] sm:$0xff] }
 0x5a5   : > { %v14286_v17 = vadd.f32 %v4093_v54, %v4005_v27  ;;  %v17591_v54 = vld [vmem:[#allocation65_spill] sm:$0xff] }
 0x5a6   : > { %v3826_v55 = vpop.f32.mrf.mxu2  ;;  %v3915_v57 = vpop.f32.mrf.mxu3 }
 0x5a7   : > { %17585 = vst [vmem:[#allocation84_spill] sm:$0xff] %v14286_v17  ;;  %v3827_v15 = vadd.f32 %v3826_v55, %v13819_v1 }
 0x5a9   : > { %v14289_v63 = vadd.f32 %v3915_v57, %v3827_v15  ;;  %v4096_v46 = vpop.f32.mrf.mxu1 }
 0x5aa   : > { %v4007_v18 = vpop.f32.mrf.mxu0 }
 0x5ab   : > { %17586 = vst [vmem:[#allocation85_spill] sm:$0xff] %v14289_v63  ;;  %4337 = vmatmul.bf16.gmra.mxu2 %v17587_v49  ;;  %v4008_v47 = vadd.f32 %v4007_v18, %v17588_v6  ;;  %4426 = vmatmul.bf16.gmra.mxu3 %v17589_v12 }
 0x5ac   : > { %4604 = vmatmul.bf16.gmra.mxu1 %v17589_v12 }
 0x5ad   : > { %v14295_v8 = vadd.f32 %v4096_v46, %v4008_v47  ;;  %4515 = vmatmul.bf16.gmra.mxu0 %v17587_v49 }
 0x5ae   : > { %v3829_v30 = vpop.f32.mrf.mxu2  ;;  %v3918_v28 = vpop.f32.mrf.mxu3 }
 0x5af   : > { %17590 = vst [vmem:[#allocation64_spill] sm:$0xff] %v14295_v8  ;;  %v3830_v1 = vadd.f32 %v3829_v30, %v17591_v54  ;;  %v17595_v54 = vld [vmem:[#allocation55_spill] sm:$0xff] }
 0x5b1   : > { %v14299_v57 = vadd.f32 %v3918_v28, %v3830_v1  ;;  %v4098_v27 = vpop.f32.mrf.mxu1  ;;  %v17597_v28 = vld [vmem:[#allocation66_spill] sm:$0xff] }
 0x5b2   : > { %v4009_v55 = vpop.f32.mrf.mxu0 }
 0x5b3   : > { %v4010_v15 = vadd.f32 %v4009_v55, %v13835_v43 }
 0x5b5   : > { %v14302_v63 = vadd.f32 %v4098_v27, %v4010_v15 }
 0x5b6   : > { %v3831_v18 = vpop.f32.mrf.mxu2  ;;  %v3920_v17 = vpop.f32.mrf.mxu3 }
 0x5b7   : > { %17592 = vst [vmem:[#allocation65_spill] sm:$0xff] %v14302_v63  ;;  %v3832_v6 = vadd.f32 %v3831_v18, %v13839_v23  ;;  %v17601_v63 = vld [vmem:[#allocation56_spill] sm:$0xff] }
 0x5b9   : > { %v14305_v46 = vadd.f32 %v3920_v17, %v3832_v6  ;;  %v4101_v47 = vpop.f32.mrf.mxu1 }
 0x5ba   : > { %v4012_v8 = vpop.f32.mrf.mxu0 }
 0x5bb   : > { %17593 = vst [vmem:[#allocation86_spill] sm:$0xff] %v14305_v46  ;;  %4342 = vmatmul.bf16.gmra.mxu2 %v17594_v52  ;;  %v4013_v30 = vadd.f32 %v4012_v8, %v13843_v56  ;;  %4431 = vmatmul.bf16.gmra.mxu3 %v17595_v54 }
 0x5bc   : > { %4609 = vmatmul.bf16.gmra.mxu1 %v17595_v54 }
 0x5bd   : > { %v14311_v1 = vadd.f32 %v4101_v47, %v4013_v30  ;;  %4520 = vmatmul.bf16.gmra.mxu0 %v17594_v52 }
 0x5be   : > { %v3834_v43 = vpop.f32.mrf.mxu2  ;;  %v3923_v27 = vpop.f32.mrf.mxu3 }
 0x5bf   : > { %17596 = vst [vmem:[#allocation27_spill] sm:$0xff] %v14311_v1  ;;  %v3835_v23 = vadd.f32 %v3834_v43, %v17597_v28  ;;  %v17602_v28 = vld [vmem:[#allocation28_spill] sm:$0xff] }
 0x5c1   : > { %v14315_v17 = vadd.f32 %v3923_v27, %v3835_v23  ;;  %v4103_v55 = vpop.f32.mrf.mxu1 }
 0x5c2   : > { %v4014_v15 = vpop.f32.mrf.mxu0 }
 0x5c3   : > { %17598 = vst [vmem:[#allocation66_spill] sm:$0xff] %v14315_v17  ;;  %v4015_v18 = vadd.f32 %v4014_v15, %v13855_v37  ;;  %v17605_v15 = vrot.slane %v13205_v61, 2  ;;  %v17613_v17 = vld [vmem:[#allocation29_spill] sm:$0xff] }
 0x5c5   : > { %v14318_v6 = vadd.f32 %v4103_v55, %v4015_v18  ;;  %v17606_v18 = vrot.slane %v13857_v9, 2 }
 0x5c6   : > { %v3836_v56 = vpop.f32.mrf.mxu2  ;;  %v3925_v46 = vpop.f32.mrf.mxu3 }
 0x5c7   : > { %17599 = vst [vmem:[#allocation87_spill] sm:$0xff] %v14318_v6  ;;  %v3837_v8 = vadd.f32 %v3836_v56, %v13861_v31 }
 0x5c9   : > { %v14321_v47 = vadd.f32 %v3925_v46, %v3837_v8  ;;  %v4106_v30 = vpop.f32.mrf.mxu1 }
 0x5ca   : > { %v4017_v1 = vpop.f32.mrf.mxu0 }
 0x5cb   : > { %17600 = vst [vmem:[#allocation88_spill] sm:$0xff] %v14321_v47  ;;  %4347 = vmatmul.bf16.gmra.mxu2 %v17601_v63  ;;  %v4018_v43 = vadd.f32 %v4017_v1, %v13870_v13  ;;  %4436 = vmatmul.bf16.gmra.mxu3 %v17602_v28  ;;  %v17607_v13 = vld [vmem:[#allocation14_spill] sm:$0xff]  ;;  %v3594_v1 = vsel %vm1348_vm2, %v17606_v18, %v17605_v15  ;;  %v17610_v47 = vld [vmem:[#allocation67_spill] sm:$0xff] }
 0x5cc   : > { %4614 = vmatmul.bf16.gmra.mxu1 %v17602_v28  ;;  %v17611_v6 = vrot.slane %v17610_v47, 2  ;;  %vm5465_vm6 = vcmp.lt.s32.totalorder %v17607_v13, 2 }
 0x5cd   : > { %v14327_v23 = vadd.f32 %v4106_v30, %v4018_v43  ;;  %4525 = vmatmul.bf16.gmra.mxu0 %v17601_v63  ;;  %v17608_v43 = vld [vmem:[#allocation31_spill] sm:$0xff] }
 0x5ce   : > { %v3839_v37 = vpop.f32.mrf.mxu2  ;;  %v3928_v27 = vpop.f32.mrf.mxu3 }
 0x5cf   : > { %17603 = vst [vmem:[#allocation89_spill] sm:$0xff] %v14327_v23  ;;  %v3840_v31 = vadd.f32 %v3839_v37, %v13887_v5  ;;  %v17609_v23 = vrot.slane %v17608_v43, 2 }
 0x5d1   : > { %v14331_v46 = vadd.f32 %v3928_v27, %v3840_v31  ;;  %v4108_v55 = vpop.f32.mrf.mxu1  ;;  %v3593_v5 = vsel %vm1348_vm2, %v17611_v6, %v17609_v23 }
 0x5d2   : > { %v4019_v56 = vpop.f32.mrf.mxu0 }
 0x5d3   : > { %17604 = vst [vmem:[#allocation90_spill] sm:$0xff] %v14331_v46  ;;  %v4020_v8 = vadd.f32 %v4019_v56, %v3594_v1 }
 0x5d5   : > { %v14339_v30 = vadd.f32 %v4108_v55, %v4020_v8  ;;  %v17614_v55 = vld [vmem:[#allocation30_spill] sm:$0xff] }
 0x5d6   : > { %v3841_v37 = vpop.f32.mrf.mxu2  ;;  %v3930_v27 = vpop.f32.mrf.mxu3 }
 0x5d7   : > { %v3842_v31 = vadd.f32 %v3841_v37, %v3593_v5 }
 0x5d9   : > { %v14347_v61 = vadd.f32 %v3930_v27, %v3842_v31  ;;  %v4580_v9 = vpop.f32.mrf.mxu1  ;;  %v17615_v27 = vld [vmem:[#allocation68_spill] sm:$0xff] }
 0x5da   : > { %v4491_v46 = vpop.f32.mrf.mxu0 }
 0x5db   : > { %17612 = vst [vmem:[#allocation14_spill] sm:$0xff] %v14347_v61  ;;  %4352 = vmatmul.bf16.gmra.mxu2 %v17613_v17  ;;  %v14350_v15 = vadd.f32 %v4580_v9, %v4491_v46  ;;  %4441 = vmatmul.bf16.gmra.mxu3 %v17614_v55 }
 0x5dc   : > { %4619 = vmatmul.bf16.gmra.mxu1 %v17614_v55 }
 0x5dd   : > { %4530 = vmatmul.bf16.gmra.mxu0 %v17613_v17  ;;  %v17134_v8 = vrot.slane %v14350_v15, 4 }
 0x5de   : > { %v4313_v47 = vpop.f32.mrf.mxu2  ;;  %v4402_v18 = vpop.f32.mrf.mxu3 }
 0x5df   : > { %v14355_v6 = vadd.f32 %v4402_v18, %v4313_v47 }
 0x5e1   : > { %v4582_v23 = vpop.f32.mrf.mxu1  ;;  %v17135_v47 = vrot.slane %v14355_v6, 4 }
 0x5e2   : > { %v4493_v1 = vpop.f32.mrf.mxu0 }
 0x5e3   : > { %v4583_v56 = vadd.f32 %v4582_v23, %v4493_v1 }
 0x5e5   : > { %v4663_v43 = vrot.slane %v4583_v56, 4 }
 0x5e6   : > { %v4315_v5 = vpop.f32.mrf.mxu2  ;;  %v4404_v37 = vpop.f32.mrf.mxu3 }
 0x5e7   : > { %v4785_v46 = vsel %vm2140_vm4, %v17134_v8, %v4663_v43  ;;  %v4405_v31 = vadd.f32 %v4404_v37, %v4315_v5 }
 0x5e8   : > { %v14363_v9 = vadd.f32 %v4785_v46, %v17615_v27 }
 0x5e9   : > { %v4662_v18 = vrot.slane %v4405_v31, 4  ;;  %v4585_v61 = vpop.f32.mrf.mxu1 }
 0x5ea   : > { %17616 = vst [vmem:[#allocation31_spill] sm:$0xff] %v14363_v9  ;;  %v4496_v55 = vpop.f32.mrf.mxu0 }
 0x5eb   : > { %4357 = vmatmul.bf16.gmra.mxu2 %v13229_v42  ;;  %v4784_v23 = vsel %vm2140_vm4, %v17135_v47, %v4662_v18  ;;  %v4586_v1 = vadd.f32 %v4585_v61, %v4496_v55  ;;  %4446 = vmatmul.bf16.gmra.mxu3 %v17515_v48 }
 0x5ec   : > { %4624 = vmatmul.bf16.gmra.mxu1 %v17515_v48  ;;  %v14374_v56 = vadd.f32 %v4784_v23, %v13899_v45  ;;  %v17619_v23 = vld [vmem:[#allocation69_spill] sm:$0xff] }
 0x5ed   : > { %v4665_v5 = vrot.slane %v4586_v1, 4  ;;  %4535 = vmatmul.bf16.gmra.mxu0 %v13229_v42 }
 0x5ee   : > { %17617 = vst [vmem:[#allocation67_spill] sm:$0xff] %v14374_v56  ;;  %v4318_v37 = vpop.f32.mrf.mxu2  ;;  %v4407_v46 = vpop.f32.mrf.mxu3 }
 0x5ef   : > { %v4783_v31 = vsel %vm2140_vm4, %v4663_v43, %v4665_v5  ;;  %v4408_v27 = vadd.f32 %v4407_v46, %v4318_v37  ;;  %v17620_v46 = vld [vmem:[#allocation70_spill] sm:$0xff] }
 0x5f0   : > { %v14380_v8 = vadd.f32 %v4783_v31, %v13902_v14 }
 0x5f1   : > { %v4664_v61 = vrot.slane %v4408_v27, 4  ;;  %v4587_v55 = vpop.f32.mrf.mxu1 }
 0x5f2   : > { %17618 = vst [vmem:[#allocation68_spill] sm:$0xff] %v14380_v8  ;;  %v4498_v47 = vpop.f32.mrf.mxu0 }
 0x5f3   : > { %v4782_v48 = vsel %vm2140_vm4, %v4662_v18, %v4664_v61  ;;  %v4588_v45 = vadd.f32 %v4587_v55, %v4498_v47 }
 0x5f4   : > { %v14385_v1 = vadd.f32 %v4782_v48, %v17619_v23 }
 0x5f5   : > { %v4667_v56 = vrot.slane %v4588_v45, 4 }
 0x5f6   : > { %v4320_v42 = vpop.f32.mrf.mxu2  ;;  %v4409_v9 = vpop.f32.mrf.mxu3 }
 0x5f7   : > { %v4781_v43 = vsel %vm2140_vm4, %v4665_v5, %v4667_v56  ;;  %v4410_v37 = vadd.f32 %v4409_v9, %v4320_v42 }
 0x5f8   : > { %v14390_v14 = vadd.f32 %v4781_v43, %v17620_v46 }
 0x5f9   : > { %v4666_v31 = vrot.slane %v4410_v37, 4  ;;  %v4590_v27 = vpop.f32.mrf.mxu1 }
 0x5fa   : > { %v4501_v8 = vpop.f32.mrf.mxu0 }
 0x5fb   : > { %4362 = vmatmul.bf16.gmra.mxu2 %v17519_v34  ;;  %v4780_v47 = vsel %vm2140_vm4, %v4664_v61, %v4666_v31  ;;  %v4591_v48 = vadd.f32 %v4590_v27, %v4501_v8  ;;  %4451 = vmatmul.bf16.gmra.mxu3 %v17520_v51 }
 0x5fc   : > { %4629 = vmatmul.bf16.gmra.mxu1 %v17520_v51  ;;  %v14398_v18 = vadd.f32 %v4780_v47, %v13915_v0 }
 0x5fd   : > { %v4669_v42 = vrot.slane %v4591_v48, 4  ;;  %4540 = vmatmul.bf16.gmra.mxu0 %v17519_v34 }
 0x5fe   : > { %v4323_v9 = vpop.f32.mrf.mxu2  ;;  %v4412_v5 = vpop.f32.mrf.mxu3 }
 0x5ff   : > { %v4779_v55 = vsel %vm2140_vm4, %v4667_v56, %v4669_v42  ;;  %v4413_v45 = vadd.f32 %v4412_v5, %v4323_v9  ;;  %v17622_v5 = vld [vmem:[#allocation36_spill] sm:$0xff] }
 0x600   : > { %v14404_v23 = vadd.f32 %v4779_v55, %v13918_v60 }
 0x601   : > { %v4668_v8 = vrot.slane %v4413_v45, 4  ;;  %v4592_v61 = vpop.f32.mrf.mxu1 }
 0x602   : > { %17621 = vst [vmem:[#allocation69_spill] sm:$0xff] %v14404_v23  ;;  %v4503_v43 = vpop.f32.mrf.mxu0 }
 0x603   : > { %v4778_v37 = vsel %vm2140_vm4, %v4666_v31, %v4668_v8  ;;  %v4593_v0 = vadd.f32 %v4592_v61, %v4503_v43 }
 0x604   : > { %v14409_v46 = vadd.f32 %v4778_v37, %v13921_v33 }
 0x605   : > { %v4671_v27 = vrot.slane %v4593_v0, 4 }
 0x606   : > { %v4325_v47 = vpop.f32.mrf.mxu2  ;;  %v4414_v48 = vpop.f32.mrf.mxu3 }
 0x607   : > { %v4777_v56 = vsel %vm2140_vm4, %v4669_v42, %v4671_v27  ;;  %v4415_v9 = vadd.f32 %v4414_v48, %v4325_v47  ;;  %v17623_v48 = vld [vmem:[#allocation46_spill] sm:$0xff] }
 0x608   : > { %v14414_v60 = vadd.f32 %v4777_v56, %v17622_v5 }
 0x609   : > { %v4670_v55 = vrot.slane %v4415_v9, 4  ;;  %v4595_v45 = vpop.f32.mrf.mxu1 }
 0x60a   : > { %v4506_v23 = vpop.f32.mrf.mxu0 }
 0x60b   : > { %4367 = vmatmul.bf16.gmra.mxu2 %v13303_v53  ;;  %v4776_v31 = vsel %vm2140_vm4, %v4668_v8, %v4670_v55  ;;  %v4596_v33 = vadd.f32 %v4595_v45, %v4506_v23  ;;  %4456 = vmatmul.bf16.gmra.mxu3 %v17525_v38  ;;  %v9100_v45 = vld [vmem:[%s16980_s3 + $0x370] sm:$0xf] }
 0x60c   : > { %4634 = vmatmul.bf16.gmra.mxu1 %v17525_v38  ;;  %v14422_v61 = vadd.f32 %v4776_v31, %v13931_v58  ;;  %v9738_v31 = vld [vmem:[%s16980_s3 + $0x374] sm:$0xf0] }
 0x60d   : > { %v4673_v42 = vrot.slane %v4596_v33, 4  ;;  %4545 = vmatmul.bf16.gmra.mxu0 %v13303_v53  ;;  %v9101_v33 = vor.u32 %v9738_v31, %v9100_v45  ;;  %v9737_v45 = vld [vmem:[%s16980_s3 + $0x374] sm:$0xf]  ;;  %v9102_v31 = vld [vmem:[%s16980_s3 + $0x378] sm:$0xf0] }
 0x60e   : > { %v4328_v43 = vpop.f32.mrf.mxu2  ;;  %v4417_v37 = vpop.f32.mrf.mxu3 }
 0x60f   : > { %v4775_v0 = vsel %vm2140_vm4, %v4671_v27, %v4673_v42  ;;  %v4418_v47 = vadd.f32 %v4417_v37, %v4328_v43  ;;  %v9164_v27 = vld [vmem:[%s16980_s3 + $0x3f0] sm:$0xf]  ;;  %v9754_v43 = vld [vmem:[%s16980_s3 + $0x3f4] sm:$0xf0]  ;;  %v17625_v37 = vld [vmem:[#allocation34_spill] sm:$0xff]  ;;  %5045 = vmatpush.bf16.msrb.mxu2 %v9101_v33 }
 0x610   : > { %v14428_v56 = vadd.f32 %v4775_v0, %v17623_v48  ;;  %v9165_v48 = vor.u32 %v9754_v43, %v9164_v27  ;;  %v9166_v27 = vld [vmem:[%s16980_s3 + $0x3f8] sm:$0xf0] }
 0x611   : > { %v4672_v23 = vrot.slane %v4418_v47, 4  ;;  %v4597_v8 = vpop.f32.mrf.mxu1 }
 0x612   : > { %17624 = vst [vmem:[#allocation70_spill] sm:$0xff] %v14428_v56  ;;  %v4508_v9 = vpop.f32.mrf.mxu0  ;;  %5134 = vmatpush.bf16.msrb.mxu3 %v9165_v48 }
 0x613   : > { %v4774_v5 = vsel %vm2140_vm4, %v4670_v55, %v4672_v23  ;;  %v4598_v58 = vadd.f32 %v4597_v8, %v4508_v9 }
 0x614   : > { %v14445_v55 = vadd.f32 %v4774_v5, %v17625_v37  ;;  %v9753_v5 = vld [vmem:[%s16980_s3 + $0x3f4] sm:$0xf] }
 0x615   : > { %v4675_v0 = vrot.slane %v4598_v58, 4  ;;  %v9105_v58 = vor.u32 %v9737_v45, %v9102_v31  ;;  %v17629_v45 = vld [vmem:[#allocation40_spill] sm:$0xff] }
 0x616   : > { %17626 = vst [vmem:[#allocation36_spill] sm:$0xff] %v14445_v55  ;;  %v4330_v47 = vpop.f32.mrf.mxu2  ;;  %v4419_v8 = vpop.f32.mrf.mxu3 }
 0x617   : > { %v4773_v9 = vsel %vm2140_vm4, %v4673_v42, %v4675_v0  ;;  %v4420_v56 = vadd.f32 %v4419_v8, %v4330_v47  ;;  %v17627_v42 = vld [vmem:[#allocation42_spill] sm:$0xff]  ;;  %v9169_v47 = vor.u32 %v9753_v5, %v9166_v27  ;;  %5223 = vmatpush.bf16.msra.mxu0 %v9105_v58 }
 0x618   : > { %v14462_v33 = vadd.f32 %v4773_v9, %v17627_v42  ;;  %v17631_v42 = vld [vmem:[#allocation39_spill] sm:$0xff] }
 0x619   : > { %v4674_v43 = vrot.slane %v4420_v56, 4  ;;  %v4600_v37 = vpop.f32.mrf.mxu1  ;;  %5312 = vmatpush.bf16.msra.mxu1 %v9169_v47  ;;  %v9092_v47 = vld [vmem:[%s16980_s3 + $0x360] sm:$0xf] }
 0x61a   : > { %17628 = vst [vmem:[#allocation46_spill] sm:$0xff] %v14462_v33  ;;  %v4511_v48 = vpop.f32.mrf.mxu0 }
 0x61b   : > { %4372 = vmatmul.bf16.gmra.mxu2 %v17532_v26  ;;  %v4772_v8 = vsel %vm2140_vm4, %v4672_v23, %v4674_v43  ;;  %v4601_v55 = vadd.f32 %v4600_v37, %v4511_v48  ;;  %4461 = vmatmul.bf16.gmra.mxu3 %v17533_v36 }
 0x61c   : > { %4639 = vmatmul.bf16.gmra.mxu1 %v17533_v36  ;;  %v14470_v31 = vadd.f32 %v4772_v8, %v17629_v45 }
 0x61d   : > { %v4677_v9 = vrot.slane %v4601_v55, 4  ;;  %4550 = vmatmul.bf16.gmra.mxu0 %v17532_v26  ;;  %v9736_v55 = vld [vmem:[%s16980_s3 + $0x364] sm:$0xf0] }
 0x61e   : > { %17630 = vst [vmem:[#allocation34_spill] sm:$0xff] %v14470_v31  ;;  %v4333_v56 = vpop.f32.mrf.mxu2  ;;  %v4422_v5 = vpop.f32.mrf.mxu3  ;;  %v9093_v45 = vor.u32 %v9736_v55, %v9092_v47  ;;  %v9094_v47 = vld [vmem:[%s16980_s3 + $0x368] sm:$0xf0]  ;;  %v9751_v55 = vld [vmem:[%s16980_s3 + $0x3e4] sm:$0xf] }
 0x61f   : > { %v4771_v58 = vsel %vm2140_vm4, %v4675_v0, %v4677_v9  ;;  %v4423_v27 = vadd.f32 %v4422_v5, %v4333_v56  ;;  %v9156_v0 = vld [vmem:[%s16980_s3 + $0x3e0] sm:$0xf]  ;;  %v9752_v56 = vld [vmem:[%s16980_s3 + $0x3e4] sm:$0xf0]  ;;  %v9735_v5 = vld [vmem:[%s16980_s3 + $0x364] sm:$0xf] }
 0x620   : > { %v14476_v23 = vadd.f32 %v4771_v58, %v17631_v42  ;;  %v9157_v42 = vor.u32 %v9752_v56, %v9156_v0  ;;  %5046 = vmatpush.bf16.msrb.mxu2 %v9093_v45  ;;  %v9097_v31 = vor.u32 %v9735_v5, %v9094_v47  ;;  %v17633_v26 = vld [vmem:[#allocation71_spill] sm:$0xff]  ;;  %v9084_v0 = vld [vmem:[%s16980_s3 + $0x350] sm:$0xf]  ;;  %v9734_v56 = vld [vmem:[%s16980_s3 + $0x354] sm:$0xf0] }
 0x621   : > { %v4676_v37 = vrot.slane %v4423_v27, 4  ;;  %v4602_v48 = vpop.f32.mrf.mxu1  ;;  %v9085_v45 = vor.u32 %v9734_v56, %v9084_v0  ;;  %v9733_v5 = vld [vmem:[%s16980_s3 + $0x354] sm:$0xf]  ;;  %v9150_v47 = vld [vmem:[%s16980_s3 + $0x3d8] sm:$0xf0] }
 0x622   : > { %17632 = vst [vmem:[#allocation42_spill] sm:$0xff] %v14476_v23  ;;  %v4513_v8 = vpop.f32.mrf.mxu0  ;;  %v9158_v23 = vld [vmem:[%s16980_s3 + $0x3e8] sm:$0xf0]  ;;  %5135 = vmatpush.bf16.msrb.mxu3 %v9157_v42  ;;  %5224 = vmatpush.bf16.msra.mxu0 %v9097_v31  ;;  %v9749_v42 = vld [vmem:[%s16980_s3 + $0x3d4] sm:$0xf] }
 0x623   : > { %v4770_v58 = vsel %vm2140_vm4, %v4674_v43, %v4676_v37  ;;  %v14495_v27 = vadd.f32 %v4602_v48, %v4513_v8  ;;  %v9161_v36 = vor.u32 %v9751_v55, %v9158_v23  ;;  %v9750_v23 = vld [vmem:[%s16980_s3 + $0x3d4] sm:$0xf0]  ;;  %v9153_v0 = vor.u32 %v9749_v42, %v9150_v47  ;;  %v17635_v56 = vld [vmem:[#allocation72_spill] sm:$0xff]  ;;  %v9078_v47 = vld [vmem:[%s16980_s3 + $0x348] sm:$0xf0] }
 0x624   : > { %v14507_v43 = vadd.f32 %v4770_v58, %v17633_v26  ;;  %v9148_v26 = vld [vmem:[%s16980_s3 + $0x3d0] sm:$0xf]  ;;  %5047 = vmatpush.bf16.msrb.mxu2 %v9085_v45 }
 0x625   : > { %v4679_v48 = vrot.slane %v14495_v27, 4  ;;  %5313 = vmatpush.bf16.msra.mxu1 %v9161_v36  ;;  %v9149_v31 = vor.u32 %v9750_v23, %v9148_v26  ;;  %v9086_v36 = vld [vmem:[%s16980_s3 + $0x358] sm:$0xf0]  ;;  %v9076_v26 = vld [vmem:[%s16980_s3 + $0x340] sm:$0xf] }
 0x626   : > { %17634 = vst [vmem:[#allocation40_spill] sm:$0xff] %v14507_v43  ;;  %v4335_v8 = vpop.f32.mrf.mxu2  ;;  %v4424_v33 = vpop.f32.mrf.mxu3  ;;  %v9089_v55 = vor.u32 %v9733_v5, %v9086_v36  ;;  %v9732_v23 = vld [vmem:[%s16980_s3 + $0x344] sm:$0xf0]  ;;  %v9140_v5 = vld [vmem:[%s16980_s3 + $0x3c0] sm:$0xf] }
 0x627   : > { %v4769_v58 = vsel %vm2140_vm4, %v4677_v9, %v4679_v48  ;;  %v14527_v27 = vadd.f32 %v4424_v33, %v4335_v8  ;;  %5136 = vmatpush.bf16.msrb.mxu3 %v9149_v31  ;;  %v9077_v45 = vor.u32 %v9732_v23, %v9076_v26 }
 0x628   : > { %v14539_v9 = vadd.f32 %v4769_v58, %v17635_v56  ;;  %5225 = vmatpush.bf16.msra.mxu0 %v9089_v55  ;;  %v9748_v58 = vld [vmem:[%s16980_s3 + $0x3c4] sm:$0xf0]  ;;  %v9747_v55 = vld [vmem:[%s16980_s3 + $0x3c4] sm:$0xf]  ;;  %v9142_v56 = vld [vmem:[%s16980_s3 + $0x3c8] sm:$0xf0] }
 0x629   : > { %v4678_v33 = vrot.slane %v14527_v27, 4  ;;  %v4605_v8 = vpop.f32.mrf.mxu1  ;;  %v9731_v27 = vld [vmem:[%s16980_s3 + $0x344] sm:$0xf]  ;;  %5314 = vmatpush.bf16.msra.mxu1 %v9153_v0  ;;  %v9141_v42 = vor.u32 %v9748_v58, %v9140_v5  ;;  %5048 = vmatpush.bf16.msrb.mxu2 %v9077_v45  ;;  %v9068_v5 = vld [vmem:[%s16980_s3 + $0x330] sm:$0xf] }
 0x62a   : > { %v4516_v43 = vpop.f32.mrf.mxu0  ;;  %v9730_v58 = vld [vmem:[%s16980_s3 + $0x334] sm:$0xf0] }
 0x62b   : > { %4377 = vmatmul.bf16.gmra.mxu2 %v17538_v16  ;;  %v4768_v31 = vsel %vm2140_vm4, %v4676_v37, %v4678_v33  ;;  %v14560_v36 = vadd.f32 %v4605_v8, %v4516_v43  ;;  %4466 = vmatmul.bf16.gmra.mxu3 %v17539_v11  ;;  %v9081_v37 = vor.u32 %v9731_v27, %v9078_v47  ;;  %v17636_v8 = vld [vmem:[#allocation49_spill] sm:$0xff] }
 0x62c   : > { %4644 = vmatmul.bf16.gmra.mxu1 %v17539_v11  ;;  %v9145_v43 = vor.u32 %v9747_v55, %v9142_v56  ;;  %v14574_v0 = vadd.f32 %v4768_v31, %v17636_v8  ;;  %5137 = vmatpush.bf16.msrb.mxu3 %v9141_v42  ;;  %v9069_v27 = vor.u32 %v9730_v58, %v9068_v5  ;;  %v9132_v31 = vld [vmem:[%s16980_s3 + $0x3b0] sm:$0xf]  ;;  %v9729_v42 = vld [vmem:[%s16980_s3 + $0x334] sm:$0xf]  ;;  %v9134_v5 = vld [vmem:[%s16980_s3 + $0x3b8] sm:$0xf0] }
 0x62d   : > { %v4681_v26 = vrot.slane %v14560_v36, 4  ;;  %4555 = vmatmul.bf16.gmra.mxu0 %v17538_v16  ;;  %v9746_v36 = vld [vmem:[%s16980_s3 + $0x3b4] sm:$0xf0]  ;;  %v9745_v8 = vld [vmem:[%s16980_s3 + $0x3b4] sm:$0xf] }
 0x62e   : > { %17637 = vst [vmem:[#allocation39_spill] sm:$0xff] %v14574_v0  ;;  %v4338_v23 = vpop.f32.mrf.mxu2  ;;  %v4427_v45 = vpop.f32.mrf.mxu3  ;;  %5226 = vmatpush.bf16.msra.mxu0 %v9081_v37  ;;  %5315 = vmatpush.bf16.msra.mxu1 %v9145_v43  ;;  %v9133_v56 = vor.u32 %v9746_v36, %v9132_v31  ;;  %v9070_v37 = vld [vmem:[%s16980_s3 + $0x338] sm:$0xf0]  ;;  %v9137_v0 = vor.u32 %v9745_v8, %v9134_v5  ;;  %v9728_v31 = vld [vmem:[%s16980_s3 + $0x324] sm:$0xf0] }
 0x62f   : > { %v4767_v47 = vsel %vm2140_vm4, %v4679_v48, %v4681_v26  ;;  %v14595_v55 = vadd.f32 %v4427_v45, %v4338_v23  ;;  %5049 = vmatpush.bf16.msrb.mxu2 %v9069_v27  ;;  %v9073_v58 = vor.u32 %v9729_v42, %v9070_v37  ;;  %v9060_v45 = vld [vmem:[%s16980_s3 + $0x320] sm:$0xf]  ;;  %v9744_v42 = vld [vmem:[%s16980_s3 + $0x3a4] sm:$0xf0]  ;;  %v9062_v8 = vld [vmem:[%s16980_s3 + $0x328] sm:$0xf0] }
 0x630   : > { %v14607_v48 = vadd.f32 %v4767_v47, %v14014_v39  ;;  %5138 = vmatpush.bf16.msrb.mxu3 %v9133_v56  ;;  %v9061_v27 = vor.u32 %v9728_v31, %v9060_v45  ;;  %v9124_v39 = vld [vmem:[%s16980_s3 + $0x3a0] sm:$0xf]  ;;  %v9727_v47 = vld [vmem:[%s16980_s3 + $0x324] sm:$0xf] }
 0x631   : > { %v4680_v43 = vrot.slane %v14595_v55, 4  ;;  %v4607_v23 = vpop.f32.mrf.mxu1  ;;  %v9125_v37 = vor.u32 %v9744_v42, %v9124_v39  ;;  %v9743_v5 = vld [vmem:[%s16980_s3 + $0x3a4] sm:$0xf]  ;;  %v9065_v45 = vor.u32 %v9727_v47, %v9062_v8  ;;  %v9052_v39 = vld [vmem:[%s16980_s3 + $0x310] sm:$0xf] }
 0x632   : > { %17638 = vst [vmem:[#allocation71_spill] sm:$0xff] %v14607_v48  ;;  %v4518_v36 = vpop.f32.mrf.mxu0  ;;  %5227 = vmatpush.bf16.msra.mxu0 %v9073_v58  ;;  %5316 = vmatpush.bf16.msra.mxu1 %v9137_v0  ;;  %v9126_v58 = vld [vmem:[%s16980_s3 + $0x3a8] sm:$0xf0]  ;;  %v9726_v42 = vld [vmem:[%s16980_s3 + $0x314] sm:$0xf0] }
 0x633   : > { %v4766_v55 = vsel %vm2140_vm4, %v4678_v33, %v4680_v43  ;;  %v14627_v56 = vadd.f32 %v4607_v23, %v4518_v36  ;;  %5050 = vmatpush.bf16.msrb.mxu2 %v9061_v27  ;;  %v9129_v31 = vor.u32 %v9743_v5, %v9126_v58  ;;  %v17639_v33 = vld [vmem:[#allocation73_spill] sm:$0xff]  ;;  %v9053_v27 = vor.u32 %v9726_v42, %v9052_v39  ;;  %v9116_v47 = vld [vmem:[%s16980_s3 + $0x390] sm:$0xf] }
 0x634   : > { %v14639_v23 = vadd.f32 %v4766_v55, %v17639_v33  ;;  %5139 = vmatpush.bf16.msrb.mxu3 %v9125_v37  ;;  %v9742_v55 = vld [vmem:[%s16980_s3 + $0x394] sm:$0xf0]  ;;  %v9054_v58 = vld [vmem:[%s16980_s3 + $0x318] sm:$0xf0] }
 0x635   : > { %v4683_v0 = vrot.slane %v14627_v56, 4  ;;  %v9725_v56 = vld [vmem:[%s16980_s3 + $0x314] sm:$0xf]  ;;  %v9117_v5 = vor.u32 %v9742_v55, %v9116_v47  ;;  %v9118_v33 = vld [vmem:[%s16980_s3 + $0x398] sm:$0xf0] }
 0x636   : > { %v4340_v36 = vpop.f32.mrf.mxu2  ;;  %v4429_v48 = vpop.f32.mrf.mxu3  ;;  %5228 = vmatpush.bf16.msra.mxu0 %v9065_v45  ;;  %5317 = vmatpush.bf16.msra.mxu1 %v9129_v31  ;;  %v9741_v45 = vld [vmem:[%s16980_s3 + $0x394] sm:$0xf]  ;;  %v9057_v39 = vor.u32 %v9725_v56, %v9054_v58  ;;  %v9724_v47 = vld [vmem:[%s16980_s3 + $0x304] sm:$0xf0] }
 0x637   : > { %v4765_v37 = vsel %vm2140_vm4, %v4681_v26, %v4683_v0  ;;  %v4430_v8 = vadd.f32 %v4429_v48, %v4340_v36  ;;  %5051 = vmatpush.bf16.msrb.mxu2 %v9053_v27  ;;  %v9121_v42 = vor.u32 %v9741_v45, %v9118_v33  ;;  %v9044_v36 = vld [vmem:[%s16980_s3 + $0x300] sm:$0xf]  ;;  %v9740_v56 = vld [vmem:[%s16980_s3 + $0x384] sm:$0xf0]  ;;  %v9046_v45 = vld [vmem:[%s16980_s3 + $0x308] sm:$0xf0] }
 0x638   : > { %v14669_v26 = vadd.f32 %v4765_v37, %v14071_v10  ;;  %5140 = vmatpush.bf16.msrb.mxu3 %v9117_v5  ;;  %v9045_v27 = vor.u32 %v9724_v47, %v9044_v36  ;;  %v9108_v10 = vld [vmem:[%s16980_s3 + $0x380] sm:$0xf]  ;;  %v9723_v37 = vld [vmem:[%s16980_s3 + $0x304] sm:$0xf] }
 0x639   : > { %v4682_v48 = vrot.slane %v4430_v8, 4  ;;  %v4610_v31 = vpop.f32.mrf.mxu1  ;;  %v9109_v58 = vor.u32 %v9740_v56, %v9108_v10  ;;  %v9739_v33 = vld [vmem:[%s16980_s3 + $0x384] sm:$0xf] }
 0x63a   : > { %17640 = vst [vmem:[#allocation72_spill] sm:$0xff] %v14669_v26  ;;  %v4521_v55 = vpop.f32.mrf.mxu0  ;;  %5229 = vmatpush.bf16.msra.mxu0 %v9057_v39  ;;  %5318 = vmatpush.bf16.msra.mxu1 %v9121_v42  ;;  %v9110_v39 = vld [vmem:[%s16980_s3 + $0x388] sm:$0xf0]  ;;  %v17641_v36 = vld [vmem:[#allocation74_spill] sm:$0xff] }
 0x63b   : > { %4382 = vmatmul.bf16.gmra.mxu2 %v13617_v3  ;;  %v4764_v8 = vsel %vm2140_vm4, %v4680_v43, %v4682_v48  ;;  %v4611_v5 = vadd.f32 %v4610_v31, %v4521_v55  ;;  %4471 = vmatmul.bf16.gmra.mxu3 %v13619_v24  ;;  %v9049_v43 = vor.u32 %v9723_v37, %v9046_v45 }
 0x63c   : > { %4649 = vmatmul.bf16.gmra.mxu1 %v13619_v24  ;;  %5052 = vmatpush.bf16.msrb.mxu2 %v9045_v27  ;;  %v9113_v31 = vor.u32 %v9739_v33, %v9110_v39  ;;  %v14701_v42 = vadd.f32 %v4764_v8, %v17641_v36  ;;  %v17642_v33 = vld [vmem:[#allocation75_spill] sm:$0xff] }
 0x63d   : > { %v4685_v47 = vrot.slane %v4611_v5, 4  ;;  %4560 = vmatmul.bf16.gmra.mxu0 %v13617_v3  ;;  %5141 = vmatpush.bf16.msrb.mxu3 %v9109_v58 }
 0x63e   : > { %v4343_v55 = vpop.f32.mrf.mxu2  ;;  %v4432_v10 = vpop.f32.mrf.mxu3  ;;  %5230 = vmatpush.bf16.msra.mxu0 %v9049_v43  ;;  %5319 = vmatpush.bf16.msra.mxu1 %v9113_v31 }
 0x63f   : > { %v4763_v56 = vsel %vm2140_vm4, %v4683_v0, %v4685_v47  ;;  %v4433_v26 = vadd.f32 %v4432_v10, %v4343_v55 }
 0x640   : > { %v14707_v24 = vadd.f32 %v4763_v56, %v14126_v41 }
 0x641   : > { %v4684_v27 = vrot.slane %v4433_v26, 4  ;;  %v4612_v37 = vpop.f32.mrf.mxu1 }
 0x642   : > { %v4523_v45 = vpop.f32.mrf.mxu0 }
 0x643   : > { %v4762_v8 = vsel %vm2140_vm4, %v4682_v48, %v4684_v27  ;;  %v4613_v5 = vadd.f32 %v4612_v37, %v4523_v45 }
 0x644   : > { %v14712_v39 = vadd.f32 %v4762_v8, %v17642_v33 }
 0x645   : > { %v4687_v58 = vrot.slane %v4613_v5, 4 }
 0x646   : > { %v4345_v43 = vpop.f32.mrf.mxu2  ;;  %v4434_v36 = vpop.f32.mrf.mxu3 }
 0x647   : > { %v4761_v0 = vsel %vm2140_vm4, %v4685_v47, %v4687_v58  ;;  %v4435_v31 = vadd.f32 %v4434_v36, %v4345_v43 }
 0x648   : > { %v14717_v41 = vadd.f32 %v4761_v0, %v14183_v62 }
 0x649   : > { %v4686_v26 = vrot.slane %v4435_v31, 4  ;;  %v4615_v55 = vpop.f32.mrf.mxu1 }
 0x64a   : > { %v4526_v10 = vpop.f32.mrf.mxu0 }
 0x64b   : > { %4387 = vmatmul.bf16.gmra.mxu2 %v13681_v44  ;;  %v4760_v48 = vsel %vm2140_vm4, %v4684_v27, %v4686_v26  ;;  %v4616_v56 = vadd.f32 %v4615_v55, %v4526_v10  ;;  %4476 = vmatmul.bf16.gmra.mxu3 %v13683_v25 }
 0x64c   : > { %4654 = vmatmul.bf16.gmra.mxu1 %v13683_v25  ;;  %v14725_v37 = vadd.f32 %v4760_v48, %v14187_v32 }
 0x64d   : > { %v4689_v47 = vrot.slane %v4616_v56, 4  ;;  %4565 = vmatmul.bf16.gmra.mxu0 %v13681_v44 }
 0x64e   : > { %v4348_v62 = vpop.f32.mrf.mxu2  ;;  %v4437_v45 = vpop.f32.mrf.mxu3 }
 0x64f   : > { %v4759_v8 = vsel %vm2140_vm4, %v4687_v58, %v4689_v47  ;;  %v4438_v5 = vadd.f32 %v4437_v45, %v4348_v62 }
 0x650   : > { %v14731_v33 = vadd.f32 %v4759_v8, %v14190_v35 }
 0x651   : > { %v4688_v27 = vrot.slane %v4438_v5, 4  ;;  %v4617_v43 = vpop.f32.mrf.mxu1  ;;  %v17643_v5 = vld [vmem:[#allocation76_spill] sm:$0xff] }
 0x652   : > { %v4528_v36 = vpop.f32.mrf.mxu0 }
 0x653   : > { %v4758_v0 = vsel %vm2140_vm4, %v4686_v26, %v4688_v27  ;;  %v4618_v32 = vadd.f32 %v4617_v43, %v4528_v36 }
 0x654   : > { %v14736_v31 = vadd.f32 %v4758_v0, %v14193_v59 }
 0x655   : > { %v4691_v55 = vrot.slane %v4618_v32, 4 }
 0x656   : > { %v4350_v10 = vpop.f32.mrf.mxu2  ;;  %v4439_v48 = vpop.f32.mrf.mxu3 }
 0x657   : > { %v4757_v58 = vsel %vm2140_vm4, %v4689_v47, %v4691_v55  ;;  %v4440_v56 = vadd.f32 %v4439_v48, %v4350_v10  ;;  %v17645_v10 = vld [vmem:[#allocation77_spill] sm:$0xff] }
 0x658   : > { %v14741_v35 = vadd.f32 %v4757_v58, %v14199_v40 }
 0x659   : > { %v4690_v62 = vrot.slane %v4440_v56, 4  ;;  %v4620_v45 = vpop.f32.mrf.mxu1 }
 0x65a   : > { %v4531_v8 = vpop.f32.mrf.mxu0 }
 0x65b   : > { %5053 = vmatmul.bf16.vlgmr.msrb.gmra.mxu2 %v17545_v29  ;;  %v4756_v26 = vsel %vm2140_vm4, %v4688_v27, %v4690_v62  ;;  %v4621_v59 = vadd.f32 %v4620_v45, %v4531_v8  ;;  %5142 = vmatmul.bf16.vlgmr.msrb.gmra.mxu3 %v17547_v22 }
 0x65c   : > { %5320 = vmatmul.bf16.vlgmr.msra.gmra.mxu1 %v17547_v22  ;;  %v14749_v43 = vadd.f32 %v4756_v26, %v17643_v5  ;;  %v17647_v26 = vld [vmem:[#allocation78_spill] sm:$0xff] }
 0x65d   : > { %v4693_v47 = vrot.slane %v4621_v59, 4  ;;  %5231 = vmatmul.bf16.vlgmr.msra.gmra.mxu0 %v17545_v29 }
 0x65e   : > { %17644 = vst [vmem:[#allocation49_spill] sm:$0xff] %v14749_v43  ;;  %v4353_v40 = vpop.f32.mrf.mxu2  ;;  %v4442_v36 = vpop.f32.mrf.mxu3 }
 0x65f   : > { %v4755_v0 = vsel %vm2140_vm4, %v4691_v55, %v4693_v47  ;;  %v4443_v32 = vadd.f32 %v4442_v36, %v4353_v40  ;;  %v17648_v36 = vld [vmem:[#allocation19_spill] sm:$0xff] }
 0x660   : > { %v14755_v48 = vadd.f32 %v4755_v0, %v17645_v10 }
 0x661   : > { %v4692_v27 = vrot.slane %v4443_v32, 4  ;;  %v4622_v58 = vpop.f32.mrf.mxu1 }
 0x662   : > { %17646 = vst [vmem:[#allocation73_spill] sm:$0xff] %v14755_v48  ;;  %v4533_v56 = vpop.f32.mrf.mxu0 }
 0x663   : > { %v4754_v45 = vsel %vm2140_vm4, %v4690_v62, %v4692_v27  ;;  %v4623_v8 = vadd.f32 %v4622_v58, %v4533_v56  ;;  %v17650_v56 = vld [vmem:[#allocation51_spill] sm:$0xff] }
 0x664   : > { %v14760_v59 = vadd.f32 %v4754_v45, %v17647_v26  ;;  %v17651_v45 = vld [vmem:[#allocation57_spill] sm:$0xff] }
 0x665   : > { %v4695_v5 = vrot.slane %v4623_v8, 4 }
 0x666   : > { %v4355_v43 = vpop.f32.mrf.mxu2  ;;  %v4444_v22 = vpop.f32.mrf.mxu3 }
 0x667   : > { %v4753_v55 = vsel %vm2140_vm4, %v4693_v47, %v4695_v5  ;;  %v4445_v40 = vadd.f32 %v4444_v22, %v4355_v43 }
 0x668   : > { %v14765_v0 = vadd.f32 %v4753_v55, %v17648_v36 }
 0x669   : > { %v4694_v32 = vrot.slane %v4445_v40, 4  ;;  %v4625_v10 = vpop.f32.mrf.mxu1  ;;  %v17653_v40 = vld [vmem:[#allocation60_spill] sm:$0xff] }
 0x66a   : > { %17649 = vst [vmem:[#allocation74_spill] sm:$0xff] %v14765_v0  ;;  %v4536_v48 = vpop.f32.mrf.mxu0 }
 0x66b   : > { %5058 = vmatmul.bf16.gmra.mxu2 %v17554_v20  ;;  %v4752_v62 = vsel %vm2140_vm4, %v4692_v27, %v4694_v32  ;;  %v4626_v58 = vadd.f32 %v4625_v10, %v4536_v48  ;;  %5147 = vmatmul.bf16.gmra.mxu3 %v17650_v56 }
 0x66c   : > { %5325 = vmatmul.bf16.gmra.mxu1 %v17650_v56  ;;  %v14773_v8 = vadd.f32 %v4752_v62, %v17651_v45  ;;  %v17655_v45 = vld [vmem:[#allocation58_spill] sm:$0xff] }
 0x66d   : > { %v4697_v22 = vrot.slane %v4626_v58, 4  ;;  %5236 = vmatmul.bf16.gmra.mxu0 %v17554_v20 }
 0x66e   : > { %17652 = vst [vmem:[#allocation75_spill] sm:$0xff] %v14773_v8  ;;  %v4358_v43 = vpop.f32.mrf.mxu2  ;;  %v4447_v47 = vpop.f32.mrf.mxu3 }
 0x66f   : > { %v4751_v26 = vsel %vm2140_vm4, %v4695_v5, %v4697_v22  ;;  %v4448_v55 = vadd.f32 %v4447_v47, %v4358_v43  ;;  %v17656_v47 = vld [vmem:[#allocation44_spill] sm:$0xff] }
 0x670   : > { %v14779_v36 = vadd.f32 %v4751_v26, %v17653_v40 }
 0x671   : > { %v4696_v48 = vrot.slane %v4448_v55, 4  ;;  %v4627_v27 = vpop.f32.mrf.mxu1 }
 0x672   : > { %17654 = vst [vmem:[#allocation76_spill] sm:$0xff] %v14779_v36  ;;  %v4538_v10 = vpop.f32.mrf.mxu0 }
 0x673   : > { %v4750_v56 = vsel %vm2140_vm4, %v4694_v32, %v4696_v48  ;;  %v4628_v62 = vadd.f32 %v4627_v27, %v4538_v10  ;;  %v17657_v27 = vld [vmem:[#allocation45_spill] sm:$0xff] }
 0x674   : > { %v14784_v58 = vadd.f32 %v4750_v56, %v17655_v45 }
 0x675   : > { %v4699_v8 = vrot.slane %v4628_v62, 4 }
 0x676   : > { %v4360_v20 = vpop.f32.mrf.mxu2  ;;  %v4449_v0 = vpop.f32.mrf.mxu3 }
 0x677   : > { %v4749_v5 = vsel %vm2140_vm4, %v4697_v22, %v4699_v8  ;;  %v4450_v43 = vadd.f32 %v4449_v0, %v4360_v20 }
 0x678   : > { %v14789_v26 = vadd.f32 %v4749_v5, %v17656_v47  ;;  %v17659_v5 = vld [vmem:[#allocation61_spill] sm:$0xff] }
 0x679   : > { %v4698_v55 = vrot.slane %v4450_v43, 4  ;;  %v4630_v40 = vpop.f32.mrf.mxu1 }
 0x67a   : > { %v4541_v36 = vpop.f32.mrf.mxu0 }
 0x67b   : > { %5063 = vmatmul.bf16.gmra.mxu2 %v17563_v19  ;;  %v4748_v32 = vsel %vm2140_vm4, %v4696_v48, %v4698_v55  ;;  %v4631_v56 = vadd.f32 %v4630_v40, %v4541_v36  ;;  %5152 = vmatmul.bf16.gmra.mxu3 %v17565_v7 }
 0x67c   : > { %5330 = vmatmul.bf16.gmra.mxu1 %v17565_v7  ;;  %v14797_v10 = vadd.f32 %v4748_v32, %v17657_v27  ;;  %v17661_v27 = vld [vmem:[#allocation79_spill] sm:$0xff] }
 0x67d   : > { %v4701_v20 = vrot.slane %v4631_v56, 4  ;;  %5241 = vmatmul.bf16.gmra.mxu0 %v17563_v19 }
 0x67e   : > { %17658 = vst [vmem:[#allocation77_spill] sm:$0xff] %v14797_v10  ;;  %v4363_v0 = vpop.f32.mrf.mxu2  ;;  %v4452_v22 = vpop.f32.mrf.mxu3 }
 0x67f   : > { %v4747_v62 = vsel %vm2140_vm4, %v4699_v8, %v4701_v20  ;;  %v4453_v45 = vadd.f32 %v4452_v22, %v4363_v0  ;;  %v17662_v22 = vld [vmem:[#allocation15_spill] sm:$0xff] }
 0x680   : > { %v14803_v43 = vadd.f32 %v4747_v62, %v17659_v5 }
 0x681   : > { %v4700_v36 = vrot.slane %v4453_v45, 4  ;;  %v4632_v48 = vpop.f32.mrf.mxu1 }
 0x682   : > { %17660 = vst [vmem:[#allocation78_spill] sm:$0xff] %v14803_v43  ;;  %v4543_v47 = vpop.f32.mrf.mxu0 }
 0x683   : > { %v4746_v40 = vsel %vm2140_vm4, %v4698_v55, %v4700_v36  ;;  %v4633_v32 = vadd.f32 %v4632_v48, %v4543_v47  ;;  %v17663_v47 = vld [vmem:[#allocation62_spill] sm:$0xff] }
 0x684   : > { %v14808_v56 = vadd.f32 %v4746_v40, %v17661_v27 }
 0x685   : > { %v4703_v10 = vrot.slane %v4633_v32, 4 }
 0x686   : > { %v4365_v7 = vpop.f32.mrf.mxu2  ;;  %v4454_v19 = vpop.f32.mrf.mxu3 }
 0x687   : > { %v4745_v8 = vsel %vm2140_vm4, %v4701_v20, %v4703_v10  ;;  %v4455_v0 = vadd.f32 %v4454_v19, %v4365_v7 }
 0x688   : > { %v14813_v62 = vadd.f32 %v4745_v8, %v17662_v22  ;;  %v17665_v8 = vld [vmem:[#allocation80_spill] sm:$0xff] }
 0x689   : > { %v4702_v45 = vrot.slane %v4455_v0, 4  ;;  %v4635_v5 = vpop.f32.mrf.mxu1 }
 0x68a   : > { %v4546_v43 = vpop.f32.mrf.mxu0 }
 0x68b   : > { %5068 = vmatmul.bf16.gmra.mxu2 %v17571_v2  ;;  %v4744_v55 = vsel %vm2140_vm4, %v4700_v36, %v4702_v45  ;;  %v4636_v48 = vadd.f32 %v4635_v5, %v4546_v43  ;;  %5157 = vmatmul.bf16.gmra.mxu3 %v17573_v4 }
 0x68c   : > { %5335 = vmatmul.bf16.gmra.mxu1 %v17573_v4  ;;  %v14821_v40 = vadd.f32 %v4744_v55, %v17663_v47  ;;  %v17667_v47 = vld [vmem:[#allocation81_spill] sm:$0xff] }
 0x68d   : > { %v4705_v19 = vrot.slane %v4636_v48, 4  ;;  %5246 = vmatmul.bf16.gmra.mxu0 %v17571_v2 }
 0x68e   : > { %17664 = vst [vmem:[#allocation19_spill] sm:$0xff] %v14821_v40  ;;  %v4368_v7 = vpop.f32.mrf.mxu2  ;;  %v4457_v20 = vpop.f32.mrf.mxu3 }
 0x68f   : > { %v4743_v32 = vsel %vm2140_vm4, %v4703_v10, %v4705_v19  ;;  %v4458_v27 = vadd.f32 %v4457_v20, %v4368_v7  ;;  %v17668_v20 = vld [vmem:[#allocation63_spill] sm:$0xff] }
 0x690   : > { %v14827_v0 = vadd.f32 %v4743_v32, %v17665_v8 }
 0x691   : > { %v4704_v43 = vrot.slane %v4458_v27, 4  ;;  %v4637_v36 = vpop.f32.mrf.mxu1 }
 0x692   : > { %17666 = vst [vmem:[#allocation57_spill] sm:$0xff] %v14827_v0  ;;  %v4548_v22 = vpop.f32.mrf.mxu0 }
 0x693   : > { %v4742_v5 = vsel %vm2140_vm4, %v4702_v45, %v4704_v43  ;;  %v4638_v55 = vadd.f32 %v4637_v36, %v4548_v22  ;;  %v17669_v22 = vld [vmem:[#allocation18_spill] sm:$0xff] }
 0x694   : > { %v14832_v48 = vadd.f32 %v4742_v5, %v17667_v47 }
 0x695   : > { %v4707_v40 = vrot.slane %v4638_v55, 4 }
 0x696   : > { %v4370_v4 = vpop.f32.mrf.mxu2  ;;  %v4459_v2 = vpop.f32.mrf.mxu3 }
 0x697   : > { %v4741_v10 = vsel %vm2140_vm4, %v4705_v19, %v4707_v40  ;;  %v4460_v7 = vadd.f32 %v4459_v2, %v4370_v4 }
 0x698   : > { %v14837_v32 = vadd.f32 %v4741_v10, %v17668_v20  ;;  %v17671_v10 = vld [vmem:[#allocation82_spill] sm:$0xff] }
 0x699   : > { %v4706_v27 = vrot.slane %v4460_v7, 4  ;;  %v4640_v8 = vpop.f32.mrf.mxu1 }
 0x69a   : > { %v4551_v0 = vpop.f32.mrf.mxu0 }
 0x69b   : > { %5073 = vmatmul.bf16.gmra.mxu2 %v17579_v21  ;;  %v4740_v45 = vsel %vm2140_vm4, %v4704_v43, %v4706_v27  ;;  %v4641_v36 = vadd.f32 %v4640_v8, %v4551_v0  ;;  %5162 = vmatmul.bf16.gmra.mxu3 %v17581_v50 }
 0x69c   : > { %5340 = vmatmul.bf16.gmra.mxu1 %v17581_v50  ;;  %v14845_v5 = vadd.f32 %v4740_v45, %v17669_v22  ;;  %v17673_v22 = vld [vmem:[#allocation83_spill] sm:$0xff] }
 0x69d   : > { %v4709_v2 = vrot.slane %v4641_v36, 4  ;;  %5251 = vmatmul.bf16.gmra.mxu0 %v17579_v21 }
 0x69e   : > { %17670 = vst [vmem:[#allocation60_spill] sm:$0xff] %v14845_v5  ;;  %v4373_v4 = vpop.f32.mrf.mxu2  ;;  %v4462_v19 = vpop.f32.mrf.mxu3 }
 0x69f   : > { %v4739_v55 = vsel %vm2140_vm4, %v4707_v40, %v4709_v2  ;;  %v4463_v47 = vadd.f32 %v4462_v19, %v4373_v4  ;;  %v17674_v19 = vld [vmem:[#allocation17_spill] sm:$0xff] }
 0x6a0   : > { %v14851_v7 = vadd.f32 %v4739_v55, %v17671_v10 }
 0x6a1   : > { %v4708_v0 = vrot.slane %v4463_v47, 4  ;;  %v4642_v43 = vpop.f32.mrf.mxu1 }
 0x6a2   : > { %17672 = vst [vmem:[#allocation58_spill] sm:$0xff] %v14851_v7  ;;  %v4553_v20 = vpop.f32.mrf.mxu0 }
 0x6a3   : > { %v4738_v8 = vsel %vm2140_vm4, %v4706_v27, %v4708_v0  ;;  %v4643_v45 = vadd.f32 %v4642_v43, %v4553_v20  ;;  %v17675_v20 = vld [vmem:[#allocation21_spill] sm:$0xff] }
 0x6a4   : > { %v14856_v36 = vadd.f32 %v4738_v8, %v17673_v22 }
 0x6a5   : > { %v4711_v5 = vrot.slane %v4643_v45, 4 }
 0x6a6   : > { %v4375_v50 = vpop.f32.mrf.mxu2  ;;  %v4464_v21 = vpop.f32.mrf.mxu3 }
 0x6a7   : > { %v4737_v40 = vsel %vm2140_vm4, %v4709_v2, %v4711_v5  ;;  %v4465_v4 = vadd.f32 %v4464_v21, %v4375_v50 }
 0x6a8   : > { %v14861_v55 = vadd.f32 %v4737_v40, %v17674_v19  ;;  %v17677_v40 = vld [vmem:[#allocation84_spill] sm:$0xff] }
 0x6a9   : > { %v4710_v47 = vrot.slane %v4465_v4, 4  ;;  %v4645_v10 = vpop.f32.mrf.mxu1 }
 0x6aa   : > { %v4556_v7 = vpop.f32.mrf.mxu0 }
 0x6ab   : > { %5078 = vmatmul.bf16.gmra.mxu2 %v17587_v49  ;;  %v4736_v27 = vsel %vm2140_vm4, %v4708_v0, %v4710_v47  ;;  %v4646_v43 = vadd.f32 %v4645_v10, %v4556_v7  ;;  %5167 = vmatmul.bf16.gmra.mxu3 %v17589_v12 }
 0x6ac   : > { %5345 = vmatmul.bf16.gmra.mxu1 %v17589_v12  ;;  %v14869_v8 = vadd.f32 %v4736_v27, %v17675_v20  ;;  %v17679_v20 = vld [vmem:[#allocation85_spill] sm:$0xff] }
 0x6ad   : > { %v4713_v21 = vrot.slane %v4646_v43, 4  ;;  %5256 = vmatmul.bf16.gmra.mxu0 %v17587_v49 }
 0x6ae   : > { %17676 = vst [vmem:[#allocation44_spill] sm:$0xff] %v14869_v8  ;;  %v4378_v50 = vpop.f32.mrf.mxu2  ;;  %v4467_v2 = vpop.f32.mrf.mxu3 }
 0x6af   : > { %v4735_v45 = vsel %vm2140_vm4, %v4711_v5, %v4713_v21  ;;  %v4468_v22 = vadd.f32 %v4467_v2, %v4378_v50  ;;  %v17680_v2 = vld [vmem:[#allocation64_spill] sm:$0xff] }
 0x6b0   : > { %v14875_v4 = vadd.f32 %v4735_v45, %v17677_v40 }
 0x6b1   : > { %v4712_v7 = vrot.slane %v4468_v22, 4  ;;  %v4647_v0 = vpop.f32.mrf.mxu1 }
 0x6b2   : > { %17678 = vst [vmem:[#allocation45_spill] sm:$0xff] %v14875_v4  ;;  %v4558_v19 = vpop.f32.mrf.mxu0 }
 0x6b3   : > { %v4734_v10 = vsel %vm2140_vm4, %v4710_v47, %v4712_v7  ;;  %v4648_v27 = vadd.f32 %v4647_v0, %v4558_v19 }
 0x6b4   : > { %v14880_v43 = vadd.f32 %v4734_v10, %v17679_v20  ;;  %v17682_v20 = vld [vmem:[#allocation65_spill] sm:$0xff] }
 0x6b5   : > { %v4715_v8 = vrot.slane %v4648_v27, 4 }
 0x6b6   : > { %v4380_v12 = vpop.f32.mrf.mxu2  ;;  %v4469_v49 = vpop.f32.mrf.mxu3 }
 0x6b7   : > { %v4733_v5 = vsel %vm2140_vm4, %v4713_v21, %v4715_v8  ;;  %v4470_v50 = vadd.f32 %v4469_v49, %v4380_v12 }
 0x6b8   : > { %v14885_v45 = vadd.f32 %v4733_v5, %v17680_v2 }
 0x6b9   : > { %v4714_v22 = vrot.slane %v4470_v50, 4  ;;  %v4650_v40 = vpop.f32.mrf.mxu1 }
 0x6ba   : > { %v4561_v4 = vpop.f32.mrf.mxu0 }
 0x6bb   : > { %5083 = vmatmul.bf16.gmra.mxu2 %v17594_v52  ;;  %v4732_v47 = vsel %vm2140_vm4, %v4712_v7, %v4714_v22  ;;  %v4651_v0 = vadd.f32 %v4650_v40, %v4561_v4  ;;  %5172 = vmatmul.bf16.gmra.mxu3 %v17595_v54  ;;  %v17684_v40 = vld [vmem:[#allocation86_spill] sm:$0xff] }
 0x6bc   : > { %5350 = vmatmul.bf16.gmra.mxu1 %v17595_v54  ;;  %v14893_v19 = vadd.f32 %v4732_v47, %v14299_v57 }
 0x6bd   : > { %v4717_v49 = vrot.slane %v4651_v0, 4  ;;  %5261 = vmatmul.bf16.gmra.mxu0 %v17594_v52 }
 0x6be   : > { %17681 = vst [vmem:[#allocation61_spill] sm:$0xff] %v14893_v19  ;;  %v4383_v12 = vpop.f32.mrf.mxu2  ;;  %v4472_v21 = vpop.f32.mrf.mxu3 }
 0x6bf   : > { %v4731_v10 = vsel %vm2140_vm4, %v4715_v8, %v4717_v49  ;;  %v4473_v27 = vadd.f32 %v4472_v21, %v4383_v12  ;;  %v17685_v21 = vld [vmem:[#allocation27_spill] sm:$0xff] }
 0x6c0   : > { %v14899_v5 = vadd.f32 %v4731_v10, %v17682_v20 }
 0x6c1   : > { %v4716_v4 = vrot.slane %v4473_v27, 4  ;;  %v4652_v7 = vpop.f32.mrf.mxu1 }
 0x6c2   : > { %17683 = vst [vmem:[#allocation79_spill] sm:$0xff] %v14899_v5  ;;  %v4563_v50 = vpop.f32.mrf.mxu0 }
 0x6c3   : > { %v4730_v2 = vsel %vm2140_vm4, %v4714_v22, %v4716_v4  ;;  %v4653_v57 = vadd.f32 %v4652_v7, %v4563_v50  ;;  %v17686_v50 = vld [vmem:[#allocation66_spill] sm:$0xff] }
 0x6c4   : > { %v14904_v47 = vadd.f32 %v4730_v2, %v17684_v40 }
 0x6c5   : > { %v4719_v0 = vrot.slane %v4653_v57, 4 }
 0x6c6   : > { %v4385_v19 = vpop.f32.mrf.mxu2  ;;  %v4474_v54 = vpop.f32.mrf.mxu3 }
 0x6c7   : > { %v4729_v8 = vsel %vm2140_vm4, %v4717_v49, %v4719_v0  ;;  %v4475_v12 = vadd.f32 %v4474_v54, %v4385_v19 }
 0x6c8   : > { %v14909_v10 = vadd.f32 %v4729_v8, %v17685_v21  ;;  %v17688_v8 = vld [vmem:[#allocation87_spill] sm:$0xff] }
 0x6c9   : > { %v4718_v27 = vrot.slane %v4475_v12, 4  ;;  %v4655_v20 = vpop.f32.mrf.mxu1 }
 0x6ca   : > { %v4566_v5 = vpop.f32.mrf.mxu0 }
 0x6cb   : > { %5088 = vmatmul.bf16.gmra.mxu2 %v17601_v63  ;;  %v4728_v22 = vsel %vm2140_vm4, %v4716_v4, %v4718_v27  ;;  %v4656_v7 = vadd.f32 %v4655_v20, %v4566_v5  ;;  %5177 = vmatmul.bf16.gmra.mxu3 %v17602_v28 }
 0x6cc   : > { %5355 = vmatmul.bf16.gmra.mxu1 %v17602_v28  ;;  %v14917_v2 = vadd.f32 %v4728_v22, %v17686_v50  ;;  %v17689_v50 = vld [vmem:[#allocation88_spill] sm:$0xff] }
 0x6cd   : > { %v4721_v54 = vrot.slane %v4656_v7, 4  ;;  %5266 = vmatmul.bf16.gmra.mxu0 %v17601_v63 }
 0x6ce   : > { %17687 = vst [vmem:[#allocation15_spill] sm:$0xff] %v14917_v2  ;;  %v4388_v19 = vpop.f32.mrf.mxu2  ;;  %v4477_v49 = vpop.f32.mrf.mxu3 }
 0x6cf   : > { %v4727_v57 = vsel %vm2140_vm4, %v4719_v0, %v4721_v54  ;;  %v4478_v40 = vadd.f32 %v4477_v49, %v4388_v19  ;;  %v17690_v19 = vrot.slane %v14350_v15, 4  ;;  %v17693_v15 = vrot.slane %v14355_v6, 4 }
 0x6d0   : > { %v14923_v12 = vadd.f32 %v4727_v57, %v17688_v8 }
 0x6d1   : > { %v4720_v5 = vrot.slane %v4478_v40, 4  ;;  %v4657_v4 = vpop.f32.mrf.mxu1 }
 0x6d2   : > { %v4568_v21 = vpop.f32.mrf.mxu0 }
 0x6d3   : > { %v4726_v20 = vsel %vm2140_vm4, %v4718_v27, %v4720_v5  ;;  %v4658_v22 = vadd.f32 %v4657_v4, %v4568_v21  ;;  %v17691_v27 = vld [vmem:[#allocation89_spill] sm:$0xff] }
 0x6d4   : > { %v14928_v7 = vadd.f32 %v4726_v20, %v17689_v50  ;;  %v17697_v50 = vld [vmem:[#allocation90_spill] sm:$0xff] }
 0x6d5   : > { %v4723_v2 = vrot.slane %v4658_v22, 4 }
 0x6d6   : > { %v4390_v28 = vpop.f32.mrf.mxu2  ;;  %v4479_v63 = vpop.f32.mrf.mxu3 }
 0x6d7   : > { %v4725_v0 = vsel %vm2140_vm4, %v4721_v54, %v4723_v2  ;;  %v4787_v49 = vsel %vm2140_vm4, %v4723_v2, %v17690_v19  ;;  %v4480_v57 = vadd.f32 %v4479_v63, %v4390_v28  ;;  %v17694_v28 = vld [vmem:[#allocation30_spill] sm:$0xff] }
 0x6d8   : > { %v14937_v40 = vadd.f32 %v4787_v49, %v14339_v30  ;;  %v14940_v8 = vadd.f32 %v4725_v0, %v17691_v27  ;;  %v17695_v30 = vld [vmem:[#allocation14_spill] sm:$0xff] }
 0x6d9   : > { %v4722_v4 = vrot.slane %v4480_v57, 4  ;;  %v5321_v21 = vpop.f32.mrf.mxu1 }
 0x6da   : > { %17692 = vst [vmem:[#allocation62_spill] sm:$0xff] %v14940_v8  ;;  %v5232_v20 = vpop.f32.mrf.mxu0 }
 0x6db   : > { %5093 = vmatmul.bf16.gmra.mxu2 %v17613_v17  ;;  %v4724_v54 = vsel %vm2140_vm4, %v4720_v5, %v4722_v4  ;;  %v4786_v2 = vsel %vm2140_vm4, %v4722_v4, %v17693_v15  ;;  %v14949_v63 = vadd.f32 %v5321_v21, %v5232_v20  ;;  %5182 = vmatmul.bf16.gmra.mxu3 %v17694_v28 }
 0x6dc   : > { %5360 = vmatmul.bf16.gmra.mxu1 %v17694_v28  ;;  %v14954_v22 = vadd.f32 %v4786_v2, %v17695_v30  ;;  %v14957_v0 = vadd.f32 %v4724_v54, %v17697_v50  ;;  %v17700_v30 = vld [vmem:[#allocation31_spill] sm:$0xff] }
 0x6dd   : > { %5271 = vmatmul.bf16.gmra.mxu0 %v17613_v17  ;;  %v17157_v4 = vrot.slane %v14949_v63, 6 }
 0x6de   : > { %17696 = vst [vmem:[#allocation80_spill] sm:$0xff] %v14954_v22  ;;  %v5054_v5 = vpop.f32.mrf.mxu2  ;;  %v5143_v19 = vpop.f32.mrf.mxu3 }
 0x6df   : > { %17698 = vst [vmem:[#allocation81_spill] sm:$0xff] %v14957_v0  ;;  %v14960_v6 = vadd.f32 %v5143_v19, %v5054_v5  ;;  %v17702_v0 = vld [vmem:[#allocation32_spill] sm:$0xff] }
 0x6e1   : > { %17699 = vst [vmem:[#allocation63_spill] sm:$0xff] %v14960_v6  ;;  %v5323_v49 = vpop.f32.mrf.mxu1  ;;  %v17161_v5 = vrot.slane %v14960_v6, 6 }
 0x6e2   : > { %v5234_v57 = vpop.f32.mrf.mxu0 }
 0x6e3   : > { %v5324_v27 = vadd.f32 %v5323_v49, %v5234_v57 }
 0x6e5   : > { %v5404_v21 = vrot.slane %v5324_v27, 6  ;;  %v17703_v27 = vld [vmem:[#allocation33_spill] sm:$0xff] }
 0x6e6   : > { %v5056_v20 = vpop.f32.mrf.mxu2  ;;  %v5145_v15 = vpop.f32.mrf.mxu3 }
 0x6e7   : > { %v5146_v2 = vadd.f32 %v5145_v15, %v5056_v20  ;;  %v5527_v54 = vsel %vm5465_vm6, %v17157_v4, %v5404_v21  ;;  %v17704_v15 = vld [vmem:[#allocation67_spill] sm:$0xff] }
 0x6e8   : > { %v14969_v50 = vadd.f32 %v5527_v54, %v17700_v30 }
 0x6e9   : > { %v5403_v19 = vrot.slane %v5146_v2, 6  ;;  %v5326_v49 = vpop.f32.mrf.mxu1 }
 0x6ea   : > { %17701 = vst [vmem:[#allocation18_spill] sm:$0xff] %v14969_v50  ;;  %v5237_v57 = vpop.f32.mrf.mxu0 }
 0x6eb   : > { %5098 = vmatmul.bf16.gmra.mxu2 %v17702_v0  ;;  %v5327_v22 = vadd.f32 %v5326_v49, %v5237_v57  ;;  %5187 = vmatmul.bf16.gmra.mxu3 %v17703_v27  ;;  %v5526_v20 = vsel %vm5465_vm6, %v17161_v5, %v5403_v19  ;;  %v17705_v57 = vld [vmem:[#allocation68_spill] sm:$0xff] }
 0x6ec   : > { %5365 = vmatmul.bf16.gmra.mxu1 %v17703_v27  ;;  %v14980_v54 = vadd.f32 %v5526_v20, %v17704_v15 }
 0x6ed   : > { %v5406_v30 = vrot.slane %v5327_v22, 6  ;;  %5276 = vmatmul.bf16.gmra.mxu0 %v17702_v0 }
 0x6ee   : > { %v5059_v2 = vpop.f32.mrf.mxu2  ;;  %v5148_v4 = vpop.f32.mrf.mxu3 }
 0x6ef   : > { %v5149_v50 = vadd.f32 %v5148_v4, %v5059_v2  ;;  %v5525_v49 = vsel %vm5465_vm6, %v5404_v21, %v5406_v30 }
 0x6f0   : > { %v14986_v28 = vadd.f32 %v5525_v49, %v17705_v57 }
 0x6f1   : > { %v5405_v6 = vrot.slane %v5149_v50, 6  ;;  %v5328_v17 = vpop.f32.mrf.mxu1 }
 0x6f2   : > { %v5239_v5 = vpop.f32.mrf.mxu0 }
 0x6f3   : > { %v5329_v8 = vadd.f32 %v5328_v17, %v5239_v5  ;;  %v5524_v20 = vsel %vm5465_vm6, %v5403_v19, %v5405_v6 }
 0x6f4   : > { %v14991_v22 = vadd.f32 %v5524_v20, %v14385_v1 }
 0x6f5   : > { %v5408_v15 = vrot.slane %v5329_v8, 6 }
 0x6f6   : > { %v5061_v27 = vpop.f32.mrf.mxu2  ;;  %v5150_v0 = vpop.f32.mrf.mxu3 }
 0x6f7   : > { %v5151_v4 = vadd.f32 %v5150_v0, %v5061_v27  ;;  %v5523_v21 = vsel %vm5465_vm6, %v5406_v30, %v5408_v15  ;;  %v17706_v30 = vld [vmem:[#allocation69_spill] sm:$0xff] }
 0x6f8   : > { %v14996_v2 = vadd.f32 %v5523_v21, %v14390_v14 }
 0x6f9   : > { %v5407_v50 = vrot.slane %v5151_v4, 6  ;;  %v5331_v49 = vpop.f32.mrf.mxu1 }
 0x6fa   : > { %v5242_v57 = vpop.f32.mrf.mxu0 }
 0x6fb   : > { %5103 = vmatmul.bf16.gmra.mxu2 %v17519_v34  ;;  %v5332_v17 = vadd.f32 %v5331_v49, %v5242_v57  ;;  %5192 = vmatmul.bf16.gmra.mxu3 %v17520_v51  ;;  %v5522_v1 = vsel %vm5465_vm6, %v5405_v6, %v5407_v50 }
 0x6fc   : > { %5370 = vmatmul.bf16.gmra.mxu1 %v17520_v51  ;;  %v15004_v8 = vadd.f32 %v5522_v1, %v14398_v18 }
 0x6fd   : > { %v5410_v0 = vrot.slane %v5332_v17, 6  ;;  %5281 = vmatmul.bf16.gmra.mxu0 %v17519_v34 }
 0x6fe   : > { %v5064_v14 = vpop.f32.mrf.mxu2  ;;  %v5153_v5 = vpop.f32.mrf.mxu3 }
 0x6ff   : > { %v5154_v19 = vadd.f32 %v5153_v5, %v5064_v14  ;;  %v5521_v27 = vsel %vm5465_vm6, %v5408_v15, %v5410_v0 }
 0x700   : > { %v15010_v20 = vadd.f32 %v5521_v27, %v17706_v30 }
 0x701   : > { %v5409_v4 = vrot.slane %v5154_v19, 6  ;;  %v5333_v21 = vpop.f32.mrf.mxu1 }
 0x702   : > { %v5244_v6 = vpop.f32.mrf.mxu0 }
 0x703   : > { %v5334_v49 = vadd.f32 %v5333_v21, %v5244_v6  ;;  %v5520_v18 = vsel %vm5465_vm6, %v5407_v50, %v5409_v4 }
 0x704   : > { %v15015_v57 = vadd.f32 %v5520_v18, %v14409_v46  ;;  %v17708_v18 = vld [vmem:[#allocation70_spill] sm:$0xff] }
 0x705   : > { %v5412_v17 = vrot.slane %v5334_v49, 6 }
 0x706   : > { %v5066_v1 = vpop.f32.mrf.mxu2  ;;  %v5155_v51 = vpop.f32.mrf.mxu3 }
 0x707   : > { %v5156_v14 = vadd.f32 %v5155_v51, %v5066_v1  ;;  %v5519_v15 = vsel %vm5465_vm6, %v5410_v0, %v5412_v17 }
 0x708   : > { %v15020_v5 = vadd.f32 %v5519_v15, %v14414_v60 }
 0x709   : > { %v5411_v19 = vrot.slane %v5156_v14, 6  ;;  %v5336_v27 = vpop.f32.mrf.mxu1 }
 0x70a   : > { %v5247_v30 = vpop.f32.mrf.mxu0 }
 0x70b   : > { %5108 = vmatmul.bf16.gmra.mxu2 %v13303_v53  ;;  %v5337_v21 = vadd.f32 %v5336_v27, %v5247_v30  ;;  %5197 = vmatmul.bf16.gmra.mxu3 %v17525_v38  ;;  %v5518_v46 = vsel %vm5465_vm6, %v5409_v4, %v5411_v19  ;;  %v9260_v4 = vld [vmem:[%s16980_s3 + $0x470] sm:$0xf] }
 0x70c   : > { %5375 = vmatmul.bf16.gmra.mxu1 %v17525_v38  ;;  %v15028_v51 = vadd.f32 %v5518_v46, %v14422_v61  ;;  %v9770_v61 = vld [vmem:[%s16980_s3 + $0x474] sm:$0xf0] }
 0x70d   : > { %v5414_v50 = vrot.slane %v5337_v21, 6  ;;  %5286 = vmatmul.bf16.gmra.mxu0 %v13303_v53  ;;  %v9261_v30 = vor.u32 %v9770_v61, %v9260_v4  ;;  %v9324_v21 = vld [vmem:[%s16980_s3 + $0x4f0] sm:$0xf]  ;;  %v9769_v4 = vld [vmem:[%s16980_s3 + $0x474] sm:$0xf]  ;;  %v17715_v53 = vld [vmem:[#allocation38_spill] sm:$0xff] }
 0x70e   : > { %17707 = vst [vmem:[#allocation82_spill] sm:$0xff] %v15028_v51  ;;  %v5069_v60 = vpop.f32.mrf.mxu2  ;;  %v5158_v0 = vpop.f32.mrf.mxu3  ;;  %v9262_v61 = vld [vmem:[%s16980_s3 + $0x478] sm:$0xf0] }
 0x70f   : > { %v5159_v6 = vadd.f32 %v5158_v0, %v5069_v60  ;;  %v5517_v49 = vsel %vm5465_vm6, %v5412_v17, %v5414_v50  ;;  %v9786_v17 = vld [vmem:[%s16980_s3 + $0x4f4] sm:$0xf0]  ;;  %5787 = vmatpush.bf16.msra.mxu2 %v9261_v30  ;;  %v9326_v30 = vld [vmem:[%s16980_s3 + $0x4f8] sm:$0xf0] }
 0x710   : > { %v15034_v1 = vadd.f32 %v5517_v49, %v17708_v18  ;;  %v9325_v60 = vor.u32 %v9786_v17, %v9324_v21 }
 0x711   : > { %v5413_v14 = vrot.slane %v5159_v6, 6  ;;  %v5338_v15 = vpop.f32.mrf.mxu1  ;;  %v17710_v6 = vld [vmem:[#allocation36_spill] sm:$0xff] }
 0x712   : > { %17709 = vst [vmem:[#allocation83_spill] sm:$0xff] %v15034_v1  ;;  %v5249_v27 = vpop.f32.mrf.mxu0  ;;  %5876 = vmatpush.bf16.msra.mxu3 %v9325_v60  ;;  %v17712_v60 = vld [vmem:[#allocation46_spill] sm:$0xff] }
 0x713   : > { %v5339_v46 = vadd.f32 %v5338_v15, %v5249_v27  ;;  %v5516_v0 = vsel %vm5465_vm6, %v5411_v19, %v5413_v14  ;;  %v9265_v27 = vor.u32 %v9769_v4, %v9262_v61  ;;  %v9785_v19 = vld [vmem:[%s16980_s3 + $0x4f4] sm:$0xf]  ;;  %v17714_v61 = vld [vmem:[#allocation43_spill] sm:$0xff] }
 0x714   : > { %v15051_v49 = vadd.f32 %v5516_v0, %v17710_v6  ;;  %v9329_v17 = vor.u32 %v9785_v19, %v9326_v30 }
 0x715   : > { %v5416_v18 = vrot.slane %v5339_v46, 6  ;;  %5965 = vmatpush.bf16.msrb.mxu0 %v9265_v27 }
 0x716   : > { %17711 = vst [vmem:[#allocation17_spill] sm:$0xff] %v15051_v49  ;;  %v5071_v1 = vpop.f32.mrf.mxu2  ;;  %v5160_v15 = vpop.f32.mrf.mxu3  ;;  %6054 = vmatpush.bf16.msrb.mxu1 %v9329_v17  ;;  %v17718_v17 = vld [vmem:[#allocation42_spill] sm:$0xff] }
 0x717   : > { %v5161_v21 = vadd.f32 %v5160_v15, %v5071_v1  ;;  %v5515_v46 = vsel %vm5465_vm6, %v5414_v50, %v5416_v18  ;;  %v17716_v15 = vld [vmem:[#allocation34_spill] sm:$0xff] }
 0x718   : > { %v15068_v0 = vadd.f32 %v5515_v46, %v17712_v60 }
 0x719   : > { %v5415_v6 = vrot.slane %v5161_v21, 6  ;;  %v5341_v49 = vpop.f32.mrf.mxu1 }
 0x71a   : > { %17713 = vst [vmem:[#allocation21_spill] sm:$0xff] %v15068_v0  ;;  %v5252_v4 = vpop.f32.mrf.mxu0  ;;  %v9766_v0 = vld [vmem:[%s16980_s3 + $0x454] sm:$0xf0] }
 0x71b   : > { %5113 = vmatmul.bf16.gmra.mxu2 %v17714_v61  ;;  %v5342_v38 = vadd.f32 %v5341_v49, %v5252_v4  ;;  %5202 = vmatmul.bf16.gmra.mxu3 %v17715_v53  ;;  %v5514_v1 = vsel %vm5465_vm6, %v5413_v14, %v5415_v6  ;;  %v9252_v4 = vld [vmem:[%s16980_s3 + $0x460] sm:$0xf] }
 0x71c   : > { %5380 = vmatmul.bf16.gmra.mxu1 %v17715_v53  ;;  %v15076_v50 = vadd.f32 %v5514_v1, %v17716_v15 }
 0x71d   : > { %v5418_v27 = vrot.slane %v5342_v38, 6  ;;  %5291 = vmatmul.bf16.gmra.mxu0 %v17714_v61  ;;  %v9768_v38 = vld [vmem:[%s16980_s3 + $0x464] sm:$0xf0] }
 0x71e   : > { %17717 = vst [vmem:[#allocation84_spill] sm:$0xff] %v15076_v50  ;;  %v5074_v19 = vpop.f32.mrf.mxu2  ;;  %v5163_v30 = vpop.f32.mrf.mxu3  ;;  %v9253_v15 = vor.u32 %v9768_v38, %v9252_v4  ;;  %v9783_v4 = vld [vmem:[%s16980_s3 + $0x4e4] sm:$0xf]  ;;  %v9318_v38 = vld [vmem:[%s16980_s3 + $0x4e8] sm:$0xf0] }
 0x71f   : > { %v15079_v21 = vadd.f32 %v5163_v30, %v5074_v19  ;;  %v5513_v49 = vsel %vm5465_vm6, %v5416_v18, %v5418_v27  ;;  %v9316_v18 = vld [vmem:[%s16980_s3 + $0x4e0] sm:$0xf]  ;;  %v9784_v19 = vld [vmem:[%s16980_s3 + $0x4e4] sm:$0xf0]  ;;  %v9767_v30 = vld [vmem:[%s16980_s3 + $0x464] sm:$0xf] }
 0x720   : > { %v15084_v46 = vadd.f32 %v5513_v49, %v17718_v17  ;;  %v9317_v49 = vor.u32 %v9784_v19, %v9316_v18  ;;  %v9254_v17 = vld [vmem:[%s16980_s3 + $0x468] sm:$0xf0]  ;;  %5788 = vmatpush.bf16.msra.mxu2 %v9253_v15  ;;  %v9244_v50 = vld [vmem:[%s16980_s3 + $0x450] sm:$0xf]  ;;  %v9782_v15 = vld [vmem:[%s16980_s3 + $0x4d4] sm:$0xf0] }
 0x721   : > { %v5417_v14 = vrot.slane %v15079_v21, 6  ;;  %v5343_v60 = vpop.f32.mrf.mxu1  ;;  %v9257_v53 = vor.u32 %v9767_v30, %v9254_v17  ;;  %v9765_v30 = vld [vmem:[%s16980_s3 + $0x454] sm:$0xf] }
 0x722   : > { %17719 = vst [vmem:[#allocation85_spill] sm:$0xff] %v15084_v46  ;;  %v5254_v1 = vpop.f32.mrf.mxu0  ;;  %5877 = vmatpush.bf16.msra.mxu3 %v9317_v49 }
 0x723   : > { %v15102_v21 = vadd.f32 %v5343_v60, %v5254_v1  ;;  %v5512_v46 = vsel %vm5465_vm6, %v5415_v6, %v5417_v14  ;;  %v9321_v60 = vor.u32 %v9783_v4, %v9318_v38  ;;  %v17720_v1 = vld [vmem:[#allocation40_spill] sm:$0xff]  ;;  %5966 = vmatpush.bf16.msrb.mxu0 %v9257_v53  ;;  %v9245_v6 = vor.u32 %v9766_v0, %v9244_v50  ;;  %v9246_v53 = vld [vmem:[%s16980_s3 + $0x458] sm:$0xf0] }
 0x724   : > { %v15116_v18 = vadd.f32 %v5512_v46, %v17720_v1  ;;  %v9308_v46 = vld [vmem:[%s16980_s3 + $0x4d0] sm:$0xf]  ;;  %v9781_v0 = vld [vmem:[%s16980_s3 + $0x4d4] sm:$0xf]  ;;  %v9310_v50 = vld [vmem:[%s16980_s3 + $0x4d8] sm:$0xf0] }
 0x725   : > { %v5420_v19 = vrot.slane %v15102_v21, 6  ;;  %6055 = vmatpush.bf16.msrb.mxu1 %v9321_v60  ;;  %v9309_v17 = vor.u32 %v9782_v15, %v9308_v46  ;;  %5789 = vmatpush.bf16.msra.mxu2 %v9245_v6  ;;  %v9236_v46 = vld [vmem:[%s16980_s3 + $0x440] sm:$0xf]  ;;  %v9764_v15 = vld [vmem:[%s16980_s3 + $0x444] sm:$0xf0] }
 0x726   : > { %17721 = vst [vmem:[#allocation64_spill] sm:$0xff] %v15116_v18  ;;  %v5076_v61 = vpop.f32.mrf.mxu2  ;;  %v5165_v51 = vpop.f32.mrf.mxu3  ;;  %v9780_v6 = vld [vmem:[%s16980_s3 + $0x4c4] sm:$0xf0] }
 0x727   : > { %v15134_v49 = vadd.f32 %v5165_v51, %v5076_v61  ;;  %v5511_v4 = vsel %vm5465_vm6, %v5418_v27, %v5420_v19  ;;  %v9249_v51 = vor.u32 %v9765_v30, %v9246_v53  ;;  %v9313_v61 = vor.u32 %v9781_v0, %v9310_v50  ;;  %5878 = vmatpush.bf16.msra.mxu3 %v9309_v17  ;;  %v9763_v30 = vld [vmem:[%s16980_s3 + $0x444] sm:$0xf]  ;;  %v9238_v0 = vld [vmem:[%s16980_s3 + $0x448] sm:$0xf0]  ;;  %v9760_v21 = vld [vmem:[%s16980_s3 + $0x424] sm:$0xf0] }
 0x728   : > { %v15150_v38 = vadd.f32 %v5511_v4, %v14539_v9  ;;  %v9237_v27 = vor.u32 %v9764_v15, %v9236_v46  ;;  %v9300_v9 = vld [vmem:[%s16980_s3 + $0x4c0] sm:$0xf]  ;;  %v9779_v50 = vld [vmem:[%s16980_s3 + $0x4c4] sm:$0xf]  ;;  %v9302_v4 = vld [vmem:[%s16980_s3 + $0x4c8] sm:$0xf0] }
 0x729   : > { %v17170_v60 = vrot.slane %v15134_v49, 6  ;;  %v5346_v1 = vpop.f32.mrf.mxu1  ;;  %5967 = vmatpush.bf16.msrb.mxu0 %v9249_v51  ;;  %6056 = vmatpush.bf16.msrb.mxu1 %v9313_v61  ;;  %v9301_v53 = vor.u32 %v9780_v6, %v9300_v9  ;;  %v9241_v51 = vor.u32 %v9763_v30, %v9238_v0  ;;  %v9305_v61 = vor.u32 %v9779_v50, %v9302_v4  ;;  %v9228_v6 = vld [vmem:[%s16980_s3 + $0x430] sm:$0xf]  ;;  %v9778_v50 = vld [vmem:[%s16980_s3 + $0x4b4] sm:$0xf0] }
 0x72a   : > { %v5257_v18 = vpop.f32.mrf.mxu0  ;;  %5790 = vmatpush.bf16.msra.mxu2 %v9237_v27  ;;  %v9292_v0 = vld [vmem:[%s16980_s3 + $0x4b0] sm:$0xf] }
 0x72b   : > { %5118 = vmatmul.bf16.gmra.mxu2 %v17538_v16  ;;  %v15169_v17 = vadd.f32 %v5346_v1, %v5257_v18  ;;  %5207 = vmatmul.bf16.gmra.mxu3 %v17539_v11  ;;  %v5510_v18 = vsel %vm5465_vm6, %v5417_v14, %v17170_v60  ;;  %v17722_v1 = vld [vmem:[#allocation39_spill] sm:$0xff]  ;;  %v9762_v14 = vld [vmem:[%s16980_s3 + $0x434] sm:$0xf0] }
 0x72c   : > { %5385 = vmatmul.bf16.gmra.mxu1 %v17539_v11  ;;  %v15187_v46 = vadd.f32 %v5510_v18, %v17722_v1  ;;  %5879 = vmatpush.bf16.msra.mxu3 %v9301_v53  ;;  %v9229_v30 = vor.u32 %v9762_v14, %v9228_v6  ;;  %v9761_v53 = vld [vmem:[%s16980_s3 + $0x434] sm:$0xf]  ;;  %v9293_v18 = vor.u32 %v9778_v50, %v9292_v0  ;;  %v9294_v6 = vld [vmem:[%s16980_s3 + $0x4b8] sm:$0xf0]  ;;  %v9220_v11 = vld [vmem:[%s16980_s3 + $0x420] sm:$0xf] }
 0x72d   : > { %v17173_v15 = vrot.slane %v15169_v17, 6  ;;  %5296 = vmatmul.bf16.gmra.mxu0 %v17538_v16  ;;  %6057 = vmatpush.bf16.msrb.mxu1 %v9305_v61  ;;  %v9777_v1 = vld [vmem:[%s16980_s3 + $0x4b4] sm:$0xf] }
 0x72e   : > { %v5079_v9 = vpop.f32.mrf.mxu2  ;;  %v5168_v27 = vpop.f32.mrf.mxu3  ;;  %5968 = vmatpush.bf16.msrb.mxu0 %v9241_v51  ;;  %v9230_v51 = vld [vmem:[%s16980_s3 + $0x438] sm:$0xf0]  ;;  %5791 = vmatpush.bf16.msra.mxu2 %v9229_v30  ;;  %v9297_v14 = vor.u32 %v9777_v1, %v9294_v6  ;;  %v9284_v30 = vld [vmem:[%s16980_s3 + $0x4a0] sm:$0xf]  ;;  %v9775_v6 = vld [vmem:[%s16980_s3 + $0x4a4] sm:$0xf] }
 0x72f   : > { %v15206_v4 = vadd.f32 %v5168_v27, %v5079_v9  ;;  %v5509_v61 = vsel %vm5465_vm6, %v5420_v19, %v17173_v15  ;;  %v9233_v9 = vor.u32 %v9761_v53, %v9230_v51  ;;  %v17723_v27 = vld [vmem:[#allocation71_spill] sm:$0xff]  ;;  %v9221_v19 = vor.u32 %v9760_v21, %v9220_v11 }
 0x730   : > { %v15224_v0 = vadd.f32 %v5509_v61, %v17723_v27  ;;  %5880 = vmatpush.bf16.msra.mxu3 %v9293_v18  ;;  %v9776_v53 = vld [vmem:[%s16980_s3 + $0x4a4] sm:$0xf0]  ;;  %v9759_v18 = vld [vmem:[%s16980_s3 + $0x424] sm:$0xf]  ;;  %v9222_v11 = vld [vmem:[%s16980_s3 + $0x428] sm:$0xf0] }
 0x731   : > { %v17174_v50 = vrot.slane %v15206_v4, 6  ;;  %v5348_v60 = vpop.f32.mrf.mxu1  ;;  %6058 = vmatpush.bf16.msrb.mxu1 %v9297_v14  ;;  %v9285_v1 = vor.u32 %v9776_v53, %v9284_v30  ;;  %v9286_v61 = vld [vmem:[%s16980_s3 + $0x4a8] sm:$0xf0]  ;;  %v9212_v53 = vld [vmem:[%s16980_s3 + $0x410] sm:$0xf] }
 0x732   : > { %v5259_v16 = vpop.f32.mrf.mxu0  ;;  %5969 = vmatpush.bf16.msrb.mxu0 %v9233_v9  ;;  %v17724_v9 = vrot.slane %v15134_v49, 6  ;;  %5792 = vmatpush.bf16.msra.mxu2 %v9221_v19  ;;  %v9289_v14 = vor.u32 %v9775_v6, %v9286_v61  ;;  %v9758_v49 = vld [vmem:[%s16980_s3 + $0x414] sm:$0xf0]  ;;  %v9214_v6 = vld [vmem:[%s16980_s3 + $0x418] sm:$0xf0] }
 0x733   : > { %v15242_v51 = vadd.f32 %v5348_v60, %v5259_v16  ;;  %v9225_v60 = vor.u32 %v9759_v18, %v9222_v11  ;;  %v9213_v19 = vor.u32 %v9758_v49, %v9212_v53  ;;  %v9774_v18 = vld [vmem:[%s16980_s3 + $0x494] sm:$0xf0]  ;;  %v9773_v61 = vld [vmem:[%s16980_s3 + $0x494] sm:$0xf] }
 0x734   : > { %v5508_v16 = vsel %vm5465_vm6, %v17724_v9, %v17174_v50  ;;  %5881 = vmatpush.bf16.msra.mxu3 %v9285_v1  ;;  %v9278_v9 = vld [vmem:[%s16980_s3 + $0x498] sm:$0xf0] }
 0x735   : > { %v15260_v27 = vadd.f32 %v5508_v16, %v14639_v23  ;;  %v5424_v21 = vrot.slane %v15242_v51, 6  ;;  %v9276_v23 = vld [vmem:[%s16980_s3 + $0x490] sm:$0xf]  ;;  %v9757_v51 = vld [vmem:[%s16980_s3 + $0x414] sm:$0xf]  ;;  %6059 = vmatpush.bf16.msrb.mxu1 %v9289_v14  ;;  %v17725_v16 = vrot.slane %v15169_v17, 6  ;;  %v9281_v14 = vor.u32 %v9773_v61, %v9278_v9 }
 0x736   : > { %v5081_v30 = vpop.f32.mrf.mxu2  ;;  %v5170_v15 = vpop.f32.mrf.mxu3  ;;  %5970 = vmatpush.bf16.msrb.mxu0 %v9225_v60  ;;  %v9277_v11 = vor.u32 %v9774_v18, %v9276_v23  ;;  %5793 = vmatpush.bf16.msra.mxu2 %v9213_v19  ;;  %v9204_v18 = vld [vmem:[%s16980_s3 + $0x400] sm:$0xf]  ;;  %v9756_v17 = vld [vmem:[%s16980_s3 + $0x404] sm:$0xf0] }
 0x737   : > { %v5171_v1 = vadd.f32 %v5170_v15, %v5081_v30  ;;  %v5507_v60 = vsel %vm5465_vm6, %v17725_v16, %v5424_v21  ;;  %v9217_v15 = vor.u32 %v9757_v51, %v9214_v6  ;;  %v17726_v30 = vld [vmem:[#allocation72_spill] sm:$0xff]  ;;  %v9205_v19 = vor.u32 %v9756_v17, %v9204_v18  ;;  %v9268_v51 = vld [vmem:[%s16980_s3 + $0x480] sm:$0xf]  ;;  %v17728_v61 = vld [vmem:[#allocation59_spill] sm:$0xff] }
 0x738   : > { %v15292_v53 = vadd.f32 %v5507_v60, %v17726_v30  ;;  %5882 = vmatpush.bf16.msra.mxu3 %v9277_v11  ;;  %v9755_v11 = vld [vmem:[%s16980_s3 + $0x404] sm:$0xf]  ;;  %v9206_v16 = vld [vmem:[%s16980_s3 + $0x408] sm:$0xf0]  ;;  %v17729_v30 = vrot.slane %v15206_v4, 6 }
 0x739   : > { %v5423_v49 = vrot.slane %v5171_v1, 6  ;;  %v5351_v23 = vpop.f32.mrf.mxu1  ;;  %v9772_v1 = vld [vmem:[%s16980_s3 + $0x484] sm:$0xf0]  ;;  %6060 = vmatpush.bf16.msrb.mxu1 %v9281_v14  ;;  %v9771_v60 = vld [vmem:[%s16980_s3 + $0x484] sm:$0xf]  ;;  %v9209_v14 = vor.u32 %v9755_v11, %v9206_v16 }
 0x73a   : > { %17727 = vst [vmem:[#allocation65_spill] sm:$0xff] %v15292_v53  ;;  %v5262_v50 = vpop.f32.mrf.mxu0  ;;  %5971 = vmatpush.bf16.msrb.mxu0 %v9217_v15  ;;  %v9269_v9 = vor.u32 %v9772_v1, %v9268_v51  ;;  %v9270_v15 = vld [vmem:[%s16980_s3 + $0x488] sm:$0xf0]  ;;  %5794 = vmatpush.bf16.msra.mxu2 %v9205_v19 }
 0x73b   : > { %5123 = vmatmul.bf16.gmra.mxu2 %v13617_v3  ;;  %v5352_v6 = vadd.f32 %v5351_v23, %v5262_v50  ;;  %5212 = vmatmul.bf16.gmra.mxu3 %v17728_v61  ;;  %v5506_v50 = vsel %vm5465_vm6, %v17729_v30, %v5423_v49  ;;  %v9273_v23 = vor.u32 %v9771_v60, %v9270_v15 }
 0x73c   : > { %5390 = vmatmul.bf16.gmra.mxu1 %v17728_v61  ;;  %v15326_v18 = vadd.f32 %v5506_v50, %v14701_v42  ;;  %5883 = vmatpush.bf16.msra.mxu3 %v9269_v9 }
 0x73d   : > { %v5426_v17 = vrot.slane %v5352_v6, 6  ;;  %5301 = vmatmul.bf16.gmra.mxu0 %v13617_v3  ;;  %6061 = vmatpush.bf16.msrb.mxu1 %v9273_v23 }
 0x73e   : > { %v5084_v51 = vpop.f32.mrf.mxu2  ;;  %v5173_v1 = vpop.f32.mrf.mxu3  ;;  %5972 = vmatpush.bf16.msrb.mxu0 %v9209_v14 }
 0x73f   : > { %v5174_v53 = vadd.f32 %v5173_v1, %v5084_v51  ;;  %v5505_v4 = vsel %vm5465_vm6, %v5424_v21, %v5426_v17 }
 0x740   : > { %v15332_v30 = vadd.f32 %v5505_v4, %v14707_v24 }
 0x741   : > { %v5425_v19 = vrot.slane %v5174_v53, 6  ;;  %v5353_v11 = vpop.f32.mrf.mxu1 }
 0x742   : > { %v5264_v16 = vpop.f32.mrf.mxu0 }
 0x743   : > { %v5354_v42 = vadd.f32 %v5353_v11, %v5264_v16  ;;  %v5504_v6 = vsel %vm5465_vm6, %v5423_v49, %v5425_v19 }
 0x744   : > { %v15337_v60 = vadd.f32 %v5504_v6, %v14712_v39 }
 0x745   : > { %v5428_v9 = vrot.slane %v5354_v42, 6 }
 0x746   : > { %v5086_v15 = vpop.f32.mrf.mxu2  ;;  %v5175_v50 = vpop.f32.mrf.mxu3 }
 0x747   : > { %v5176_v14 = vadd.f32 %v5175_v50, %v5086_v15  ;;  %v5503_v21 = vsel %vm5465_vm6, %v5426_v17, %v5428_v9 }
 0x748   : > { %v15342_v24 = vadd.f32 %v5503_v21, %v14717_v41 }
 0x749   : > { %v5427_v53 = vrot.slane %v5176_v14, 6  ;;  %v5356_v23 = vpop.f32.mrf.mxu1 }
 0x74a   : > { %v5267_v51 = vpop.f32.mrf.mxu0 }
 0x74b   : > { %5128 = vmatmul.bf16.gmra.mxu2 %v13681_v44  ;;  %v5357_v1 = vadd.f32 %v5356_v23, %v5267_v51  ;;  %5217 = vmatmul.bf16.gmra.mxu3 %v13683_v25  ;;  %v5502_v39 = vsel %vm5465_vm6, %v5425_v19, %v5427_v53 }
 0x74c   : > { %5395 = vmatmul.bf16.gmra.mxu1 %v13683_v25  ;;  %v15350_v49 = vadd.f32 %v5502_v39, %v14725_v37 }
 0x74d   : > { %v5430_v17 = vrot.slane %v5357_v1, 6  ;;  %5306 = vmatmul.bf16.gmra.mxu0 %v13681_v44 }
 0x74e   : > { %v5089_v41 = vpop.f32.mrf.mxu2  ;;  %v5178_v4 = vpop.f32.mrf.mxu3 }
 0x74f   : > { %v5179_v11 = vadd.f32 %v5178_v4, %v5089_v41  ;;  %v5501_v16 = vsel %vm5465_vm6, %v5428_v9, %v5430_v17 }
 0x750   : > { %v15356_v42 = vadd.f32 %v5501_v16, %v14731_v33  ;;  %v17731_v16 = vld [vmem:[#allocation49_spill] sm:$0xff] }
 0x751   : > { %v5429_v6 = vrot.slane %v5179_v11, 6  ;;  %v5358_v15 = vpop.f32.mrf.mxu1 }
 0x752   : > { %v5269_v19 = vpop.f32.mrf.mxu0 }
 0x753   : > { %v5359_v50 = vadd.f32 %v5358_v15, %v5269_v19  ;;  %v5500_v37 = vsel %vm5465_vm6, %v5427_v53, %v5429_v6  ;;  %v17730_v53 = vld [vmem:[#allocation20_spill] sm:$0xff] }
 0x754   : > { %v15361_v14 = vadd.f32 %v5500_v37, %v14736_v31 }
 0x755   : > { %v5432_v21 = vrot.slane %v5359_v50, 6 }
 0x756   : > { %v5091_v23 = vpop.f32.mrf.mxu2  ;;  %v5180_v51 = vpop.f32.mrf.mxu3 }
 0x757   : > { %v5181_v1 = vadd.f32 %v5180_v51, %v5091_v23  ;;  %v5499_v9 = vsel %vm5465_vm6, %v5430_v17, %v5432_v21  ;;  %v17732_v23 = vld [vmem:[#allocation73_spill] sm:$0xff] }
 0x758   : > { %v15366_v33 = vadd.f32 %v5499_v9, %v14741_v35 }
 0x759   : > { %v5431_v39 = vrot.slane %v5181_v1, 6  ;;  %v5361_v41 = vpop.f32.mrf.mxu1 }
 0x75a   : > { %v5272_v4 = vpop.f32.mrf.mxu0 }
 0x75b   : > { %5795 = vmatmul.bf16.vlgmr.msra.gmra.mxu2 %v17545_v29  ;;  %v5362_v11 = vadd.f32 %v5361_v41, %v5272_v4  ;;  %5884 = vmatmul.bf16.vlgmr.msra.gmra.mxu3 %v17730_v53  ;;  %v5498_v31 = vsel %vm5465_vm6, %v5429_v6, %v5431_v39 }
 0x75c   : > { %6062 = vmatmul.bf16.vlgmr.msrb.gmra.mxu1 %v17730_v53  ;;  %v15374_v15 = vadd.f32 %v5498_v31, %v17731_v16 }
 0x75d   : > { %v5434_v17 = vrot.slane %v5362_v11, 6  ;;  %5973 = vmatmul.bf16.vlgmr.msrb.gmra.mxu0 %v17545_v29 }
 0x75e   : > { %v5094_v35 = vpop.f32.mrf.mxu2  ;;  %v5183_v19 = vpop.f32.mrf.mxu3 }
 0x75f   : > { %v5184_v50 = vadd.f32 %v5183_v19, %v5094_v35  ;;  %v5497_v37 = vsel %vm5465_vm6, %v5432_v21, %v5434_v17  ;;  %v17734_v35 = vld [vmem:[#allocation74_spill] sm:$0xff] }
 0x760   : > { %v15380_v51 = vadd.f32 %v5497_v37, %v17732_v23 }
 0x761   : > { %v5433_v1 = vrot.slane %v5184_v50, 6  ;;  %v5363_v9 = vpop.f32.mrf.mxu1 }
 0x762   : > { %v5274_v6 = vpop.f32.mrf.mxu0 }
 0x763   : > { %v5364_v41 = vadd.f32 %v5363_v9, %v5274_v6  ;;  %v5496_v4 = vsel %vm5465_vm6, %v5431_v39, %v5433_v1  ;;  %v17736_v9 = vld [vmem:[#allocation50_spill] sm:$0xff]  ;;  %v17737_v39 = vld [vmem:[#allocation51_spill] sm:$0xff] }
 0x764   : > { %v15385_v11 = vadd.f32 %v5496_v4, %v14760_v59 }
 0x765   : > { %v5436_v29 = vrot.slane %v5364_v41, 6  ;;  %v17738_v41 = vld [vmem:[#allocation75_spill] sm:$0xff] }
 0x766   : > { %17733 = vst [vmem:[#allocation86_spill] sm:$0xff] %v15385_v11  ;;  %v5096_v53 = vpop.f32.mrf.mxu2  ;;  %v5185_v31 = vpop.f32.mrf.mxu3 }
 0x767   : > { %v5186_v16 = vadd.f32 %v5185_v31, %v5096_v53  ;;  %v5495_v21 = vsel %vm5465_vm6, %v5434_v17, %v5436_v29 }
 0x768   : > { %v15390_v19 = vadd.f32 %v5495_v21, %v17734_v35  ;;  %v17739_v35 = vld [vmem:[#allocation76_spill] sm:$0xff] }
 0x769   : > { %v5435_v50 = vrot.slane %v5186_v16, 6  ;;  %v5366_v37 = vpop.f32.mrf.mxu1 }
 0x76a   : > { %17735 = vst [vmem:[#allocation27_spill] sm:$0xff] %v15390_v19  ;;  %v5277_v23 = vpop.f32.mrf.mxu0 }
 0x76b   : > { %5800 = vmatmul.bf16.gmra.mxu2 %v17736_v9  ;;  %v5367_v6 = vadd.f32 %v5366_v37, %v5277_v23  ;;  %5889 = vmatmul.bf16.gmra.mxu3 %v17737_v39  ;;  %v5494_v59 = vsel %vm5465_vm6, %v5433_v1, %v5435_v50 }
 0x76c   : > { %6067 = vmatmul.bf16.gmra.mxu1 %v17737_v39  ;;  %v15398_v4 = vadd.f32 %v5494_v59, %v17738_v41 }
 0x76d   : > { %v5438_v17 = vrot.slane %v5367_v6, 6  ;;  %5978 = vmatmul.bf16.gmra.mxu0 %v17736_v9 }
 0x76e   : > { %v5099_v53 = vpop.f32.mrf.mxu2  ;;  %v5188_v31 = vpop.f32.mrf.mxu3 }
 0x76f   : > { %v5189_v16 = vadd.f32 %v5188_v31, %v5099_v53  ;;  %v5493_v21 = vsel %vm5465_vm6, %v5436_v29, %v5438_v17 }
 0x770   : > { %v15404_v37 = vadd.f32 %v5493_v21, %v17739_v35 }
 0x771   : > { %v5437_v23 = vrot.slane %v5189_v16, 6  ;;  %v5368_v19 = vpop.f32.mrf.mxu1 }
 0x772   : > { %v5279_v1 = vpop.f32.mrf.mxu0 }
 0x773   : > { %v5369_v11 = vadd.f32 %v5368_v19, %v5279_v1  ;;  %v5492_v39 = vsel %vm5465_vm6, %v5435_v50, %v5437_v23  ;;  %v17742_v19 = vld [vmem:[#allocation52_spill] sm:$0xff]  ;;  %v17743_v50 = vld [vmem:[#allocation22_spill] sm:$0xff] }
 0x774   : > { %v15409_v6 = vadd.f32 %v5492_v39, %v14784_v58 }
 0x775   : > { %v5440_v9 = vrot.slane %v5369_v11, 6  ;;  %v17744_v11 = vld [vmem:[#allocation77_spill] sm:$0xff] }
 0x776   : > { %17740 = vst [vmem:[#allocation66_spill] sm:$0xff] %v15409_v6  ;;  %v5101_v59 = vpop.f32.mrf.mxu2  ;;  %v5190_v41 = vpop.f32.mrf.mxu3 }
 0x777   : > { %v5191_v53 = vadd.f32 %v5190_v41, %v5101_v59  ;;  %v5491_v29 = vsel %vm5465_vm6, %v5438_v17, %v5440_v9 }
 0x778   : > { %v15414_v31 = vadd.f32 %v5491_v29, %v14789_v26  ;;  %v17745_v29 = vld [vmem:[#allocation78_spill] sm:$0xff] }
 0x779   : > { %v5439_v16 = vrot.slane %v5191_v53, 6  ;;  %v5371_v21 = vpop.f32.mrf.mxu1 }
 0x77a   : > { %17741 = vst [vmem:[#allocation87_spill] sm:$0xff] %v15414_v31  ;;  %v5282_v35 = vpop.f32.mrf.mxu0 }
 0x77b   : > { %5805 = vmatmul.bf16.gmra.mxu2 %v17742_v19  ;;  %v5372_v1 = vadd.f32 %v5371_v21, %v5282_v35  ;;  %5894 = vmatmul.bf16.gmra.mxu3 %v17743_v50  ;;  %v5490_v58 = vsel %vm5465_vm6, %v5437_v23, %v5439_v16 }
 0x77c   : > { %6072 = vmatmul.bf16.gmra.mxu1 %v17743_v50  ;;  %v15422_v39 = vadd.f32 %v5490_v58, %v17744_v11 }
 0x77d   : > { %v5442_v17 = vrot.slane %v5372_v1, 6  ;;  %5983 = vmatmul.bf16.gmra.mxu0 %v17742_v19 }
 0x77e   : > { %v5104_v26 = vpop.f32.mrf.mxu2  ;;  %v5193_v59 = vpop.f32.mrf.mxu3 }
 0x77f   : > { %v5194_v41 = vadd.f32 %v5193_v59, %v5104_v26  ;;  %v5489_v53 = vsel %vm5465_vm6, %v5440_v9, %v5442_v17 }
 0x780   : > { %v15428_v21 = vadd.f32 %v5489_v53, %v17745_v29 }
 0x781   : > { %v5441_v35 = vrot.slane %v5194_v41, 6  ;;  %v5373_v31 = vpop.f32.mrf.mxu1 }
 0x782   : > { %v5284_v23 = vpop.f32.mrf.mxu0 }
 0x783   : > { %v5374_v6 = vadd.f32 %v5373_v31, %v5284_v23  ;;  %v5488_v50 = vsel %vm5465_vm6, %v5439_v16, %v5441_v35  ;;  %v17748_v31 = vld [vmem:[#allocation23_spill] sm:$0xff]  ;;  %v17749_v16 = vld [vmem:[#allocation24_spill] sm:$0xff] }
 0x784   : > { %v15433_v1 = vadd.f32 %v5488_v50, %v14808_v56 }
 0x785   : > { %v5444_v19 = vrot.slane %v5374_v6, 6  ;;  %v17750_v6 = vld [vmem:[#allocation19_spill] sm:$0xff] }
 0x786   : > { %17746 = vst [vmem:[#allocation88_spill] sm:$0xff] %v15433_v1  ;;  %v5106_v58 = vpop.f32.mrf.mxu2  ;;  %v5195_v11 = vpop.f32.mrf.mxu3 }
 0x787   : > { %v5196_v26 = vadd.f32 %v5195_v11, %v5106_v58  ;;  %v5487_v9 = vsel %vm5465_vm6, %v5442_v17, %v5444_v19 }
 0x788   : > { %v15438_v59 = vadd.f32 %v5487_v9, %v14813_v62  ;;  %v17751_v9 = vld [vmem:[#allocation57_spill] sm:$0xff] }
 0x789   : > { %v5443_v41 = vrot.slane %v5196_v26, 6  ;;  %v5376_v53 = vpop.f32.mrf.mxu1 }
 0x78a   : > { %17747 = vst [vmem:[#allocation89_spill] sm:$0xff] %v15438_v59  ;;  %v5287_v29 = vpop.f32.mrf.mxu0 }
 0x78b   : > { %5810 = vmatmul.bf16.gmra.mxu2 %v17748_v31  ;;  %v5377_v23 = vadd.f32 %v5376_v53, %v5287_v29  ;;  %5899 = vmatmul.bf16.gmra.mxu3 %v17749_v16  ;;  %v5486_v56 = vsel %vm5465_vm6, %v5441_v35, %v5443_v41 }
 0x78c   : > { %6077 = vmatmul.bf16.gmra.mxu1 %v17749_v16  ;;  %v15446_v50 = vadd.f32 %v5486_v56, %v17750_v6 }
 0x78d   : > { %v5446_v17 = vrot.slane %v5377_v23, 6  ;;  %5988 = vmatmul.bf16.gmra.mxu0 %v17748_v31 }
 0x78e   : > { %v5109_v62 = vpop.f32.mrf.mxu2  ;;  %v5198_v58 = vpop.f32.mrf.mxu3 }
 0x78f   : > { %v5199_v11 = vadd.f32 %v5198_v58, %v5109_v62  ;;  %v5485_v26 = vsel %vm5465_vm6, %v5444_v19, %v5446_v17 }
 0x790   : > { %v15452_v53 = vadd.f32 %v5485_v26, %v17751_v9 }
 0x791   : > { %v5445_v29 = vrot.slane %v5199_v11, 6  ;;  %v5378_v59 = vpop.f32.mrf.mxu1 }
 0x792   : > { %v5289_v35 = vpop.f32.mrf.mxu0 }
 0x793   : > { %v5379_v1 = vadd.f32 %v5378_v59, %v5289_v35  ;;  %v5484_v16 = vsel %vm5465_vm6, %v5443_v41, %v5445_v29  ;;  %v17754_v59 = vld [vmem:[#allocation25_spill] sm:$0xff] }
 0x794   : > { %v15457_v23 = vadd.f32 %v5484_v16, %v14832_v48  ;;  %v17755_v41 = vld [vmem:[#allocation53_spill] sm:$0xff] }
 0x795   : > { %v5448_v31 = vrot.slane %v5379_v1, 6  ;;  %v17756_v1 = vld [vmem:[#allocation60_spill] sm:$0xff] }
 0x796   : > { %17752 = vst [vmem:[#allocation14_spill] sm:$0xff] %v15457_v23  ;;  %v5111_v56 = vpop.f32.mrf.mxu2  ;;  %v5200_v6 = vpop.f32.mrf.mxu3 }
 0x797   : > { %v5201_v62 = vadd.f32 %v5200_v6, %v5111_v56  ;;  %v5483_v19 = vsel %vm5465_vm6, %v5446_v17, %v5448_v31 }
 0x798   : > { %v15462_v58 = vadd.f32 %v5483_v19, %v14837_v32  ;;  %v17757_v19 = vld [vmem:[#allocation58_spill] sm:$0xff] }
 0x799   : > { %v5447_v11 = vrot.slane %v5201_v62, 6  ;;  %v5381_v26 = vpop.f32.mrf.mxu1 }
 0x79a   : > { %17753 = vst [vmem:[#allocation90_spill] sm:$0xff] %v15462_v58  ;;  %v5292_v9 = vpop.f32.mrf.mxu0 }
 0x79b   : > { %5815 = vmatmul.bf16.gmra.mxu2 %v17754_v59  ;;  %v5382_v35 = vadd.f32 %v5381_v26, %v5292_v9  ;;  %5904 = vmatmul.bf16.gmra.mxu3 %v17755_v41  ;;  %v5482_v48 = vsel %vm5465_vm6, %v5445_v29, %v5447_v11 }
 0x79c   : > { %6082 = vmatmul.bf16.gmra.mxu1 %v17755_v41  ;;  %v15470_v16 = vadd.f32 %v5482_v48, %v17756_v1 }
 0x79d   : > { %v5450_v17 = vrot.slane %v5382_v35, 6  ;;  %5993 = vmatmul.bf16.gmra.mxu0 %v17754_v59 }
 0x79e   : > { %v5114_v32 = vpop.f32.mrf.mxu2  ;;  %v5203_v56 = vpop.f32.mrf.mxu3 }
 0x79f   : > { %v5204_v6 = vadd.f32 %v5203_v56, %v5114_v32  ;;  %v5481_v62 = vsel %vm5465_vm6, %v5448_v31, %v5450_v17 }
 0x7a0   : > { %v15476_v26 = vadd.f32 %v5481_v62, %v17757_v19 }
 0x7a1   : > { %v5449_v9 = vrot.slane %v5204_v6, 6  ;;  %v5383_v58 = vpop.f32.mrf.mxu1 }
 0x7a2   : > { %v5294_v29 = vpop.f32.mrf.mxu0 }
 0x7a3   : > { %v5384_v23 = vadd.f32 %v5383_v58, %v5294_v29  ;;  %v5480_v41 = vsel %vm5465_vm6, %v5447_v11, %v5449_v9  ;;  %v17760_v58 = vld [vmem:[#allocation54_spill] sm:$0xff] }
 0x7a4   : > { %v15481_v35 = vadd.f32 %v5480_v41, %v14856_v36  ;;  %v17761_v11 = vld [vmem:[#allocation26_spill] sm:$0xff] }
 0x7a5   : > { %v5452_v59 = vrot.slane %v5384_v23, 6  ;;  %v17762_v23 = vld [vmem:[#allocation44_spill] sm:$0xff] }
 0x7a6   : > { %17758 = vst [vmem:[#allocation31_spill] sm:$0xff] %v15481_v35  ;;  %v5116_v48 = vpop.f32.mrf.mxu2  ;;  %v5205_v1 = vpop.f32.mrf.mxu3 }
 0x7a7   : > { %v5206_v32 = vadd.f32 %v5205_v1, %v5116_v48  ;;  %v5479_v31 = vsel %vm5465_vm6, %v5450_v17, %v5452_v59 }
 0x7a8   : > { %v15486_v56 = vadd.f32 %v5479_v31, %v14861_v55  ;;  %v17763_v31 = vld [vmem:[#allocation45_spill] sm:$0xff] }
 0x7a9   : > { %v5451_v6 = vrot.slane %v5206_v32, 6  ;;  %v5386_v62 = vpop.f32.mrf.mxu1 }
 0x7aa   : > { %17759 = vst [vmem:[#allocation67_spill] sm:$0xff] %v15486_v56  ;;  %v5297_v19 = vpop.f32.mrf.mxu0 }
 0x7ab   : > { %5820 = vmatmul.bf16.gmra.mxu2 %v17760_v58  ;;  %v5387_v29 = vadd.f32 %v5386_v62, %v5297_v19  ;;  %5909 = vmatmul.bf16.gmra.mxu3 %v17761_v11  ;;  %v5478_v36 = vsel %vm5465_vm6, %v5449_v9, %v5451_v6 }
 0x7ac   : > { %6087 = vmatmul.bf16.gmra.mxu1 %v17761_v11  ;;  %v15494_v41 = vadd.f32 %v5478_v36, %v17762_v23 }
 0x7ad   : > { %v5454_v17 = vrot.slane %v5387_v29, 6  ;;  %5998 = vmatmul.bf16.gmra.mxu0 %v17760_v58 }
 0x7ae   : > { %v5119_v55 = vpop.f32.mrf.mxu2  ;;  %v5208_v48 = vpop.f32.mrf.mxu3 }
 0x7af   : > { %v5209_v1 = vadd.f32 %v5208_v48, %v5119_v55  ;;  %v5477_v32 = vsel %vm5465_vm6, %v5452_v59, %v5454_v17 }
 0x7b0   : > { %v15500_v62 = vadd.f32 %v5477_v32, %v17763_v31 }
 0x7b1   : > { %v5453_v19 = vrot.slane %v5209_v1, 6  ;;  %v5388_v56 = vpop.f32.mrf.mxu1 }
 0x7b2   : > { %17764 = vst [vmem:[#allocation68_spill] sm:$0xff] %v15500_v62  ;;  %v5299_v9 = vpop.f32.mrf.mxu0 }
 0x7b3   : > { %v5389_v35 = vadd.f32 %v5388_v56, %v5299_v9  ;;  %v5476_v11 = vsel %vm5465_vm6, %v5451_v6, %v5453_v19  ;;  %v17767_v6 = vld [vmem:[#allocation55_spill] sm:$0xff] }
 0x7b4   : > { %v15505_v29 = vadd.f32 %v5476_v11, %v14880_v43 }
 0x7b5   : > { %v5456_v58 = vrot.slane %v5389_v35, 6  ;;  %v17768_v35 = vld [vmem:[#allocation61_spill] sm:$0xff] }
 0x7b6   : > { %17765 = vst [vmem:[#allocation69_spill] sm:$0xff] %v15505_v29  ;;  %v5121_v36 = vpop.f32.mrf.mxu2  ;;  %v5210_v23 = vpop.f32.mrf.mxu3 }
 0x7b7   : > { %v5211_v55 = vadd.f32 %v5210_v23, %v5121_v36  ;;  %v5475_v59 = vsel %vm5465_vm6, %v5454_v17, %v5456_v58 }
 0x7b8   : > { %v15510_v48 = vadd.f32 %v5475_v59, %v14885_v45 }
 0x7b9   : > { %v5455_v1 = vrot.slane %v5211_v55, 6  ;;  %v5391_v32 = vpop.f32.mrf.mxu1  ;;  %v17770_v55 = vld [vmem:[#allocation79_spill] sm:$0xff] }
 0x7ba   : > { %17766 = vst [vmem:[#allocation70_spill] sm:$0xff] %v15510_v48  ;;  %v5302_v31 = vpop.f32.mrf.mxu0 }
 0x7bb   : > { %5825 = vmatmul.bf16.gmra.mxu2 %v17594_v52  ;;  %v5392_v56 = vadd.f32 %v5391_v32, %v5302_v31  ;;  %5914 = vmatmul.bf16.gmra.mxu3 %v17767_v6  ;;  %v5474_v43 = vsel %vm5465_vm6, %v5453_v19, %v5455_v1 }
 0x7bc   : > { %6092 = vmatmul.bf16.gmra.mxu1 %v17767_v6  ;;  %v15518_v9 = vadd.f32 %v5474_v43, %v17768_v35 }
 0x7bd   : > { %v5458_v17 = vrot.slane %v5392_v56, 6  ;;  %6003 = vmatmul.bf16.gmra.mxu0 %v17594_v52 }
 0x7be   : > { %17769 = vst [vmem:[#allocation36_spill] sm:$0xff] %v15518_v9  ;;  %v5124_v45 = vpop.f32.mrf.mxu2  ;;  %v5213_v11 = vpop.f32.mrf.mxu3 }
 0x7bf   : > { %v5214_v36 = vadd.f32 %v5213_v11, %v5124_v45  ;;  %v5473_v23 = vsel %vm5465_vm6, %v5456_v58, %v5458_v17 }
 0x7c0   : > { %v15524_v59 = vadd.f32 %v5473_v23, %v17770_v55 }
 0x7c1   : > { %v5457_v32 = vrot.slane %v5214_v36, 6  ;;  %v5393_v31 = vpop.f32.mrf.mxu1 }
 0x7c2   : > { %17771 = vst [vmem:[#allocation46_spill] sm:$0xff] %v15524_v59  ;;  %v5304_v19 = vpop.f32.mrf.mxu0 }
 0x7c3   : > { %v5394_v48 = vadd.f32 %v5393_v31, %v5304_v19  ;;  %v5472_v6 = vsel %vm5465_vm6, %v5455_v1, %v5457_v32  ;;  %v17774_v31 = vld [vmem:[#allocation56_spill] sm:$0xff] }
 0x7c4   : > { %v15529_v56 = vadd.f32 %v5472_v6, %v14904_v47  ;;  %v17775_v1 = vld [vmem:[#allocation28_spill] sm:$0xff] }
 0x7c5   : > { %v5460_v52 = vrot.slane %v5394_v48, 6  ;;  %v17776_v48 = vld [vmem:[#allocation15_spill] sm:$0xff] }
 0x7c6   : > { %17772 = vst [vmem:[#allocation34_spill] sm:$0xff] %v15529_v56  ;;  %v5126_v43 = vpop.f32.mrf.mxu2  ;;  %v5215_v35 = vpop.f32.mrf.mxu3 }
 0x7c7   : > { %v5216_v45 = vadd.f32 %v5215_v35, %v5126_v43  ;;  %v5471_v58 = vsel %vm5465_vm6, %v5458_v17, %v5460_v52 }
 0x7c8   : > { %v15534_v11 = vadd.f32 %v5471_v58, %v14909_v10 }
 0x7c9   : > { %v5459_v36 = vrot.slane %v5216_v45, 6  ;;  %v5396_v23 = vpop.f32.mrf.mxu1 }
 0x7ca   : > { %17773 = vst [vmem:[#allocation42_spill] sm:$0xff] %v15534_v11  ;;  %v5307_v55 = vpop.f32.mrf.mxu0 }
 0x7cb   : > { %5830 = vmatmul.bf16.gmra.mxu2 %v17774_v31  ;;  %v5397_v19 = vadd.f32 %v5396_v23, %v5307_v55  ;;  %5919 = vmatmul.bf16.gmra.mxu3 %v17775_v1  ;;  %v5470_v47 = vsel %vm5465_vm6, %v5457_v32, %v5459_v36 }
 0x7cc   : > { %6097 = vmatmul.bf16.gmra.mxu1 %v17775_v1  ;;  %v15542_v6 = vadd.f32 %v5470_v47, %v17776_v48 }
 0x7cd   : > { %v5462_v17 = vrot.slane %v5397_v19, 6  ;;  %6008 = vmatmul.bf16.gmra.mxu0 %v17774_v31 }
 0x7ce   : > { %17777 = vst [vmem:[#allocation40_spill] sm:$0xff] %v15542_v6  ;;  %v5129_v10 = vpop.f32.mrf.mxu2  ;;  %v5218_v43 = vpop.f32.mrf.mxu3 }
 0x7cf   : > { %v5219_v35 = vadd.f32 %v5218_v43, %v5129_v10  ;;  %v5469_v45 = vsel %vm5465_vm6, %v5460_v52, %v5462_v17  ;;  %v17780_v43 = vrot.slane %v14949_v63, 6  ;;  %v6207_v63 = vld [vmem:[%s16981_s4] sm:$0x3] }
 0x7d0   : > { %v15548_v58 = vadd.f32 %v5469_v45, %v14923_v12  ;;  %v17781_v45 = vld [vmem:[#allocation62_spill] sm:$0xff] }
 0x7d1   : > { %v5461_v23 = vrot.slane %v5219_v35, 6  ;;  %v5398_v55 = vpop.f32.mrf.mxu1 }
 0x7d2   : > { %17778 = vst [vmem:[#allocation39_spill] sm:$0xff] %v15548_v58  ;;  %v5309_v32 = vpop.f32.mrf.mxu0 }
 0x7d3   : > { %v5399_v11 = vadd.f32 %v5398_v55, %v5309_v32  ;;  %v5468_v1 = vsel %vm5465_vm6, %v5459_v36, %v5461_v23 }
 0x7d4   : > { %v15553_v19 = vadd.f32 %v5468_v1, %v14928_v7 }
 0x7d5   : > { %v5464_v31 = vrot.slane %v5399_v11, 6  ;;  %v17783_v11 = vld [vmem:[#allocation29_spill] sm:$0xff] }
 0x7d6   : > { %17779 = vst [vmem:[#allocation71_spill] sm:$0xff] %v15553_v19  ;;  %v5131_v47 = vpop.f32.mrf.mxu2  ;;  %v5220_v48 = vpop.f32.mrf.mxu3 }
 0x7d7   : > { %v5221_v10 = vadd.f32 %v5220_v48, %v5131_v47  ;;  %v5529_v12 = vsel %vm5465_vm6, %v5464_v31, %v17780_v43  ;;  %v5467_v52 = vsel %vm5465_vm6, %v5462_v17, %v5464_v31  ;;  %v17784_v47 = vld [vmem:[#allocation30_spill] sm:$0xff]  ;;  %v17785_v48 = vld [vmem:[#allocation63_spill] sm:$0xff]  ;;  %v17787_v31 = vld [vmem:[#allocation80_spill] sm:$0xff] }
 0x7d8   : > { %v5593_v35 = vadd.f32 %v5529_v12, %v14937_v40  ;;  %v15563_v55 = vadd.f32 %v5467_v52, %v17781_v45  ;;  %v17786_v43 = vrot.slane %v17785_v48, 6  ;;  %v17788_v12 = vld [vmem:[#allocation81_spill] sm:$0xff] }
 0x7d9   : > { %v5463_v36 = vrot.slane %v5221_v10, 6  ;;  %v6063_v7 = vpop.f32.mrf.mxu1 }
 0x7da   : > { %17782 = vst [vmem:[#allocation72_spill] sm:$0xff] %v15563_v55  ;;  %v5974_v32 = vpop.f32.mrf.mxu0 }
 0x7db   : > { %5835 = vmatmul.bf16.gmra.mxu2 %v17783_v11  ;;  %v6064_v1 = vadd.f32 %v6063_v7, %v5974_v32  ;;  %5924 = vmatmul.bf16.gmra.mxu3 %v17784_v47  ;;  %v5528_v40 = vsel %vm5465_vm6, %v5463_v36, %v17786_v43  ;;  %v5466_v17 = vsel %vm5465_vm6, %v5461_v23, %v5463_v36  ;;  %v15582_v32 = vperm.slane %v6207_v63, 1 }
 0x7dc   : > { %6102 = vmatmul.bf16.gmra.mxu1 %v17784_v47  ;;  %v5592_v10 = vadd.f32 %v5528_v40, %v17787_v31  ;;  %v15579_v52 = vadd.f32 %v5466_v17, %v17788_v12  ;;  %v15585_v36 = vperm.slane %v6207_v63, 0  ;;  %v17790_v40 = vld [vmem:[#allocation18_spill] sm:$0xff]  ;;  %v17792_v63 = vld [vmem:[#allocation32_spill] sm:$0xff] }
 0x7dd   : > { %v6206_v45 = vadd.f32 %v6064_v1, %v5593_v35  ;;  %6013 = vmatmul.bf16.gmra.mxu0 %v17783_v11 }
 0x7de   : > { %17789 = vst [vmem:[#allocation59_spill] sm:$0xff] %v15579_v52  ;;  %v5796_v7 = vpop.f32.mrf.mxu2  ;;  %v5885_v48 = vpop.f32.mrf.mxu3 }
 0x7df   : > { %v5886_v55 = vadd.f32 %v5885_v48, %v5796_v7  ;;  %v6276_v58 = vadd.f32 %v15582_v32, %v6206_v45 }
 0x7e1   : > { %v6205_v19 = vadd.f32 %v5886_v55, %v5592_v10  ;;  %v6065_v43 = vpop.f32.mrf.mxu1  ;;  %v6340_v12 = vmax.f32 %v6276_v58, 0.0 }
 0x7e2   : > { %v5976_v23 = vpop.f32.mrf.mxu0 }
 0x7e3   : > { %v6066_v47 = vadd.f32 %v6065_v43, %v5976_v23  ;;  %v6275_v11 = vadd.f32 %v15585_v36, %v6205_v19  ;;  %v15591_v7 = vrot.slane %v6340_v12, 2 }
 0x7e5   : > { %v6144_v31 = vadd.f32 %v6066_v47, %v17790_v40  ;;  %17791 = vst [vmem:[#allocation20_spill] sm:$0xff] %v15591_v7  ;;  %v6339_v48 = vmax.f32 %v6275_v11, 0.0  ;;  %v17793_v47 = vld [vmem:[#allocation33_spill] sm:$0xff] }
 0x7e6   : > { %v5798_v17 = vpop.f32.mrf.mxu2  ;;  %v5887_v35 = vpop.f32.mrf.mxu3 }
 0x7e7   : > { %v6214_v1 = vadd.f32 %v15582_v32, %v6144_v31  ;;  %v5888_v52 = vadd.f32 %v5887_v35, %v5798_v17  ;;  %v15604_v35 = vrot.slane %v6339_v48, 2 }
 0x7e9   : > { %v6278_v6 = vmax.f32 %v6214_v1, 0.0  ;;  %v6143_v55 = vadd.f32 %v5888_v52, %v14980_v54  ;;  %v6068_v10 = vpop.f32.mrf.mxu1  ;;  %17795 = vst [vmem:[#allocation73_spill] sm:$0xff] %v15604_v35 }
 0x7ea   : > { %v5979_v45 = vpop.f32.mrf.mxu0 }
 0x7eb   : > { %5840 = vmatmul.bf16.gmra.mxu2 %v17792_v63  ;;  %v6342_v43 = vrot.slane %v6278_v6, 2  ;;  %v6213_v23 = vadd.f32 %v15585_v36, %v6143_v55  ;;  %v6069_v58 = vadd.f32 %v6068_v10, %v5979_v45  ;;  %5929 = vmatmul.bf16.gmra.mxu3 %v17793_v47 }
 0x7ec   : > { %6107 = vmatmul.bf16.gmra.mxu1 %v17793_v47 }
 0x7ed   : > { %v6277_v19 = vmax.f32 %v6213_v23, 0.0  ;;  %v6146_v40 = vadd.f32 %v6069_v58, %v14986_v28  ;;  %6018 = vmatmul.bf16.gmra.mxu0 %v17792_v63  ;;  %v6468_v52 = vsel %vm1348_vm2, %v15591_v7, %v6342_v43 }
 0x7ee   : > { %v5801_v54 = vpop.f32.mrf.mxu2  ;;  %v5890_v31 = vpop.f32.mrf.mxu3  ;;  %v15602_v17 = vmax.f32 %v6340_v12, %v6468_v52 }
 0x7ef   : > { %v6341_v11 = vrot.slane %v6277_v19, 2  ;;  %v6216_v1 = vadd.f32 %v15582_v32, %v6146_v40  ;;  %v5891_v55 = vadd.f32 %v5890_v31, %v5801_v54 }
 0x7f0   : > { %17794 = vst [vmem:[#allocation49_spill] sm:$0xff] %v15602_v17 }
 0x7f1   : > { %v6280_v10 = vmax.f32 %v6216_v1, 0.0  ;;  %v6145_v45 = vadd.f32 %v5891_v55, %v14991_v22  ;;  %v6070_v28 = vpop.f32.mrf.mxu1  ;;  %v6467_v63 = vsel %vm1348_vm2, %v15604_v35, %v6341_v11 }
 0x7f2   : > { %v5981_v23 = vpop.f32.mrf.mxu0  ;;  %v15611_v58 = vmax.f32 %v6339_v48, %v6467_v63 }
 0x7f3   : > { %v6344_v47 = vrot.slane %v6280_v10, 2  ;;  %v6215_v12 = vadd.f32 %v15585_v36, %v6145_v45  ;;  %v6071_v52 = vadd.f32 %v6070_v28, %v5981_v23 }
 0x7f4   : > { %17796 = vst [vmem:[#allocation74_spill] sm:$0xff] %v15611_v58 }
 0x7f5   : > { %v6279_v17 = vmax.f32 %v6215_v12, 0.0  ;;  %v6148_v7 = vadd.f32 %v6071_v52, %v14996_v2  ;;  %v6466_v54 = vsel %vm1348_vm2, %v6342_v43, %v6344_v47  ;;  %v17797_v12 = vld [vmem:[#allocation35_spill] sm:$0xff] }
 0x7f6   : > { %v5803_v40 = vpop.f32.mrf.mxu2  ;;  %v5892_v22 = vpop.f32.mrf.mxu3  ;;  %v15617_v31 = vmax.f32 %v6278_v6, %v6466_v54 }
 0x7f7   : > { %v6343_v1 = vrot.slane %v6279_v17, 2  ;;  %v6218_v55 = vadd.f32 %v15582_v32, %v6148_v7  ;;  %v5893_v35 = vadd.f32 %v5892_v22, %v5803_v40 }
 0x7f9   : > { %v6282_v48 = vmax.f32 %v6218_v55, 0.0  ;;  %v6147_v63 = vadd.f32 %v5893_v35, %v15004_v8  ;;  %v6073_v58 = vpop.f32.mrf.mxu1  ;;  %v6465_v45 = vsel %vm1348_vm2, %v6341_v11, %v6343_v1 }
 0x7fa   : > { %v5984_v28 = vpop.f32.mrf.mxu0  ;;  %v15624_v2 = vmax.f32 %v6277_v19, %v6465_v45 }
 0x7fb   : > { %5845 = vmatmul.bf16.gmra.mxu2 %v17519_v34  ;;  %v6346_v43 = vrot.slane %v6282_v48, 2  ;;  %v6217_v6 = vadd.f32 %v15585_v36, %v6147_v63  ;;  %v6074_v23 = vadd.f32 %v6073_v58, %v5984_v28  ;;  %5934 = vmatmul.bf16.gmra.mxu3 %v17797_v12 }
 0x7fc   : > { %6112 = vmatmul.bf16.gmra.mxu1 %v17797_v12 }
 0x7fd   : > { %v6281_v7 = vmax.f32 %v6217_v6, 0.0  ;;  %v6150_v8 = vadd.f32 %v6074_v23, %v15010_v20  ;;  %6023 = vmatmul.bf16.gmra.mxu0 %v17519_v34  ;;  %v6464_v11 = vsel %vm1348_vm2, %v6344_v47, %v6346_v43 }
 0x7fe   : > { %v5806_v35 = vpop.f32.mrf.mxu2  ;;  %v5895_v52 = vpop.f32.mrf.mxu3  ;;  %v15633_v19 = vmax.f32 %v6280_v10, %v6464_v11 }
 0x7ff   : > { %v6345_v40 = vrot.slane %v6281_v7, 2  ;;  %v6220_v54 = vadd.f32 %v15582_v32, %v6150_v8  ;;  %v5896_v58 = vadd.f32 %v5895_v52, %v5806_v35 }
 0x800   : > { %v10077_v22 = vpack.i.bf16 %v15633_v19, %v15617_v31 }
 0x801   : > { %v6284_v55 = vmax.f32 %v6220_v54, 0.0  ;;  %v6149_v63 = vadd.f32 %v5896_v58, %v15015_v57  ;;  %v6075_v20 = vpop.f32.mrf.mxu1  ;;  %v6463_v34 = vsel %vm1348_vm2, %v6343_v1, %v6345_v40 }
 0x802   : > { %v5986_v45 = vpop.f32.mrf.mxu0  ;;  %10078 = vrot.lane.b32.xlu0 %v10077_v22, %s10419_s11  ;;  %v15642_v10 = vmax.f32 %v6279_v17, %v6463_v34  ;;  %v17798_v22 = vld [vmem:[#allocation82_spill] sm:$0xff] }
 0x803   : > { %v6348_v47 = vrot.slane %v6284_v55, 2  ;;  %v6219_v28 = vadd.f32 %v15585_v36, %v6149_v63  ;;  %v6076_v6 = vadd.f32 %v6075_v20, %v5986_v45  ;;  %v17799_v45 = vld [vmem:[#allocation47_spill] sm:$0xff] }
 0x804   : > { %v10072_v23 = vpack.i.bf16 %v15642_v10, %v15624_v2 }
 0x805   : > { %v6283_v12 = vmax.f32 %v6219_v28, 0.0  ;;  %v6152_v57 = vadd.f32 %v6076_v6, %v15020_v5  ;;  %v6462_v1 = vsel %vm1348_vm2, %v6346_v43, %v6348_v47 }
 0x806   : > { %v5808_v8 = vpop.f32.mrf.mxu2  ;;  %v5897_v35 = vpop.f32.mrf.mxu3  ;;  %10073 = vrot.lane.b32.xlu2 %v10072_v23, %s10419_s11  ;;  %v15651_v11 = vmax.f32 %v6282_v48, %v6462_v1  ;;  %v17800_v23 = vld [vmem:[#allocation37_spill] sm:$0xff] }
 0x807   : > { %v6347_v17 = vrot.slane %v6283_v12, 2  ;;  %v6222_v52 = vadd.f32 %v15582_v32, %v6152_v57  ;;  %v5898_v54 = vadd.f32 %v5897_v35, %v5808_v8  ;;  %v17801_v8 = vld [vmem:[#allocation83_spill] sm:$0xff] }
 0x809   : > { %v6286_v58 = vmax.f32 %v6222_v52, 0.0  ;;  %v6151_v63 = vadd.f32 %v5898_v54, %v17798_v22  ;;  %v6078_v20 = vpop.f32.mrf.mxu1  ;;  %v6461_v5 = vsel %vm1348_vm2, %v6345_v40, %v6347_v17 }
 0x80a   : > { %v5989_v34 = vpop.f32.mrf.mxu0  ;;  %v15658_v43 = vmax.f32 %v6281_v7, %v6461_v5 }
 0x80b   : > { %5850 = vmatmul.bf16.gmra.mxu2 %v17799_v45  ;;  %v6350_v28 = vrot.slane %v6286_v58, 2  ;;  %v6221_v48 = vadd.f32 %v15585_v36, %v6151_v63  ;;  %v6079_v6 = vadd.f32 %v6078_v20, %v5989_v34  ;;  %5939 = vmatmul.bf16.gmra.mxu3 %v17800_v23  ;;  %v17802_v34 = vld [vmem:[#allocation17_spill] sm:$0xff] }
 0x80c   : > { %6117 = vmatmul.bf16.gmra.mxu1 %v17800_v23 }
 0x80d   : > { %v6285_v57 = vmax.f32 %v6221_v48, 0.0  ;;  %v6154_v1 = vadd.f32 %v6079_v6, %v17801_v8  ;;  %6028 = vmatmul.bf16.gmra.mxu0 %v17799_v45  ;;  %v6460_v40 = vsel %vm1348_vm2, %v6348_v47, %v6350_v28 }
 0x80e   : > { %v5811_v35 = vpop.f32.mrf.mxu2  ;;  %v5900_v52 = vpop.f32.mrf.mxu3  ;;  %v15667_v7 = vmax.f32 %v6284_v55, %v6460_v40 }
 0x80f   : > { %v6349_v54 = vrot.slane %v6285_v57, 2  ;;  %v6224_v22 = vadd.f32 %v15582_v32, %v6154_v1  ;;  %v5901_v63 = vadd.f32 %v5900_v52, %v5811_v35  ;;  %v17803_v52 = vld [vmem:[#allocation21_spill] sm:$0xff] }
 0x810   : > { %v10087_v20 = vpack.i.bf16 %v15667_v7, %v15651_v11 }
 0x811   : > { %v6288_v5 = vmax.f32 %v6224_v22, 0.0  ;;  %v6153_v48 = vadd.f32 %v5901_v63, %v17802_v34  ;;  %v6080_v6 = vpop.f32.mrf.mxu1  ;;  %v6459_v45 = vsel %vm1348_vm2, %v6347_v17, %v6349_v54 }
 0x812   : > { %v5991_v23 = vpop.f32.mrf.mxu0  ;;  %10088 = vrot.lane.b32.xlu2 %v10087_v20, %s10419_s11  ;;  %v15676_v47 = vmax.f32 %v6283_v12, %v6459_v45 }
 0x813   : > { %v6352_v55 = vrot.slane %v6288_v5, 2  ;;  %v6223_v8 = vadd.f32 %v15585_v36, %v6153_v48  ;;  %v6081_v1 = vadd.f32 %v6080_v6, %v5991_v23  ;;  %v17804_v23 = vld [vmem:[#allocation84_spill] sm:$0xff] }
 0x814   : > { %v10082_v35 = vpack.i.bf16 %v15676_v47, %v15658_v43 }
 0x815   : > { %v6287_v40 = vmax.f32 %v6223_v8, 0.0  ;;  %v6156_v22 = vadd.f32 %v6081_v1, %v17803_v52  ;;  %v6458_v34 = vsel %vm1348_vm2, %v6350_v28, %v6352_v55  ;;  %v17805_v52 = vld [vmem:[#allocation43_spill] sm:$0xff] }
 0x816   : > { %v5813_v63 = vpop.f32.mrf.mxu2  ;;  %v5902_v17 = vpop.f32.mrf.mxu3  ;;  %10083 = vrot.lane.b32.xlu1 %v10082_v35, %s10419_s11  ;;  %v15685_v20 = vmax.f32 %v6286_v58, %v6458_v34  ;;  %v17806_v34 = vld [vmem:[#allocation38_spill] sm:$0xff] }
 0x817   : > { %v6351_v12 = vrot.slane %v6287_v40, 2  ;;  %v6226_v45 = vadd.f32 %v15582_v32, %v6156_v22  ;;  %v5903_v48 = vadd.f32 %v5902_v17, %v5813_v63  ;;  %v17807_v63 = vld [vmem:[#allocation85_spill] sm:$0xff] }
 0x819   : > { %v6290_v6 = vmax.f32 %v6226_v45, 0.0  ;;  %v6155_v56 = vadd.f32 %v5903_v48, %v17804_v23  ;;  %v6083_v59 = vpop.f32.mrf.mxu1  ;;  %v6457_v8 = vsel %vm1348_vm2, %v6349_v54, %v6351_v12 }
 0x81a   : > { %v5994_v1 = vpop.f32.mrf.mxu0  ;;  %v15692_v28 = vmax.f32 %v6285_v57, %v6457_v8 }
 0x81b   : > { %5855 = vmatmul.bf16.gmra.mxu2 %v17805_v52  ;;  %v6354_v9 = vrot.slane %v6290_v6, 2  ;;  %v6225_v58 = vadd.f32 %v15585_v36, %v6155_v56  ;;  %v6084_v35 = vadd.f32 %v6083_v59, %v5994_v1  ;;  %5944 = vmatmul.bf16.gmra.mxu3 %v17806_v34 }
 0x81c   : > { %6122 = vmatmul.bf16.gmra.mxu1 %v17806_v34 }
 0x81d   : > { %v6289_v22 = vmax.f32 %v6225_v58, 0.0  ;;  %v6158_v17 = vadd.f32 %v6084_v35, %v17807_v63  ;;  %6033 = vmatmul.bf16.gmra.mxu0 %v17805_v52  ;;  %v6456_v54 = vsel %vm1348_vm2, %v6352_v55, %v6354_v9  ;;  %v17808_v58 = vld [vmem:[#allocation64_spill] sm:$0xff] }
 0x81e   : > { %v5816_v45 = vpop.f32.mrf.mxu2  ;;  %v5905_v48 = vpop.f32.mrf.mxu3  ;;  %v15701_v57 = vmax.f32 %v6288_v5, %v6456_v54 }
 0x81f   : > { %v6353_v23 = vrot.slane %v6289_v22, 2  ;;  %v6228_v56 = vadd.f32 %v15582_v32, %v6158_v17  ;;  %v5906_v59 = vadd.f32 %v5905_v48, %v5816_v45 }
 0x820   : > { %v10097_v8 = vpack.i.bf16 %v15701_v57, %v15685_v20 }
 0x821   : > { %v6292_v1 = vmax.f32 %v6228_v56, 0.0  ;;  %v6157_v34 = vadd.f32 %v5906_v59, %v17808_v58  ;;  %v6085_v35 = vpop.f32.mrf.mxu1  ;;  %v6455_v52 = vsel %vm1348_vm2, %v6351_v12, %v6353_v23 }
 0x822   : > { %v5996_v63 = vpop.f32.mrf.mxu0  ;;  %10098 = vrot.lane.b32.xlu1 %v10097_v8, %s10419_s11  ;;  %v15710_v55 = vmax.f32 %v6287_v40, %v6455_v52 }
 0x823   : > { %v6356_v5 = vrot.slane %v6292_v1, 2  ;;  %v6227_v54 = vadd.f32 %v15585_v36, %v6157_v34  ;;  %v6086_v17 = vadd.f32 %v6085_v35, %v5996_v63 }
 0x824   : > { %v10092_v45 = vpack.i.bf16 %v15710_v55, %v15692_v28 }
 0x825   : > { %v6291_v48 = vmax.f32 %v6227_v54, 0.0  ;;  %v6160_v56 = vadd.f32 %v6086_v17, %v15150_v38  ;;  %v6454_v58 = vsel %vm1348_vm2, %v6354_v9, %v6356_v5  ;;  %v17809_v17 = vld [vmem:[#allocation41_spill] sm:$0xff] }
 0x826   : > { %v5818_v59 = vpop.f32.mrf.mxu2  ;;  %v5907_v12 = vpop.f32.mrf.mxu3  ;;  %10093 = vrot.lane.b32.xlu0 %v10092_v45, %s10419_s11  ;;  %v15719_v8 = vmax.f32 %v6290_v6, %v6454_v58  ;;  %v17810_v58 = vld [vmem:[#allocation48_spill] sm:$0xff] }
 0x827   : > { %v6355_v40 = vrot.slane %v6291_v48, 2  ;;  %v6230_v52 = vadd.f32 %v15582_v32, %v6160_v56  ;;  %v5908_v34 = vadd.f32 %v5907_v12, %v5818_v59 }
 0x829   : > { %v6294_v35 = vmax.f32 %v6230_v52, 0.0  ;;  %v6159_v63 = vadd.f32 %v5908_v34, %v15187_v46  ;;  %v6088_v29 = vpop.f32.mrf.mxu1  ;;  %v6453_v38 = vsel %vm1348_vm2, %v6353_v23, %v6355_v40 }
 0x82a   : > { %v5999_v54 = vpop.f32.mrf.mxu0  ;;  %v15726_v9 = vmax.f32 %v6289_v22, %v6453_v38 }
 0x82b   : > { %5860 = vmatmul.bf16.gmra.mxu2 %v17809_v17  ;;  %v6358_v62 = vrot.slane %v6294_v35, 2  ;;  %v6229_v6 = vadd.f32 %v15585_v36, %v6159_v63  ;;  %v6089_v45 = vadd.f32 %v6088_v29, %v5999_v54  ;;  %5949 = vmatmul.bf16.gmra.mxu3 %v17810_v58 }
 0x82c   : > { %6127 = vmatmul.bf16.gmra.mxu1 %v17810_v58 }
 0x82d   : > { %v6293_v56 = vmax.f32 %v6229_v6, 0.0  ;;  %v6162_v46 = vadd.f32 %v6089_v45, %v15224_v0  ;;  %6038 = vmatmul.bf16.gmra.mxu0 %v17809_v17  ;;  %v6452_v23 = vsel %vm1348_vm2, %v6356_v5, %v6358_v62 }
 0x82e   : > { %v5821_v59 = vpop.f32.mrf.mxu2  ;;  %v5910_v12 = vpop.f32.mrf.mxu3  ;;  %v15735_v22 = vmax.f32 %v6292_v1, %v6452_v23  ;;  %v17811_v23 = vld [vmem:[#allocation65_spill] sm:$0xff] }
 0x82f   : > { %v6357_v52 = vrot.slane %v6293_v56, 2  ;;  %v6232_v34 = vadd.f32 %v15582_v32, %v6162_v46  ;;  %v5911_v29 = vadd.f32 %v5910_v12, %v5821_v59 }
 0x830   : > { %v10107_v63 = vpack.i.bf16 %v15735_v22, %v15719_v8 }
 0x831   : > { %v6296_v38 = vmax.f32 %v6232_v34, 0.0  ;;  %v6161_v54 = vadd.f32 %v5911_v29, %v15260_v27  ;;  %v6090_v0 = vpop.f32.mrf.mxu1  ;;  %v6451_v17 = vsel %vm1348_vm2, %v6355_v40, %v6357_v52 }
 0x832   : > { %v6001_v6 = vpop.f32.mrf.mxu0  ;;  %10108 = vrot.lane.b32.xlu0 %v10107_v63, %s10419_s11  ;;  %v15744_v5 = vmax.f32 %v6291_v48, %v6451_v17 }
 0x833   : > { %v6360_v1 = vrot.slane %v6296_v38, 2  ;;  %v6231_v45 = vadd.f32 %v15585_v36, %v6161_v54  ;;  %v6091_v58 = vadd.f32 %v6090_v0, %v6001_v6 }
 0x834   : > { %v10102_v46 = vpack.i.bf16 %v15744_v5, %v15726_v9 }
 0x835   : > { %v6295_v59 = vmax.f32 %v6231_v45, 0.0  ;;  %v6164_v12 = vadd.f32 %v6091_v58, %v17811_v23  ;;  %v6450_v34 = vsel %vm1348_vm2, %v6358_v62, %v6360_v1 }
 0x836   : > { %v5823_v27 = vpop.f32.mrf.mxu2  ;;  %v5912_v40 = vpop.f32.mrf.mxu3  ;;  %10103 = vrot.lane.b32.xlu2 %v10102_v46, %s10419_s11  ;;  %v15753_v29 = vmax.f32 %v6294_v35, %v6450_v34 }
 0x837   : > { %v6359_v48 = vrot.slane %v6295_v59, 2  ;;  %v6234_v63 = vadd.f32 %v15582_v32, %v6164_v12  ;;  %v5913_v54 = vadd.f32 %v5912_v40, %v5823_v27  ;;  %v9794_v40 = vld [vmem:[%s16982_s5 + $0x38] sm:$0xff] }
 0x838   : > { %7321 = vmatpush.bf16.msra.mxu0 %v9794_v40 }
 0x839   : > { %v6298_v0 = vmax.f32 %v6234_v63, 0.0  ;;  %v6163_v17 = vadd.f32 %v5913_v54, %v15326_v18  ;;  %v6093_v6 = vpop.f32.mrf.mxu1  ;;  %v6449_v45 = vsel %vm1348_vm2, %v6357_v52, %v6359_v48  ;;  %v9810_v18 = vld [vmem:[%s16982_s5 + $0xb8] sm:$0xff] }
 0x83a   : > { %v6004_v58 = vpop.f32.mrf.mxu0  ;;  %v15760_v62 = vmax.f32 %v6293_v56, %v6449_v45  ;;  %v9818_v52 = vld [vmem:[%s16982_s5 + $0xf8] sm:$0xff]  ;;  %6983 = vmatpush.bf16.msrb.mxu2 %v9810_v18  ;;  %v9793_v18 = vld [vmem:[%s16982_s5 + $0x30] sm:$0xff] }
 0x83b   : > { %5865 = vmatmul.bf16.gmra.mxu2 %v13617_v3  ;;  %v6362_v23 = vrot.slane %v6298_v0, 2  ;;  %v15763_v35 = vadd.f32 %v15585_v36, %v6163_v17  ;;  %v6094_v46 = vadd.f32 %v6093_v6, %v6004_v58  ;;  %5954 = vmatmul.bf16.gmra.mxu3 %v17728_v61  ;;  %v9802_v63 = vld [vmem:[%s16982_s5 + $0x78] sm:$0xff] }
 0x83c   : > { %6132 = vmatmul.bf16.gmra.mxu1 %v17728_v61  ;;  %7072 = vmatpush.bf16.msrb.mxu3 %v9818_v52 }
 0x83d   : > { %v6297_v56 = vmax.f32 %v15763_v35, 0.0  ;;  %v6166_v12 = vadd.f32 %v6094_v46, %v15332_v30  ;;  %6043 = vmatmul.bf16.gmra.mxu0 %v13617_v3  ;;  %v6448_v34 = vsel %vm1348_vm2, %v6360_v1, %v6362_v23  ;;  %7410 = vmatpush.bf16.msra.mxu1 %v9802_v63  ;;  %v9809_v35 = vld [vmem:[%s16982_s5 + $0xb0] sm:$0xff] }
 0x83e   : > { %v5826_v27 = vpop.f32.mrf.mxu2  ;;  %v5915_v61 = vpop.f32.mrf.mxu3  ;;  %v15784_v54 = vmax.f32 %v6296_v38, %v6448_v34  ;;  %v9817_v46 = vld [vmem:[%s16982_s5 + $0xf0] sm:$0xff]  ;;  %6984 = vmatpush.bf16.msrb.mxu2 %v9809_v35  ;;  %7322 = vmatpush.bf16.msra.mxu0 %v9793_v18 }
 0x83f   : > { %v6361_v30 = vrot.slane %v6297_v56, 2  ;;  %v15787_v3 = vadd.f32 %v15582_v32, %v6166_v12  ;;  %v5916_v17 = vadd.f32 %v5915_v61, %v5826_v27 }
 0x840   : > { %v10117_v1 = vpack.i.bf16 %v15784_v54, %v15753_v29  ;;  %7073 = vmatpush.bf16.msrb.mxu3 %v9817_v46 }
 0x841   : > { %v6300_v6 = vmax.f32 %v15787_v3, 0.0  ;;  %v6165_v45 = vadd.f32 %v5916_v17, %v15337_v60  ;;  %v6095_v58 = vpop.f32.mrf.mxu1  ;;  %v6447_v38 = vsel %vm1348_vm2, %v6359_v48, %v6361_v30  ;;  %v9801_v48 = vld [vmem:[%s16982_s5 + $0x70] sm:$0xff] }
 0x842   : > { %v6006_v52 = vpop.f32.mrf.mxu0  ;;  %10118 = vrot.lane.b32.xlu2 %v10117_v1, %s10419_s11  ;;  %v15805_v60 = vmax.f32 %v6295_v59, %v6447_v38  ;;  %7411 = vmatpush.bf16.msra.mxu1 %v9801_v48  ;;  %v9808_v1 = vld [vmem:[%s16982_s5 + $0xa8] sm:$0xff] }
 0x843   : > { %v6364_v12 = vrot.slane %v6300_v6, 2  ;;  %v15813_v27 = vadd.f32 %v15585_v36, %v6165_v45  ;;  %v6096_v34 = vadd.f32 %v6095_v58, %v6006_v52  ;;  %v9816_v45 = vld [vmem:[%s16982_s5 + $0xe8] sm:$0xff]  ;;  %6985 = vmatpush.bf16.msrb.mxu2 %v9808_v1 }
 0x844   : > { %v10112_v40 = vpack.i.bf16 %v15805_v60, %v15760_v62  ;;  %v9792_v58 = vld [vmem:[%s16982_s5 + $0x28] sm:$0xff]  ;;  %7074 = vmatpush.bf16.msrb.mxu3 %v9816_v45 }
 0x845   : > { %v6299_v59 = vmax.f32 %v15813_v27, 0.0  ;;  %v6168_v63 = vadd.f32 %v6096_v34, %v15342_v24  ;;  %v6446_v17 = vsel %vm1348_vm2, %v6362_v23, %v6364_v12  ;;  %v9800_v23 = vld [vmem:[%s16982_s5 + $0x68] sm:$0xff]  ;;  %7323 = vmatpush.bf16.msra.mxu0 %v9792_v58 }
 0x846   : > { %v5828_v61 = vpop.f32.mrf.mxu2  ;;  %v5917_v38 = vpop.f32.mrf.mxu3  ;;  %10113 = vrot.lane.b32.xlu1 %v10112_v40, %s10419_s11  ;;  %v15831_v24 = vmax.f32 %v6298_v0, %v6446_v17  ;;  %7412 = vmatpush.bf16.msra.mxu1 %v9800_v23  ;;  %v9807_v40 = vld [vmem:[%s16982_s5 + $0xa0] sm:$0xff] }
 0x847   : > { %v6363_v35 = vrot.slane %v6299_v59, 2  ;;  %v15839_v46 = vadd.f32 %v15582_v32, %v6168_v63  ;;  %v5918_v18 = vadd.f32 %v5917_v38, %v5828_v61  ;;  %v9815_v63 = vld [vmem:[%s16982_s5 + $0xe0] sm:$0xff]  ;;  %6986 = vmatpush.bf16.msrb.mxu2 %v9807_v40 }
 0x848   : > { %7075 = vmatpush.bf16.msrb.mxu3 %v9815_v63 }
 0x849   : > { %v6302_v52 = vmax.f32 %v15839_v46, 0.0  ;;  %v6167_v0 = vadd.f32 %v5918_v18, %v15350_v49  ;;  %v6098_v48 = vpop.f32.mrf.mxu1  ;;  %v6445_v34 = vsel %vm1348_vm2, %v6361_v30, %v6363_v35  ;;  %v9791_v49 = vld [vmem:[%s16982_s5 + $0x20] sm:$0xff] }
 0x84a   : > { %v6009_v61 = vpop.f32.mrf.mxu0  ;;  %v15852_v17 = vmax.f32 %v6297_v56, %v6445_v34  ;;  %v9799_v30 = vld [vmem:[%s16982_s5 + $0x60] sm:$0xff]  ;;  %7324 = vmatpush.bf16.msra.mxu0 %v9791_v49 }
 0x84b   : > { %5870 = vmatmul.bf16.gmra.mxu2 %v13681_v44  ;;  %v6366_v1 = vrot.slane %v6302_v52, 2  ;;  %v15863_v45 = vadd.f32 %v15585_v36, %v6167_v0  ;;  %v6099_v58 = vadd.f32 %v6098_v48, %v6009_v61  ;;  %5959 = vmatmul.bf16.gmra.mxu3 %v13683_v25  ;;  %v9806_v0 = vld [vmem:[%s16982_s5 + $0x98] sm:$0xff] }
 0x84c   : > { %6137 = vmatmul.bf16.gmra.mxu1 %v13683_v25  ;;  %v9814_v25 = vld [vmem:[%s16982_s5 + $0xd8] sm:$0xff]  ;;  %6987 = vmatpush.bf16.msrb.mxu2 %v9806_v0 }
 0x84d   : > { %v6301_v56 = vmax.f32 %v15863_v45, 0.0  ;;  %v6170_v38 = vadd.f32 %v6099_v58, %v15356_v42  ;;  %6048 = vmatmul.bf16.gmra.mxu0 %v13681_v44  ;;  %v6444_v18 = vsel %vm1348_vm2, %v6364_v12, %v6366_v1  ;;  %7413 = vmatpush.bf16.msra.mxu1 %v9799_v30  ;;  %v9790_v44 = vld [vmem:[%s16982_s5 + $0x18] sm:$0xff]  ;;  %v9805_v58 = vld [vmem:[%s16982_s5 + $0x90] sm:$0xff] }
 0x84e   : > { %v5831_v23 = vpop.f32.mrf.mxu2  ;;  %v5920_v48 = vpop.f32.mrf.mxu3  ;;  %v15880_v34 = vmax.f32 %v6300_v6, %v6444_v18  ;;  %v9798_v42 = vld [vmem:[%s16982_s5 + $0x58] sm:$0xff]  ;;  %7076 = vmatpush.bf16.msrb.mxu3 %v9814_v25  ;;  %7325 = vmatpush.bf16.msra.mxu0 %v9790_v44 }
 0x84f   : > { %v6365_v12 = vrot.slane %v6301_v56, 2  ;;  %v15891_v40 = vadd.f32 %v15582_v32, %v6170_v38  ;;  %v5921_v63 = vadd.f32 %v5920_v48, %v5831_v23  ;;  %v9813_v38 = vld [vmem:[%s16982_s5 + $0xd0] sm:$0xff] }
 0x850   : > { %v10127_v3 = vpack.i.bf16 %v15880_v34, %v15831_v24  ;;  %6988 = vmatpush.bf16.msrb.mxu2 %v9805_v58 }
 0x851   : > { %v6304_v6 = vmax.f32 %v15891_v40, 0.0  ;;  %v6169_v61 = vadd.f32 %v5921_v63, %v15361_v14  ;;  %v6100_v49 = vpop.f32.mrf.mxu1  ;;  %v6443_v30 = vsel %vm1348_vm2, %v6363_v35, %v6365_v12  ;;  %7414 = vmatpush.bf16.msra.mxu1 %v9798_v42  ;;  %v9789_v14 = vld [vmem:[%s16982_s5 + $0x10] sm:$0xff]  ;;  %v9804_v63 = vld [vmem:[%s16982_s5 + $0x88] sm:$0xff] }
 0x852   : > { %v6011_v23 = vpop.f32.mrf.mxu0  ;;  %10128 = vrot.lane.b32.xlu1 %v10127_v3, %s10419_s11  ;;  %v15908_v18 = vmax.f32 %v6299_v59, %v6443_v30  ;;  %v9797_v35 = vld [vmem:[%s16982_s5 + $0x50] sm:$0xff]  ;;  %7077 = vmatpush.bf16.msrb.mxu3 %v9813_v38  ;;  %v9812_v3 = vld [vmem:[%s16982_s5 + $0xc8] sm:$0xff] }
 0x853   : > { %v6368_v0 = vrot.slane %v6304_v6, 2  ;;  %v6239_v25 = vadd.f32 %v15585_v36, %v6169_v61  ;;  %v6101_v48 = vadd.f32 %v6100_v49, %v6011_v23  ;;  %7326 = vmatpush.bf16.msra.mxu0 %v9789_v14 }
 0x854   : > { %v10122_v42 = vpack.i.bf16 %v15908_v18, %v15852_v17  ;;  %6989 = vmatpush.bf16.msrb.mxu2 %v9804_v63 }
 0x855   : > { %v6303_v27 = vmax.f32 %v6239_v25, 0.0  ;;  %v6172_v59 = vadd.f32 %v6101_v48, %v15366_v33  ;;  %v6442_v40 = vsel %vm1348_vm2, %v6366_v1, %v6368_v0  ;;  %7415 = vmatpush.bf16.msra.mxu1 %v9797_v35  ;;  %v9788_v33 = vld [vmem:[%s16982_s5 + $0x8] sm:$0xff]  ;;  %v9803_v35 = vld [vmem:[%s16982_s5 + $0x80] sm:$0xff] }
 0x856   : > { %v5833_v44 = vpop.f32.mrf.mxu2  ;;  %v5922_v61 = vpop.f32.mrf.mxu3  ;;  %10123 = vrot.lane.b32.xlu0 %v10122_v42, %s10419_s11  ;;  %v15931_v49 = vmax.f32 %v6302_v52, %v6442_v40  ;;  %v9796_v1 = vld [vmem:[%s16982_s5 + $0x48] sm:$0xff]  ;;  %7078 = vmatpush.bf16.msrb.mxu3 %v9812_v3  ;;  %v9811_v25 = vld [vmem:[%s16982_s5 + $0xc0] sm:$0xff] }
 0x857   : > { %v6367_v30 = vrot.slane %v6303_v27, 2  ;;  %v6242_v58 = vadd.f32 %v15582_v32, %v6172_v59  ;;  %v5923_v38 = vadd.f32 %v5922_v61, %v5833_v44  ;;  %7327 = vmatpush.bf16.msra.mxu0 %v9788_v33 }
 0x858   : > { %17812 = vst [vmem:[#allocation50_spill] sm:$0xff] %v15931_v49  ;;  %6990 = vmatpush.bf16.msrb.mxu2 %v9803_v35 }
 0x859   : > { %v6306_v23 = vmax.f32 %v6242_v58, 0.0  ;;  %v6171_v46 = vadd.f32 %v5923_v38, %v15374_v15  ;;  %v6103_v52 = vpop.f32.mrf.mxu1  ;;  %v6441_v14 = vsel %vm1348_vm2, %v6365_v12, %v6367_v30  ;;  %7416 = vmatpush.bf16.msra.mxu1 %v9796_v1  ;;  %v9787_v15 = vld [vmem:[%s16982_s5] sm:$0xff] }
 0x85a   : > { %v6014_v48 = vpop.f32.mrf.mxu0  ;;  %v15951_v42 = vmax.f32 %v6301_v56, %v6441_v14  ;;  %v9795_v12 = vld [vmem:[%s16982_s5 + $0x40] sm:$0xff]  ;;  %7079 = vmatpush.bf16.msrb.mxu3 %v9811_v25 }
 0x85b   : > { %v6370_v59 = vrot.slane %v6306_v23, 2  ;;  %v6241_v44 = vadd.f32 %v15585_v36, %v6171_v46  ;;  %v6104_v40 = vadd.f32 %v6103_v52, %v6014_v48  ;;  %7328 = vmatpush.bf16.msra.mxu0 %v9787_v15  ;;  %v17815_v14 = vld [vmem:[#allocation86_spill] sm:$0xff] }
 0x85c   : > { %17813 = vst [vmem:[#allocation51_spill] sm:$0xff] %v15951_v42 }
 0x85d   : > { %v6305_v63 = vmax.f32 %v6241_v44, 0.0  ;;  %v6174_v45 = vadd.f32 %v6104_v40, %v15380_v51  ;;  %v6440_v3 = vsel %vm1348_vm2, %v6368_v0, %v6370_v59  ;;  %7417 = vmatpush.bf16.msra.mxu1 %v9795_v12  ;;  %v17817_v40 = vld [vmem:[#allocation27_spill] sm:$0xff] }
 0x85e   : > { %v5836_v56 = vpop.f32.mrf.mxu2  ;;  %v5925_v61 = vpop.f32.mrf.mxu3  ;;  %v15963_v33 = vmax.f32 %v6304_v6, %v6440_v3 }
 0x85f   : > { %v6369_v1 = vrot.slane %v6305_v63, 2  ;;  %v6244_v58 = vadd.f32 %v15582_v32, %v6174_v45  ;;  %v5926_v38 = vadd.f32 %v5925_v61, %v5836_v56 }
 0x860   : > { %17814 = vst [vmem:[#allocation75_spill] sm:$0xff] %v15963_v33  ;;  %v10137_v46 = vpack.i.bf16 %v15963_v33, %v15931_v49 }
 0x861   : > { %v6308_v52 = vmax.f32 %v6244_v58, 0.0  ;;  %v6173_v35 = vadd.f32 %v5926_v38, %v17815_v14  ;;  %v6105_v51 = vpop.f32.mrf.mxu1  ;;  %v6439_v0 = vsel %vm1348_vm2, %v6367_v30, %v6369_v1 }
 0x862   : > { %v6016_v25 = vpop.f32.mrf.mxu0  ;;  %10138 = vrot.lane.b32.xlu0 %v10137_v46, %s10419_s11  ;;  %v15973_v12 = vmax.f32 %v6303_v27, %v6439_v0 }
 0x863   : > { %v6372_v6 = vrot.slane %v6308_v52, 2  ;;  %v6243_v48 = vadd.f32 %v15585_v36, %v6173_v35  ;;  %v6106_v15 = vadd.f32 %v6105_v51, %v6016_v25 }
 0x864   : > { %17816 = vst [vmem:[#allocation76_spill] sm:$0xff] %v15973_v12  ;;  %v10132_v3 = vpack.i.bf16 %v15973_v12, %v15951_v42 }
 0x865   : > { %v6307_v44 = vmax.f32 %v6243_v48, 0.0  ;;  %v6176_v45 = vadd.f32 %v6106_v15, %v17817_v40  ;;  %v6438_v61 = vsel %vm1348_vm2, %v6370_v59, %v6372_v6 }
 0x866   : > { %v5838_v56 = vpop.f32.mrf.mxu2  ;;  %v5927_v58 = vpop.f32.mrf.mxu3  ;;  %v15980_v38 = vmax.f32 %v6306_v23, %v6438_v61  ;;  %10133 = vrot.lane.b32.xlu2 %v10132_v3, %s10419_s11 }
 0x867   : > { %v6371_v30 = vrot.slane %v6307_v44, 2  ;;  %v6246_v46 = vadd.f32 %v15582_v32, %v6176_v45  ;;  %v5928_v14 = vadd.f32 %v5927_v58, %v5838_v56 }
 0x868   : > { %17818 = vst [vmem:[#allocation52_spill] sm:$0xff] %v15980_v38 }
 0x869   : > { %v6310_v27 = vmax.f32 %v6246_v46, 0.0  ;;  %v6175_v35 = vadd.f32 %v5928_v14, %v15398_v4  ;;  %v6108_v51 = vpop.f32.mrf.mxu1  ;;  %v6437_v25 = vsel %vm1348_vm2, %v6369_v1, %v6371_v30 }
 0x86a   : > { %v6019_v0 = vpop.f32.mrf.mxu0  ;;  %v15987_v48 = vmax.f32 %v6305_v63, %v6437_v25  ;;  %v10074_v63 = vpop.permute.xlu2 %10073  ;;  %v17821_v25 = vld [vmem:[#allocation66_spill] sm:$0xff] }
 0x86b   : > { %v6374_v59 = vrot.slane %v6310_v27, 2  ;;  %v6245_v23 = vadd.f32 %v15585_v36, %v6175_v35  ;;  %v6109_v15 = vadd.f32 %v6108_v51, %v6019_v0 }
 0x86c   : > { %17819 = vst [vmem:[#allocation22_spill] sm:$0xff] %v15987_v48 }
 0x86d   : > { %v6309_v40 = vmax.f32 %v6245_v23, 0.0  ;;  %v6178_v45 = vadd.f32 %v6109_v15, %v15404_v37  ;;  %v6436_v3 = vsel %vm1348_vm2, %v6372_v6, %v6374_v59 }
 0x86e   : > { %v5841_v56 = vpop.f32.mrf.mxu2  ;;  %v5930_v61 = vpop.f32.mrf.mxu3  ;;  %v15994_v1 = vmax.f32 %v6308_v52, %v6436_v3 }
 0x86f   : > { %v6373_v4 = vrot.slane %v6309_v40, 2  ;;  %v6248_v58 = vadd.f32 %v15582_v32, %v6178_v45  ;;  %v5931_v46 = vadd.f32 %v5930_v61, %v5841_v56  ;;  %v10076_v45 = vunpack.i.h.bf16 %v10074_v63  ;;  %v17823_v61 = vld [vmem:[#allocation16_spill] sm:$0xff] }
 0x870   : > { %17820 = vst [vmem:[#allocation77_spill] sm:$0xff] %v15994_v1  ;;  %v10147_v51 = vpack.i.bf16 %v15994_v1, %v15980_v38  ;;  %v10075_v56 = vunpack.i.l.bf16 %v10074_v63  ;;  %vm6661_vm7 = vcmp.lt.s32.totalorder %v17823_v61, 108 }
 0x871   : > { %v6312_v14 = vmax.f32 %v6248_v58, 0.0  ;;  %v6177_v33 = vadd.f32 %v5931_v46, %v17821_v25  ;;  %v6110_v35 = vpop.f32.mrf.mxu1  ;;  %v6435_v37 = vsel %vm1348_vm2, %v6371_v30, %v6373_v4  ;;  %v17824_v46 = vld [vmem:[#allocation87_spill] sm:$0xff] }
 0x872   : > { %v6021_v0 = vpop.f32.mrf.mxu0  ;;  %v16001_v23 = vmax.f32 %v6307_v44, %v6435_v37  ;;  %10148 = vrot.lane.b32.xlu2 %v10147_v51, %s10419_s11 }
 0x873   : > { %v6376_v6 = vrot.slane %v6312_v14, 2  ;;  %v16004_v15 = vadd.f32 %v15585_v36, %v6177_v33  ;;  %v6111_v52 = vadd.f32 %v6110_v35, %v6021_v0 }
 0x874   : > { %17822 = vst [vmem:[#allocation78_spill] sm:$0xff] %v16001_v23  ;;  %v10079_v3 = vpop.permute.xlu0 %10078  ;;  %v10142_v58 = vpack.i.bf16 %v16001_v23, %v15987_v48 }
 0x875   : > { %v6311_v30 = vmax.f32 %v16004_v15, 0.0  ;;  %v6180_v44 = vadd.f32 %v6111_v52, %v17824_v46  ;;  %v10081_v25 = vunpack.i.h.bf16 %v10079_v3  ;;  %v10080_v37 = vunpack.i.l.bf16 %v10079_v3 }
 0x876   : > { %v5843_v1 = vpop.f32.mrf.mxu2  ;;  %v5932_v33 = vpop.f32.mrf.mxu3  ;;  %10143 = vrot.lane.b32.xlu1 %v10142_v58, %s10419_s11  ;;  %v6434_v35 = vsel %vm1348_vm2, %v6374_v59, %v6376_v6 }
 0x877   : > { %v6375_v63 = vrot.slane %v6311_v30, 2  ;;  %v6250_v51 = vadd.f32 %v15582_v32, %v6180_v44  ;;  %v6662_v0 = vsel %vm6661_vm7, %v10075_v56, %v10080_v37  ;;  %v6663_v15 = vsel %vm6661_vm7, %v10076_v45, %v10081_v25 }
 0x878   : > { %v6694_v52 = vsel %vm6661_vm7, %v10080_v37, %v10075_v56  ;;  %v6695_v3 = vsel %vm6661_vm7, %v10081_v25, %v10076_v45  ;;  %v6726_v58 = vmax.f32 %v15624_v2, %v6662_v0  ;;  %v6728_v46 = vmax.f32 %v15642_v10, %v6663_v15 }
 0x879   : > { %v6314_v59 = vmax.f32 %v6250_v51, 0.0  ;;  %v6727_v38 = vmax.f32 %v15617_v31, %v6694_v52  ;;  %v6729_v44 = vmax.f32 %v15633_v19, %v6695_v3  ;;  %v5933_v23 = vadd.f32 %v5932_v33, %v5843_v1  ;;  %v6113_v48 = vpop.f32.mrf.mxu1  ;;  %v17825_v33 = vld [vmem:[#allocation88_spill] sm:$0xff] }
 0x87a   : > { %v16028_v49 = vpack.c.bf16 %v6728_v46, %v6726_v58  ;;  %v6024_v12 = vpop.f32.mrf.mxu0  ;;  %v16030_v42 = vmax.f32 %v6310_v27, %v6434_v35  ;;  %v6433_v56 = vsel %vm1348_vm2, %v6373_v4, %v6375_v63  ;;  %v10089_v58 = vpop.permute.xlu2 %10088 }
 0x87b   : > { %v6378_v45 = vrot.slane %v6314_v59, 2  ;;  %v16034_v25 = vpack.c.bf16 %v6729_v44, %v6727_v38  ;;  %v6179_v2 = vadd.f32 %v5933_v23, %v15422_v39  ;;  %v6114_v10 = vadd.f32 %v6113_v48, %v6024_v12  ;;  %v17826_v44 = vld [vmem:[#allocation89_spill] sm:$0xff] }
 0x87c   : > { %6991 = vmatmul.bf16.vlgmr.msrb.gmra.mxu2 %v16028_v49  ;;  %7329 = vmatmul.bf16.vlgmr.msra.gmra.mxu0 %v16028_v49  ;;  %v16039_v31 = vmax.f32 %v6309_v40, %v6433_v56 }
 0x87d   : > { %v16042_v19 = vadd.f32 %v15585_v36, %v6179_v2  ;;  %v6182_v27 = vadd.f32 %v6114_v10, %v15428_v21  ;;  %7080 = vmatmul.bf16.vlgmr.msrb.gmra.mxu3 %v16034_v25  ;;  %7418 = vmatmul.bf16.vlgmr.msra.gmra.mxu1 %v16034_v25  ;;  %v6432_v39 = vsel %vm1348_vm2, %v6376_v6, %v6378_v45 }
 0x87e   : > { %v5846_v38 = vpop.f32.mrf.mxu2  ;;  %v5935_v12 = vpop.f32.mrf.mxu3  ;;  %v16049_v48 = vmax.f32 %v6312_v14, %v6432_v39 }
 0x87f   : > { %v6313_v4 = vmax.f32 %v16042_v19, 0.0  ;;  %v6252_v40 = vadd.f32 %v15582_v32, %v6182_v27  ;;  %v5936_v1 = vadd.f32 %v5935_v12, %v5846_v38  ;;  %v10090_v12 = vunpack.i.l.bf16 %v10089_v58 }
 0x880   : > { %v10157_v23 = vpack.i.bf16 %v16049_v48, %v16030_v42 }
 0x881   : > { %v6377_v21 = vrot.slane %v6313_v4, 2  ;;  %v6316_v37 = vmax.f32 %v6252_v40, 0.0  ;;  %v6181_v35 = vadd.f32 %v5936_v1, %v17825_v33  ;;  %v6115_v51 = vpop.f32.mrf.mxu1 }
 0x882   : > { %v6026_v0 = vpop.f32.mrf.mxu0  ;;  %10158 = vrot.lane.b32.xlu1 %v10157_v23, %s10419_s11 }
 0x883   : > { %v6380_v6 = vrot.slane %v6316_v37, 2  ;;  %v16058_v14 = vadd.f32 %v15585_v36, %v6181_v35  ;;  %v6116_v15 = vadd.f32 %v6115_v51, %v6026_v0  ;;  %v6431_v52 = vsel %vm1348_vm2, %v6375_v63, %v6377_v21 }
 0x884   : > { %v16062_v3 = vmax.f32 %v6311_v30, %v6431_v52  ;;  %v10091_v51 = vunpack.i.h.bf16 %v10089_v58 }
 0x885   : > { %v6315_v46 = vmax.f32 %v16058_v14, 0.0  ;;  %v6184_v56 = vadd.f32 %v6116_v15, %v17826_v44  ;;  %v6430_v10 = vsel %vm1348_vm2, %v6378_v45, %v6380_v6 }
 0x886   : > { %v5848_v2 = vpop.f32.mrf.mxu2  ;;  %v5937_v19 = vpop.f32.mrf.mxu3  ;;  %v10152_v27 = vpack.i.bf16 %v16062_v3, %v16039_v31  ;;  %v16070_v38 = vmax.f32 %v6314_v59, %v6430_v10 }
 0x887   : > { %v6379_v39 = vrot.slane %v6315_v46, 2  ;;  %v6254_v63 = vadd.f32 %v15582_v32, %v6184_v56  ;;  %v5938_v30 = vadd.f32 %v5937_v19, %v5848_v2 }
 0x888   : > { %10153 = vrot.lane.b32.xlu0 %v10152_v27, %s10419_s11  ;;  %v10084_v40 = vpop.permute.xlu1 %10083 }
 0x889   : > { %v6318_v1 = vmax.f32 %v6254_v63, 0.0  ;;  %v6183_v23 = vadd.f32 %v5938_v30, %v15446_v50  ;;  %v6118_v33 = vpop.f32.mrf.mxu1  ;;  %v10086_v35 = vunpack.i.h.bf16 %v10084_v40  ;;  %v10085_v45 = vunpack.i.l.bf16 %v10084_v40 }
 0x88a   : > { %v6029_v0 = vpop.f32.mrf.mxu0  ;;  %v6429_v59 = vsel %vm1348_vm2, %v6377_v21, %v6379_v39 }
 0x88b   : > { %v6382_v14 = vrot.slane %v6318_v1, 2  ;;  %v16078_v15 = vadd.f32 %v15585_v36, %v6183_v23  ;;  %v6119_v52 = vadd.f32 %v6118_v33, %v6029_v0  ;;  %v6664_v44 = vsel %vm6661_vm7, %v10085_v45, %v10090_v12 }
 0x88c   : > { %v6665_v56 = vsel %vm6661_vm7, %v10086_v35, %v10091_v51  ;;  %v6696_v50 = vsel %vm6661_vm7, %v10090_v12, %v10085_v45  ;;  %v6697_v58 = vsel %vm6661_vm7, %v10091_v51, %v10086_v35  ;;  %v6730_v2 = vmax.f32 %v15658_v43, %v6664_v44  ;;  %v17827_v51 = vld [vmem:[#allocation14_spill] sm:$0xff] }
 0x88d   : > { %v6317_v21 = vmax.f32 %v16078_v15, 0.0  ;;  %v6186_v10 = vadd.f32 %v6119_v52, %v15452_v53  ;;  %v6428_v27 = vsel %vm1348_vm2, %v6380_v6, %v6382_v14  ;;  %v6732_v63 = vmax.f32 %v15676_v47, %v6665_v56 }
 0x88e   : > { %v5851_v19 = vpop.f32.mrf.mxu2  ;;  %v5940_v30 = vpop.f32.mrf.mxu3  ;;  %v16094_v40 = vmax.f32 %v6316_v37, %v6428_v27  ;;  %v6731_v12 = vmax.f32 %v15651_v11, %v6696_v50  ;;  %v6733_v23 = vmax.f32 %v15667_v7, %v6697_v58  ;;  %v16098_v33 = vmax.f32 %v6313_v4, %v6429_v59  ;;  %v17828_v58 = vld [vmem:[#allocation90_spill] sm:$0xff] }
 0x88f   : > { %v6381_v43 = vrot.slane %v6317_v21, 2  ;;  %v6256_v53 = vadd.f32 %v15582_v32, %v6186_v10  ;;  %v5941_v35 = vadd.f32 %v5940_v30, %v5851_v19  ;;  %v16103_v45 = vpack.c.bf16 %v6732_v63, %v6730_v2 }
 0x890   : > { %v10167_v47 = vpack.i.bf16 %v16094_v40, %v16070_v38  ;;  %v16107_v6 = vpack.c.bf16 %v6733_v23, %v6731_v12 }
 0x891   : > { %v6320_v37 = vmax.f32 %v6256_v53, 0.0  ;;  %v6185_v11 = vadd.f32 %v5941_v35, %v17827_v51  ;;  %v6120_v0 = vpop.f32.mrf.mxu1  ;;  %6996 = vmatmul.bf16.gmra.mxu2 %v16103_v45  ;;  %7334 = vmatmul.bf16.gmra.mxu0 %v16103_v45  ;;  %v6427_v4 = vsel %vm1348_vm2, %v6379_v39, %v6381_v43 }
 0x892   : > { %v6031_v7 = vpop.f32.mrf.mxu0  ;;  %10168 = vrot.lane.b32.xlu0 %v10167_v47, %s10419_s11  ;;  %7085 = vmatmul.bf16.gmra.mxu3 %v16107_v6  ;;  %v16118_v56 = vmax.f32 %v6315_v46, %v6427_v4 }
 0x893   : > { %v6384_v59 = vrot.slane %v6320_v37, 2  ;;  %v6255_v52 = vadd.f32 %v15585_v36, %v6185_v11  ;;  %v6121_v44 = vadd.f32 %v6120_v0, %v6031_v7  ;;  %7423 = vmatmul.bf16.gmra.mxu1 %v16107_v6 }
 0x894   : > { %v10099_v10 = vpop.permute.xlu1 %10098  ;;  %v10162_v63 = vpack.i.bf16 %v16118_v56, %v16098_v33 }
 0x895   : > { %v6319_v50 = vmax.f32 %v6255_v52, 0.0  ;;  %v6188_v2 = vadd.f32 %v6121_v44, %v17828_v58  ;;  %v6426_v39 = vsel %vm1348_vm2, %v6382_v14, %v6384_v59  ;;  %v10100_v46 = vunpack.i.l.bf16 %v10099_v10 }
 0x896   : > { %v5853_v19 = vpop.f32.mrf.mxu2  ;;  %v5942_v27 = vpop.f32.mrf.mxu3  ;;  %v16128_v53 = vmax.f32 %v6318_v1, %v6426_v39  ;;  %10163 = vrot.lane.b32.xlu2 %v10162_v63, %s10419_s11  ;;  %v10101_v4 = vunpack.i.h.bf16 %v10099_v10 }
 0x897   : > { %v6383_v30 = vrot.slane %v6319_v50, 2  ;;  %v16126_v12 = vadd.f32 %v15582_v32, %v6188_v2  ;;  %v5943_v23 = vadd.f32 %v5942_v27, %v5853_v19 }
 0x898   : > { %v10094_v35 = vpop.permute.xlu0 %10093 }
 0x899   : > { %v6322_v47 = vmax.f32 %v16126_v12, 0.0  ;;  %v6187_v51 = vadd.f32 %v5943_v23, %v15470_v16  ;;  %v6123_v11 = vpop.f32.mrf.mxu1  ;;  %v10096_v0 = vunpack.i.h.bf16 %v10094_v35  ;;  %v10095_v7 = vunpack.i.l.bf16 %v10094_v35 }
 0x89a   : > { %v6034_v14 = vpop.f32.mrf.mxu0  ;;  %v6425_v52 = vsel %vm1348_vm2, %v6381_v43, %v6383_v30 }
 0x89b   : > { %v6386_v44 = vrot.slane %v6322_v47, 2  ;;  %v16136_v1 = vadd.f32 %v15585_v36, %v6187_v51  ;;  %v6124_v58 = vadd.f32 %v6123_v11, %v6034_v14  ;;  %v6666_v2 = vsel %vm6661_vm7, %v10095_v7, %v10100_v46 }
 0x89c   : > { %v6667_v19 = vsel %vm6661_vm7, %v10096_v0, %v10101_v4  ;;  %v6698_v16 = vsel %vm6661_vm7, %v10100_v46, %v10095_v7  ;;  %v6699_v10 = vsel %vm6661_vm7, %v10101_v4, %v10096_v0  ;;  %v6734_v27 = vmax.f32 %v15692_v28, %v6666_v2 }
 0x89d   : > { %v6321_v43 = vmax.f32 %v16136_v1, 0.0  ;;  %v6190_v63 = vadd.f32 %v6124_v58, %v15476_v26  ;;  %v6424_v23 = vsel %vm1348_vm2, %v6384_v59, %v6386_v44  ;;  %v6736_v35 = vmax.f32 %v15710_v55, %v6667_v19  ;;  %v17829_v55 = vld [vmem:[#allocation31_spill] sm:$0xff]  ;;  %v10104_v19 = vpop.permute.xlu2 %10103 }
 0x89e   : > { %v5856_v39 = vpop.f32.mrf.mxu2  ;;  %v5945_v12 = vpop.f32.mrf.mxu3  ;;  %v6735_v51 = vmax.f32 %v15685_v20, %v6698_v16  ;;  %v6737_v46 = vmax.f32 %v15701_v57, %v6699_v10  ;;  %v16155_v28 = vmax.f32 %v6320_v37, %v6424_v23  ;;  %v16163_v14 = vmax.f32 %v6317_v21, %v6425_v52 }
 0x89f   : > { %v6385_v11 = vrot.slane %v6321_v43, 2  ;;  %v6260_v0 = vadd.f32 %v15582_v32, %v6190_v63  ;;  %v5946_v7 = vadd.f32 %v5945_v12, %v5856_v39  ;;  %v16157_v4 = vpack.c.bf16 %v6736_v35, %v6734_v27 }
 0x8a0   : > { %v16159_v26 = vpack.c.bf16 %v6737_v46, %v6735_v51  ;;  %v10177_v57 = vpack.i.bf16 %v16155_v28, %v16128_v53  ;;  %v10106_v51 = vunpack.i.h.bf16 %v10104_v19  ;;  %v10105_v46 = vunpack.i.l.bf16 %v10104_v19 }
 0x8a1   : > { %v6324_v59 = vmax.f32 %v6260_v0, 0.0  ;;  %v6189_v1 = vadd.f32 %v5946_v7, %v17829_v55  ;;  %v6125_v20 = vpop.f32.mrf.mxu1  ;;  %v6423_v58 = vsel %vm1348_vm2, %v6383_v30, %v6385_v11  ;;  %7001 = vmatmul.bf16.gmra.mxu2 %v16157_v4  ;;  %7339 = vmatmul.bf16.gmra.mxu0 %v16157_v4 }
 0x8a2   : > { %v6036_v37 = vpop.f32.mrf.mxu0  ;;  %7090 = vmatmul.bf16.gmra.mxu3 %v16159_v26  ;;  %v16172_v2 = vmax.f32 %v6319_v50, %v6423_v58  ;;  %10178 = vrot.lane.b32.xlu2 %v10177_v57, %s10419_s11  ;;  %v17830_v50 = vld [vmem:[#allocation67_spill] sm:$0xff] }
 0x8a3   : > { %v6388_v15 = vrot.slane %v6324_v59, 2  ;;  %v16175_v21 = vadd.f32 %v15585_v36, %v6189_v1  ;;  %v6126_v52 = vadd.f32 %v6125_v20, %v6036_v37  ;;  %7428 = vmatmul.bf16.gmra.mxu1 %v16159_v26 }
 0x8a4   : > { %v10109_v30 = vpop.permute.xlu0 %10108  ;;  %v10172_v16 = vpack.i.bf16 %v16172_v2, %v16163_v14 }
 0x8a5   : > { %v6323_v10 = vmax.f32 %v16175_v21, 0.0  ;;  %v6192_v27 = vadd.f32 %v6126_v52, %v17830_v50  ;;  %v10111_v63 = vunpack.i.h.bf16 %v10109_v30  ;;  %v10110_v39 = vunpack.i.l.bf16 %v10109_v30 }
 0x8a6   : > { %v5858_v12 = vpop.f32.mrf.mxu2  ;;  %v5947_v23 = vpop.f32.mrf.mxu3  ;;  %10173 = vrot.lane.b32.xlu1 %v10172_v16, %s10419_s11  ;;  %v6422_v35 = vsel %vm1348_vm2, %v6386_v44, %v6388_v15 }
 0x8a7   : > { %v6387_v0 = vrot.slane %v6323_v10, 2  ;;  %v6262_v7 = vadd.f32 %v15582_v32, %v6192_v27  ;;  %v5948_v55 = vadd.f32 %v5947_v23, %v5858_v12  ;;  %v16188_v1 = vmax.f32 %v6322_v47, %v6422_v35  ;;  %v17831_v23 = vld [vmem:[#allocation68_spill] sm:$0xff] }
 0x8a8   : > { %v6668_v57 = vsel %vm6661_vm7, %v10105_v46, %v10110_v39  ;;  %v6669_v58 = vsel %vm6661_vm7, %v10106_v51, %v10111_v63  ;;  %v6700_v21 = vsel %vm6661_vm7, %v10110_v39, %v10105_v46  ;;  %v6701_v44 = vsel %vm6661_vm7, %v10111_v63, %v10106_v51 }
 0x8a9   : > { %v6326_v20 = vmax.f32 %v6262_v7, 0.0  ;;  %v6128_v37 = vpop.f32.mrf.mxu1  ;;  %v6191_v52 = vadd.f32 %v5948_v55, %v15494_v41  ;;  %v6421_v47 = vsel %vm1348_vm2, %v6385_v11, %v6387_v0  ;;  %v6738_v12 = vmax.f32 %v15726_v9, %v6668_v57 }
 0x8aa   : > { %v6039_v19 = vpop.f32.mrf.mxu0  ;;  %v16201_v50 = vmax.f32 %v6321_v43, %v6421_v47  ;;  %v6740_v39 = vmax.f32 %v15744_v5, %v6669_v58  ;;  %v6739_v51 = vmax.f32 %v15719_v8, %v6700_v21  ;;  %v6741_v11 = vmax.f32 %v15735_v22, %v6701_v44 }
 0x8ab   : > { %v6390_v30 = vrot.slane %v6326_v20, 2  ;;  %v6129_v16 = vadd.f32 %v6128_v37, %v6039_v19  ;;  %v16204_v27 = vadd.f32 %v15585_v36, %v6191_v52 }
 0x8ac   : > { %v16219_v58 = vpack.c.bf16 %v6740_v39, %v6738_v12  ;;  %v16222_v21 = vpack.c.bf16 %v6741_v11, %v6739_v51  ;;  %v17833_v39 = vld [vmem:[#allocation70_spill] sm:$0xff] }
 0x8ad   : > { %v6194_v35 = vadd.f32 %v6129_v16, %v17831_v23  ;;  %v6420_v41 = vsel %vm1348_vm2, %v6388_v15, %v6390_v30  ;;  %v6325_v43 = vmax.f32 %v16204_v27, 0.0  ;;  %v17832_v15 = vld [vmem:[#allocation69_spill] sm:$0xff]  ;;  %v10119_v27 = vpop.permute.xlu2 %10118 }
 0x8ae   : > { %v5861_v63 = vpop.f32.mrf.mxu2  ;;  %v5950_v46 = vpop.f32.mrf.mxu3  ;;  %v16214_v7 = vmax.f32 %v6324_v59, %v6420_v41 }
 0x8af   : > { %v6264_v55 = vadd.f32 %v15582_v32, %v6194_v35  ;;  %v5951_v9 = vadd.f32 %v5950_v46, %v5861_v63  ;;  %v6389_v57 = vrot.slane %v6325_v43, 2 }
 0x8b0   : > { %v10187_v5 = vpack.i.bf16 %v16214_v7, %v16188_v1 }
 0x8b1   : > { %v6328_v37 = vmax.f32 %v6264_v55, 0.0  ;;  %v6193_v52 = vadd.f32 %v5951_v9, %v17832_v15  ;;  %v6130_v8 = vpop.f32.mrf.mxu1  ;;  %7006 = vmatmul.bf16.gmra.mxu2 %v16219_v58  ;;  %v6419_v59 = vsel %vm1348_vm2, %v6387_v0, %v6389_v57  ;;  %7344 = vmatmul.bf16.gmra.mxu0 %v16219_v58  ;;  %v10120_v55 = vunpack.i.l.bf16 %v10119_v27  ;;  %v17834_v15 = vld [vmem:[#allocation36_spill] sm:$0xff] }
 0x8b2   : > { %v6041_v22 = vpop.f32.mrf.mxu0  ;;  %10188 = vrot.lane.b32.xlu1 %v10187_v5, %s10419_s11  ;;  %7095 = vmatmul.bf16.gmra.mxu3 %v16222_v21  ;;  %v16231_v16 = vmax.f32 %v6323_v10, %v6419_v59 }
 0x8b3   : > { %v6392_v44 = vrot.slane %v6328_v37, 2  ;;  %v6263_v19 = vadd.f32 %v15585_v36, %v6193_v52  ;;  %v6131_v47 = vadd.f32 %v6130_v8, %v6041_v22  ;;  %7433 = vmatmul.bf16.gmra.mxu1 %v16222_v21 }
 0x8b4   : > { %v10182_v0 = vpack.i.bf16 %v16231_v16, %v16201_v50 }
 0x8b5   : > { %v6327_v12 = vmax.f32 %v6263_v19, 0.0  ;;  %v6196_v23 = vadd.f32 %v6131_v47, %v17833_v39  ;;  %v6418_v63 = vsel %vm1348_vm2, %v6390_v30, %v6392_v44  ;;  %v10121_v30 = vunpack.i.h.bf16 %v10119_v27 }
 0x8b6   : > { %v5863_v35 = vpop.f32.mrf.mxu2  ;;  %v5952_v41 = vpop.f32.mrf.mxu3  ;;  %v16239_v51 = vmax.f32 %v6326_v20, %v6418_v63  ;;  %10183 = vrot.lane.b32.xlu0 %v10182_v0, %s10419_s11 }
 0x8b7   : > { %v6391_v11 = vrot.slane %v6327_v12, 2  ;;  %v16242_v10 = vadd.f32 %v15582_v32, %v6196_v23  ;;  %v5953_v46 = vadd.f32 %v5952_v41, %v5863_v35 }
 0x8b8   : > { %v10114_v9 = vpop.permute.xlu1 %10113 }
 0x8b9   : > { %v6330_v5 = vmax.f32 %v16242_v10, 0.0  ;;  %v6195_v52 = vadd.f32 %v5953_v46, %v17834_v15  ;;  %v6133_v8 = vpop.f32.mrf.mxu1  ;;  %v10116_v22 = vunpack.i.h.bf16 %v10114_v9  ;;  %v10115_v59 = vunpack.i.l.bf16 %v10114_v9  ;;  %v17835_v10 = vld [vmem:[#allocation46_spill] sm:$0xff] }
 0x8ba   : > { %v6044_v19 = vpop.f32.mrf.mxu0  ;;  %v6417_v20 = vsel %vm1348_vm2, %v6389_v57, %v6391_v11 }
 0x8bb   : > { %v6394_v47 = vrot.slane %v6330_v5, 2  ;;  %v16250_v39 = vadd.f32 %v15585_v36, %v6195_v52  ;;  %v6134_v23 = vadd.f32 %v6133_v8, %v6044_v19  ;;  %v6670_v35 = vsel %vm6661_vm7, %v10115_v59, %v10120_v55 }
 0x8bc   : > { %v6671_v0 = vsel %vm6661_vm7, %v10116_v22, %v10121_v30  ;;  %v6702_v63 = vsel %vm6661_vm7, %v10120_v55, %v10115_v59  ;;  %v6703_v27 = vsel %vm6661_vm7, %v10121_v30, %v10116_v22  ;;  %v6742_v41 = vmax.f32 %v15760_v62, %v6670_v35 }
 0x8bd   : > { %v17187_v57 = vmax.f32 %v16250_v39, 0.0  ;;  %v6198_v46 = vadd.f32 %v6134_v23, %v17835_v10  ;;  %v6416_v15 = vsel %vm1348_vm2, %v6392_v44, %v6394_v47  ;;  %v6744_v52 = vmax.f32 %v15805_v60, %v6671_v0  ;;  %v17838_v0 = vld [vmem:[#allocation34_spill] sm:$0xff] }
 0x8be   : > { %v5866_v9 = vpop.f32.mrf.mxu2  ;;  %v5955_v8 = vpop.f32.mrf.mxu3  ;;  %v16266_v19 = vmax.f32 %v6328_v37, %v6416_v15  ;;  %v6743_v55 = vmax.f32 %v15753_v29, %v6702_v63  ;;  %v6745_v59 = vmax.f32 %v15784_v54, %v6703_v27  ;;  %v16270_v22 = vmax.f32 %v6325_v43, %v6417_v20 }
 0x8bf   : > { %v6393_v62 = vrot.slane %v17187_v57, 2  ;;  %v6268_v30 = vadd.f32 %v15582_v32, %v6198_v46  ;;  %v5956_v23 = vadd.f32 %v5955_v8, %v5866_v9  ;;  %v16275_v35 = vpack.c.bf16 %v6744_v52, %v6742_v41  ;;  %v17839_v9 = vld [vmem:[#allocation42_spill] sm:$0xff] }
 0x8c0   : > { %v10197_v60 = vpack.i.bf16 %v16266_v19, %v16239_v51  ;;  %v16279_v44 = vpack.c.bf16 %v6745_v59, %v6743_v55 }
 0x8c1   : > { %17836 = vst [vmem:[#allocation23_spill] sm:$0xff] %v16275_v35  ;;  %v6332_v37 = vmax.f32 %v6268_v30, 0.0  ;;  %v6197_v29 = vadd.f32 %v5956_v23, %v17838_v0  ;;  %v6135_v63 = vpop.f32.mrf.mxu1  ;;  %v6415_v54 = vsel %vm1348_vm2, %v6391_v11, %v6393_v62  ;;  %7011 = vmatmul.bf16.gmra.mxu2 %v16275_v35  ;;  %7349 = vmatmul.bf16.gmra.mxu0 %v16275_v35 }
 0x8c2   : > { %17837 = vst [vmem:[#allocation24_spill] sm:$0xff] %v16279_v44  ;;  %v6046_v43 = vpop.f32.mrf.mxu0  ;;  %10198 = vrot.lane.b32.xlu0 %v10197_v60, %s10419_s11  ;;  %v16286_v20 = vmax.f32 %v6327_v12, %v6415_v54  ;;  %7100 = vmatmul.bf16.gmra.mxu3 %v16279_v44  ;;  %v17840_v54 = vld [vmem:[#allocation40_spill] sm:$0xff] }
 0x8c3   : > { %v6396_v27 = vrot.slane %v6332_v37, 2  ;;  %v6267_v41 = vadd.f32 %v15585_v36, %v6197_v29  ;;  %v6136_v10 = vadd.f32 %v6135_v63, %v6046_v43  ;;  %7438 = vmatmul.bf16.gmra.mxu1 %v16279_v44 }
 0x8c4   : > { %v10192_v11 = vpack.i.bf16 %v16286_v20, %v16270_v22  ;;  %v10129_v52 = vpop.permute.xlu1 %10128 }
 0x8c5   : > { %v6331_v46 = vmax.f32 %v6267_v41, 0.0  ;;  %v6200_v15 = vadd.f32 %v6136_v10, %v17839_v9  ;;  %v6414_v55 = vsel %vm1348_vm2, %v6394_v47, %v6396_v27  ;;  %v10130_v0 = vunpack.i.l.bf16 %v10129_v52 }
 0x8c6   : > { %v5868_v8 = vpop.f32.mrf.mxu2  ;;  %v5957_v12 = vpop.f32.mrf.mxu3  ;;  %10193 = vrot.lane.b32.xlu2 %v10192_v11, %s10419_s11  ;;  %v16301_v60 = vmax.f32 %v6330_v5, %v6414_v55  ;;  %v10131_v11 = vunpack.i.h.bf16 %v10129_v52 }
 0x8c7   : > { %v6395_v59 = vrot.slane %v6331_v46, 2  ;;  %v16299_v30 = vadd.f32 %v15582_v32, %v6200_v15  ;;  %v5958_v23 = vadd.f32 %v5957_v12, %v5868_v8 }
 0x8c8   : > { %v10124_v29 = vpop.permute.xlu0 %10123 }
 0x8c9   : > { %v6334_v63 = vmax.f32 %v16299_v30, 0.0  ;;  %v6199_v43 = vadd.f32 %v5958_v23, %v17840_v54  ;;  %v6138_v41 = vpop.f32.mrf.mxu1  ;;  %v10126_v10 = vunpack.i.h.bf16 %v10124_v29  ;;  %v10125_v9 = vunpack.i.l.bf16 %v10124_v29  ;;  %v17841_v23 = vld [vmem:[#allocation39_spill] sm:$0xff] }
 0x8ca   : > { %v6049_v57 = vpop.f32.mrf.mxu0  ;;  %v6413_v47 = vsel %vm1348_vm2, %v6393_v62, %v6395_v59 }
 0x8cb   : > { %v6398_v44 = vrot.slane %v6334_v63, 2  ;;  %v16308_v15 = vadd.f32 %v15585_v36, %v6199_v43  ;;  %v6139_v5 = vadd.f32 %v6138_v41, %v6049_v57  ;;  %v6672_v8 = vsel %vm6661_vm7, %v10125_v9, %v10130_v0 }
 0x8cc   : > { %v6673_v12 = vsel %vm6661_vm7, %v10126_v10, %v10131_v11  ;;  %v6704_v55 = vsel %vm6661_vm7, %v10130_v0, %v10125_v9  ;;  %v6705_v52 = vsel %vm6661_vm7, %v10131_v11, %v10126_v10  ;;  %v6746_v30 = vmax.f32 %v15852_v17, %v6672_v8 }
 0x8cd   : > { %v6333_v62 = vmax.f32 %v16308_v15, 0.0  ;;  %v6202_v29 = vadd.f32 %v6139_v5, %v17841_v23  ;;  %v6412_v57 = vsel %vm1348_vm2, %v6396_v27, %v6398_v44  ;;  %v6748_v43 = vmax.f32 %v15908_v18, %v6673_v12 }
 0x8ce   : > { %v5871_v54 = vpop.f32.mrf.mxu2  ;;  %v5960_v41 = vpop.f32.mrf.mxu3  ;;  %v16324_v35 = vmax.f32 %v6332_v37, %v6412_v57  ;;  %v6747_v0 = vmax.f32 %v15831_v24, %v6704_v55  ;;  %v6749_v5 = vmax.f32 %v15880_v34, %v6705_v52  ;;  %v17843_v27 = vmax.f32 %v16250_v39, 0.0  ;;  %v17844_v37 = vld [vmem:[#allocation71_spill] sm:$0xff] }
 0x8cf   : > { %v6397_v9 = vrot.slane %v6333_v62, 2  ;;  %v6272_v10 = vadd.f32 %v15582_v32, %v6202_v29  ;;  %v5961_v11 = vadd.f32 %v5960_v41, %v5871_v54  ;;  %v16328_v17 = vpack.c.bf16 %v6748_v43, %v6746_v30  ;;  %v10134_v52 = vpop.permute.xlu2 %10133  ;;  %v17846_v43 = vld [vmem:[#allocation72_spill] sm:$0xff] }
 0x8d0   : > { %v10207_v15 = vpack.i.bf16 %v16324_v35, %v16301_v60  ;;  %v16335_v8 = vmax.f32 %v17843_v27, %v6413_v47  ;;  %v16342_v30 = vpack.c.bf16 %v6749_v5, %v6747_v0  ;;  %v10136_v5 = vunpack.i.h.bf16 %v10134_v52 }
 0x8d1   : > { %17842 = vst [vmem:[#allocation19_spill] sm:$0xff] %v16328_v17  ;;  %v6336_v18 = vmax.f32 %v6272_v10, 0.0  ;;  %v6201_v12 = vadd.f32 %v5961_v11, %v17844_v37  ;;  %v6140_v23 = vpop.f32.mrf.mxu1  ;;  %v6411_v24 = vsel %vm1348_vm2, %v6395_v59, %v6397_v9  ;;  %7016 = vmatmul.bf16.gmra.mxu2 %v16328_v17  ;;  %7354 = vmatmul.bf16.gmra.mxu0 %v16328_v17  ;;  %v10135_v27 = vunpack.i.l.bf16 %v10134_v52 }
 0x8d2   : > { %v6051_v55 = vpop.f32.mrf.mxu0  ;;  %10208 = vrot.lane.b32.xlu2 %v10207_v15, %s10419_s11  ;;  %17845 = vst [vmem:[#allocation57_spill] sm:$0xff] %v16342_v30  ;;  %v16344_v29 = vmax.f32 %v6331_v46, %v6411_v24  ;;  %7105 = vmatmul.bf16.gmra.mxu3 %v16342_v30 }
 0x8d3   : > { %v6400_v34 = vrot.slane %v6336_v18, 2  ;;  %v6271_v39 = vadd.f32 %v15585_v36, %v6201_v12  ;;  %v6141_v47 = vadd.f32 %v6140_v23, %v6051_v55  ;;  %7443 = vmatmul.bf16.gmra.mxu1 %v16342_v30 }
 0x8d4   : > { %v10139_v59 = vpop.permute.xlu0 %10138  ;;  %v10202_v54 = vpack.i.bf16 %v16344_v29, %v16335_v8 }
 0x8d5   : > { %v6335_v57 = vmax.f32 %v6271_v39, 0.0  ;;  %v6204_v41 = vadd.f32 %v6141_v47, %v17846_v43  ;;  %v10141_v46 = vunpack.i.h.bf16 %v10139_v59  ;;  %v10140_v0 = vunpack.i.l.bf16 %v10139_v59 }
 0x8d6   : > { %v5873_v10 = vpop.f32.mrf.mxu2  ;;  %v5962_v11 = vpop.f32.mrf.mxu3  ;;  %10203 = vrot.lane.b32.xlu1 %v10202_v54, %s10419_s11  ;;  %v6410_v15 = vsel %vm1348_vm2, %v6398_v44, %v6400_v34  ;;  %v17847_v54 = vld [vmem:[#allocation59_spill] sm:$0xff] }
 0x8d7   : > { %v6399_v37 = vrot.slane %v6335_v57, 2  ;;  %v6274_v12 = vadd.f32 %v15582_v32, %v6204_v41  ;;  %v5963_v23 = vadd.f32 %v5962_v11, %v5873_v10  ;;  %v16357_v24 = vmax.f32 %v6334_v63, %v6410_v15  ;;  %v17848_v10 = vld [vmem:[#allocation51_spill] sm:$0xff]  ;;  %v17849_v15 = vld [vmem:[#allocation76_spill] sm:$0xff] }
 0x8d8   : > { %v6674_v39 = vsel %vm6661_vm7, %v10135_v27, %v10140_v0  ;;  %v6675_v47 = vsel %vm6661_vm7, %v10136_v5, %v10141_v46  ;;  %v6706_v59 = vsel %vm6661_vm7, %v10140_v0, %v10135_v27  ;;  %v6707_v32 = vsel %vm6661_vm7, %v10141_v46, %v10136_v5  ;;  %v17850_v27 = vld [vmem:[#allocation50_spill] sm:$0xff] }
 0x8d9   : > { %v6338_v55 = vmax.f32 %v6274_v12, 0.0  ;;  %v6203_v44 = vadd.f32 %v5963_v23, %v17847_v54  ;;  %v6409_v52 = vsel %vm1348_vm2, %v6397_v9, %v6399_v37  ;;  %v6750_v11 = vmax.f32 %v17848_v10, %v6674_v39  ;;  %v17851_v54 = vld [vmem:[#allocation20_spill] sm:$0xff] }
 0x8da   : > { %v16370_v63 = vmax.f32 %v6333_v62, %v6409_v52  ;;  %v6752_v12 = vmax.f32 %v17849_v15, %v6675_v47  ;;  %v6751_v23 = vmax.f32 %v17850_v27, %v6706_v59  ;;  %v17852_v62 = vld [vmem:[#allocation75_spill] sm:$0xff]  ;;  %v17853_v59 = vld [vmem:[#allocation73_spill] sm:$0xff] }
 0x8db   : > { %v6402_v43 = vrot.slane %v6338_v55, 2  ;;  %v6273_v41 = vadd.f32 %v15585_v36, %v6203_v44  ;;  %v6753_v46 = vmax.f32 %v17852_v62, %v6707_v32  ;;  %v17854_v32 = vld [vmem:[#allocation74_spill] sm:$0xff] }
 0x8dc   : > { %v16388_v47 = vpack.c.bf16 %v6752_v12, %v6750_v11  ;;  %v17856_v62 = vld [vmem:[#allocation78_spill] sm:$0xff] }
 0x8dd   : > { %v6408_v0 = vsel %vm1348_vm2, %v6400_v34, %v6402_v43  ;;  %v6406_v9 = vsel %vm1348_vm2, %v6402_v43, %v17851_v54  ;;  %v6337_v30 = vmax.f32 %v6273_v41, 0.0  ;;  %v16392_v34 = vpack.c.bf16 %v6753_v46, %v6751_v23  ;;  %v10149_v41 = vpop.permute.xlu2 %10148  ;;  %v17855_v54 = vld [vmem:[#allocation22_spill] sm:$0xff] }
 0x8de   : > { %v16381_v17 = vmax.f32 %v6336_v18, %v6408_v0  ;;  %v16384_v5 = vmax.f32 %v6338_v55, %v6406_v9  ;;  %v10150_v11 = vunpack.i.l.bf16 %v10149_v41 }
 0x8df   : > { %v6401_v36 = vrot.slane %v6337_v30, 2 }
 0x8e0   : > { %v10217_v39 = vpack.i.bf16 %v16381_v17, %v16357_v24 }
 0x8e1   : > { %7021 = vmatmul.bf16.gmra.mxu2 %v16388_v47  ;;  %v6407_v18 = vsel %vm1348_vm2, %v6399_v37, %v6401_v36  ;;  %v6405_v55 = vsel %vm1348_vm2, %v6401_v36, %v17853_v59  ;;  %7359 = vmatmul.bf16.gmra.mxu0 %v16388_v47  ;;  %v17857_v36 = vld [vmem:[#allocation52_spill] sm:$0xff] }
 0x8e2   : > { %10218 = vrot.lane.b32.xlu1 %v10217_v39, %s10419_s11  ;;  %v16400_v44 = vmax.f32 %v6335_v57, %v6407_v18  ;;  %v16402_v52 = vmax.f32 %v6337_v30, %v6405_v55  ;;  %7110 = vmatmul.bf16.gmra.mxu3 %v16392_v34  ;;  %v10151_v57 = vunpack.i.h.bf16 %v10149_v41  ;;  %v17858_v18 = vld [vmem:[#allocation77_spill] sm:$0xff] }
 0x8e3   : > { %7448 = vmatmul.bf16.gmra.mxu1 %v16392_v34  ;;  %v17859_v55 = vld [vmem:[#allocation49_spill] sm:$0xff] }
 0x8e4   : > { %v10212_v43 = vpack.i.bf16 %v16400_v44, %v16370_v63  ;;  %v10222_v37 = vpack.i.bf16 %v17854_v32, %v16402_v52 }
 0x8e6   : > { %10213 = vrot.lane.b32.xlu0 %v10212_v43, %s10419_s11  ;;  %10223 = vrot.lane.b32.xlu2 %v10222_v37, %s10419_s11  ;;  %v10227_v43 = vpack.i.bf16 %v17859_v55, %v16384_v5 }
 0x8e8   : > { %v10144_v10 = vpop.permute.xlu1 %10143 }
 0x8e9   : > { %v10146_v30 = vunpack.i.h.bf16 %v10144_v10  ;;  %v10145_v15 = vunpack.i.l.bf16 %v10144_v10 }
 0x8eb   : > { %v6676_v12 = vsel %vm6661_vm7, %v10145_v15, %v10150_v11  ;;  %v6677_v0 = vsel %vm6661_vm7, %v10146_v30, %v10151_v57  ;;  %v6708_v27 = vsel %vm6661_vm7, %v10150_v11, %v10145_v15  ;;  %v6709_v23 = vsel %vm6661_vm7, %v10151_v57, %v10146_v30 }
 0x8ec   : > { %v6754_v9 = vmax.f32 %v17855_v54, %v6676_v12  ;;  %v6756_v46 = vmax.f32 %v17856_v62, %v6677_v0  ;;  %v6755_v39 = vmax.f32 %v17857_v36, %v6708_v27  ;;  %v6757_v59 = vmax.f32 %v17858_v18, %v6709_v23 }
 0x8ee   : > { %v16426_v37 = vpack.c.bf16 %v6756_v46, %v6754_v9  ;;  %10228 = vrot.lane.b32.xlu0 %v10227_v43, %s10419_s11  ;;  %v16429_v41 = vpack.c.bf16 %v6757_v59, %v6755_v39 }
 0x8f0   : > { %17860 = vst [vmem:[#allocation25_spill] sm:$0xff] %v16429_v41 }
 0x8f1   : > { %7026 = vmatmul.bf16.gmra.mxu2 %v16426_v37  ;;  %7364 = vmatmul.bf16.gmra.mxu0 %v16426_v37 }
 0x8f2   : > { %7115 = vmatmul.bf16.gmra.mxu3 %v16429_v41 }
 0x8f3   : > { %7453 = vmatmul.bf16.gmra.mxu1 %v16429_v41 }
 0x8f4   : > { %v10159_v10 = vpop.permute.xlu1 %10158 }
 0x8f5   : > { %v10161_v11 = vunpack.i.h.bf16 %v10159_v10  ;;  %v10160_v30 = vunpack.i.l.bf16 %v10159_v10 }
 0x8f9   : > { %v7330_v0 = vpop.f32.mrf.mxu0 }
 0x8fa   : > { %v10154_v57 = vpop.permute.xlu0 %10153  ;;  %v7419_v62 = vpop.f32.mrf.mxu1 }
 0x8fb   : > { %v10156_v15 = vunpack.i.h.bf16 %v10154_v57  ;;  %v10155_v12 = vunpack.i.l.bf16 %v10154_v57 }
 0x8fd   : > { %v6678_v27 = vsel %vm6661_vm7, %v10155_v12, %v10160_v30  ;;  %v6679_v23 = vsel %vm6661_vm7, %v10156_v15, %v10161_v11  ;;  %v6710_v54 = vsel %vm6661_vm7, %v10160_v30, %v10155_v12  ;;  %v6711_v9 = vsel %vm6661_vm7, %v10161_v11, %v10156_v15  ;;  %v10164_v11 = vpop.permute.xlu2 %10163 }
 0x8fe   : > { %v6758_v46 = vmax.f32 %v16039_v31, %v6678_v27  ;;  %v6760_v36 = vmax.f32 %v16062_v3, %v6679_v23  ;;  %v6759_v18 = vmax.f32 %v16030_v42, %v6710_v54  ;;  %v6761_v59 = vmax.f32 %v16049_v48, %v6711_v9 }
 0x8ff   : > { %v6992_v39 = vpop.f32.mrf.mxu2  ;;  %v10166_v30 = vunpack.i.h.bf16 %v10164_v11  ;;  %v10165_v15 = vunpack.i.l.bf16 %v10164_v11 }
 0x900   : > { %v7081_v43 = vpop.f32.mrf.mxu3  ;;  %v16447_v10 = vpack.c.bf16 %v6760_v36, %v6758_v46  ;;  %v16451_v41 = vpack.c.bf16 %v6761_v59, %v6759_v18 }
 0x901   : > { %v16449_v57 = vadd.f32 %v7081_v43, %v6992_v39  ;;  %v7332_v48 = vpop.f32.mrf.mxu0 }
 0x902   : > { %17861 = vst [vmem:[#allocation53_spill] sm:$0xff] %v16447_v10  ;;  %7031 = vmatmul.bf16.gmra.mxu2 %v16447_v10  ;;  %7369 = vmatmul.bf16.gmra.mxu0 %v16447_v10  ;;  %v7421_v27 = vpop.f32.mrf.mxu1 }
 0x903   : > { %17862 = vst [vmem:[#allocation60_spill] sm:$0xff] %v16449_v57  ;;  %7120 = vmatmul.bf16.gmra.mxu3 %v16451_v41  ;;  %7458 = vmatmul.bf16.gmra.mxu1 %v16451_v41  ;;  %v17195_v36 = vrot.slane %v16449_v57, 4 }
 0x904   : > { %17863 = vst [vmem:[#allocation58_spill] sm:$0xff] %v16451_v41  ;;  %v10169_v31 = vpop.permute.xlu0 %10168 }
 0x905   : > { %v10171_v42 = vunpack.i.h.bf16 %v10169_v31  ;;  %v10170_v3 = vunpack.i.l.bf16 %v10169_v31 }
 0x907   : > { %v6994_v12 = vpop.f32.mrf.mxu2  ;;  %v6680_v54 = vsel %vm6661_vm7, %v10165_v15, %v10170_v3  ;;  %v6681_v9 = vsel %vm6661_vm7, %v10166_v30, %v10171_v42  ;;  %v6712_v39 = vsel %vm6661_vm7, %v10170_v3, %v10165_v15  ;;  %v6713_v18 = vsel %vm6661_vm7, %v10171_v42, %v10166_v30  ;;  %v10179_v30 = vpop.permute.xlu2 %10178 }
 0x908   : > { %v7083_v23 = vpop.f32.mrf.mxu3  ;;  %v6762_v43 = vmax.f32 %v16098_v33, %v6680_v54  ;;  %v6764_v11 = vmax.f32 %v16118_v56, %v6681_v9 }
 0x909   : > { %v7084_v46 = vadd.f32 %v7083_v23, %v6994_v12  ;;  %v6763_v12 = vmax.f32 %v16070_v38, %v6712_v39  ;;  %v6765_v23 = vmax.f32 %v16094_v40, %v6713_v18 }
 0x90a   : > { %v16474_v15 = vpack.c.bf16 %v6764_v11, %v6762_v43 }
 0x90b   : > { %v7162_v59 = vrot.slane %v7084_v46, 4  ;;  %v16479_v33 = vpack.c.bf16 %v6765_v23, %v6763_v12 }
 0x90c   : > { %17864 = vst [vmem:[#allocation54_spill] sm:$0xff] %v16474_v15 }
 0x90d   : > { %v7223_v31 = vsel %vm2140_vm4, %v17195_v36, %v7162_v59  ;;  %17866 = vst [vmem:[#allocation44_spill] sm:$0xff] %v16479_v33 }
 0x90e   : > { %v7335_v41 = vpop.f32.mrf.mxu0  ;;  %v7331_v10 = vadd.f32 %v7330_v0, %v7223_v31 }
 0x910   : > { %v7424_v3 = vpop.f32.mrf.mxu1  ;;  %v16476_v42 = vadd.f32 %v7419_v62, %v7331_v10  ;;  %v10181_v62 = vunpack.i.h.bf16 %v10179_v30  ;;  %v10180_v10 = vunpack.i.l.bf16 %v10179_v30 }
 0x912   : > { %17865 = vst [vmem:[#allocation26_spill] sm:$0xff] %v16476_v42  ;;  %7036 = vmatmul.bf16.gmra.mxu2 %v16474_v15  ;;  %7374 = vmatmul.bf16.gmra.mxu0 %v16474_v15 }
 0x913   : > { %7125 = vmatmul.bf16.gmra.mxu3 %v16479_v33  ;;  %7463 = vmatmul.bf16.gmra.mxu1 %v16479_v33 }
 0x914   : > { %v6997_v56 = vpop.f32.mrf.mxu2 }
 0x915   : > { %v7086_v38 = vpop.f32.mrf.mxu3 }
 0x916   : > { %v7087_v40 = vadd.f32 %v7086_v38, %v6997_v56  ;;  %v7337_v0 = vpop.f32.mrf.mxu0 }
 0x918   : > { %v7163_v54 = vrot.slane %v7087_v40, 4  ;;  %v7426_v9 = vpop.f32.mrf.mxu1  ;;  %v10174_v46 = vpop.permute.xlu1 %10173 }
 0x919   : > { %v10176_v39 = vunpack.i.h.bf16 %v10174_v46  ;;  %v10175_v18 = vunpack.i.l.bf16 %v10174_v46 }
 0x91a   : > { %v7222_v43 = vsel %vm2140_vm4, %v7162_v59, %v7163_v54 }
 0x91b   : > { %v6682_v11 = vsel %vm6661_vm7, %v10175_v18, %v10180_v10  ;;  %v6683_v31 = vsel %vm6661_vm7, %v10176_v39, %v10181_v62  ;;  %v6714_v12 = vsel %vm6661_vm7, %v10180_v10, %v10175_v18  ;;  %v6715_v23 = vsel %vm6661_vm7, %v10181_v62, %v10176_v39 }
 0x91c   : > { %v6999_v56 = vpop.f32.mrf.mxu2  ;;  %v6766_v38 = vmax.f32 %v16163_v14, %v6682_v11  ;;  %v6768_v30 = vmax.f32 %v16172_v2, %v6683_v31  ;;  %v6767_v40 = vmax.f32 %v16128_v53, %v6714_v12  ;;  %v6769_v59 = vmax.f32 %v16155_v28, %v6715_v23 }
 0x91d   : > { %v7088_v46 = vpop.f32.mrf.mxu3  ;;  %v7333_v36 = vadd.f32 %v7332_v48, %v7222_v43 }
 0x91e   : > { %v7089_v33 = vadd.f32 %v7088_v46, %v6999_v56  ;;  %v16498_v15 = vpack.c.bf16 %v6768_v30, %v6766_v38  ;;  %v7340_v18 = vpop.f32.mrf.mxu0  ;;  %v16502_v57 = vpack.c.bf16 %v6769_v59, %v6767_v40 }
 0x91f   : > { %v16500_v42 = vadd.f32 %v7421_v27, %v7333_v36 }
 0x920   : > { %v7164_v10 = vrot.slane %v7089_v33, 4  ;;  %v7429_v62 = vpop.f32.mrf.mxu1 }
 0x922   : > { %v7221_v14 = vsel %vm2140_vm4, %v7163_v54, %v7164_v10  ;;  %7041 = vmatmul.bf16.gmra.mxu2 %v16498_v15  ;;  %7379 = vmatmul.bf16.gmra.mxu0 %v16498_v15 }
 0x923   : > { %v7336_v53 = vadd.f32 %v7335_v41, %v7221_v14  ;;  %7130 = vmatmul.bf16.gmra.mxu3 %v16502_v57  ;;  %7468 = vmatmul.bf16.gmra.mxu1 %v16502_v57 }
 0x924   : > { %v7002_v28 = vpop.f32.mrf.mxu2  ;;  %v10189_v27 = vpop.permute.xlu1 %10188 }
 0x925   : > { %v7091_v2 = vpop.f32.mrf.mxu3  ;;  %v16510_v48 = vadd.f32 %v7424_v3, %v7336_v53  ;;  %v10191_v43 = vunpack.i.h.bf16 %v10189_v27  ;;  %v10190_v31 = vunpack.i.l.bf16 %v10189_v27 }
 0x926   : > { %v7092_v36 = vadd.f32 %v7091_v2, %v7002_v28  ;;  %v7342_v39 = vpop.f32.mrf.mxu0 }
 0x928   : > { %v7165_v33 = vrot.slane %v7092_v36, 4  ;;  %v7431_v11 = vpop.f32.mrf.mxu1  ;;  %v10184_v54 = vpop.permute.xlu0 %10183 }
 0x929   : > { %v10186_v41 = vunpack.i.h.bf16 %v10184_v54  ;;  %v10185_v23 = vunpack.i.l.bf16 %v10184_v54 }
 0x92a   : > { %v7220_v12 = vsel %vm2140_vm4, %v7164_v10, %v7165_v33 }
 0x92b   : > { %v7338_v56 = vadd.f32 %v7337_v0, %v7220_v12  ;;  %v6684_v38 = vsel %vm6661_vm7, %v10185_v23, %v10190_v31  ;;  %v6685_v3 = vsel %vm6661_vm7, %v10186_v41, %v10191_v43  ;;  %v6716_v30 = vsel %vm6661_vm7, %v10190_v31, %v10185_v23 }
 0x92c   : > { %v6717_v40 = vsel %vm6661_vm7, %v10191_v43, %v10186_v41  ;;  %v7004_v59 = vpop.f32.mrf.mxu2  ;;  %v6770_v14 = vmax.f32 %v16201_v50, %v6684_v38  ;;  %v6772_v10 = vmax.f32 %v16231_v16, %v6685_v3  ;;  %v6771_v0 = vmax.f32 %v16188_v1, %v6716_v30  ;;  %v10194_v1 = vpop.permute.xlu2 %10193 }
 0x92d   : > { %v7093_v46 = vpop.f32.mrf.mxu3  ;;  %v6773_v28 = vmax.f32 %v16214_v7, %v6717_v40  ;;  %v16526_v2 = vadd.f32 %v7426_v9, %v7338_v56  ;;  %v10196_v38 = vunpack.i.h.bf16 %v10194_v1  ;;  %v10195_v3 = vunpack.i.l.bf16 %v10194_v1 }
 0x92e   : > { %v7094_v53 = vadd.f32 %v7093_v46, %v7004_v59  ;;  %v16528_v27 = vpack.c.bf16 %v6772_v10, %v6770_v14  ;;  %v7345_v54 = vpop.f32.mrf.mxu0 }
 0x92f   : > { %v16530_v31 = vpack.c.bf16 %v6773_v28, %v6771_v0  ;;  %v9826_v28 = vld [vmem:[%s16982_s5 + $0x138] sm:$0xff] }
 0x930   : > { %v7166_v36 = vrot.slane %v7094_v53, 4  ;;  %v7434_v43 = vpop.f32.mrf.mxu1  ;;  %7628 = vmatpush.bf16.msra.mxu2 %v9826_v28 }
 0x932   : > { %v7219_v12 = vsel %vm2140_vm4, %v7165_v33, %v7166_v36  ;;  %7046 = vmatmul.bf16.gmra.mxu2 %v16528_v27  ;;  %7384 = vmatmul.bf16.gmra.mxu0 %v16528_v27 }
 0x933   : > { %v7341_v50 = vadd.f32 %v7340_v18, %v7219_v12  ;;  %7135 = vmatmul.bf16.gmra.mxu3 %v16530_v31  ;;  %7473 = vmatmul.bf16.gmra.mxu1 %v16530_v31  ;;  %v9834_v12 = vld [vmem:[%s16982_s5 + $0x178] sm:$0xff] }
 0x934   : > { %v10199_v7 = vpop.permute.xlu0 %10198  ;;  %v7007_v41 = vpop.f32.mrf.mxu2  ;;  %7717 = vmatpush.bf16.msra.mxu3 %v9834_v12 }
 0x935   : > { %v10201_v16 = vunpack.i.h.bf16 %v10199_v7  ;;  %v10200_v9 = vunpack.i.l.bf16 %v10199_v7  ;;  %v16538_v23 = vadd.f32 %v7429_v62, %v7341_v50  ;;  %v7096_v56 = vpop.f32.mrf.mxu3 }
 0x936   : > { %v7097_v33 = vadd.f32 %v7096_v56, %v7007_v41  ;;  %v7347_v30 = vpop.f32.mrf.mxu0 }
 0x937   : > { %v6686_v40 = vsel %vm6661_vm7, %v10195_v3, %v10200_v9  ;;  %v6687_v18 = vsel %vm6661_vm7, %v10196_v38, %v10201_v16  ;;  %v6718_v14 = vsel %vm6661_vm7, %v10200_v9, %v10195_v3  ;;  %v6719_v62 = vsel %vm6661_vm7, %v10201_v16, %v10196_v38 }
 0x938   : > { %v7436_v59 = vpop.f32.mrf.mxu1  ;;  %v7167_v46 = vrot.slane %v7097_v33, 4  ;;  %v6774_v53 = vmax.f32 %v16270_v22, %v6686_v40  ;;  %v6776_v0 = vmax.f32 %v16286_v20, %v6687_v18  ;;  %v6775_v16 = vmax.f32 %v16239_v51, %v6718_v14 }
 0x939   : > { %v6777_v9 = vmax.f32 %v16266_v19, %v6719_v62 }
 0x93a   : > { %v7218_v10 = vsel %vm2140_vm4, %v7166_v36, %v7167_v46  ;;  %v16564_v41 = vpack.c.bf16 %v6776_v0, %v6774_v53 }
 0x93b   : > { %v7343_v1 = vadd.f32 %v7342_v39, %v7218_v10  ;;  %v16569_v39 = vpack.c.bf16 %v6777_v9, %v6775_v16 }
 0x93c   : > { %v7009_v50 = vpop.f32.mrf.mxu2 }
 0x93d   : > { %v7098_v7 = vpop.f32.mrf.mxu3  ;;  %v16560_v36 = vadd.f32 %v7431_v11, %v7343_v1  ;;  %v10209_v11 = vpop.permute.xlu2 %10208 }
 0x93e   : > { %v7099_v22 = vadd.f32 %v7098_v7, %v7009_v50  ;;  %v16562_v20 = vpop.f32.mrf.mxu0  ;;  %v10211_v14 = vunpack.i.h.bf16 %v10209_v11  ;;  %v10210_v53 = vunpack.i.l.bf16 %v10209_v11  ;;  %v9832_v11 = vld [vmem:[%s16982_s5 + $0x168] sm:$0xff] }
 0x940   : > { %v7168_v56 = vrot.slane %v7099_v22, 4  ;;  %v16566_v38 = vpop.f32.mrf.mxu1 }
 0x942   : > { %7051 = vmatmul.bf16.gmra.mxu2 %v16564_v41  ;;  %v7217_v51 = vsel %vm2140_vm4, %v7167_v46, %v7168_v56  ;;  %7389 = vmatmul.bf16.gmra.mxu0 %v16564_v41 }
 0x943   : > { %7140 = vmatmul.bf16.gmra.mxu3 %v16569_v39  ;;  %7478 = vmatmul.bf16.gmra.mxu1 %v16569_v39  ;;  %v7346_v19 = vadd.f32 %v7345_v54, %v7217_v51  ;;  %v9825_v54 = vld [vmem:[%s16982_s5 + $0x130] sm:$0xff] }
 0x944   : > { %v7012_v3 = vpop.f32.mrf.mxu2  ;;  %7629 = vmatpush.bf16.msra.mxu2 %v9825_v54 }
 0x945   : > { %v7101_v33 = vpop.f32.mrf.mxu3  ;;  %v16576_v40 = vadd.f32 %v7434_v43, %v7346_v19  ;;  %v9833_v43 = vld [vmem:[%s16982_s5 + $0x170] sm:$0xff] }
 0x946   : > { %v7102_v18 = vadd.f32 %v7101_v33, %v7012_v3  ;;  %v16578_v62 = vpop.f32.mrf.mxu0  ;;  %7718 = vmatpush.bf16.msra.mxu3 %v9833_v43  ;;  %v9822_v43 = vld [vmem:[%s16982_s5 + $0x118] sm:$0xff] }
 0x948   : > { %v10204_v10 = vpop.permute.xlu1 %10203  ;;  %v7169_v0 = vrot.slane %v7102_v18, 4  ;;  %v16580_v46 = vpop.f32.mrf.mxu1 }
 0x949   : > { %v10206_v28 = vunpack.i.h.bf16 %v10204_v10  ;;  %v10205_v12 = vunpack.i.l.bf16 %v10204_v10 }
 0x94a   : > { %v7216_v50 = vsel %vm2140_vm4, %v7168_v56, %v7169_v0  ;;  %v9824_v56 = vld [vmem:[%s16982_s5 + $0x128] sm:$0xff]  ;;  %7719 = vmatpush.bf16.msra.mxu3 %v9832_v11 }
 0x94b   : > { %v6688_v1 = vsel %vm6661_vm7, %v10205_v12, %v10210_v53  ;;  %v6689_v7 = vsel %vm6661_vm7, %v10206_v28, %v10211_v14  ;;  %v6720_v16 = vsel %vm6661_vm7, %v10210_v53, %v10205_v12  ;;  %v7348_v9 = vadd.f32 %v7347_v30, %v7216_v50  ;;  %7630 = vmatpush.bf16.msra.mxu2 %v9824_v56  ;;  %v9830_v50 = vld [vmem:[%s16982_s5 + $0x158] sm:$0xff]  ;;  %v9829_v56 = vld [vmem:[%s16982_s5 + $0x150] sm:$0xff] }
 0x94c   : > { %v6721_v22 = vsel %vm6661_vm7, %v10211_v14, %v10206_v28  ;;  %v6778_v51 = vmax.f32 %v16335_v8, %v6688_v1  ;;  %v6780_v19 = vmax.f32 %v16344_v29, %v6689_v7  ;;  %v7014_v3 = vpop.f32.mrf.mxu2  ;;  %v6779_v33 = vmax.f32 %v16301_v60, %v6720_v16  ;;  %v9823_v60 = vld [vmem:[%s16982_s5 + $0x120] sm:$0xff] }
 0x94d   : > { %v6781_v30 = vmax.f32 %v16324_v35, %v6721_v22  ;;  %v7103_v18 = vpop.f32.mrf.mxu3  ;;  %v16610_v8 = vadd.f32 %v7436_v59, %v7348_v9  ;;  %v9831_v35 = vld [vmem:[%s16982_s5 + $0x160] sm:$0xff] }
 0x94e   : > { %v16608_v14 = vpack.c.bf16 %v6780_v19, %v6778_v51  ;;  %v7104_v29 = vadd.f32 %v7103_v18, %v7014_v3  ;;  %v16612_v10 = vpop.f32.mrf.mxu0  ;;  %7720 = vmatpush.bf16.msra.mxu3 %v9831_v35  ;;  %v9821_v19 = vld [vmem:[%s16982_s5 + $0x110] sm:$0xff] }
 0x94f   : > { %17867 = vst [vmem:[#allocation45_spill] sm:$0xff] %v16610_v8  ;;  %v16614_v53 = vpack.c.bf16 %v6781_v30, %v6779_v33  ;;  %7631 = vmatpush.bf16.msra.mxu2 %v9823_v60 }
 0x950   : > { %v7170_v28 = vrot.slane %v7104_v29, 4  ;;  %v16616_v12 = vpop.f32.mrf.mxu1 }
 0x952   : > { %7056 = vmatmul.bf16.gmra.mxu2 %v16608_v14  ;;  %v16627_v59 = vsel %vm2140_vm4, %v7169_v0, %v7170_v28  ;;  %7394 = vmatmul.bf16.gmra.mxu0 %v16608_v14 }
 0x953   : > { %7145 = vmatmul.bf16.gmra.mxu3 %v16614_v53  ;;  %7483 = vmatmul.bf16.gmra.mxu1 %v16614_v53 }
 0x954   : > { %v7017_v54 = vpop.f32.mrf.mxu2  ;;  %v10219_v1 = vpop.permute.xlu1 %10218  ;;  %7632 = vmatpush.bf16.msra.mxu2 %v9822_v43  ;;  %7721 = vmatpush.bf16.msra.mxu3 %v9830_v50 }
 0x955   : > { %v7106_v0 = vpop.f32.mrf.mxu3  ;;  %v10221_v9 = vunpack.i.h.bf16 %v10219_v1  ;;  %v10220_v11 = vunpack.i.l.bf16 %v10219_v1 }
 0x956   : > { %v7107_v7 = vadd.f32 %v7106_v0, %v7017_v54  ;;  %v16638_v16 = vpop.f32.mrf.mxu0  ;;  %v9820_v54 = vld [vmem:[%s16982_s5 + $0x108] sm:$0xff] }
 0x958   : > { %v16640_v22 = vpop.f32.mrf.mxu1  ;;  %v10214_v51 = vpop.permute.xlu0 %10213  ;;  %v7171_v3 = vrot.slane %v7107_v7, 4  ;;  %7633 = vmatpush.bf16.msra.mxu2 %v9821_v19  ;;  %7722 = vmatpush.bf16.msra.mxu3 %v9829_v56  ;;  %v9828_v7 = vld [vmem:[%s16982_s5 + $0x148] sm:$0xff] }
 0x959   : > { %v10216_v33 = vunpack.i.h.bf16 %v10214_v51  ;;  %v10215_v30 = vunpack.i.l.bf16 %v10214_v51 }
 0x95a   : > { %v16650_v18 = vsel %vm2140_vm4, %v7170_v28, %v7171_v3 }
 0x95b   : > { %v6691_v29 = vsel %vm6661_vm7, %v10216_v33, %v10221_v9  ;;  %v6723_v60 = vsel %vm6661_vm7, %v10221_v9, %v10216_v33  ;;  %v6690_v35 = vsel %vm6661_vm7, %v10215_v30, %v10220_v11  ;;  %v6722_v43 = vsel %vm6661_vm7, %v10220_v11, %v10215_v30 }
 0x95c   : > { %v7019_v50 = vpop.f32.mrf.mxu2  ;;  %v6782_v28 = vmax.f32 %v16370_v63, %v6690_v35  ;;  %v6784_v1 = vmax.f32 %v16400_v44, %v6691_v29  ;;  %v6785_v0 = vmax.f32 %v16381_v17, %v6723_v60  ;;  %v6783_v9 = vmax.f32 %v16357_v24, %v6722_v43  ;;  %7634 = vmatpush.bf16.msra.mxu2 %v9820_v54  ;;  %v9819_v17 = vld [vmem:[%s16982_s5 + $0x100] sm:$0xff]  ;;  %v10224_v29 = vpop.permute.xlu2 %10223 }
 0x95d   : > { %v7108_v51 = vpop.f32.mrf.mxu3  ;;  %7723 = vmatpush.bf16.msra.mxu3 %v9828_v7  ;;  %v9827_v24 = vld [vmem:[%s16982_s5 + $0x140] sm:$0xff] }
 0x95e   : > { %v16670_v19 = vpack.c.bf16 %v6784_v1, %v6782_v28  ;;  %v7109_v33 = vadd.f32 %v7108_v51, %v7019_v50  ;;  %v7360_v11 = vpop.f32.mrf.mxu0  ;;  %v16672_v30 = vpack.c.bf16 %v6785_v0, %v6783_v9  ;;  %v10226_v28 = vunpack.i.h.bf16 %v10224_v29 }
 0x95f   : > { %v10225_v1 = vunpack.i.l.bf16 %v10224_v29 }
 0x960   : > { %v7449_v63 = vpop.f32.mrf.mxu1  ;;  %v7172_v44 = vrot.slane %v7109_v33, 4  ;;  %v10229_v56 = vpop.permute.xlu0 %10228  ;;  %7635 = vmatpush.bf16.msra.mxu2 %v9819_v17 }
 0x961   : > { %v10231_v35 = vunpack.i.h.bf16 %v10229_v56  ;;  %v10230_v54 = vunpack.i.l.bf16 %v10229_v56  ;;  %7724 = vmatpush.bf16.msra.mxu3 %v9827_v24 }
 0x962   : > { %7061 = vmatmul.bf16.gmra.mxu2 %v16670_v19  ;;  %7399 = vmatmul.bf16.gmra.mxu0 %v16670_v19  ;;  %v7213_v60 = vsel %vm2140_vm4, %v7171_v3, %v7172_v44 }
 0x963   : > { %7150 = vmatmul.bf16.gmra.mxu3 %v16672_v30  ;;  %7488 = vmatmul.bf16.gmra.mxu1 %v16672_v30  ;;  %v7356_v50 = vadd.f32 %v16612_v10, %v7213_v60  ;;  %v6692_v3 = vsel %vm6661_vm7, %v10225_v1, %v10230_v54  ;;  %v6693_v33 = vsel %vm6661_vm7, %v10226_v28, %v10231_v35 }
 0x964   : > { %v7022_v43 = vpop.f32.mrf.mxu2  ;;  %v6724_v24 = vsel %vm6661_vm7, %v10230_v54, %v10225_v1  ;;  %v6725_v10 = vsel %vm6661_vm7, %v10231_v35, %v10226_v28  ;;  %v6788_v60 = vmax.f32 %v17854_v32, %v6693_v33 }
 0x965   : > { %v7111_v0 = vpop.f32.mrf.mxu3  ;;  %v16688_v51 = vadd.f32 %v16616_v12, %v7356_v50  ;;  %v6786_v12 = vmax.f32 %v16402_v52, %v6692_v3 }
 0x966   : > { %v7112_v7 = vadd.f32 %v7111_v0, %v7022_v43  ;;  %v7362_v9 = vpop.f32.mrf.mxu0  ;;  %v6787_v0 = vmax.f32 %v16384_v5, %v6724_v24 }
 0x967   : > { %v16708_v28 = vpack.c.bf16 %v6788_v60, %v6786_v12 }
 0x968   : > { %v7451_v17 = vpop.f32.mrf.mxu1  ;;  %v7173_v56 = vrot.slane %v7112_v7, 4  ;;  %v6789_v7 = vmax.f32 %v17859_v55, %v6725_v10 }
 0x96a   : > { %v7212_v29 = vsel %vm2140_vm4, %v7172_v44, %v7173_v56  ;;  %v16711_v52 = vpack.c.bf16 %v6789_v7, %v6787_v0 }
 0x96b   : > { %v7358_v50 = vadd.f32 %v16638_v16, %v7212_v29 }
 0x96c   : > { %v7024_v43 = vpop.f32.mrf.mxu2 }
 0x96d   : > { %v7113_v8 = vpop.f32.mrf.mxu3  ;;  %v16706_v54 = vadd.f32 %v16640_v22, %v7358_v50 }
 0x96e   : > { %v7114_v61 = vadd.f32 %v7113_v8, %v7024_v43  ;;  %v7365_v35 = vpop.f32.mrf.mxu0 }
 0x970   : > { %v7454_v44 = vpop.f32.mrf.mxu1  ;;  %v7174_v1 = vrot.slane %v7114_v61, 4 }
 0x972   : > { %7066 = vmatmul.bf16.gmra.mxu2 %v16708_v28  ;;  %7404 = vmatmul.bf16.gmra.mxu0 %v16708_v28  ;;  %v7211_v5 = vsel %vm2140_vm4, %v7173_v56, %v7174_v1 }
 0x973   : > { %7155 = vmatmul.bf16.gmra.mxu3 %v16711_v52  ;;  %7493 = vmatmul.bf16.gmra.mxu1 %v16711_v52  ;;  %v7361_v55 = vadd.f32 %v7360_v11, %v7211_v5 }
 0x974   : > { %v7027_v32 = vpop.f32.mrf.mxu2 }
 0x975   : > { %v7116_v8 = vpop.f32.mrf.mxu3  ;;  %v16718_v16 = vadd.f32 %v7449_v63, %v7361_v55 }
 0x976   : > { %v7117_v22 = vadd.f32 %v7116_v8, %v7027_v32  ;;  %v7367_v3 = vpop.f32.mrf.mxu0 }
 0x978   : > { %v7456_v33 = vpop.f32.mrf.mxu1  ;;  %v7175_v24 = vrot.slane %v7117_v22, 4 }
 0x97a   : > { %v7210_v10 = vsel %vm2140_vm4, %v7174_v1, %v7175_v24 }
 0x97b   : > { %v7363_v12 = vadd.f32 %v7362_v9, %v7210_v10 }
 0x97c   : > { %v7029_v29 = vpop.f32.mrf.mxu2 }
 0x97d   : > { %v7118_v60 = vpop.f32.mrf.mxu3  ;;  %v16722_v56 = vadd.f32 %v7451_v17, %v7363_v12 }
 0x97e   : > { %v7119_v43 = vadd.f32 %v7118_v60, %v7029_v29 }
 0x97f   : > { %v7370_v50 = vpop.f32.mrf.mxu0 }
 0x980   : > { %v7459_v0 = vpop.f32.mrf.mxu1  ;;  %v7176_v7 = vrot.slane %v7119_v43, 4 }
 0x982   : > { %7636 = vmatmul.bf16.vlgmr.msra.gmra.mxu2 %v16028_v49  ;;  %v7209_v11 = vsel %vm2140_vm4, %v7175_v24, %v7176_v7 }
 0x983   : > { %7725 = vmatmul.bf16.vlgmr.msra.gmra.mxu3 %v16034_v25  ;;  %v7366_v61 = vadd.f32 %v7365_v35, %v7209_v11 }
 0x985   : > { %v7032_v63 = vpop.f32.mrf.mxu2  ;;  %v16728_v1 = vadd.f32 %v7454_v44, %v7366_v61 }
 0x986   : > { %v7121_v5 = vpop.f32.mrf.mxu3 }
 0x987   : > { %v7122_v9 = vadd.f32 %v7121_v5, %v7032_v63  ;;  %v7372_v32 = vpop.f32.mrf.mxu0 }
 0x988   : > { %v7461_v17 = vpop.f32.mrf.mxu1 }
 0x989   : > { %v7177_v55 = vrot.slane %v7122_v9, 4 }
 0x98b   : > { %v7208_v8 = vsel %vm2140_vm4, %v7176_v7, %v7177_v55 }
 0x98c   : > { %v7368_v10 = vadd.f32 %v7367_v3, %v7208_v8 }
 0x98d   : > { %v7034_v22 = vpop.f32.mrf.mxu2 }
 0x98e   : > { %v7123_v49 = vpop.f32.mrf.mxu3  ;;  %v16732_v29 = vadd.f32 %v7456_v33, %v7368_v10 }
 0x98f   : > { %v7124_v24 = vadd.f32 %v7123_v49, %v7034_v22  ;;  %v7375_v12 = vpop.f32.mrf.mxu0 }
 0x990   : > { %v7464_v25 = vpop.f32.mrf.mxu1 }
 0x991   : > { %v7178_v60 = vrot.slane %v7124_v24, 4 }
 0x992   : > { %7641 = vmatmul.bf16.gmra.mxu2 %v16103_v45 }
 0x993   : > { %v7207_v35 = vsel %vm2140_vm4, %v7177_v55, %v7178_v60  ;;  %7730 = vmatmul.bf16.gmra.mxu3 %v16107_v6 }
 0x994   : > { %v7371_v43 = vadd.f32 %v7370_v50, %v7207_v35 }
 0x995   : > { %v7037_v44 = vpop.f32.mrf.mxu2 }
 0x996   : > { %v7126_v11 = vpop.f32.mrf.mxu3  ;;  %v16738_v7 = vadd.f32 %v7459_v0, %v7371_v43 }
 0x997   : > { %v7127_v3 = vadd.f32 %v7126_v11, %v7037_v44  ;;  %v7377_v63 = vpop.f32.mrf.mxu0 }
 0x998   : > { %v7466_v33 = vpop.f32.mrf.mxu1 }
 0x999   : > { %v7179_v61 = vrot.slane %v7127_v3, 4 }
 0x99b   : > { %v7206_v5 = vsel %vm2140_vm4, %v7178_v60, %v7179_v61 }
 0x99c   : > { %v7373_v8 = vadd.f32 %v7372_v32, %v7206_v5 }
 0x99d   : > { %v7039_v9 = vpop.f32.mrf.mxu2 }
 0x99e   : > { %v7128_v45 = vpop.f32.mrf.mxu3  ;;  %v16742_v22 = vadd.f32 %v7461_v17, %v7373_v8 }
 0x99f   : > { %v7129_v55 = vadd.f32 %v7128_v45, %v7039_v9  ;;  %v7380_v10 = vpop.f32.mrf.mxu0 }
 0x9a0   : > { %v7469_v6 = vpop.f32.mrf.mxu1 }
 0x9a1   : > { %v7180_v49 = vrot.slane %v7129_v55, 4 }
 0x9a2   : > { %7646 = vmatmul.bf16.gmra.mxu2 %v16157_v4 }
 0x9a3   : > { %v7205_v50 = vsel %vm2140_vm4, %v7179_v61, %v7180_v49  ;;  %7735 = vmatmul.bf16.gmra.mxu3 %v16159_v26 }
 0x9a4   : > { %v7376_v24 = vadd.f32 %v7375_v12, %v7205_v50 }
 0x9a5   : > { %v7042_v0 = vpop.f32.mrf.mxu2 }
 0x9a6   : > { %v7131_v35 = vpop.f32.mrf.mxu3  ;;  %v16748_v60 = vadd.f32 %v7464_v25, %v7376_v24 }
 0x9a7   : > { %v7132_v32 = vadd.f32 %v7131_v35, %v7042_v0  ;;  %v7382_v44 = vpop.f32.mrf.mxu0 }
 0x9a8   : > { %v7471_v17 = vpop.f32.mrf.mxu1 }
 0x9a9   : > { %v7181_v43 = vrot.slane %v7132_v32, 4 }
 0x9ab   : > { %v7204_v11 = vsel %vm2140_vm4, %v7180_v49, %v7181_v43 }
 0x9ac   : > { %v7378_v5 = vadd.f32 %v7377_v63, %v7204_v11 }
 0x9ad   : > { %v7044_v3 = vpop.f32.mrf.mxu2 }
 0x9ae   : > { %v7133_v4 = vpop.f32.mrf.mxu3  ;;  %v16752_v9 = vadd.f32 %v7466_v33, %v7378_v5 }
 0x9af   : > { %v7134_v61 = vadd.f32 %v7133_v4, %v7044_v3  ;;  %v7385_v8 = vpop.f32.mrf.mxu0 }
 0x9b0   : > { %v7474_v26 = vpop.f32.mrf.mxu1 }
 0x9b1   : > { %v7182_v45 = vrot.slane %v7134_v61, 4  ;;  %v17870_v61 = vld [vmem:[#allocation24_spill] sm:$0xff] }
 0x9b2   : > { %7651 = vmatmul.bf16.gmra.mxu2 %v16219_v58 }
 0x9b3   : > { %v7203_v12 = vsel %vm2140_vm4, %v7181_v43, %v7182_v45  ;;  %7740 = vmatmul.bf16.gmra.mxu3 %v16222_v21 }
 0x9b4   : > { %v7381_v55 = vadd.f32 %v7380_v10, %v7203_v12  ;;  %v17869_v10 = vld [vmem:[#allocation23_spill] sm:$0xff] }
 0x9b5   : > { %v7047_v25 = vpop.f32.mrf.mxu2 }
 0x9b6   : > { %v7136_v50 = vpop.f32.mrf.mxu3  ;;  %v16758_v49 = vadd.f32 %v7469_v6, %v7381_v55 }
 0x9b7   : > { %v7137_v63 = vadd.f32 %v7136_v50, %v7047_v25  ;;  %v7387_v0 = vpop.f32.mrf.mxu0 }
 0x9b8   : > { %v7476_v33 = vpop.f32.mrf.mxu1 }
 0x9b9   : > { %v7183_v24 = vrot.slane %v7137_v63, 4 }
 0x9bb   : > { %v7202_v35 = vsel %vm2140_vm4, %v7182_v45, %v7183_v24 }
 0x9bc   : > { %v7383_v11 = vadd.f32 %v7382_v44, %v7202_v35 }
 0x9bd   : > { %v7049_v32 = vpop.f32.mrf.mxu2 }
 0x9be   : > { %v7138_v58 = vpop.f32.mrf.mxu3  ;;  %v16762_v3 = vadd.f32 %v7471_v17, %v7383_v11 }
 0x9bf   : > { %v7139_v43 = vadd.f32 %v7138_v58, %v7049_v32  ;;  %v7390_v5 = vpop.f32.mrf.mxu0 }
 0x9c0   : > { %17868 = vst [vmem:[#allocation55_spill] sm:$0xff] %v16762_v3  ;;  %v7479_v21 = vpop.f32.mrf.mxu1  ;;  %v17872_v3 = vld [vmem:[#allocation19_spill] sm:$0xff] }
 0x9c1   : > { %v7184_v4 = vrot.slane %v7139_v43, 4 }
 0x9c2   : > { %7656 = vmatmul.bf16.gmra.mxu2 %v17869_v10 }
 0x9c3   : > { %v7201_v6 = vsel %vm2140_vm4, %v7183_v24, %v7184_v4  ;;  %7745 = vmatmul.bf16.gmra.mxu3 %v17870_v61 }
 0x9c4   : > { %v7386_v25 = vadd.f32 %v7385_v8, %v7201_v6  ;;  %v17873_v6 = vld [vmem:[#allocation57_spill] sm:$0xff] }
 0x9c5   : > { %v7052_v12 = vpop.f32.mrf.mxu2 }
 0x9c6   : > { %v7141_v55 = vpop.f32.mrf.mxu3  ;;  %v16768_v45 = vadd.f32 %v7474_v26, %v7386_v25 }
 0x9c7   : > { %v7142_v44 = vadd.f32 %v7141_v55, %v7052_v12  ;;  %v7392_v50 = vpop.f32.mrf.mxu0 }
 0x9c8   : > { %v7481_v63 = vpop.f32.mrf.mxu1 }
 0x9c9   : > { %v7185_v17 = vrot.slane %v7142_v44, 4 }
 0x9cb   : > { %v7200_v35 = vsel %vm2140_vm4, %v7184_v4, %v7185_v17 }
 0x9cc   : > { %v7388_v11 = vadd.f32 %v7387_v0, %v7200_v35 }
 0x9cd   : > { %v7054_v32 = vpop.f32.mrf.mxu2 }
 0x9ce   : > { %v7143_v58 = vpop.f32.mrf.mxu3  ;;  %v16772_v43 = vadd.f32 %v7476_v33, %v7388_v11 }
 0x9cf   : > { %v7144_v24 = vadd.f32 %v7143_v58, %v7054_v32  ;;  %v7395_v61 = vpop.f32.mrf.mxu0 }
 0x9d0   : > { %17871 = vst [vmem:[#allocation61_spill] sm:$0xff] %v16772_v43  ;;  %v7484_v26 = vpop.f32.mrf.mxu1 }
 0x9d1   : > { %v7186_v10 = vrot.slane %v7144_v24, 4 }
 0x9d2   : > { %7661 = vmatmul.bf16.gmra.mxu2 %v17872_v3 }
 0x9d3   : > { %v7199_v8 = vsel %vm2140_vm4, %v7185_v17, %v7186_v10  ;;  %7750 = vmatmul.bf16.gmra.mxu3 %v17873_v6 }
 0x9d4   : > { %v7391_v25 = vadd.f32 %v7390_v5, %v7199_v8 }
 0x9d5   : > { %v7057_v12 = vpop.f32.mrf.mxu2 }
 0x9d6   : > { %v7146_v55 = vpop.f32.mrf.mxu3  ;;  %v16778_v4 = vadd.f32 %v7479_v21, %v7391_v25 }
 0x9d7   : > { %v7147_v0 = vadd.f32 %v7146_v55, %v7057_v12  ;;  %v7397_v35 = vpop.f32.mrf.mxu0 }
 0x9d8   : > { %v7486_v3 = vpop.f32.mrf.mxu1 }
 0x9d9   : > { %v7187_v44 = vrot.slane %v7147_v0, 4 }
 0x9db   : > { %v7198_v33 = vsel %vm2140_vm4, %v7186_v10, %v7187_v44 }
 0x9dc   : > { %v7393_v11 = vadd.f32 %v7392_v50, %v7198_v33 }
 0x9dd   : > { %v7059_v32 = vpop.f32.mrf.mxu2 }
 0x9de   : > { %v7148_v58 = vpop.f32.mrf.mxu3  ;;  %v16782_v24 = vadd.f32 %v7481_v63, %v7393_v11 }
 0x9df   : > { %v7149_v17 = vadd.f32 %v7148_v58, %v7059_v32  ;;  %v7400_v6 = vpop.f32.mrf.mxu0 }
 0x9e0   : > { %v7489_v50 = vpop.f32.mrf.mxu1 }
 0x9e1   : > { %v7188_v43 = vrot.slane %v7149_v17, 4 }
 0x9e2   : > { %7666 = vmatmul.bf16.gmra.mxu2 %v16388_v47 }
 0x9e3   : > { %v7197_v5 = vsel %vm2140_vm4, %v7187_v44, %v7188_v43  ;;  %7755 = vmatmul.bf16.gmra.mxu3 %v16392_v34 }
 0x9e4   : > { %v7396_v8 = vadd.f32 %v7395_v61, %v7197_v5 }
 0x9e5   : > { %v7062_v21 = vpop.f32.mrf.mxu2 }
 0x9e6   : > { %v7151_v10 = vpop.f32.mrf.mxu3  ;;  %v16788_v12 = vadd.f32 %v7484_v26, %v7396_v8  ;;  %v17874_v26 = vld [vmem:[#allocation25_spill] sm:$0xff] }
 0x9e7   : > { %v7152_v25 = vadd.f32 %v7151_v10, %v7062_v21  ;;  %v7402_v44 = vpop.f32.mrf.mxu0 }
 0x9e8   : > { %v7491_v34 = vpop.f32.mrf.mxu1 }
 0x9e9   : > { %v7189_v55 = vrot.slane %v7152_v25, 4 }
 0x9eb   : > { %v7196_v63 = vsel %vm2140_vm4, %v7188_v43, %v7189_v55 }
 0x9ec   : > { %v7398_v33 = vadd.f32 %v7397_v35, %v7196_v63 }
 0x9ed   : > { %v7064_v0 = vpop.f32.mrf.mxu2 }
 0x9ee   : > { %v7153_v47 = vpop.f32.mrf.mxu3  ;;  %v16792_v32 = vadd.f32 %v7486_v3, %v7398_v33 }
 0x9ef   : > { %v7154_v11 = vadd.f32 %v7153_v47, %v7064_v0  ;;  %v7405_v8 = vpop.f32.mrf.mxu0 }
 0x9f0   : > { %v7494_v10 = vpop.f32.mrf.mxu1 }
 0x9f1   : > { %v7190_v58 = vrot.slane %v7154_v11, 4  ;;  %v17875_v11 = vld [vmem:[#allocation53_spill] sm:$0xff] }
 0x9f2   : > { %7671 = vmatmul.bf16.gmra.mxu2 %v16426_v37 }
 0x9f3   : > { %v7195_v61 = vsel %vm2140_vm4, %v7189_v55, %v7190_v58  ;;  %7760 = vmatmul.bf16.gmra.mxu3 %v17874_v26 }
 0x9f4   : > { %v7401_v5 = vadd.f32 %v7400_v6, %v7195_v61  ;;  %v17876_v61 = vld [vmem:[#allocation60_spill] sm:$0xff] }
 0x9f5   : > { %v7067_v17 = vpop.f32.mrf.mxu2  ;;  %v17877_v26 = vrot.slane %v17876_v61, 4 }
 0x9f6   : > { %v7156_v21 = vpop.f32.mrf.mxu3  ;;  %v16798_v43 = vadd.f32 %v7489_v50, %v7401_v5  ;;  %v17878_v5 = vld [vmem:[#allocation58_spill] sm:$0xff] }
 0x9f7   : > { %v7157_v35 = vadd.f32 %v7156_v21, %v7067_v17  ;;  %v7407_v6 = vpop.f32.mrf.mxu0 }
 0x9f9   : > { %v7191_v3 = vrot.slane %v7157_v35, 4 }
 0x9fb   : > { %v7194_v25 = vsel %vm2140_vm4, %v7190_v58, %v7191_v3 }
 0x9fc   : > { %v7403_v0 = vadd.f32 %v7402_v44, %v7194_v25 }
 0x9fd   : > { %v7069_v63 = vpop.f32.mrf.mxu2 }
 0x9fe   : > { %v7158_v37 = vpop.f32.mrf.mxu3  ;;  %v16802_v33 = vadd.f32 %v7491_v34, %v7403_v0  ;;  %v7496_v34 = vpop.f32.mrf.mxu1 }
 0x9ff   : > { %v7159_v55 = vadd.f32 %v7158_v37, %v7069_v63 }
 0xa01   : > { %v7192_v47 = vrot.slane %v7159_v55, 4 }
 0xa02   : > { %7676 = vmatmul.bf16.gmra.mxu2 %v17875_v11 }
 0xa03   : > { %v7193_v50 = vsel %vm2140_vm4, %v7191_v3, %v7192_v47  ;;  %v7224_v17 = vsel %vm2140_vm4, %v7192_v47, %v17877_v26  ;;  %7765 = vmatmul.bf16.gmra.mxu3 %v17878_v5  ;;  %v16817_v3 = vld [vmem:[%s16983_s6] ss:$0 sm:$0xff] }
 0xa04   : > { %v7408_v44 = vadd.f32 %v7407_v6, %v7224_v17  ;;  %v7406_v21 = vadd.f32 %v7405_v8, %v7193_v50  ;;  %v17879_v8 = vld [vmem:[#allocation26_spill] sm:$0xff]  ;;  %v17881_v50 = vld [vmem:[#allocation44_spill] sm:$0xff] }
 0xa05   : > { %v7637_v58 = vpop.f32.mrf.mxu2 }
 0xa06   : > { %v7497_v35 = vadd.f32 %v7496_v34, %v7408_v44  ;;  %v7726_v25 = vpop.f32.mrf.mxu3  ;;  %v16812_v63 = vadd.f32 %v7494_v10, %v7406_v21  ;;  %v17880_v10 = vld [vmem:[#allocation54_spill] sm:$0xff] }
 0xa07   : > { %v7727_v0 = vadd.f32 %v7726_v25, %v7637_v58 }
 0xa09   : > { %v7837_v37 = vadd.f32 %v7727_v0, %v7497_v35 }
 0xa0b   : > { %v7873_v13 = vadd.f32 %v16817_v3, %v7837_v37 }
 0xa0d   : > { %v7639_v55 = vpop.f32.mrf.mxu2  ;;  %v7905_v47 = vmax.f32 %v7873_v13, 0.0 }
 0xa0e   : > { %v7728_v11 = vpop.f32.mrf.mxu3 }
 0xa0f   : > { %v7729_v61 = vadd.f32 %v7728_v11, %v7639_v55  ;;  %7928 = vmatpush.msrb.mxu1 %v7905_v47  ;;  %7971 = vmatpush.msrb.mxu3 %v7905_v47 }
 0xa11   : > { %v16821_v6 = vadd.f32 %v7729_v61, %v17879_v8 }
 0xa12   : > { %7681 = vmatmul.bf16.gmra.mxu2 %v17880_v10 }
 0xa13   : > { %7770 = vmatmul.bf16.gmra.mxu3 %v17881_v50 }
 0xa15   : > { %v7642_v26 = vpop.f32.mrf.mxu2 }
 0xa16   : > { %v7731_v17 = vpop.f32.mrf.mxu3 }
 0xa17   : > { %v7732_v5 = vadd.f32 %v7731_v17, %v7642_v26 }
 0xa19   : > { %v16826_v58 = vadd.f32 %v7732_v5, %v16500_v42 }
 0xa1d   : > { %v7644_v44 = vpop.f32.mrf.mxu2 }
 0xa1e   : > { %v7733_v21 = vpop.f32.mrf.mxu3 }
 0xa1f   : > { %v7734_v34 = vadd.f32 %v7733_v21, %v7644_v44 }
 0xa21   : > { %v16829_v35 = vadd.f32 %v7734_v34, %v16510_v48 }
 0xa22   : > { %7686 = vmatmul.bf16.gmra.mxu2 %v16498_v15 }
 0xa23   : > { %7775 = vmatmul.bf16.gmra.mxu3 %v16502_v57 }
 0xa25   : > { %v7647_v25 = vpop.f32.mrf.mxu2 }
 0xa26   : > { %v7736_v0 = vpop.f32.mrf.mxu3 }
 0xa27   : > { %v7737_v37 = vadd.f32 %v7736_v0, %v7647_v25 }
 0xa29   : > { %v16834_v13 = vadd.f32 %v7737_v37, %v16526_v2 }
 0xa2d   : > { %v7649_v55 = vpop.f32.mrf.mxu2 }
 0xa2e   : > { %v7738_v47 = vpop.f32.mrf.mxu3 }
 0xa2f   : > { %v7739_v42 = vadd.f32 %v7738_v47, %v7649_v55 }
 0xa31   : > { %v16837_v11 = vadd.f32 %v7739_v42, %v16538_v23 }
 0xa32   : > { %7691 = vmatmul.bf16.gmra.mxu2 %v16528_v27 }
 0xa33   : > { %7780 = vmatmul.bf16.gmra.mxu3 %v16530_v31 }
 0xa35   : > { %v7652_v48 = vpop.f32.mrf.mxu2 }
 0xa36   : > { %v7741_v15 = vpop.f32.mrf.mxu3 }
 0xa37   : > { %v7742_v61 = vadd.f32 %v7741_v15, %v7652_v48 }
 0xa39   : > { %v16842_v57 = vadd.f32 %v7742_v61, %v16560_v36 }
 0xa3d   : > { %v7654_v8 = vpop.f32.mrf.mxu2 }
 0xa3e   : > { %v7743_v10 = vpop.f32.mrf.mxu3 }
 0xa3f   : > { %v7744_v2 = vadd.f32 %v7743_v10, %v7654_v8 }
 0xa41   : > { %v16845_v50 = vadd.f32 %v7744_v2, %v16576_v40 }
 0xa42   : > { %7696 = vmatmul.bf16.gmra.mxu2 %v16564_v41 }
 0xa43   : > { %7785 = vmatmul.bf16.gmra.mxu3 %v16569_v39 }
 0xa45   : > { %v7657_v23 = vpop.f32.mrf.mxu2 }
 0xa46   : > { %v7746_v27 = vpop.f32.mrf.mxu3 }
 0xa4d   : > { %v7659_v26 = vpop.f32.mrf.mxu2 }
 0xa4e   : > { %v7748_v31 = vpop.f32.mrf.mxu3 }
 0xa52   : > { %7701 = vmatmul.bf16.gmra.mxu2 %v16608_v14 }
 0xa53   : > { %7790 = vmatmul.bf16.gmra.mxu3 %v16614_v53 }
 0xa55   : > { %v7662_v36 = vpop.f32.mrf.mxu2 }
 0xa56   : > { %v7751_v17 = vpop.f32.mrf.mxu3 }
 0xa5d   : > { %v7664_v5 = vpop.f32.mrf.mxu2 }
 0xa5e   : > { %v7753_v44 = vpop.f32.mrf.mxu3 }
 0xa62   : > { %7706 = vmatmul.bf16.gmra.mxu2 %v16670_v19 }
 0xa63   : > { %7795 = vmatmul.bf16.gmra.mxu3 %v16672_v30 }
 0xa65   : > { %v7667_v40 = vpop.f32.mrf.mxu2 }
 0xa66   : > { %v7756_v41 = vpop.f32.mrf.mxu3 }
 0xa67   : > { %v7757_v48 = vadd.f32 %v7756_v41, %v7667_v40  ;;  %v7749_v41 = vadd.f32 %v7748_v31, %v7659_v26 }
 0xa69   : > { %v7817_v40 = vadd.f32 %v7757_v48, %v16706_v54 }
 0xa6d   : > { %v7669_v21 = vpop.f32.mrf.mxu2 }
 0xa6e   : > { %v7758_v39 = vpop.f32.mrf.mxu3 }
 0xa6f   : > { %v7759_v42 = vadd.f32 %v7758_v39, %v7669_v21  ;;  %v7351_v21 = vadd.f32 %v16562_v20, %v16627_v59  ;;  %v7752_v39 = vadd.f32 %v7751_v17, %v7662_v36  ;;  %v7747_v20 = vadd.f32 %v7746_v27, %v7657_v23 }
 0xa71   : > { %v7818_v8 = vadd.f32 %v7759_v42, %v16718_v16  ;;  %v7440_v59 = vadd.f32 %v16566_v38, %v7351_v21  ;;  %v7844_v21 = vadd.f32 %v16817_v3, %v16829_v35 }
 0xa72   : > { %7711 = vmatmul.bf16.gmra.mxu2 %v16708_v28  ;;  %v7353_v28 = vadd.f32 %v16578_v62, %v16650_v18 }
 0xa73   : > { %7800 = vmatmul.bf16.gmra.mxu3 %v16711_v52  ;;  %v7754_v52 = vadd.f32 %v7753_v44, %v7664_v5  ;;  %v7814_v31 = vadd.f32 %v7749_v41, %v7440_v59 }
 0xa74   : > { %v7442_v62 = vadd.f32 %v16580_v46, %v7353_v28  ;;  %v7853_v46 = vadd.f32 %v16817_v3, %v7817_v40 }
 0xa75   : > { %v7672_v34 = vpop.f32.mrf.mxu2  ;;  %v7816_v16 = vadd.f32 %v7754_v52, %v16688_v51 }
 0xa76   : > { %v7761_v14 = vpop.f32.mrf.mxu3  ;;  %v7815_v36 = vadd.f32 %v7752_v39, %v7442_v62  ;;  %v7885_v38 = vmax.f32 %v7853_v46, 0.0 }
 0xa77   : > { %v7762_v55 = vadd.f32 %v7761_v14, %v7672_v34  ;;  %v7854_v34 = vadd.f32 %v16817_v3, %v7818_v8  ;;  %v7852_v17 = vadd.f32 %v16817_v3, %v7816_v16  ;;  %v7846_v8 = vadd.f32 %v16817_v3, %v16837_v11 }
 0xa79   : > { %v7819_v15 = vadd.f32 %v7762_v55, %v16722_v56  ;;  %v7886_v51 = vmax.f32 %v7854_v34, 0.0  ;;  %v17883_v34 = vld [vmem:[#allocation55_spill] sm:$0xff] }
 0xa7d   : > { %v7674_v25 = vpop.f32.mrf.mxu2 }
 0xa7e   : > { %v7763_v53 = vpop.f32.mrf.mxu3 }
 0xa7f   : > { %v7764_v0 = vadd.f32 %v7763_v53, %v7674_v25  ;;  %v17882_v25 = vld [vmem:[#allocation45_spill] sm:$0xff] }
 0xa80   : > { %v7813_v23 = vadd.f32 %v7747_v20, %v17882_v25 }
 0xa81   : > { %v7820_v19 = vadd.f32 %v7764_v0, %v16728_v1  ;;  %v7884_v0 = vmax.f32 %v7852_v17, 0.0  ;;  %v17884_v17 = vld [vmem:[#allocation61_spill] sm:$0xff] }
 0xa82   : > { %v7849_v42 = vadd.f32 %v16817_v3, %v7813_v23 }
 0xa83   : > { %v7856_v2 = vadd.f32 %v16817_v3, %v7820_v19 }
 0xa85   : > { %v7677_v37 = vpop.f32.mrf.mxu2  ;;  %v7888_v44 = vmax.f32 %v7856_v2, 0.0  ;;  %v7845_v2 = vadd.f32 %v16817_v3, %v16834_v13  ;;  %v7842_v13 = vadd.f32 %v16817_v3, %v16821_v6 }
 0xa86   : > { %v7766_v47 = vpop.f32.mrf.mxu3 }
 0xa87   : > { %v7767_v30 = vadd.f32 %v7766_v47, %v7677_v37  ;;  %v7850_v37 = vadd.f32 %v16817_v3, %v7814_v31  ;;  %v7877_v39 = vmax.f32 %v7845_v2, 0.0  ;;  %v7874_v41 = vmax.f32 %v7842_v13, 0.0 }
 0xa89   : > { %v7821_v61 = vadd.f32 %v7767_v30, %v16732_v29  ;;  %v7855_v29 = vadd.f32 %v16817_v3, %v7819_v15  ;;  %v7882_v19 = vmax.f32 %v7850_v37, 0.0  ;;  %v7848_v30 = vadd.f32 %v16817_v3, %v16845_v50 }
 0xa8a   : > { %v7881_v15 = vmax.f32 %v7849_v42, 0.0 }
 0xa8b   : > { %v7857_v10 = vadd.f32 %v16817_v3, %v7821_v61  ;;  %v7887_v26 = vmax.f32 %v7855_v29, 0.0  ;;  %v7847_v61 = vadd.f32 %v16817_v3, %v16842_v57  ;;  %v7880_v52 = vmax.f32 %v7848_v30, 0.0 }
 0xa8c   : > { %v7878_v57 = vmax.f32 %v7846_v8, 0.0 }
 0xa8d   : > { %v7679_v1 = vpop.f32.mrf.mxu2  ;;  %v7889_v56 = vmax.f32 %v7857_v10, 0.0  ;;  %v7879_v50 = vmax.f32 %v7847_v61, 0.0 }
 0xa8e   : > { %v7768_v18 = vpop.f32.mrf.mxu3 }
 0xa8f   : > { %v7769_v5 = vadd.f32 %v7768_v18, %v7679_v1  ;;  %7908 = vmatpush.msrb.mxu0 %v7889_v56  ;;  %7951 = vmatpush.msrb.mxu2 %v7889_v56  ;;  %v7876_v56 = vmax.f32 %v7844_v21, 0.0 }
 0xa91   : > { %v16872_v54 = vadd.f32 %v7769_v5, %v16738_v7  ;;  %7909 = vmatpush.msrb.mxu0 %v7888_v44  ;;  %7952 = vmatpush.msrb.mxu2 %v7888_v44  ;;  %v7851_v7 = vadd.f32 %v16817_v3, %v7815_v36 }
 0xa93   : > { %7910 = vmatpush.msrb.mxu0 %v7887_v26  ;;  %7953 = vmatpush.msrb.mxu2 %v7887_v26  ;;  %v7883_v47 = vmax.f32 %v7851_v7, 0.0 }
 0xa95   : > { %v7682_v14 = vpop.f32.mrf.mxu2  ;;  %7911 = vmatpush.msrb.mxu0 %v7886_v51  ;;  %7954 = vmatpush.msrb.mxu2 %v7886_v51 }
 0xa96   : > { %v7771_v27 = vpop.f32.mrf.mxu3 }
 0xa97   : > { %v7772_v53 = vadd.f32 %v7771_v27, %v7682_v14  ;;  %7912 = vmatpush.msrb.mxu0 %v7885_v38  ;;  %7955 = vmatpush.msrb.mxu2 %v7885_v38 }
 0xa99   : > { %v16880_v55 = vadd.f32 %v7772_v53, %v16742_v22  ;;  %7913 = vmatpush.msrb.mxu0 %v7884_v0  ;;  %7956 = vmatpush.msrb.mxu2 %v7884_v0 }
 0xa9b   : > { %7914 = vmatpush.msrb.mxu0 %v7883_v47  ;;  %7957 = vmatpush.msrb.mxu2 %v7883_v47 }
 0xa9d   : > { %v7684_v48 = vpop.f32.mrf.mxu2  ;;  %7915 = vmatpush.msrb.mxu0 %v7882_v19  ;;  %7958 = vmatpush.msrb.mxu2 %v7882_v19 }
 0xa9e   : > { %v7773_v22 = vpop.f32.mrf.mxu3 }
 0xa9f   : > { %v7774_v28 = vadd.f32 %v7773_v22, %v7684_v48  ;;  %7916 = vmatpush.msrb.mxu0 %v7881_v15  ;;  %7959 = vmatpush.msrb.mxu2 %v7881_v15 }
 0xaa1   : > { %v16890_v10 = vadd.f32 %v7774_v28, %v16748_v60  ;;  %7917 = vmatpush.msrb.mxu0 %v7880_v52  ;;  %7960 = vmatpush.msrb.mxu2 %v7880_v52  ;;  %v7843_v60 = vadd.f32 %v16817_v3, %v16826_v58 }
 0xaa3   : > { %7918 = vmatpush.msrb.mxu0 %v7879_v50  ;;  %7961 = vmatpush.msrb.mxu2 %v7879_v50  ;;  %v7875_v35 = vmax.f32 %v7843_v60, 0.0  ;;  %v7949_v60 = vld [vmem:[#allocation7 + $0x10] sm:$0xff] }
 0xaa5   : > { %v7687_v1 = vpop.f32.mrf.mxu2  ;;  %7919 = vmatpush.msrb.mxu0 %v7878_v57  ;;  %7962 = vmatpush.msrb.mxu2 %v7878_v57 }
 0xaa6   : > { %v7776_v11 = vpop.f32.mrf.mxu3 }
 0xaa7   : > { %v7777_v40 = vadd.f32 %v7776_v11, %v7687_v1  ;;  %7920 = vmatpush.msrb.mxu0 %v7877_v39  ;;  %7963 = vmatpush.msrb.mxu2 %v7877_v39  ;;  %v7906_v39 = vld [vmem:[#allocation7] sm:$0xff]  ;;  %v8021_v11 = vld [vmem:[#allocation5 + $0xf0] sm:$0xff] }
 0xaa9   : > { %v16901_v29 = vadd.f32 %v7777_v40, %v16752_v9  ;;  %7921 = vmatpush.msrb.mxu0 %v7876_v56  ;;  %7964 = vmatpush.msrb.mxu2 %v7876_v56 }
 0xaab   : > { %7922 = vmatpush.msrb.mxu0 %v7875_v35  ;;  %7965 = vmatpush.msrb.mxu2 %v7875_v35 }
 0xaad   : > { %v7689_v62 = vpop.f32.mrf.mxu2  ;;  %7923 = vmatpush.msrb.mxu0 %v7874_v41  ;;  %7966 = vmatpush.msrb.mxu2 %v7874_v41  ;;  %v8017_v41 = vld [vmem:[#allocation5 + $0xd0] sm:$0xff] }
 0xaae   : > { %v7778_v58 = vpop.f32.mrf.mxu3  ;;  %7924 = vmatmul.f32.vlgmr.msrb.gmra.mxu0 %v7906_v39  ;;  %7967 = vmatmul.f32.vlgmr.msrb.gmra.mxu2 %v7949_v60  ;;  %v8055_v39 = vld [vmem:[#allocation5 + $0x1f8] sm:$0xff] }
 0xaaf   : > { %v7779_v18 = vadd.f32 %v7778_v58, %v7689_v62  ;;  %8096 = vmatpush.msra.mxu2 %v8021_v11  ;;  %v8018_v60 = vld [vmem:[#allocation5 + $0xd8] sm:$0xff] }
 0xab0   : > { %v8051_v11 = vld [vmem:[#allocation5 + $0x1d8] sm:$0xff] }
 0xab1   : > { %v16904_v16 = vadd.f32 %v7779_v18, %v16758_v49  ;;  %v8054_v18 = vld [vmem:[#allocation5 + $0x1f0] sm:$0xff] }
 0xab2   : > { %8056 = vmatpush.msra.mxu0 %v8054_v18  ;;  %v8004_v18 = vld [vmem:[#allocation5 + $0x68] sm:$0xff] }
 0xab5   : > { %v7692_v5 = vpop.f32.mrf.mxu2 }
 0xab6   : > { %v7781_v44 = vpop.f32.mrf.mxu3 }
 0xab7   : > { %v7782_v6 = vadd.f32 %v7781_v44, %v7692_v5  ;;  %v8015_v5 = vld [vmem:[#allocation5 + $0xc0] sm:$0xff] }
 0xab9   : > { %v16907_v9 = vadd.f32 %v7782_v6, %v17883_v34  ;;  %v8052_v6 = vld [vmem:[#allocation5 + $0x1e0] sm:$0xff]  ;;  %v8013_v34 = vld [vmem:[#allocation5 + $0xb0] sm:$0xff] }
 0xaba   : > { %8057 = vmatpush.msra.mxu0 %v8052_v6  ;;  %v8000_v6 = vld [vmem:[#allocation5 + $0x48] sm:$0xff] }
 0xabd   : > { %v7694_v20 = vpop.f32.mrf.mxu2 }
 0xabe   : > { %v7783_v59 = vpop.f32.mrf.mxu3 }
 0xabf   : > { %v7784_v36 = vadd.f32 %v7783_v59, %v7694_v20  ;;  %v8050_v59 = vld [vmem:[#allocation5 + $0x1d0] sm:$0xff] }
 0xac0   : > { %8058 = vmatpush.msra.mxu0 %v8050_v59  ;;  %v8033_v59 = vld [vmem:[#allocation5 + $0x148] sm:$0xff] }
 0xac1   : > { %v16910_v26 = vadd.f32 %v7784_v36, %v16768_v45  ;;  %v8011_v36 = vld [vmem:[#allocation5 + $0xa0] sm:$0xff] }
 0xac5   : > { %v7697_v46 = vpop.f32.mrf.mxu2 }
 0xac6   : > { %v7786_v31 = vpop.f32.mrf.mxu3 }
 0xac7   : > { %v7787_v51 = vadd.f32 %v7786_v31, %v7697_v46 }
 0xac9   : > { %v16913_v14 = vadd.f32 %v7787_v51, %v17884_v17  ;;  %v8048_v51 = vld [vmem:[#allocation5 + $0x1c0] sm:$0xff]  ;;  %v8009_v17 = vld [vmem:[#allocation5 + $0x90] sm:$0xff] }
 0xaca   : > { %8059 = vmatpush.msra.mxu0 %v8048_v51  ;;  %v8031_v51 = vld [vmem:[#allocation5 + $0x138] sm:$0xff] }
 0xacb   : > { %v7865_v31 = vadd.f32 %v16817_v3, %v16913_v14  ;;  %v7863_v14 = vadd.f32 %v16817_v3, %v16907_v9  ;;  %v7861_v9 = vadd.f32 %v16817_v3, %v16901_v29  ;;  %v7859_v29 = vadd.f32 %v16817_v3, %v16880_v55 }
 0xacd   : > { %v7699_v49 = vpop.f32.mrf.mxu2 }
 0xace   : > { %v7788_v25 = vpop.f32.mrf.mxu3 }
 0xacf   : > { %v7789_v40 = vadd.f32 %v7788_v25, %v7699_v49  ;;  %v7864_v25 = vadd.f32 %v16817_v3, %v16910_v26  ;;  %v7862_v26 = vadd.f32 %v16817_v3, %v16904_v16  ;;  %v7860_v16 = vadd.f32 %v16817_v3, %v16890_v10 }
 0xad0   : > { %v7858_v10 = vadd.f32 %v16817_v3, %v16872_v54  ;;  %v8053_v54 = vld [vmem:[#allocation5 + $0x1e8] sm:$0xff] }
 0xad1   : > { %v7830_v62 = vadd.f32 %v7789_v40, %v16778_v4  ;;  %v8016_v40 = vld [vmem:[#allocation5 + $0xc8] sm:$0xff] }
 0xad2   : > { %v7890_v55 = vmax.f32 %v7858_v10, 0.0 }
 0xad3   : > { %v7866_v20 = vadd.f32 %v16817_v3, %v7830_v62  ;;  %v8041_v62 = vld [vmem:[#allocation5 + $0x188] sm:$0xff] }
 0xad5   : > { %v7702_v23 = vpop.f32.mrf.mxu2  ;;  %v7898_v49 = vmax.f32 %v7866_v20, 0.0  ;;  %v8032_v20 = vld [vmem:[#allocation5 + $0x140] sm:$0xff] }
 0xad6   : > { %v7791_v38 = vpop.f32.mrf.mxu3 }
 0xad7   : > { %v7792_v2 = vadd.f32 %v7791_v38, %v7702_v23  ;;  %v8046_v23 = vld [vmem:[#allocation5 + $0x1b0] sm:$0xff]  ;;  %v8007_v38 = vld [vmem:[#allocation5 + $0x80] sm:$0xff] }
 0xad8   : > { %8060 = vmatpush.msra.mxu0 %v8046_v23  ;;  %v8029_v23 = vld [vmem:[#allocation5 + $0x128] sm:$0xff] }
 0xadd   : > { %v7704_v7 = vpop.f32.mrf.mxu2 }
 0xade   : > { %v7793_v27 = vpop.f32.mrf.mxu3 }
 0xadf   : > { %v7794_v52 = vadd.f32 %v7793_v27, %v7704_v7  ;;  %v7897_v7 = vmax.f32 %v7865_v31, 0.0  ;;  %v8044_v27 = vld [vmem:[#allocation5 + $0x1a0] sm:$0xff]  ;;  %v8030_v31 = vld [vmem:[#allocation5 + $0x130] sm:$0xff] }
 0xae0   : > { %8061 = vmatpush.msra.mxu0 %v8044_v27  ;;  %v8025_v27 = vld [vmem:[#allocation5 + $0x108] sm:$0xff] }
 0xae5   : > { %v7707_v53 = vpop.f32.mrf.mxu2 }
 0xae6   : > { %v7796_v0 = vpop.f32.mrf.mxu3 }
 0xae7   : > { %v7797_v61 = vadd.f32 %v7796_v0, %v7707_v53  ;;  %v8005_v53 = vld [vmem:[#allocation5 + $0x70] sm:$0xff]  ;;  %v7896_v0 = vmax.f32 %v7864_v25, 0.0  ;;  %v8028_v25 = vld [vmem:[#allocation5 + $0x120] sm:$0xff] }
 0xae9   : > { %v7833_v57 = vadd.f32 %v7797_v61, %v16792_v32  ;;  %v7893_v61 = vmax.f32 %v7861_v9, 0.0 }
 0xaeb   : > { %v7869_v35 = vadd.f32 %v16817_v3, %v7833_v57  ;;  %v7907_v57 = vld [vmem:[#allocation7 + $0x8] sm:$0xff] }
 0xaed   : > { %v7709_v37 = vpop.f32.mrf.mxu2 }
 0xaee   : > { %v7798_v47 = vpop.f32.mrf.mxu3 }
 0xaef   : > { %v7799_v48 = vadd.f32 %v7798_v47, %v7709_v37  ;;  %v8042_v37 = vld [vmem:[#allocation5 + $0x190] sm:$0xff]  ;;  %v8003_v47 = vld [vmem:[#allocation5 + $0x60] sm:$0xff] }
 0xaf0   : > { %8062 = vmatpush.msra.mxu0 %v8042_v37 }
 0xaf1   : > { %v7834_v8 = vadd.f32 %v7799_v48, %v16798_v43  ;;  %v8019_v43 = vld [vmem:[#allocation5 + $0xe0] sm:$0xff]  ;;  %v8038_v48 = vld [vmem:[#allocation5 + $0x170] sm:$0xff] }
 0xaf2   : > { %8097 = vmatpush.msra.mxu2 %v8019_v43  ;;  %v8012_v43 = vld [vmem:[#allocation5 + $0xa8] sm:$0xff] }
 0xaf3   : > { %v7870_v13 = vadd.f32 %v16817_v3, %v7834_v8  ;;  %v8034_v8 = vld [vmem:[#allocation5 + $0x150] sm:$0xff] }
 0xaf4   : > { %8098 = vmatpush.msra.mxu2 %v8017_v41  ;;  %v8008_v41 = vld [vmem:[#allocation5 + $0x88] sm:$0xff] }
 0xaf5   : > { %v7712_v42 = vpop.f32.mrf.mxu2 }
 0xaf6   : > { %v7801_v19 = vpop.f32.mrf.mxu3  ;;  %8099 = vmatpush.msra.mxu2 %v8015_v5  ;;  %v8037_v5 = vld [vmem:[#allocation5 + $0x168] sm:$0xff] }
 0xaf7   : > { %v7802_v45 = vadd.f32 %v7801_v19, %v7712_v42  ;;  %v7895_v42 = vmax.f32 %v7863_v14, 0.0  ;;  %v8040_v19 = vld [vmem:[#allocation5 + $0x180] sm:$0xff] }
 0xaf8   : > { %8100 = vmatpush.msra.mxu2 %v8013_v34  ;;  %8063 = vmatpush.msra.mxu0 %v8040_v19  ;;  %v7998_v34 = vld [vmem:[#allocation5 + $0x38] sm:$0xff]  ;;  %v8024_v14 = vld [vmem:[#allocation5 + $0x100] sm:$0xff] }
 0xaf9   : > { %v7835_v22 = vadd.f32 %v7802_v45, %v16802_v33  ;;  %v7832_v33 = vadd.f32 %v7794_v52, %v16788_v12  ;;  %v7902_v12 = vmax.f32 %v7870_v13, 0.0  ;;  %v8001_v45 = vld [vmem:[#allocation5 + $0x50] sm:$0xff]  ;;  %v7892_v52 = vmax.f32 %v7860_v16, 0.0  ;;  %v8047_v13 = vld [vmem:[#allocation5 + $0x1b8] sm:$0xff] }
 0xafa   : > { %8101 = vmatpush.msra.mxu2 %v8011_v36  ;;  %8064 = vmatpush.msra.mxu0 %v8038_v48  ;;  %v7993_v36 = vld [vmem:[#allocation5 + $0x10] sm:$0xff] }
 0xafb   : > { %v7871_v1 = vadd.f32 %v16817_v3, %v7835_v22  ;;  %v7868_v58 = vadd.f32 %v16817_v3, %v7832_v33  ;;  %v8036_v22 = vld [vmem:[#allocation5 + $0x160] sm:$0xff]  ;;  %v8049_v33 = vld [vmem:[#allocation5 + $0x1c8] sm:$0xff] }
 0xafc   : > { %8102 = vmatpush.msra.mxu2 %v8009_v17  ;;  %8065 = vmatpush.msra.mxu0 %v8036_v22  ;;  %v7991_v17 = vld [vmem:[#allocation5] sm:$0xff] }
 0xafd   : > { %v7714_v30 = vpop.f32.mrf.mxu2  ;;  %v7903_v32 = vmax.f32 %v7871_v1, 0.0  ;;  %v7900_v4 = vmax.f32 %v7868_v58, 0.0  ;;  %v8022_v1 = vld [vmem:[#allocation5 + $0xf8] sm:$0xff] }
 0xafe   : > { %v7803_v15 = vpop.f32.mrf.mxu3  ;;  %8103 = vmatpush.msra.mxu2 %v8007_v38  ;;  %8066 = vmatpush.msra.mxu0 %v8034_v8  ;;  %v8039_v58 = vld [vmem:[#allocation5 + $0x178] sm:$0xff]  ;;  %v8026_v38 = vld [vmem:[#allocation5 + $0x110] sm:$0xff] }
 0xaff   : > { %v7804_v28 = vadd.f32 %v7803_v15, %v7714_v30  ;;  %v7894_v30 = vmax.f32 %v7862_v26, 0.0  ;;  %v7999_v15 = vld [vmem:[#allocation5 + $0x40] sm:$0xff] }
 0xb00   : > { %8104 = vmatpush.msra.mxu2 %v8005_v53  ;;  %8067 = vmatpush.msra.mxu0 %v8032_v20 }
 0xb01   : > { %v7836_v50 = vadd.f32 %v7804_v28, %v16812_v63  ;;  %v7831_v63 = vadd.f32 %v7792_v2, %v16782_v24  ;;  %v7901_v24 = vmax.f32 %v7869_v35, 0.0  ;;  %v7997_v28 = vld [vmem:[#allocation5 + $0x30] sm:$0xff]  ;;  %v7891_v2 = vmax.f32 %v7859_v29, 0.0  ;;  %v8043_v35 = vld [vmem:[#allocation5 + $0x198] sm:$0xff] }
 0xb02   : > { %8105 = vmatpush.msra.mxu2 %v8003_v47  ;;  %8068 = vmatpush.msra.mxu0 %v8030_v31 }
 0xb03   : > { %v7872_v21 = vadd.f32 %v16817_v3, %v7836_v50  ;;  %v7867_v44 = vadd.f32 %v16817_v3, %v7831_v63  ;;  %v7995_v50 = vld [vmem:[#allocation5 + $0x20] sm:$0xff]  ;;  %v8020_v3 = vld [vmem:[#allocation5 + $0xe8] sm:$0xff] }
 0xb04   : > { %8106 = vmatpush.msra.mxu2 %v8001_v45  ;;  %v8045_v63 = vld [vmem:[#allocation5 + $0x1a8] sm:$0xff]  ;;  %8069 = vmatpush.msra.mxu0 %v8028_v25 }
 0xb05   : > { %v7904_v56 = vmax.f32 %v7872_v21, 0.0  ;;  %v7899_v46 = vmax.f32 %v7867_v44, 0.0  ;;  %v7950_v21 = vld [vmem:[#allocation7 + $0x18] sm:$0xff] }
 0xb06   : > { %8107 = vmatpush.msra.mxu2 %v7999_v15  ;;  %v8035_v44 = vld [vmem:[#allocation5 + $0x158] sm:$0xff]  ;;  %8070 = vmatpush.msra.mxu0 %v8026_v38 }
 0xb07   : > { %7929 = vmatpush.msrb.mxu1 %v7904_v56  ;;  %7972 = vmatpush.msrb.mxu3 %v7904_v56  ;;  %v8014_v56 = vld [vmem:[#allocation5 + $0xb8] sm:$0xff] }
 0xb08   : > { %8108 = vmatpush.msra.mxu2 %v7997_v28  ;;  %8071 = vmatpush.msra.mxu0 %v8024_v14 }
 0xb09   : > { %7930 = vmatpush.msrb.mxu1 %v7903_v32  ;;  %7973 = vmatpush.msrb.mxu3 %v7903_v32  ;;  %v8010_v32 = vld [vmem:[#allocation5 + $0x98] sm:$0xff] }
 0xb0a   : > { %8109 = vmatpush.msra.mxu2 %v7995_v50 }
 0xb0b   : > { %7931 = vmatpush.msrb.mxu1 %v7902_v12  ;;  %7974 = vmatpush.msrb.mxu3 %v7902_v12  ;;  %v8006_v12 = vld [vmem:[#allocation5 + $0x78] sm:$0xff] }
 0xb0c   : > { %8110 = vmatpush.msra.mxu2 %v7993_v36 }
 0xb0d   : > { %7932 = vmatpush.msrb.mxu1 %v7901_v24  ;;  %7975 = vmatpush.msrb.mxu3 %v7901_v24  ;;  %v8002_v24 = vld [vmem:[#allocation5 + $0x58] sm:$0xff] }
 0xb0e   : > { %8111 = vmatpush.msra.mxu2 %v7991_v17 }
 0xb0f   : > { %7933 = vmatpush.msrb.mxu1 %v7900_v4  ;;  %7976 = vmatpush.msrb.mxu3 %v7900_v4  ;;  %v7996_v4 = vld [vmem:[#allocation5 + $0x28] sm:$0xff] }
 0xb11   : > { %7934 = vmatpush.msrb.mxu1 %v7899_v46  ;;  %7977 = vmatpush.msrb.mxu3 %v7899_v46  ;;  %v7994_v46 = vld [vmem:[#allocation5 + $0x18] sm:$0xff] }
 0xb13   : > { %7935 = vmatpush.msrb.mxu1 %v7898_v49  ;;  %7978 = vmatpush.msrb.mxu3 %v7898_v49  ;;  %v7992_v49 = vld [vmem:[#allocation5 + $0x8] sm:$0xff] }
 0xb15   : > { %7936 = vmatpush.msrb.mxu1 %v7897_v7  ;;  %7979 = vmatpush.msrb.mxu3 %v7897_v7  ;;  %v8027_v7 = vld [vmem:[#allocation5 + $0x118] sm:$0xff] }
 0xb17   : > { %7937 = vmatpush.msrb.mxu1 %v7896_v0  ;;  %7980 = vmatpush.msrb.mxu3 %v7896_v0 }
 0xb19   : > { %7938 = vmatpush.msrb.mxu1 %v7895_v42  ;;  %7981 = vmatpush.msrb.mxu3 %v7895_v42 }
 0xb1b   : > { %7939 = vmatpush.msrb.mxu1 %v7894_v30  ;;  %7982 = vmatpush.msrb.mxu3 %v7894_v30 }
 0xb1d   : > { %7940 = vmatpush.msrb.mxu1 %v7893_v61  ;;  %7983 = vmatpush.msrb.mxu3 %v7893_v61 }
 0xb1f   : > { %7941 = vmatpush.msrb.mxu1 %v7892_v52  ;;  %7984 = vmatpush.msrb.mxu3 %v7892_v52 }
 0xb21   : > { %7942 = vmatpush.msrb.mxu1 %v7891_v2  ;;  %7985 = vmatpush.msrb.mxu3 %v7891_v2 }
 0xb23   : > { %7943 = vmatpush.msrb.mxu1 %v7890_v55  ;;  %7986 = vmatpush.msrb.mxu3 %v7890_v55 }
 0xb24   : > { %7944 = vmatmul.f32.vlgmr.msrb.gmra.mxu1 %v7907_v57  ;;  %7987 = vmatmul.f32.vlgmr.msrb.gmra.mxu3 %v7950_v21 }
 0xb25   : > { %8116 = vmatpush.msra.mxu3 %v8022_v1  ;;  %8076 = vmatpush.msra.mxu1 %v8055_v39 }
 0xb27   : > { %8117 = vmatpush.msra.mxu3 %v8020_v3  ;;  %8077 = vmatpush.msra.mxu1 %v8053_v54 }
 0xb29   : > { %8118 = vmatpush.msra.mxu3 %v8018_v60  ;;  %8078 = vmatpush.msra.mxu1 %v8051_v11 }
 0xb2b   : > { %8119 = vmatpush.msra.mxu3 %v8016_v40  ;;  %8079 = vmatpush.msra.mxu1 %v8049_v33  ;;  %v7925_v53 = vpop.f32.mrf.mxu0 }
 0xb2d   : > { %8120 = vmatpush.msra.mxu3 %v8014_v56  ;;  %8080 = vmatpush.msra.mxu1 %v8047_v13 }
 0xb2f   : > { %8121 = vmatpush.msra.mxu3 %v8012_v43  ;;  %8081 = vmatpush.msra.mxu1 %v8045_v63 }
 0xb31   : > { %8122 = vmatpush.msra.mxu3 %v8010_v32  ;;  %8082 = vmatpush.msra.mxu1 %v8043_v35  ;;  %v7968_v37 = vpop.f32.mrf.mxu2 }
 0xb33   : > { %8123 = vmatpush.msra.mxu3 %v8008_v41  ;;  %8083 = vmatpush.msra.mxu1 %v8041_v62 }
 0xb35   : > { %8124 = vmatpush.msra.mxu3 %v8006_v12  ;;  %8084 = vmatpush.msra.mxu1 %v8039_v58 }
 0xb37   : > { %8125 = vmatpush.msra.mxu3 %v8004_v18  ;;  %8085 = vmatpush.msra.mxu1 %v8037_v5 }
 0xb39   : > { %8126 = vmatpush.msra.mxu3 %v8002_v24  ;;  %8086 = vmatpush.msra.mxu1 %v8035_v44 }
 0xb3b   : > { %8127 = vmatpush.msra.mxu3 %v8000_v6  ;;  %8087 = vmatpush.msra.mxu1 %v8033_v59 }
 0xb3d   : > { %8128 = vmatpush.msra.mxu3 %v7998_v34  ;;  %8088 = vmatpush.msra.mxu1 %v8031_v51 }
 0xb3f   : > { %8129 = vmatpush.msra.mxu3 %v7996_v4  ;;  %8089 = vmatpush.msra.mxu1 %v8029_v23 }
 0xb41   : > { %8130 = vmatpush.msra.mxu3 %v7994_v46  ;;  %8090 = vmatpush.msra.mxu1 %v8027_v7 }
 0xb43   : > { %8131 = vmatpush.msra.mxu3 %v7992_v49  ;;  %8091 = vmatpush.msra.mxu1 %v8025_v27 }
 0xba1   : > { %v7945_v0 = vpop.f32.mrf.mxu1 }
 0xba2   : > { %v7946_v26 = vadd.f32 %v7945_v0, %v7925_v53 }
 0xba4   : > { %8112 = vmatmul.f32.vlgmr.msra.gmra.mxu2 %v7946_v26  ;;  %8132 = vmatmul.f32.vlgmr.msra.gmra.mxu3 %v7946_v26 }
 0xba7   : > { %v7988_v47 = vpop.f32.mrf.mxu3 }
 0xba8   : > { %v7989_v42 = vadd.f32 %v7988_v47, %v7968_v37 }
 0xbaa   : > { %8072 = vmatmul.f32.vlgmr.msra.gmra.mxu0 %v7989_v42  ;;  %8092 = vmatmul.f32.vlgmr.msra.gmra.mxu1 %v7989_v42 }
 0xc27   : > { %v8073_v9 = vpop.f32.mrf.mxu0  ;;  %v8093_v19 = vpop.f32.mrf.mxu1 }
 0xc28   : > { %v8113_v45 = vpop.f32.mrf.mxu2  ;;  %v8133_v30 = vpop.f32.mrf.mxu3 }
 0xc29   : > { %v8114_v16 = vadd.f32 %v8113_v45, %v8073_v9  ;;  %v8134_v48 = vadd.f32 %v8133_v30, %v8093_v19 }
 0xc2b   : > { %8136 = vst [vmem:[%s376_s21] sm:$0xff] %v8114_v16 }
 0xc2c   : > { %8137 = vst [vmem:[%s376_s21 + $0x8] sm:$0xff] %v8134_v48 }
 0xc2d   : > { %10366 = shalt.err (!%p10363_p8)
}
 0xc2e   : > { %9848 = dma.vmem_to_hbm [thread:$0]  (%p10508_p5), %s8153_s7, 256, %s8155_s27, %s8139_s1  }
 0xc2f PF: > { %p9870_p9 = scmp.ge.s32.totalorder %s10409_s12, 2  ;;  %s8166_s17 = sand.u32 1, %s10397_s30  }
 0xc30   : > { %s8167_s22 = scalar_lea.sflag [#allocation4], %s8166_s17 }
 0xc31   : > { %p9861_p10 = pnand %p9870_p9, %p10512_p6 }
 0xc33   : > { %p9862_p11 = pneg %p9861_p10 }
 0xc35   : > { %10392 = dma.done.wait (%p9862_p11), %s8167_s22, 256  }
 0xc36   : > { %10394 = vsyncadd (%p9862_p11), %s8167_s22, 4294967040  ;;  %s17885_s23 = sld [smem:[#allocation12_spill]]  ;;  %p21_p12 = scmp.ge.s32.totalorder %s10495_s15, 4  }
 0xc37   : > { %s17886_s11 = sld [smem:[#allocation13_spill]]  ;;  %s17887_s30 = smov %s10401_s10 }
 0xc38   : > { %s17889_s12 = smov %s10495_s15  ;;  %23 = sbr.rel (!%p21_p12) target bundleno = 8 (0x8), region = 116 }
 0xc3c   : > { %s17888_s10 = smov %s17885_s23 }
 0xc3d   :  { %8173 = vsyncpa [#allocation3], 1 }
 0xc3e   :  { %8175 = vsyncpa [#allocation3 + $0x1], 1 }
 0xc3f   :  { %8176 = vsyncpa [#allocation6], 1 }
 0xc40   :  { %8177 = vsyncpa [#allocation4], 1 }
 0xc41   :  { %8179 = vsyncpa [#allocation4 + $0x1], 1 }

</bundles_post_ra>
